<compile_context>
chip_gen: v5e
topology: v5e:2x2
jax: 0.10.0
libtpu: 0.0.40
codegen_flags: <defaults>
</compile_context>

<pallas_src>
import numpy as np

import jax
import jax.numpy as jnp
from jax import lax
from jax.experimental import pallas as pl
from jax.experimental.pallas import tpu as pltpu


# ------------------------------ Pallas kernel -------------------------------

def _dqn_kernel(x_ref, w1_ref, b1_ref, w2_ref, b2_ref, ws_ref, bs_ref,
                wv1_ref, bv1_ref, wv2_ref, bv2_ref,
                wa1_ref, ba1_ref, wa2_ref, ba2_ref,
                q_ref, sp1_ref):
    """Fused DQN forward for one batch tile.

    x_ref : (TB, V+2, (V+2)*Cin)  zero-padded NHWC obs, rows=(n, h_pad), lanes=(w_pad, c)
    w1_ref: (3, (V+2)*Cin, V*32)  banded conv1 weights (one slab per dy)
    w2_ref: (3, (V-1)*32, (V/2)*64) banded conv2 weights (reads W-pooled slab)
    ws_ref: (V/4, (V/2-1)*64, hidden) fc_shared split per pooled row ph2
    sp1_ref: VMEM scratch, H-padded pooled-conv1 slab.
    """
    TB = x_ref.shape[0]
    V = x_ref.shape[1] - 2                  # spatial size (16)
    C1 = b1_ref.shape[1] // V               # 32
    C2 = b2_ref.shape[1] // (V // 2)        # 64
    L1 = (V - 1) * C1                       # W-pooled conv1 lane width (480)
    L2 = (V // 2 - 1) * C2                  # W-pooled conv2 lane width (448)

    # ---- conv1 (3 banded matmuls) + bias + ReLU: rows (n, h), lanes (w, c1) --
    def tap1(dy):
        return x_ref[:, dy:dy + V, :].reshape(TB * V, x_ref.shape[2])

    z1 = jnp.dot(tap1(0), w1_ref[0], preferred_element_type=jnp.float32)
    z1 = z1 + jnp.dot(tap1(1), w1_ref[1], preferred_element_type=jnp.float32)
    z1 = z1 + jnp.dot(tap1(2), w1_ref[2], preferred_element_type=jnp.float32)
    z1 = jnp.maximum(z1 + b1_ref[...], 0.0)

    # ---- pool1 over W: max of adjacent w lane-blocks (valid at even blocks) --
    z1 = jnp.maximum(z1[:, :L1], z1[:, C1:])

    # ---- stash into H-padded scratch; pool1 over H folds into conv2 taps -----
    sp1_ref[...] = jnp.zeros(sp1_ref.shape, sp1_ref.dtype)
    sp1_ref[:, 2:2 + V, :] = z1.reshape(TB, V, L1)

    # ---- conv2 (3 banded matmuls) + bias + ReLU ------------------------------
    def tap2(dy):
        a = sp1_ref[:, 2 * dy:2 * dy + V, :]
        b = sp1_ref[:, 2 * dy + 1:2 * dy + 1 + V, :]
        return jnp.maximum(a, b).reshape(TB * V, L1)   # H-pool of pooled1 row

    z2 = jnp.dot(tap2(0), w2_ref[0], preferred_element_type=jnp.float32)
    z2 = z2 + jnp.dot(tap2(1), w2_ref[1], preferred_element_type=jnp.float32)
    z2 = z2 + jnp.dot(tap2(2), w2_ref[2], preferred_element_type=jnp.float32)
    z2 = jnp.maximum(z2 + b2_ref[...], 0.0)

    # ---- pool2 over W, then over H folded into the fc_shared reads -----------
    z2 = jnp.maximum(z2[:, :L2], z2[:, C2:])
    z2 = z2.reshape(TB, V, L2)
    hs = None
    for ph in range(V // 4):
        row = jnp.maximum(z2[:, 4 * ph, :], z2[:, 4 * ph + 2, :])   # (TB, L2)
        part = jnp.dot(row, ws_ref[ph], preferred_element_type=jnp.float32)
        hs = part if hs is None else hs + part
    hs = jnp.maximum(hs + bs_ref[...], 0.0)

    # ---- dueling heads -------------------------------------------------------
    v = jnp.maximum(jnp.dot(hs, wv1_ref[...], preferred_element_type=jnp.float32)
                    + bv1_ref[...], 0.0)
    v = jnp.dot(v, wv2_ref[...], preferred_element_type=jnp.float32) + bv2_ref[...]
    a = jnp.maximum(jnp.dot(hs, wa1_ref[...], preferred_element_type=jnp.float32)
                    + ba1_ref[...], 0.0)
    a = jnp.dot(a, wa2_ref[...], preferred_element_type=jnp.float32) + ba2_ref[...]
    q_ref[...] = v + (a - jnp.mean(a, axis=1, keepdims=True))


# --------------------------- weight repacking (once) -------------------------

def pack_params(params, view):
    """Repack PyTorch-style params into banded/permuted matrices (one-time)."""
    V = int(view)
    assert V % 4 == 0, "local_view_size must be divisible by 4"
    V2, V4 = V // 2, V // 4

    w1 = params["w1"].astype(jnp.float32)          # (3, 3, Cin, 32) HWIO
    w2 = params["w2"].astype(jnp.float32)          # (3, 3, 32, 64)
    C1, C2 = w1.shape[-1], w2.shape[-1]

    # conv1: W1big[dy][(w_pad*Cin + c), (w*C1 + o)] = w1[dy, w_pad - w] (band).
    e = [np.eye(V + 2, V, k=-dx, dtype=np.float32) for dx in range(3)]
    w1big = jnp.stack([
        sum(jnp.kron(jnp.asarray(e[dx]), w1[dy, dx]) for dx in range(3))
        for dy in range(3)])                       # (3, (V+2)*Cin, V*C1)

    # conv2 reads the W-pooled conv1 slab: valid data sits at even w blocks.
    f = []
    for dx in range(3):
        m = np.zeros((V - 1, V2), np.float32)
        for wc in range(V2):
            pw = wc + dx - 1
            if 0 <= pw < V2:
                m[2 * pw, wc] = 1.0
        f.append(m)
    w2big = jnp.stack([
        sum(jnp.kron(jnp.asarray(f[dx]), w2[dy, dx]) for dx in range(3))
        for dy in range(3)])                       # (3, (V-1)*C1, V2*C2)

    # fc_shared: fold the PyTorch (C, H, W) flatten order in; one (L2, hidden)
    # matmul per pooled output row ph2, reading the W-pooled conv2 slab.
    ws = params["ws"].astype(jnp.float32)          # (C2*V4*V4, hidden)
    hidden = ws.shape[1]
    ws_r = ws.reshape(C2, V4, V4, hidden)          # (c2, ph2, pw2, k)
    s = np.zeros((V4, V2 - 1), np.float32)
    for pw2 in range(V4):
        s[pw2, 2 * pw2] = 1.0
    wsbig = jnp.einsum("pw,chpk->hwck", jnp.asarray(s), ws_r)
    wsbig = wsbig.reshape(V4, (V2 - 1) * C2, hidden)

    def row(b):
        return jnp.asarray(b, jnp.float32).reshape(1, -1)

    return dict(
        w1big=w1big, b1big=row(jnp.tile(params["b1"], V)),
        w2big=w2big, b2big=row(jnp.tile(params["b2"], V2)),
        wsbig=wsbig, bs=row(params["bs"]),
        wv1=params["wv1"].astype(jnp.float32), bv1=row(params["bv1"]),
        wv2=params["wv2"].astype(jnp.float32), bv2=row(params["bv2"]),
        wa1=params["wa1"].astype(jnp.float32), ba1=row(params["ba1"]),
        wa2=params["wa2"].astype(jnp.float32), ba2=row(params["ba2"]),
    )


# ------------------------------- JAX wrapper ---------------------------------

def _batch_tile(n):
    if n <= 8:
        return n
    for tb in (32, 16, 8):
        if n % tb == 0:
            return tb
    return n


def dqn_forward(obs_nchw, packed):
    N, Cin, V, _ = obs_nchw.shape
    A = packed["wa2"].shape[1]
    C1 = packed["w1big"].shape[2] // V
    L1 = (V - 1) * C1

    x = jnp.transpose(obs_nchw, (0, 2, 3, 1)).astype(jnp.float32)   # NCHW->NHWC
    xp = jnp.pad(x, ((0, 0), (1, 1), (1, 1), (0, 0)))
    xp = xp.reshape(N, V + 2, (V + 2) * Cin)

    TB = _batch_tile(N)
    grid = (N // TB,)

    def whole(shape):
        zeros = (0,) * len(shape)
        return pl.BlockSpec(shape, lambda i, z=zeros: z)

    in_specs = [
        pl.BlockSpec((TB, V + 2, (V + 2) * Cin), lambda i: (i, 0, 0)),
        whole(packed["w1big"].shape), whole(packed["b1big"].shape),
        whole(packed["w2big"].shape), whole(packed["b2big"].shape),
        whole(packed["wsbig"].shape), whole(packed["bs"].shape),
        whole(packed["wv1"].shape), whole(packed["bv1"].shape),
        whole(packed["wv2"].shape), whole(packed["bv2"].shape),
        whole(packed["wa1"].shape), whole(packed["ba1"].shape),
        whole(packed["wa2"].shape), whole(packed["ba2"].shape),
    ]

    return pl.pallas_call(
        _dqn_kernel,
        out_shape=jax.ShapeDtypeStruct((N, A), jnp.float32),
        grid_spec=pltpu.PrefetchScalarGridSpec(
            num_scalar_prefetch=0,
            grid=grid,
            in_specs=in_specs,
            out_specs=pl.BlockSpec((TB, A), lambda i: (i, 0)),
            scratch_shapes=[pltpu.VMEM((TB, V + 8, L1), jnp.float32)],
        ),
        compiler_params=pltpu.CompilerParams(
            dimension_semantics=("parallel",),
            vmem_limit_bytes=32 * 1024 * 1024,
        ),
    )(xp, packed["w1big"], packed["b1big"], packed["w2big"], packed["b2big"],
      packed["wsbig"], packed["bs"],
      packed["wv1"], packed["bv1"], packed["wv2"], packed["bv2"],
      packed["wa1"], packed["ba1"], packed["wa2"], packed["ba2"])


# --------------------------- params / pure-JAX reference ---------------------

def init_params(key, in_ch, action_size, view, hidden):
    ks = jax.random.split(key, 14)

    def init(k, shape, fan_in):
        return jax.random.normal(k, shape, jnp.float32) / jnp.sqrt(fan_in)

    conv_out = 64 * (view // 4) * (view // 4)
    return dict(
        w1=init(ks[0], (3, 3, in_ch, 32), 9 * in_ch),
        b1=init(ks[1], (32,), 9 * in_ch),
        w2=init(ks[2], (3, 3, 32, 64), 9 * 32),
        b2=init(ks[3], (64,), 9 * 32),
        ws=init(ks[4], (conv_out, hidden), conv_out),
        bs=init(ks[5], (hidden,), conv_out),
        wv1=init(ks[6], (hidden, hidden // 2), hidden),
        bv1=init(ks[7], (hidden // 2,), hidden),
        wv2=init(ks[8], (hidden // 2, 1), hidden // 2),
        bv2=init(ks[9], (1,), hidden // 2),
        wa1=init(ks[10], (hidden, hidden // 2), hidden),
        ba1=init(ks[11], (hidden // 2,), hidden),
        wa2=init(ks[12], (hidden // 2, action_size), hidden // 2),
        ba2=init(ks[13], (action_size,), hidden // 2),
    )


def dqn_reference(obs_nchw, params):
    """Pure-JAX reference of the PyTorch forward (for correctness check)."""
    x = jnp.transpose(obs_nchw, (0, 2, 3, 1)).astype(jnp.float32)

    def conv_block(x, w, b):
        y = lax.conv_general_dilated(x, w, (1, 1), ((1, 1), (1, 1)),
                                     dimension_numbers=("NHWC", "HWIO", "NHWC"))
        y = jnp.maximum(y + b, 0.0)
        return lax.reduce_window(y, -jnp.inf, lax.max,
                                 (1, 2, 2, 1), (1, 2, 2, 1), "VALID")

    x = conv_block(x, params["w1"], params["b1"])
    x = conv_block(x, params["w2"], params["b2"])
    N = x.shape[0]
    flat = jnp.transpose(x, (0, 3, 1, 2)).reshape(N, -1)   # (C, H, W) order
    h = jnp.maximum(flat @ params["ws"] + params["bs"], 0.0)
    v = jnp.maximum(h @ params["wv1"] + params["bv1"], 0.0) @ params["wv2"] + params["bv2"]
    a = jnp.maximum(h @ params["wa1"] + params["ba1"], 0.0) @ params["wa2"] + params["ba2"]
    return v + (a - a.mean(axis=1, keepdims=True))


# ----------------------------------- main ------------------------------------

if __name__ == "__main__":
    input_channels, local_view_size, action_size, hidden_size = 4, 16, 6, 32

    key = jax.random.PRNGKey(0)
    pkey, xkey = jax.random.split(key)
    params = init_params(pkey, input_channels, action_size, local_view_size, hidden_size)
    obs = jax.random.normal(
        xkey, (2, input_channels, local_view_size, local_view_size), jnp.float32)

    packed = pack_params(params, local_view_size)          # one-time repack
    q = jax.jit(dqn_forward)(obs, packed)
    q = jax.block_until_ready(q)

    q_ref = dqn_reference(obs, params)
    assert q.shape == (2, action_size), q.shape
    assert bool(jnp.allclose(q, q_ref, atol=2e-2, rtol=2e-2)), (q, q_ref)
    print("KERNEL_OK")
</pallas_src>

<mosaic_0001>
module attributes {stable_mosaic.version = 11 : i64} {
  func.func @_dqn_kernel(%arg0: i32, %arg1: memref<2x18x72xf32, #tpu.memory_space<vmem>>, %arg2: memref<3x72x512xf32, #tpu.memory_space<vmem>>, %arg3: memref<1x512xf32, #tpu.memory_space<vmem>>, %arg4: memref<3x480x512xf32, #tpu.memory_space<vmem>>, %arg5: memref<1x512xf32, #tpu.memory_space<vmem>>, %arg6: memref<4x448x32xf32, #tpu.memory_space<vmem>>, %arg7: memref<1x32xf32, #tpu.memory_space<vmem>>, %arg8: memref<32x16xf32, #tpu.memory_space<vmem>>, %arg9: memref<1x16xf32, #tpu.memory_space<vmem>>, %arg10: memref<16x1xf32, #tpu.memory_space<vmem>>, %arg11: memref<1x1xf32, #tpu.memory_space<vmem>>, %arg12: memref<32x16xf32, #tpu.memory_space<vmem>>, %arg13: memref<1x16xf32, #tpu.memory_space<vmem>>, %arg14: memref<16x6xf32, #tpu.memory_space<vmem>>, %arg15: memref<1x6xf32, #tpu.memory_space<vmem>>, %arg16: memref<2x6xf32, #tpu.memory_space<vmem>>, %arg17: memref<2x24x480xf32, #tpu.memory_space<vmem>>) attributes {dimension_semantics = [#tpu.dimension_semantics<parallel>], iteration_bounds = array<i64: 1>, scalar_prefetch = 0 : i64, scratch_operands = 1 : i64, tpu.core_type = #tpu.core_type<tc>, window_params = [{transform_indices = @transform_0, window_bounds = array<i64: 2, 18, 72>}, {pipeline_mode = #tpu.pipeline_mode<synchronous>, transform_indices = @transform_1, window_bounds = array<i64: 3, 72, 512>}, {pipeline_mode = #tpu.pipeline_mode<synchronous>, transform_indices = @transform_2, window_bounds = array<i64: 1, 512>}, {pipeline_mode = #tpu.pipeline_mode<synchronous>, transform_indices = @transform_3, window_bounds = array<i64: 3, 480, 512>}, {pipeline_mode = #tpu.pipeline_mode<synchronous>, transform_indices = @transform_4, window_bounds = array<i64: 1, 512>}, {pipeline_mode = #tpu.pipeline_mode<synchronous>, transform_indices = @transform_5, window_bounds = array<i64: 4, 448, 32>}, {pipeline_mode = #tpu.pipeline_mode<synchronous>, transform_indices = @transform_6, window_bounds = array<i64: 1, 32>}, {pipeline_mode = #tpu.pipeline_mode<synchronous>, transform_indices = @transform_7, window_bounds = array<i64: 32, 16>}, {pipeline_mode = #tpu.pipeline_mode<synchronous>, transform_indices = @transform_8, window_bounds = array<i64: 1, 16>}, {pipeline_mode = #tpu.pipeline_mode<synchronous>, transform_indices = @transform_9, window_bounds = array<i64: 16, 1>}, {pipeline_mode = #tpu.pipeline_mode<synchronous>, transform_indices = @transform_10, window_bounds = array<i64: 1, 1>}, {pipeline_mode = #tpu.pipeline_mode<synchronous>, transform_indices = @transform_11, window_bounds = array<i64: 32, 16>}, {pipeline_mode = #tpu.pipeline_mode<synchronous>, transform_indices = @transform_12, window_bounds = array<i64: 1, 16>}, {pipeline_mode = #tpu.pipeline_mode<synchronous>, transform_indices = @transform_13, window_bounds = array<i64: 16, 6>}, {pipeline_mode = #tpu.pipeline_mode<synchronous>, transform_indices = @transform_14, window_bounds = array<i64: 1, 6>}, {transform_indices = @transform_15, window_bounds = array<i64: 2, 6>}]} {
    %c0 = arith.constant 0 : index
    %c0_0 = arith.constant 0 : index
    %c0_1 = arith.constant 0 : index
    %0 = vector.load %arg1[%c0, %c0_0, %c0_1] : memref<2x18x72xf32, #tpu.memory_space<vmem>>, vector<2x16x72xf32>
    %1 = vector.shape_cast %0 : vector<2x16x72xf32> to vector<32x72xf32>
    %c0_2 = arith.constant 0 : index
    %c0_3 = arith.constant 0 : index
    %c0_4 = arith.constant 0 : index
    %2 = vector.load %arg2[%c0_2, %c0_3, %c0_4] : memref<3x72x512xf32, #tpu.memory_space<vmem>>, vector<1x72x512xf32>
    %3 = vector.shape_cast %2 : vector<1x72x512xf32> to vector<72x512xf32>
    %cst = arith.constant dense<0.000000e+00> : vector<32x512xf32>
    %4 = tpu.matmul %1, %3, %cst {dimension_numbers = #tpu.dot_dimension_numbers<[1], [0], [0], [1], [0, 0, 1, 1], [], []>} : vector<32x72xf32>, vector<72x512xf32>, vector<32x512xf32> -> vector<32x512xf32>
    %c0_5 = arith.constant 0 : index
    %c1 = arith.constant 1 : index
    %c0_6 = arith.constant 0 : index
    %5 = vector.load %arg1[%c0_5, %c1, %c0_6] : memref<2x18x72xf32, #tpu.memory_space<vmem>>, vector<2x16x72xf32>
    %6 = vector.shape_cast %5 : vector<2x16x72xf32> to vector<32x72xf32>
    %c1_7 = arith.constant 1 : index
    %c0_8 = arith.constant 0 : index
    %c0_9 = arith.constant 0 : index
    %7 = vector.load %arg2[%c1_7, %c0_8, %c0_9] : memref<3x72x512xf32, #tpu.memory_space<vmem>>, vector<1x72x512xf32>
    %8 = vector.shape_cast %7 : vector<1x72x512xf32> to vector<72x512xf32>
    %cst_10 = arith.constant dense<0.000000e+00> : vector<32x512xf32>
    %9 = tpu.matmul %6, %8, %cst_10 {dimension_numbers = #tpu.dot_dimension_numbers<[1], [0], [0], [1], [0, 0, 1, 1], [], []>} : vector<32x72xf32>, vector<72x512xf32>, vector<32x512xf32> -> vector<32x512xf32>
    %10 = arith.addf %4, %9 : vector<32x512xf32>
    %c0_11 = arith.constant 0 : index
    %c2 = arith.constant 2 : index
    %c0_12 = arith.constant 0 : index
    %11 = vector.load %arg1[%c0_11, %c2, %c0_12] : memref<2x18x72xf32, #tpu.memory_space<vmem>>, vector<2x16x72xf32>
    %12 = vector.shape_cast %11 : vector<2x16x72xf32> to vector<32x72xf32>
    %c2_13 = arith.constant 2 : index
    %c0_14 = arith.constant 0 : index
    %c0_15 = arith.constant 0 : index
    %13 = vector.load %arg2[%c2_13, %c0_14, %c0_15] : memref<3x72x512xf32, #tpu.memory_space<vmem>>, vector<1x72x512xf32>
    %14 = vector.shape_cast %13 : vector<1x72x512xf32> to vector<72x512xf32>
    %cst_16 = arith.constant dense<0.000000e+00> : vector<32x512xf32>
    %15 = tpu.matmul %12, %14, %cst_16 {dimension_numbers = #tpu.dot_dimension_numbers<[1], [0], [0], [1], [0, 0, 1, 1], [], []>} : vector<32x72xf32>, vector<72x512xf32>, vector<32x512xf32> -> vector<32x512xf32>
    %16 = arith.addf %10, %15 : vector<32x512xf32>
    %c0_17 = arith.constant 0 : index
    %c0_18 = arith.constant 0 : index
    %17 = vector.load %arg3[%c0_17, %c0_18] : memref<1x512xf32, #tpu.memory_space<vmem>>, vector<1x512xf32>
    %18 = vector.broadcast %17 : vector<1x512xf32> to vector<32x512xf32>
    %19 = arith.addf %16, %18 : vector<32x512xf32>
    %cst_19 = arith.constant 0.000000e+00 : f32
    %20 = vector.broadcast %cst_19 : f32 to vector<32x512xf32>
    %21 = arith.maximumf %19, %20 : vector<32x512xf32>
    %22 = vector.extract_strided_slice %21 {offsets = [0, 0], sizes = [32, 480], strides = [1, 1]} : vector<32x512xf32> to vector<32x480xf32>
    %23 = vector.extract_strided_slice %21 {offsets = [0, 32], sizes = [32, 480], strides = [1, 1]} : vector<32x512xf32> to vector<32x480xf32>
    %24 = arith.maximumf %22, %23 : vector<32x480xf32>
    %cst_20 = arith.constant 0.000000e+00 : f32
    %25 = vector.broadcast %cst_20 : f32 to vector<2x24x480xf32>
    %c0_21 = arith.constant 0 : index
    %c0_22 = arith.constant 0 : index
    %c0_23 = arith.constant 0 : index
    %26 = vector.load %arg17[%c0_21, %c0_22, %c0_23] : memref<2x24x480xf32, #tpu.memory_space<vmem>>, vector<2x24x480xf32>
    tpu.vector_store %arg17[%c0_21, %c0_22, %c0_23], %25 {strides = array<i32>} : memref<2x24x480xf32, #tpu.memory_space<vmem>>, vector<2x24x480xf32>,
    %27 = vector.shape_cast %24 : vector<32x480xf32> to vector<2x16x480xf32>
    %c0_24 = arith.constant 0 : index
    %c2_25 = arith.constant 2 : index
    %c0_26 = arith.constant 0 : index
    %28 = vector.load %arg17[%c0_24, %c2_25, %c0_26] : memref<2x24x480xf32, #tpu.memory_space<vmem>>, vector<2x16x480xf32>
    tpu.vector_store %arg17[%c0_24, %c2_25, %c0_26], %27 {strides = array<i32>} : memref<2x24x480xf32, #tpu.memory_space<vmem>>, vector<2x16x480xf32>,
    %c0_27 = arith.constant 0 : index
    %c0_28 = arith.constant 0 : index
    %c0_29 = arith.constant 0 : index
    %29 = vector.load %arg17[%c0_27, %c0_28, %c0_29] : memref<2x24x480xf32, #tpu.memory_space<vmem>>, vector<2x16x480xf32>
    %c0_30 = arith.constant 0 : index
    %c1_31 = arith.constant 1 : index
    %c0_32 = arith.constant 0 : index
    %30 = vector.load %arg17[%c0_30, %c1_31, %c0_32] : memref<2x24x480xf32, #tpu.memory_space<vmem>>, vector<2x16x480xf32>
    %31 = arith.maximumf %29, %30 : vector<2x16x480xf32>
    %32 = vector.shape_cast %31 : vector<2x16x480xf32> to vector<32x480xf32>
    %c0_33 = arith.constant 0 : index
    %c0_34 = arith.constant 0 : index
    %c0_35 = arith.constant 0 : index
    %33 = vector.load %arg4[%c0_33, %c0_34, %c0_35] : memref<3x480x512xf32, #tpu.memory_space<vmem>>, vector<1x480x512xf32>
    %34 = vector.shape_cast %33 : vector<1x480x512xf32> to vector<480x512xf32>
    %cst_36 = arith.constant dense<0.000000e+00> : vector<32x512xf32>
    %35 = tpu.matmul %32, %34, %cst_36 {dimension_numbers = #tpu.dot_dimension_numbers<[1], [0], [0], [1], [0, 0, 1, 1], [], []>} : vector<32x480xf32>, vector<480x512xf32>, vector<32x512xf32> -> vector<32x512xf32>
    %c0_37 = arith.constant 0 : index
    %c2_38 = arith.constant 2 : index
    %c0_39 = arith.constant 0 : index
    %36 = vector.load %arg17[%c0_37, %c2_38, %c0_39] : memref<2x24x480xf32, #tpu.memory_space<vmem>>, vector<2x16x480xf32>
    %c0_40 = arith.constant 0 : index
    %c3 = arith.constant 3 : index
    %c0_41 = arith.constant 0 : index
    %37 = vector.load %arg17[%c0_40, %c3, %c0_41] : memref<2x24x480xf32, #tpu.memory_space<vmem>>, vector<2x16x480xf32>
    %38 = arith.maximumf %36, %37 : vector<2x16x480xf32>
    %39 = vector.shape_cast %38 : vector<2x16x480xf32> to vector<32x480xf32>
    %c1_42 = arith.constant 1 : index
    %c0_43 = arith.constant 0 : index
    %c0_44 = arith.constant 0 : index
    %40 = vector.load %arg4[%c1_42, %c0_43, %c0_44] : memref<3x480x512xf32, #tpu.memory_space<vmem>>, vector<1x480x512xf32>
    %41 = vector.shape_cast %40 : vector<1x480x512xf32> to vector<480x512xf32>
    %cst_45 = arith.constant dense<0.000000e+00> : vector<32x512xf32>
    %42 = tpu.matmul %39, %41, %cst_45 {dimension_numbers = #tpu.dot_dimension_numbers<[1], [0], [0], [1], [0, 0, 1, 1], [], []>} : vector<32x480xf32>, vector<480x512xf32>, vector<32x512xf32> -> vector<32x512xf32>
    %43 = arith.addf %35, %42 : vector<32x512xf32>
    %c0_46 = arith.constant 0 : index
    %c4 = arith.constant 4 : index
    %c0_47 = arith.constant 0 : index
    %44 = vector.load %arg17[%c0_46, %c4, %c0_47] : memref<2x24x480xf32, #tpu.memory_space<vmem>>, vector<2x16x480xf32>
    %c0_48 = arith.constant 0 : index
    %c5 = arith.constant 5 : index
    %c0_49 = arith.constant 0 : index
    %45 = vector.load %arg17[%c0_48, %c5, %c0_49] : memref<2x24x480xf32, #tpu.memory_space<vmem>>, vector<2x16x480xf32>
    %46 = arith.maximumf %44, %45 : vector<2x16x480xf32>
    %47 = vector.shape_cast %46 : vector<2x16x480xf32> to vector<32x480xf32>
    %c2_50 = arith.constant 2 : index
    %c0_51 = arith.constant 0 : index
    %c0_52 = arith.constant 0 : index
    %48 = vector.load %arg4[%c2_50, %c0_51, %c0_52] : memref<3x480x512xf32, #tpu.memory_space<vmem>>, vector<1x480x512xf32>
    %49 = vector.shape_cast %48 : vector<1x480x512xf32> to vector<480x512xf32>
    %cst_53 = arith.constant dense<0.000000e+00> : vector<32x512xf32>
    %50 = tpu.matmul %47, %49, %cst_53 {dimension_numbers = #tpu.dot_dimension_numbers<[1], [0], [0], [1], [0, 0, 1, 1], [], []>} : vector<32x480xf32>, vector<480x512xf32>, vector<32x512xf32> -> vector<32x512xf32>
    %51 = arith.addf %43, %50 : vector<32x512xf32>
    %c0_54 = arith.constant 0 : index
    %c0_55 = arith.constant 0 : index
    %52 = vector.load %arg5[%c0_54, %c0_55] : memref<1x512xf32, #tpu.memory_space<vmem>>, vector<1x512xf32>
    %53 = vector.broadcast %52 : vector<1x512xf32> to vector<32x512xf32>
    %54 = arith.addf %51, %53 : vector<32x512xf32>
    %cst_56 = arith.constant 0.000000e+00 : f32
    %55 = vector.broadcast %cst_56 : f32 to vector<32x512xf32>
    %56 = arith.maximumf %54, %55 : vector<32x512xf32>
    %57 = vector.extract_strided_slice %56 {offsets = [0, 0], sizes = [32, 448], strides = [1, 1]} : vector<32x512xf32> to vector<32x448xf32>
    %58 = vector.extract_strided_slice %56 {offsets = [0, 64], sizes = [32, 448], strides = [1, 1]} : vector<32x512xf32> to vector<32x448xf32>
    %59 = arith.maximumf %57, %58 : vector<32x448xf32>
    %60 = vector.shape_cast %59 : vector<32x448xf32> to vector<2x16x448xf32>
    %61 = vector.extract_strided_slice %60 {offsets = [0, 0, 0], sizes = [2, 1, 448], strides = [1, 1, 1]} : vector<2x16x448xf32> to vector<2x1x448xf32>
    %62 = vector.shape_cast %61 : vector<2x1x448xf32> to vector<2x448xf32>
    %63 = vector.extract_strided_slice %60 {offsets = [0, 2, 0], sizes = [2, 1, 448], strides = [1, 1, 1]} : vector<2x16x448xf32> to vector<2x1x448xf32>
    %64 = vector.shape_cast %63 : vector<2x1x448xf32> to vector<2x448xf32>
    %65 = arith.maximumf %62, %64 : vector<2x448xf32>
    %c0_57 = arith.constant 0 : index
    %c0_58 = arith.constant 0 : index
    %c0_59 = arith.constant 0 : index
    %66 = vector.load %arg6[%c0_57, %c0_58, %c0_59] : memref<4x448x32xf32, #tpu.memory_space<vmem>>, vector<1x448x32xf32>
    %67 = vector.shape_cast %66 : vector<1x448x32xf32> to vector<448x32xf32>
    %cst_60 = arith.constant dense<0.000000e+00> : vector<2x32xf32>
    %68 = tpu.matmul %65, %67, %cst_60 {dimension_numbers = #tpu.dot_dimension_numbers<[1], [0], [0], [1], [0, 0, 1, 1], [], []>} : vector<2x448xf32>, vector<448x32xf32>, vector<2x32xf32> -> vector<2x32xf32>
    %69 = vector.extract_strided_slice %60 {offsets = [0, 4, 0], sizes = [2, 1, 448], strides = [1, 1, 1]} : vector<2x16x448xf32> to vector<2x1x448xf32>
    %70 = vector.shape_cast %69 : vector<2x1x448xf32> to vector<2x448xf32>
    %71 = vector.extract_strided_slice %60 {offsets = [0, 6, 0], sizes = [2, 1, 448], strides = [1, 1, 1]} : vector<2x16x448xf32> to vector<2x1x448xf32>
    %72 = vector.shape_cast %71 : vector<2x1x448xf32> to vector<2x448xf32>
    %73 = arith.maximumf %70, %72 : vector<2x448xf32>
    %c1_61 = arith.constant 1 : index
    %c0_62 = arith.constant 0 : index
    %c0_63 = arith.constant 0 : index
    %74 = vector.load %arg6[%c1_61, %c0_62, %c0_63] : memref<4x448x32xf32, #tpu.memory_space<vmem>>, vector<1x448x32xf32>
    %75 = vector.shape_cast %74 : vector<1x448x32xf32> to vector<448x32xf32>
    %cst_64 = arith.constant dense<0.000000e+00> : vector<2x32xf32>
    %76 = tpu.matmul %73, %75, %cst_64 {dimension_numbers = #tpu.dot_dimension_numbers<[1], [0], [0], [1], [0, 0, 1, 1], [], []>} : vector<2x448xf32>, vector<448x32xf32>, vector<2x32xf32> -> vector<2x32xf32>
    %77 = arith.addf %68, %76 : vector<2x32xf32>
    %78 = vector.extract_strided_slice %60 {offsets = [0, 8, 0], sizes = [2, 1, 448], strides = [1, 1, 1]} : vector<2x16x448xf32> to vector<2x1x448xf32>
    %79 = vector.shape_cast %78 : vector<2x1x448xf32> to vector<2x448xf32>
    %80 = vector.extract_strided_slice %60 {offsets = [0, 10, 0], sizes = [2, 1, 448], strides = [1, 1, 1]} : vector<2x16x448xf32> to vector<2x1x448xf32>
    %81 = vector.shape_cast %80 : vector<2x1x448xf32> to vector<2x448xf32>
    %82 = arith.maximumf %79, %81 : vector<2x448xf32>
    %c2_65 = arith.constant 2 : index
    %c0_66 = arith.constant 0 : index
    %c0_67 = arith.constant 0 : index
    %83 = vector.load %arg6[%c2_65, %c0_66, %c0_67] : memref<4x448x32xf32, #tpu.memory_space<vmem>>, vector<1x448x32xf32>
    %84 = vector.shape_cast %83 : vector<1x448x32xf32> to vector<448x32xf32>
    %cst_68 = arith.constant dense<0.000000e+00> : vector<2x32xf32>
    %85 = tpu.matmul %82, %84, %cst_68 {dimension_numbers = #tpu.dot_dimension_numbers<[1], [0], [0], [1], [0, 0, 1, 1], [], []>} : vector<2x448xf32>, vector<448x32xf32>, vector<2x32xf32> -> vector<2x32xf32>
    %86 = arith.addf %77, %85 : vector<2x32xf32>
    %87 = vector.extract_strided_slice %60 {offsets = [0, 12, 0], sizes = [2, 1, 448], strides = [1, 1, 1]} : vector<2x16x448xf32> to vector<2x1x448xf32>
    %88 = vector.shape_cast %87 : vector<2x1x448xf32> to vector<2x448xf32>
    %89 = vector.extract_strided_slice %60 {offsets = [0, 14, 0], sizes = [2, 1, 448], strides = [1, 1, 1]} : vector<2x16x448xf32> to vector<2x1x448xf32>
    %90 = vector.shape_cast %89 : vector<2x1x448xf32> to vector<2x448xf32>
    %91 = arith.maximumf %88, %90 : vector<2x448xf32>
    %c3_69 = arith.constant 3 : index
    %c0_70 = arith.constant 0 : index
    %c0_71 = arith.constant 0 : index
    %92 = vector.load %arg6[%c3_69, %c0_70, %c0_71] : memref<4x448x32xf32, #tpu.memory_space<vmem>>, vector<1x448x32xf32>
    %93 = vector.shape_cast %92 : vector<1x448x32xf32> to vector<448x32xf32>
    %cst_72 = arith.constant dense<0.000000e+00> : vector<2x32xf32>
    %94 = tpu.matmul %91, %93, %cst_72 {dimension_numbers = #tpu.dot_dimension_numbers<[1], [0], [0], [1], [0, 0, 1, 1], [], []>} : vector<2x448xf32>, vector<448x32xf32>, vector<2x32xf32> -> vector<2x32xf32>
    %95 = arith.addf %86, %94 : vector<2x32xf32>
    %c0_73 = arith.constant 0 : index
    %c0_74 = arith.constant 0 : index
    %96 = vector.load %arg7[%c0_73, %c0_74] : memref<1x32xf32, #tpu.memory_space<vmem>>, vector<1x32xf32>
    %97 = vector.broadcast %96 : vector<1x32xf32> to vector<2x32xf32>
    %98 = arith.addf %95, %97 : vector<2x32xf32>
    %cst_75 = arith.constant 0.000000e+00 : f32
    %99 = vector.broadcast %cst_75 : f32 to vector<2x32xf32>
    %100 = arith.maximumf %98, %99 : vector<2x32xf32>
    %c0_76 = arith.constant 0 : index
    %c0_77 = arith.constant 0 : index
    %101 = vector.load %arg8[%c0_76, %c0_77] : memref<32x16xf32, #tpu.memory_space<vmem>>, vector<32x16xf32>
    %cst_78 = arith.constant dense<0.000000e+00> : vector<2x16xf32>
    %102 = tpu.matmul %100, %101, %cst_78 {dimension_numbers = #tpu.dot_dimension_numbers<[1], [0], [0], [1], [0, 0, 1, 1], [], []>} : vector<2x32xf32>, vector<32x16xf32>, vector<2x16xf32> -> vector<2x16xf32>
    %c0_79 = arith.constant 0 : index
    %c0_80 = arith.constant 0 : index
    %103 = vector.load %arg9[%c0_79, %c0_80] : memref<1x16xf32, #tpu.memory_space<vmem>>, vector<1x16xf32>
    %104 = vector.broadcast %103 : vector<1x16xf32> to vector<2x16xf32>
    %105 = arith.addf %102, %104 : vector<2x16xf32>
    %cst_81 = arith.constant 0.000000e+00 : f32
    %106 = vector.broadcast %cst_81 : f32 to vector<2x16xf32>
    %107 = arith.maximumf %105, %106 : vector<2x16xf32>
    %c0_82 = arith.constant 0 : index
    %c0_83 = arith.constant 0 : index
    %108 = vector.load %arg10[%c0_82, %c0_83] : memref<16x1xf32, #tpu.memory_space<vmem>>, vector<16x1xf32>
    %cst_84 = arith.constant dense<0.000000e+00> : vector<2x1xf32>
    %109 = tpu.matmul %107, %108, %cst_84 {dimension_numbers = #tpu.dot_dimension_numbers<[1], [0], [0], [1], [0, 0, 1, 1], [], []>} : vector<2x16xf32>, vector<16x1xf32>, vector<2x1xf32> -> vector<2x1xf32>
    %c0_85 = arith.constant 0 : index
    %c0_86 = arith.constant 0 : index
    %110 = vector.load %arg11[%c0_85, %c0_86] : memref<1x1xf32, #tpu.memory_space<vmem>>, vector<1x1xf32>
    %111 = vector.broadcast %110 : vector<1x1xf32> to vector<2x1xf32>
    %112 = arith.addf %109, %111 : vector<2x1xf32>
    %c0_87 = arith.constant 0 : index
    %c0_88 = arith.constant 0 : index
    %113 = vector.load %arg12[%c0_87, %c0_88] : memref<32x16xf32, #tpu.memory_space<vmem>>, vector<32x16xf32>
    %cst_89 = arith.constant dense<0.000000e+00> : vector<2x16xf32>
    %114 = tpu.matmul %100, %113, %cst_89 {dimension_numbers = #tpu.dot_dimension_numbers<[1], [0], [0], [1], [0, 0, 1, 1], [], []>} : vector<2x32xf32>, vector<32x16xf32>, vector<2x16xf32> -> vector<2x16xf32>
    %c0_90 = arith.constant 0 : index
    %c0_91 = arith.constant 0 : index
    %115 = vector.load %arg13[%c0_90, %c0_91] : memref<1x16xf32, #tpu.memory_space<vmem>>, vector<1x16xf32>
    %116 = vector.broadcast %115 : vector<1x16xf32> to vector<2x16xf32>
    %117 = arith.addf %114, %116 : vector<2x16xf32>
    %cst_92 = arith.constant 0.000000e+00 : f32
    %118 = vector.broadcast %cst_92 : f32 to vector<2x16xf32>
    %119 = arith.maximumf %117, %118 : vector<2x16xf32>
    %c0_93 = arith.constant 0 : index
    %c0_94 = arith.constant 0 : index
    %120 = vector.load %arg14[%c0_93, %c0_94] : memref<16x6xf32, #tpu.memory_space<vmem>>, vector<16x6xf32>
    %cst_95 = arith.constant dense<0.000000e+00> : vector<2x6xf32>
    %121 = tpu.matmul %119, %120, %cst_95 {dimension_numbers = #tpu.dot_dimension_numbers<[1], [0], [0], [1], [0, 0, 1, 1], [], []>} : vector<2x16xf32>, vector<16x6xf32>, vector<2x6xf32> -> vector<2x6xf32>
    %c0_96 = arith.constant 0 : index
    %c0_97 = arith.constant 0 : index
    %122 = vector.load %arg15[%c0_96, %c0_97] : memref<1x6xf32, #tpu.memory_space<vmem>>, vector<1x6xf32>
    %123 = vector.broadcast %122 : vector<1x6xf32> to vector<2x6xf32>
    %124 = arith.addf %121, %123 : vector<2x6xf32>
    %cst_98 = arith.constant dense<0.000000e+00> : vector<2xf32>
    %125 = vector.multi_reduction <add>, %124, %cst_98 [1] : vector<2x6xf32> to vector<2xf32>
    %126 = vector.shape_cast %125 : vector<2xf32> to vector<2x1xf32>
    %cst_99 = arith.constant 6.000000e+00 : f32
    %127 = vector.broadcast %cst_99 : f32 to vector<2x1xf32>
    %128 = arith.divf %126, %127 : vector<2x1xf32>
    %129 = vector.broadcast %128 : vector<2x1xf32> to vector<2x6xf32>
    %130 = arith.subf %124, %129 : vector<2x6xf32>
    %131 = vector.broadcast %112 : vector<2x1xf32> to vector<2x6xf32>
    %132 = arith.addf %131, %130 : vector<2x6xf32>
    %c0_100 = arith.constant 0 : index
    %c0_101 = arith.constant 0 : index
    %133 = vector.load %arg16[%c0_100, %c0_101] : memref<2x6xf32, #tpu.memory_space<vmem>>, vector<2x6xf32>
    tpu.vector_store %arg16[%c0_100, %c0_101], %132 {strides = array<i32>} : memref<2x6xf32, #tpu.memory_space<vmem>>, vector<2x6xf32>,
    return
  }
  func.func @transform_0(%arg0: i32) -> (i32, i32, i32) {
    %c0_i32 = arith.constant 0 : i32
    %c0_i32_0 = arith.constant 0 : i32
    %c0_i32_1 = arith.constant 0 : i32
    return %arg0, %c0_i32, %c0_i32_0 : i32, i32, i32
  }
  func.func @transform_1(%arg0: i32) -> (i32, i32, i32) {
    %c0_i32 = arith.constant 0 : i32
    %c0_i32_0 = arith.constant 0 : i32
    %c0_i32_1 = arith.constant 0 : i32
    %c0_i32_2 = arith.constant 0 : i32
    return %c0_i32, %c0_i32_0, %c0_i32_1 : i32, i32, i32
  }
  func.func @transform_2(%arg0: i32) -> (i32, i32) {
    %c0_i32 = arith.constant 0 : i32
    %c0_i32_0 = arith.constant 0 : i32
    %c0_i32_1 = arith.constant 0 : i32
    return %c0_i32, %c0_i32_0 : i32, i32
  }
  func.func @transform_3(%arg0: i32) -> (i32, i32, i32) {
    %c0_i32 = arith.constant 0 : i32
    %c0_i32_0 = arith.constant 0 : i32
    %c0_i32_1 = arith.constant 0 : i32
    %c0_i32_2 = arith.constant 0 : i32
    return %c0_i32, %c0_i32_0, %c0_i32_1 : i32, i32, i32
  }
  func.func @transform_4(%arg0: i32) -> (i32, i32) {
    %c0_i32 = arith.constant 0 : i32
    %c0_i32_0 = arith.constant 0 : i32
    %c0_i32_1 = arith.constant 0 : i32
    return %c0_i32, %c0_i32_0 : i32, i32
  }
  func.func @transform_5(%arg0: i32) -> (i32, i32, i32) {
    %c0_i32 = arith.constant 0 : i32
    %c0_i32_0 = arith.constant 0 : i32
    %c0_i32_1 = arith.constant 0 : i32
    %c0_i32_2 = arith.constant 0 : i32
    return %c0_i32, %c0_i32_0, %c0_i32_1 : i32, i32, i32
  }
  func.func @transform_6(%arg0: i32) -> (i32, i32) {
    %c0_i32 = arith.constant 0 : i32
    %c0_i32_0 = arith.constant 0 : i32
    %c0_i32_1 = arith.constant 0 : i32
    return %c0_i32, %c0_i32_0 : i32, i32
  }
  func.func @transform_7(%arg0: i32) -> (i32, i32) {
    %c0_i32 = arith.constant 0 : i32
    %c0_i32_0 = arith.constant 0 : i32
    %c0_i32_1 = arith.constant 0 : i32
    return %c0_i32, %c0_i32_0 : i32, i32
  }
  func.func @transform_8(%arg0: i32) -> (i32, i32) {
    %c0_i32 = arith.constant 0 : i32
    %c0_i32_0 = arith.constant 0 : i32
    %c0_i32_1 = arith.constant 0 : i32
    return %c0_i32, %c0_i32_0 : i32, i32
  }
  func.func @transform_9(%arg0: i32) -> (i32, i32) {
    %c0_i32 = arith.constant 0 : i32
    %c0_i32_0 = arith.constant 0 : i32
    %c0_i32_1 = arith.constant 0 : i32
    return %c0_i32, %c0_i32_0 : i32, i32
  }
  func.func @transform_10(%arg0: i32) -> (i32, i32) {
    %c0_i32 = arith.constant 0 : i32
    %c0_i32_0 = arith.constant 0 : i32
    %c0_i32_1 = arith.constant 0 : i32
    return %c0_i32, %c0_i32_0 : i32, i32
  }
  func.func @transform_11(%arg0: i32) -> (i32, i32) {
    %c0_i32 = arith.constant 0 : i32
    %c0_i32_0 = arith.constant 0 : i32
    %c0_i32_1 = arith.constant 0 : i32
    return %c0_i32, %c0_i32_0 : i32, i32
  }
  func.func @transform_12(%arg0: i32) -> (i32, i32) {
    %c0_i32 = arith.constant 0 : i32
    %c0_i32_0 = arith.constant 0 : i32
    %c0_i32_1 = arith.constant 0 : i32
    return %c0_i32, %c0_i32_0 : i32, i32
  }
  func.func @transform_13(%arg0: i32) -> (i32, i32) {
    %c0_i32 = arith.constant 0 : i32
    %c0_i32_0 = arith.constant 0 : i32
    %c0_i32_1 = arith.constant 0 : i32
    return %c0_i32, %c0_i32_0 : i32, i32
  }
  func.func @transform_14(%arg0: i32) -> (i32, i32) {
    %c0_i32 = arith.constant 0 : i32
    %c0_i32_0 = arith.constant 0 : i32
    %c0_i32_1 = arith.constant 0 : i32
    return %c0_i32, %c0_i32_0 : i32, i32
  }
  func.func @transform_15(%arg0: i32) -> (i32, i32) {
    %c0_i32 = arith.constant 0 : i32
    %c0_i32_0 = arith.constant 0 : i32
    return %arg0, %c0_i32 : i32, i32
  }
}

</mosaic_0001>

<bundles_post_ra>
// kernel: dqn_forward.1
= control target key start
LH: loop header
LB: loop body
LE: loop exit
PB: predicated region body
PF: predicated region fallthrough
CT: control target
= control target key end

     0   :  { %s7739_s0 = inlined_call_operand.vmem [shape: f32[2,18,72], index: 0, kind: input, shape index: {}]   ;;  %s7740_s1 = inlined_call_operand.hbm [shape: f32[3,72,512], index: 1, kind: input, shape index: {}]   ;;  %s7741_s2 = inlined_call_operand.hbm [shape: f32[1,512], index: 2, kind: input, shape index: {}]   ;;  %s7742_s3 = inlined_call_operand.hbm [shape: f32[3,480,512], index: 3, kind: input, shape index: {}]   ;;  %s7743_s4 = inlined_call_operand.hbm [shape: f32[1,512], index: 4, kind: input, shape index: {}]   ;;  %s7744_s5 = inlined_call_operand.vmem [shape: f32[4,448,32], index: 5, kind: input, shape index: {}]   ;;  %s7745_s6 = inlined_call_operand.hbm [shape: f32[1,32], index: 6, kind: input, shape index: {}]   ;;  %s7746_s7 = inlined_call_operand.vmem [shape: f32[32,16], index: 7, kind: input, shape index: {}]   ;;  %s7747_s8 = inlined_call_operand.hbm [shape: f32[1,16], index: 8, kind: input, shape index: {}]   ;;  %s7748_s9 = inlined_call_operand.vmem [shape: f32[16,1], index: 9, kind: input, shape index: {}]   ;;  %s7749_s10 = inlined_call_operand.<no memory space> [shape: f32[1,1], index: 10, kind: input, shape index: {}]   ;;  %s7750_s11 = inlined_call_operand.vmem [shape: f32[32,16], index: 11, kind: input, shape index: {}]   ;;  %s7751_s12 = inlined_call_operand.hbm [shape: f32[1,16], index: 12, kind: input, shape index: {}]   ;;  %s7752_s13 = inlined_call_operand.vmem [shape: f32[16,6], index: 13, kind: input, shape index: {}]   ;;  %s7753_s14 = inlined_call_operand.hbm [shape: f32[1,6], index: 14, kind: input, shape index: {}]   ;;  %s7754_s15 = inlined_call_operand.hbm [shape: f32[2,6], index: 15, kind: output, shape index: {}]  }
   0x1   :  { %v20_v0 = vstv %s7749_s10 }
   0x2   :  { %21 = vst [vmem:[#allocation3] sm:$0x1] %v20_v0 }
   0x3   :  { %22 = vsyncpa [#allocation5], 0 }
   0x4   :  { %23 = vsyncpa [#allocation8], 0 }
   0x5   :  { %24 = vsyncpa [#allocation11], 0 }
   0x6   :  { %25 = vsyncpa [#allocation14], 0 }
   0x7   :  { %26 = vsyncpa [#allocation17], 0  ;;  %s48_s22 = sshll.u32 %s7741_s2, 4  ;;  %s49_s22 = int_to_ptr.hbm [resolvable:$true] %s48_s22 }
   0x8   :  { %27 = vsyncpa [#allocation6], 0  ;;  %s5195_s23 = smov [#allocation7]   ;;  %s72_s27 = sshll.u32 %s7743_s4, 4  ;;  %s73_s27 = int_to_ptr.hbm [resolvable:$true] %s72_s27 }
   0x9   :  { %s50_s24 = sshll.u32 %s5195_s23, 4  ;;  %s5196_s10 = smov [#allocation10]   ;;  %s51_s24 = int_to_ptr.vmem [resolvable:$true] %s50_s24 }
   0xa   :  { %53 = dma.hbm_to_vmem [thread:$0]  %s49_s22, 64, %s51_s24, [#allocation8]  }
   0xb   :  { %s74_s28 = sshll.u32 %s5196_s10, 4  ;;  %s98_s16 = sshll.u32 %s7747_s8, 4  ;;  %s75_s28 = int_to_ptr.vmem [resolvable:$true] %s74_s28  ;;  %s99_s16 = int_to_ptr.hbm [resolvable:$true] %s98_s16 }
   0xc   :  { %77 = dma.hbm_to_vmem [thread:$0]  %s73_s27, 64, %s75_s28, [#allocation11]  }
   0xd   :  { %s34_s18 = sshll.u32 %s7740_s1, 4  ;;  %s5197_s19 = smov [#allocation13]   ;;  %s35_s18 = int_to_ptr.hbm [resolvable:$true] %s34_s18 }
   0xe   :  { %s100_s20 = sshll.u32 %s5197_s19, 4  ;;  %s5198_s4 = smov [#allocation4]   ;;  %s101_s20 = int_to_ptr.vmem [resolvable:$true] %s100_s20 }
   0xf   :  { %103 = dma.hbm_to_vmem [thread:$0]  %s99_s16, 16, %s101_s20, [#allocation14]  }
  0x10   :  { %s36_s21 = sshll.u32 %s5198_s4, 4  ;;  %s5199_s22 = smov 512   ;;  %s37_s21 = int_to_ptr.vmem [resolvable:$true] %s36_s21 }
  0x11   :  { %s5200_s23 = smov 32   ;;  %s58_s25 = sshll.u32 %s7742_s3, 4  ;;  %s59_s25 = int_to_ptr.hbm [resolvable:$true] %s58_s25 }
  0x12   :  { %42 = dma.hbm_to_vmem [thread:$0]  %s35_s18, 13824, %s37_s21, [#allocation5], %s5199_s22, %s5199_s22, %s5200_s23  }
  0x13   :  { %s5201_s26 = smov [#allocation9]   ;;  %s85_s28 = sshll.u32 %s7745_s6, 4  ;;  %s86_s28 = int_to_ptr.hbm [resolvable:$true] %s85_s28 }
  0x14   :  { %s60_s27 = sshll.u32 %s5201_s26, 4  ;;  %s5202_s29 = smov [#allocation12]   ;;  %s61_s27 = int_to_ptr.vmem [resolvable:$true] %s60_s27 }
  0x15   :  { %66 = dma.hbm_to_vmem [thread:$0]  %s59_s25, 92160, %s61_s27, [#allocation8], %s5199_s22, %s5199_s22, %s5200_s23  }
  0x16   :  { %s87_s30 = sshll.u32 %s5202_s29, 4  ;;  %s115_s17 = sshll.u32 %s7751_s12, 4  ;;  %s88_s30 = int_to_ptr.vmem [resolvable:$true] %s87_s30  ;;  %s116_s17 = int_to_ptr.hbm [resolvable:$true] %s115_s17 }
  0x17   :  { %90 = dma.hbm_to_vmem [thread:$0]  %s86_s28, 16, %s88_s30, [#allocation11]  }
  0x18   :  { %s128_s19 = sshll.u32 %s7753_s14, 4  ;;  %s5203_s20 = smov [#allocation15]   ;;  %s129_s19 = int_to_ptr.hbm [resolvable:$true] %s128_s19 }
  0x19   :  { %s117_s4 = sshll.u32 %s5203_s20, 4  ;;  %s5204_s6 = smov [#allocation16]   ;;  %s118_s4 = int_to_ptr.vmem [resolvable:$true] %s117_s4 }
  0x1a   :  { %120 = dma.hbm_to_vmem [thread:$0]  %s116_s17, 16, %s118_s4, [#allocation14]  }
  0x1b   :  { %s130_s21 = sshll.u32 %s5204_s6, 4  ;;  %s131_s21 = int_to_ptr.vmem [resolvable:$true] %s130_s21 }
  0x1c   :  { %133 = dma.hbm_to_vmem [thread:$0]  %s129_s19, 16, %s131_s21, [#allocation17]  }
  0x1d   :  { %5183 = dma.done.wait [#allocation5], 13824  }
  0x1e   :  { %5184 = vsyncadd [#allocation5], 4294953472 }
  0x1f   :  { %5185 = dma.done.wait [#allocation8], 92224  }
  0x20   :  { %5186 = vsyncadd [#allocation8], 4294875072 }
  0x21   :  { %5187 = dma.done.wait [#allocation11], 80  }
  0x22   :  { %5188 = vsyncadd [#allocation11], 4294967216 }
  0x23   :  { %5189 = dma.done.wait [#allocation14], 32  }
  0x24   :  { %5190 = vsyncadd [#allocation14], 4294967264 }
  0x25   :  { %5191 = dma.done.wait [#allocation17], 16  }
  0x26   :  { %5192 = vsyncadd [#allocation17], 4294967280  ;;  %v243_v1 = vld [vmem:[#allocation4 + $0x220] sm:$0xff]  ;;  %v244_v2 = vld [vmem:[#allocation4 + $0x228] sm:$0xff]  ;;  %vm247_vm0 = vcmask 588800   ;;  %vm779_vm1 = vcmask 785408  }
  0x27   :  { %v245_v3 = vld [vmem:[#allocation4 + $0x230] sm:$0xff]  ;;  %267 = vmatpush.msra.mxu0 %v243_v1  ;;  %296 = vmatpush.msra.mxu1 %v244_v2  ;;  %v246_v4 = vld [vmem:[#allocation4 + $0x238] sm:$0xff]  ;;  %v239_v5 = vld [vmem:[#allocation4 + $0x200] sm:$0xff]  ;;  %vm925_vm2 = vcmask 779264   ;;  %vm916_vm3 = vcmask 785410   ;;  %vm864_vm4 = vcmask 1041408  }
  0x28   :  { %v240_v6 = vld [vmem:[#allocation4 + $0x208] sm:$0xff]  ;;  %325 = vmatpush.msra.mxu2 %v245_v3  ;;  %354 = vmatpush.msra.mxu3 %v246_v4  ;;  %v241_v7 = vld [vmem:[#allocation4 + $0x210] sm:$0xff]  ;;  %v242_v8 = vld [vmem:[#allocation4 + $0x218] sm:$0xff]  ;;  %vm995_vm5 = vcmask 1046528   ;;  %vm1460_vm6 = vcmask 1045504   ;;  %vm2854_vm7 = vcmask 1043456  }
  0x29   :  { %v235_v9 = vld [vmem:[#allocation4 + $0x1e0] sm:$0xff]  ;;  %268 = vmatpush.msra.mxu0 %v239_v5  ;;  %297 = vmatpush.msra.mxu1 %v240_v6  ;;  %v236_v10 = vld [vmem:[#allocation4 + $0x1e8] sm:$0xff]  ;;  %v237_v11 = vld [vmem:[#allocation4 + $0x1f0] sm:$0xff]  ;;  %s5207_s12 = smov 64   ;;  %vm3726_vm8 = vcmask 523264   ;;  %vm3926_vm9 = vcmask 1041409  }
  0x2a   :  { %v238_v12 = vld [vmem:[#allocation4 + $0x1f8] sm:$0xff]  ;;  %326 = vmatpush.msra.mxu2 %v241_v7  ;;  %355 = vmatpush.msra.mxu3 %v242_v8  ;;  %v231_v13 = vld [vmem:[#allocation4 + $0x1c0] sm:$0xff]  ;;  %v232_v14 = vld [vmem:[#allocation4 + $0x1c8] sm:$0xff]  ;;  %vm4475_vm10 = vcmask 261120   ;;  %vm4506_vm11 = vcmask 130048   ;;  %vm4588_vm12 = vcmask 41984  }
  0x2b   :  { %269 = vmatpush.msra.mxu0 %v235_v9  ;;  %298 = vmatpush.msra.mxu1 %v236_v10  ;;  %v233_v15 = vld [vmem:[#allocation4 + $0x1d0] sm:$0xff]  ;;  %v234_v16 = vld [vmem:[#allocation4 + $0x1d8] sm:$0xff]  ;;  %v227_v17 = vld [vmem:[#allocation4 + $0x1a0] sm:$0xff] }
  0x2c   :  { %327 = vmatpush.msra.mxu2 %v237_v11  ;;  %356 = vmatpush.msra.mxu3 %v238_v12  ;;  %v228_v18 = vld [vmem:[#allocation4 + $0x1a8] sm:$0xff]  ;;  %v229_v19 = vld [vmem:[#allocation4 + $0x1b0] sm:$0xff]  ;;  %v230_v20 = vld [vmem:[#allocation4 + $0x1b8] sm:$0xff] }
  0x2d   :  { %270 = vmatpush.msra.mxu0 %v231_v13  ;;  %299 = vmatpush.msra.mxu1 %v232_v14  ;;  %v223_v21 = vld [vmem:[#allocation4 + $0x180] sm:$0xff]  ;;  %v224_v22 = vld [vmem:[#allocation4 + $0x188] sm:$0xff]  ;;  %v225_v23 = vld [vmem:[#allocation4 + $0x190] sm:$0xff] }
  0x2e   :  { %328 = vmatpush.msra.mxu2 %v233_v15  ;;  %357 = vmatpush.msra.mxu3 %v234_v16  ;;  %v226_v24 = vld [vmem:[#allocation4 + $0x198] sm:$0xff]  ;;  %v219_v25 = vld [vmem:[#allocation4 + $0x160] sm:$0xff]  ;;  %v220_v26 = vld [vmem:[#allocation4 + $0x168] sm:$0xff] }
  0x2f   :  { %271 = vmatpush.msra.mxu0 %v227_v17  ;;  %300 = vmatpush.msra.mxu1 %v228_v18  ;;  %v221_v27 = vld [vmem:[#allocation4 + $0x170] sm:$0xff]  ;;  %v222_v28 = vld [vmem:[#allocation4 + $0x178] sm:$0xff]  ;;  %v215_v29 = vld [vmem:[#allocation4 + $0x140] sm:$0xff] }
  0x30   :  { %329 = vmatpush.msra.mxu2 %v229_v19  ;;  %358 = vmatpush.msra.mxu3 %v230_v20  ;;  %v216_v30 = vld [vmem:[#allocation4 + $0x148] sm:$0xff]  ;;  %v217_v31 = vld [vmem:[#allocation4 + $0x150] sm:$0xff]  ;;  %v218_v32 = vld [vmem:[#allocation4 + $0x158] sm:$0xff] }
  0x31   :  { %272 = vmatpush.msra.mxu0 %v223_v21  ;;  %301 = vmatpush.msra.mxu1 %v224_v22  ;;  %v211_v33 = vld [vmem:[#allocation4 + $0x120] sm:$0xff]  ;;  %v212_v34 = vld [vmem:[#allocation4 + $0x128] sm:$0xff]  ;;  %v213_v35 = vld [vmem:[#allocation4 + $0x130] sm:$0xff] }
  0x32   :  { %330 = vmatpush.msra.mxu2 %v225_v23  ;;  %359 = vmatpush.msra.mxu3 %v226_v24  ;;  %v214_v36 = vld [vmem:[#allocation4 + $0x138] sm:$0xff]  ;;  %v206_v37 = vld [vmem:[%s7739_s0 + $0x1] sm:$0xff]  ;;  %v203_v39 = vld [vmem:[#allocation4 + $0x108] sm:$0xff] }
  0x33   :  { %273 = vmatpush.msra.mxu0 %v219_v25  ;;  %302 = vmatpush.msra.mxu1 %v220_v26  ;;  %v202_v38 = vld [vmem:[#allocation4 + $0x100] sm:$0xff]  ;;  %v204_v40 = vld [vmem:[#allocation4 + $0x110] sm:$0xff]  ;;  %v205_v41 = vld [vmem:[#allocation4 + $0x118] sm:$0xff] }
  0x34   :  { %331 = vmatpush.msra.mxu2 %v221_v27  ;;  %360 = vmatpush.msra.mxu3 %v222_v28  ;;  %v198_v42 = vld [vmem:[#allocation4 + $0xe0] sm:$0xff]  ;;  %v199_v43 = vld [vmem:[#allocation4 + $0xe8] sm:$0xff]  ;;  %v200_v44 = vld [vmem:[#allocation4 + $0xf0] sm:$0xff] }
  0x35   :  { %274 = vmatpush.msra.mxu0 %v215_v29  ;;  %303 = vmatpush.msra.mxu1 %v216_v30  ;;  %v201_v45 = vld [vmem:[#allocation4 + $0xf8] sm:$0xff]  ;;  %v194_v46 = vld [vmem:[#allocation4 + $0xc0] sm:$0xff]  ;;  %v195_v47 = vld [vmem:[#allocation4 + $0xc8] sm:$0xff] }
  0x36   :  { %332 = vmatpush.msra.mxu2 %v217_v31  ;;  %361 = vmatpush.msra.mxu3 %v218_v32  ;;  %v196_v48 = vld [vmem:[#allocation4 + $0xd0] sm:$0xff]  ;;  %v197_v49 = vld [vmem:[#allocation4 + $0xd8] sm:$0xff]  ;;  %v207_v50 = vld [vmem:[%s7739_s0 + $0x9] sm:$0xff] }
  0x37   :  { %275 = vmatpush.msra.mxu0 %v211_v33  ;;  %304 = vmatpush.msra.mxu1 %v212_v34  ;;  %v190_v51 = vld [vmem:[#allocation4 + $0xa0] sm:$0xff]  ;;  %v191_v52 = vld [vmem:[#allocation4 + $0xa8] sm:$0xff]  ;;  %v192_v53 = vld [vmem:[#allocation4 + $0xb0] sm:$0xff] }
  0x38   :  { %333 = vmatpush.msra.mxu2 %v213_v35  ;;  %362 = vmatpush.msra.mxu3 %v214_v36  ;;  %v193_v54 = vld [vmem:[#allocation4 + $0xb8] sm:$0xff]  ;;  %v186_v55 = vld [vmem:[#allocation4 + $0x80] sm:$0xff]  ;;  %v187_v56 = vld [vmem:[#allocation4 + $0x88] sm:$0xff] }
  0x39   :  { %4629 = vmatmul.msk.f32.vlgmr.msra.gmra.mxu0 %vm247_vm0, %v206_v37  ;;  %4633 = vmatmul.msk.f32.vlgmr.msra.gmra.mxu1 %vm247_vm0, %v206_v37  ;;  %v188_v57 = vld [vmem:[#allocation4 + $0x90] sm:$0xff]  ;;  %v189_v58 = vld [vmem:[#allocation4 + $0x98] sm:$0xff]  ;;  %v182_v59 = vld [vmem:[#allocation4 + $0x60] sm:$0xff] }
  0x3a   :  { %4637 = vmatmul.msk.f32.vlgmr.msra.gmra.mxu2 %vm247_vm0, %v206_v37  ;;  %4641 = vmatmul.msk.f32.vlgmr.msra.gmra.mxu3 %vm247_vm0, %v206_v37  ;;  %v183_v60 = vld [vmem:[#allocation4 + $0x68] sm:$0xff]  ;;  %v184_v61 = vld [vmem:[#allocation4 + $0x70] sm:$0xff]  ;;  %v185_v62 = vld [vmem:[#allocation4 + $0x78] sm:$0xff] }
  0x3b   :  { %395 = vmatpush.msrb.mxu0 %v202_v38  ;;  %424 = vmatpush.msrb.mxu1 %v203_v39  ;;  %v208_v63 = vld [vmem:[%s7739_s0 + $0x19] sm:$0xff]  ;;  %v178_v0 = vld [vmem:[#allocation4 + $0x40] sm:$0xff]  ;;  %v179_v1 = vld [vmem:[#allocation4 + $0x48] sm:$0xff] }
  0x3c   :  { %453 = vmatpush.msrb.mxu2 %v204_v40  ;;  %482 = vmatpush.msrb.mxu3 %v205_v41  ;;  %v180_v2 = vld [vmem:[#allocation4 + $0x50] sm:$0xff]  ;;  %v181_v3 = vld [vmem:[#allocation4 + $0x58] sm:$0xff]  ;;  %v174_v4 = vld [vmem:[#allocation4 + $0x20] sm:$0xff] }
  0x3d   :  { %396 = vmatpush.msrb.mxu0 %v198_v42  ;;  %425 = vmatpush.msrb.mxu1 %v199_v43  ;;  %v175_v5 = vld [vmem:[#allocation4 + $0x28] sm:$0xff]  ;;  %v176_v6 = vld [vmem:[#allocation4 + $0x30] sm:$0xff]  ;;  %v177_v7 = vld [vmem:[#allocation4 + $0x38] sm:$0xff] }
  0x3e   :  { %454 = vmatpush.msrb.mxu2 %v200_v44  ;;  %483 = vmatpush.msrb.mxu3 %v201_v45  ;;  %v170_v8 = vld [vmem:[#allocation4] sm:$0xff]  ;;  %v171_v9 = vld [vmem:[#allocation4 + $0x8] sm:$0xff]  ;;  %v172_v10 = vld [vmem:[#allocation4 + $0x10] sm:$0xff] }
  0x3f   :  { %397 = vmatpush.msrb.mxu0 %v194_v46  ;;  %426 = vmatpush.msrb.mxu1 %v195_v47  ;;  %v173_v11 = vld [vmem:[#allocation4 + $0x18] sm:$0xff]  ;;  %v209_v12 = vld [vmem:[%s7739_s0 + $0x21] sm:$0xff]  ;;  %v542_v14 = vld [vmem:[#allocation4 + $0x348] sm:$0xff] }
  0x40   :  { %455 = vmatpush.msrb.mxu2 %v196_v48  ;;  %484 = vmatpush.msrb.mxu3 %v197_v49  ;;  %v541_v13 = vld [vmem:[#allocation4 + $0x340] sm:$0xff]  ;;  %v543_v15 = vld [vmem:[#allocation4 + $0x350] sm:$0xff]  ;;  %v544_v16 = vld [vmem:[#allocation4 + $0x358] sm:$0xff] }
  0x41   :  { %4630 = vmatmul.msk.f32.gmra.mxu0 %vm247_vm0, %v207_v50  ;;  %4634 = vmatmul.msk.f32.gmra.mxu1 %vm247_vm0, %v207_v50  ;;  %v537_v17 = vld [vmem:[#allocation4 + $0x320] sm:$0xff]  ;;  %v538_v18 = vld [vmem:[#allocation4 + $0x328] sm:$0xff]  ;;  %v539_v19 = vld [vmem:[#allocation4 + $0x330] sm:$0xff] }
  0x42   :  { %4638 = vmatmul.msk.f32.gmra.mxu2 %vm247_vm0, %v207_v50  ;;  %4642 = vmatmul.msk.f32.gmra.mxu3 %vm247_vm0, %v207_v50  ;;  %v540_v20 = vld [vmem:[#allocation4 + $0x338] sm:$0xff]  ;;  %v533_v21 = vld [vmem:[#allocation4 + $0x300] sm:$0xff]  ;;  %v534_v22 = vld [vmem:[#allocation4 + $0x308] sm:$0xff] }
  0x43   :  { %398 = vmatpush.msrb.mxu0 %v190_v51  ;;  %427 = vmatpush.msrb.mxu1 %v191_v52  ;;  %v535_v23 = vld [vmem:[#allocation4 + $0x310] sm:$0xff]  ;;  %v536_v24 = vld [vmem:[#allocation4 + $0x318] sm:$0xff]  ;;  %v529_v26 = vld [vmem:[#allocation4 + $0x2e0] sm:$0xff] }
  0x44   :  { %456 = vmatpush.msrb.mxu2 %v192_v53  ;;  %485 = vmatpush.msrb.mxu3 %v193_v54  ;;  %v166_v25 = vld [vmem:[%s7739_s0] sm:$0xff]  ;;  %v530_v27 = vld [vmem:[#allocation4 + $0x2e8] sm:$0xff]  ;;  %v531_v28 = vld [vmem:[#allocation4 + $0x2f0] sm:$0xff] }
  0x45   :  { %399 = vmatpush.msrb.mxu0 %v186_v55  ;;  %428 = vmatpush.msrb.mxu1 %v187_v56  ;;  %v532_v29 = vld [vmem:[#allocation4 + $0x2f8] sm:$0xff]  ;;  %v525_v30 = vld [vmem:[#allocation4 + $0x2c0] sm:$0xff]  ;;  %v526_v31 = vld [vmem:[#allocation4 + $0x2c8] sm:$0xff] }
  0x46   :  { %457 = vmatpush.msrb.mxu2 %v188_v57  ;;  %486 = vmatpush.msrb.mxu3 %v189_v58  ;;  %v527_v32 = vld [vmem:[#allocation4 + $0x2d0] sm:$0xff]  ;;  %v528_v33 = vld [vmem:[#allocation4 + $0x2d8] sm:$0xff]  ;;  %v521_v34 = vld [vmem:[#allocation4 + $0x2a0] sm:$0xff] }
  0x47   :  { %400 = vmatpush.msrb.mxu0 %v182_v59  ;;  %429 = vmatpush.msrb.mxu1 %v183_v60  ;;  %v522_v35 = vld [vmem:[#allocation4 + $0x2a8] sm:$0xff]  ;;  %v523_v36 = vld [vmem:[#allocation4 + $0x2b0] sm:$0xff]  ;;  %v524_v37 = vld [vmem:[#allocation4 + $0x2b8] sm:$0xff] }
  0x48   :  { %458 = vmatpush.msrb.mxu2 %v184_v61  ;;  %487 = vmatpush.msrb.mxu3 %v185_v62  ;;  %v167_v38 = vld [vmem:[%s7739_s0 + $0x8] sm:$0xff]  ;;  %v519_v41 = vld [vmem:[#allocation4 + $0x290] sm:$0xff]  ;;  %v520_v42 = vld [vmem:[#allocation4 + $0x298] sm:$0xff] }
  0x49   :  { %4631 = vmatmul.msk.f32.gmra.mxu0 %vm247_vm0, %v208_v63  ;;  %4635 = vmatmul.msk.f32.gmra.mxu1 %vm247_vm0, %v208_v63  ;;  %v517_v39 = vld [vmem:[#allocation4 + $0x280] sm:$0xff]  ;;  %v518_v40 = vld [vmem:[#allocation4 + $0x288] sm:$0xff]  ;;  %v515_v45 = vld [vmem:[#allocation4 + $0x270] sm:$0xff] }
  0x4a   :  { %4639 = vmatmul.msk.f32.gmra.mxu2 %vm247_vm0, %v208_v63  ;;  %4643 = vmatmul.msk.f32.gmra.mxu3 %vm247_vm0, %v208_v63  ;;  %v513_v43 = vld [vmem:[#allocation4 + $0x260] sm:$0xff]  ;;  %v514_v44 = vld [vmem:[#allocation4 + $0x268] sm:$0xff]  ;;  %v516_v46 = vld [vmem:[#allocation4 + $0x278] sm:$0xff] }
  0x4b   :  { %401 = vmatpush.msrb.mxu0 %v178_v0  ;;  %430 = vmatpush.msrb.mxu1 %v179_v1  ;;  %v509_v47 = vld [vmem:[#allocation4 + $0x240] sm:$0xff]  ;;  %v510_v48 = vld [vmem:[#allocation4 + $0x248] sm:$0xff]  ;;  %v511_v49 = vld [vmem:[#allocation4 + $0x250] sm:$0xff] }
  0x4c   :  { %459 = vmatpush.msrb.mxu2 %v180_v2  ;;  %488 = vmatpush.msrb.mxu3 %v181_v3  ;;  %v512_v50 = vld [vmem:[#allocation4 + $0x258] sm:$0xff]  ;;  %v504_v53 = vld [vmem:[%s7739_s0 + $0x2] sm:$0xff]  ;;  %v505_v54 = vld [vmem:[%s7739_s0 + $0xa] sm:$0xff] }
  0x4d   :  { %402 = vmatpush.msrb.mxu0 %v174_v4  ;;  %431 = vmatpush.msrb.mxu1 %v175_v5  ;;  %v168_v51 = vld [vmem:[%s7739_s0 + $0x18] sm:$0xff]  ;;  %v169_v52 = vld [vmem:[%s7739_s0 + $0x20] sm:$0xff] }
  0x4e   :  { %460 = vmatpush.msrb.mxu2 %v176_v6  ;;  %489 = vmatpush.msrb.mxu3 %v177_v7  ;;  %v506_v55 = vld [vmem:[%s7739_s0 + $0x1a] sm:$0xff]  ;;  %v507_v56 = vld [vmem:[%s7739_s0 + $0x22] sm:$0xff]  ;;  %s5205_s0 = smov 96  }
  0x4f   :  { %403 = vmatpush.msrb.mxu0 %v170_v8  ;;  %432 = vmatpush.msrb.mxu1 %v171_v9 }
  0x50   :  { %461 = vmatpush.msrb.mxu2 %v172_v10  ;;  %490 = vmatpush.msrb.mxu3 %v173_v11 }
  0x51   :  { %4632 = vmatmul.msk.f32.gmra.mxu0 %vm247_vm0, %v209_v12  ;;  %4636 = vmatmul.msk.f32.gmra.mxu1 %vm247_vm0, %v209_v12 }
  0x52   :  { %4640 = vmatmul.msk.f32.gmra.mxu2 %vm247_vm0, %v209_v12  ;;  %4644 = vmatmul.msk.f32.gmra.mxu3 %vm247_vm0, %v209_v12 }
  0x53   :  { %564 = vmatpush.msra.mxu0 %v541_v13  ;;  %593 = vmatpush.msra.mxu1 %v542_v14 }
  0x54   :  { %622 = vmatpush.msra.mxu2 %v543_v15  ;;  %651 = vmatpush.msra.mxu3 %v544_v16 }
  0x55   :  { %565 = vmatpush.msra.mxu0 %v537_v17  ;;  %594 = vmatpush.msra.mxu1 %v538_v18 }
  0x56   :  { %623 = vmatpush.msra.mxu2 %v539_v19  ;;  %652 = vmatpush.msra.mxu3 %v540_v20 }
  0x57   :  { %566 = vmatpush.msra.mxu0 %v533_v21  ;;  %595 = vmatpush.msra.mxu1 %v534_v22 }
  0x58   :  { %624 = vmatpush.msra.mxu2 %v535_v23  ;;  %653 = vmatpush.msra.mxu3 %v536_v24  ;;  %v689_v23 = vld [vmem:[#allocation7] sm:$0xf] }
  0x59   :  { %4645 = vmatmul.msk.f32.vlgmr.msrb.gmra.mxu0 %vm247_vm0, %v166_v25  ;;  %4649 = vmatmul.msk.f32.vlgmr.msrb.gmra.mxu1 %vm247_vm0, %v166_v25 }
  0x5a   :  { %4653 = vmatmul.msk.f32.vlgmr.msrb.gmra.mxu2 %vm247_vm0, %v166_v25  ;;  %4657 = vmatmul.msk.f32.vlgmr.msrb.gmra.mxu3 %vm247_vm0, %v166_v25 }
  0x5b   :  { %567 = vmatpush.msra.mxu0 %v529_v26  ;;  %596 = vmatpush.msra.mxu1 %v530_v27  ;;  %v5430_v27 = vperm.slane %v689_v23, 0 }
  0x5c   :  { %625 = vmatpush.msra.mxu2 %v531_v28  ;;  %654 = vmatpush.msra.mxu3 %v532_v29 }
  0x5d   :  { %568 = vmatpush.msra.mxu0 %v525_v30  ;;  %597 = vmatpush.msra.mxu1 %v526_v31 }
  0x5e   :  { %626 = vmatpush.msra.mxu2 %v527_v32  ;;  %655 = vmatpush.msra.mxu3 %v528_v33 }
  0x5f   :  { %569 = vmatpush.msra.mxu0 %v521_v34  ;;  %598 = vmatpush.msra.mxu1 %v522_v35  ;;  %v5435_v34 = vperm.slane %v689_v23, 1 }
  0x60   :  { %627 = vmatpush.msra.mxu2 %v523_v36  ;;  %656 = vmatpush.msra.mxu3 %v524_v37  ;;  %v5438_v37 = vperm.slane %v689_v23, 2 }
  0x61   :  { %4646 = vmatmul.msk.f32.gmra.mxu0 %vm247_vm0, %v167_v38  ;;  %4650 = vmatmul.msk.f32.gmra.mxu1 %vm247_vm0, %v167_v38 }
  0x62   :  { %4654 = vmatmul.msk.f32.gmra.mxu2 %vm247_vm0, %v167_v38  ;;  %4658 = vmatmul.msk.f32.gmra.mxu3 %vm247_vm0, %v167_v38 }
  0x63   :  { %570 = vmatpush.msra.mxu0 %v517_v39  ;;  %599 = vmatpush.msra.mxu1 %v518_v40 }
  0x64   :  { %628 = vmatpush.msra.mxu2 %v519_v41  ;;  %657 = vmatpush.msra.mxu3 %v520_v42 }
  0x65   :  { %571 = vmatpush.msra.mxu0 %v513_v43  ;;  %600 = vmatpush.msra.mxu1 %v514_v44 }
  0x66   :  { %629 = vmatpush.msra.mxu2 %v515_v45  ;;  %658 = vmatpush.msra.mxu3 %v516_v46  ;;  %v694_v45 = vperm.slane %v689_v23, 3 }
  0x67   :  { %572 = vmatpush.msra.mxu0 %v509_v47  ;;  %601 = vmatpush.msra.mxu1 %v510_v48 }
  0x68   :  { %630 = vmatpush.msra.mxu2 %v511_v49  ;;  %659 = vmatpush.msra.mxu3 %v512_v50 }
  0x69   :  { %4647 = vmatmul.msk.f32.gmra.mxu0 %vm247_vm0, %v168_v51  ;;  %4651 = vmatmul.msk.f32.gmra.mxu1 %vm247_vm0, %v168_v51 }
  0x6a   :  { %4655 = vmatmul.msk.f32.gmra.mxu2 %vm247_vm0, %v168_v51  ;;  %4659 = vmatmul.msk.f32.gmra.mxu3 %vm247_vm0, %v168_v51 }
  0x71   :  { %4648 = vmatmul.msk.f32.gmra.mxu0 %vm247_vm0, %v169_v52  ;;  %4652 = vmatmul.msk.f32.gmra.mxu1 %vm247_vm0, %v169_v52 }
  0x72   :  { %4656 = vmatmul.msk.f32.gmra.mxu2 %vm247_vm0, %v169_v52  ;;  %4660 = vmatmul.msk.f32.gmra.mxu3 %vm247_vm0, %v169_v52 }
  0x79   :  { %4661 = vmatmul.msk.f32.vlgmr.msra.gmra.mxu0 %vm247_vm0, %v504_v53  ;;  %4665 = vmatmul.msk.f32.vlgmr.msra.gmra.mxu1 %vm247_vm0, %v504_v53 }
  0x7a   :  { %4669 = vmatmul.msk.f32.vlgmr.msra.gmra.mxu2 %vm247_vm0, %v504_v53  ;;  %4673 = vmatmul.msk.f32.vlgmr.msra.gmra.mxu3 %vm247_vm0, %v504_v53 }
  0x81   :  { %4662 = vmatmul.msk.f32.gmra.mxu0 %vm247_vm0, %v505_v54  ;;  %4666 = vmatmul.msk.f32.gmra.mxu1 %vm247_vm0, %v505_v54 }
  0x82   :  { %4670 = vmatmul.msk.f32.gmra.mxu2 %vm247_vm0, %v505_v54  ;;  %4674 = vmatmul.msk.f32.gmra.mxu3 %vm247_vm0, %v505_v54 }
  0x89   :  { %4663 = vmatmul.msk.f32.gmra.mxu0 %vm247_vm0, %v506_v55  ;;  %4667 = vmatmul.msk.f32.gmra.mxu1 %vm247_vm0, %v506_v55 }
  0x8a   :  { %4671 = vmatmul.msk.f32.gmra.mxu2 %vm247_vm0, %v506_v55  ;;  %4675 = vmatmul.msk.f32.gmra.mxu3 %vm247_vm0, %v506_v55 }
  0x91   :  { %4664 = vmatmul.msk.f32.gmra.mxu0 %vm247_vm0, %v507_v56  ;;  %4668 = vmatmul.msk.f32.gmra.mxu1 %vm247_vm0, %v507_v56 }
  0x92   :  { %4672 = vmatmul.msk.f32.gmra.mxu2 %vm247_vm0, %v507_v56  ;;  %4676 = vmatmul.msk.f32.gmra.mxu3 %vm247_vm0, %v507_v56 }
  0xb6   :  { %v277_v57 = vpop.f32.mrf.mxu0  ;;  %v306_v58 = vpop.f32.mrf.mxu1 }
  0xbd   :  { %v335_v59 = vpop.f32.mrf.mxu2  ;;  %v364_v60 = vpop.f32.mrf.mxu3 }
  0xbe   :  { %v280_v61 = vpop.f32.mrf.mxu0  ;;  %v5402_v62 = vpop.f32.mrf.mxu1 }
  0xc5   :  { %v338_v63 = vpop.f32.mrf.mxu2  ;;  %v367_v0 = vpop.f32.mrf.mxu3 }
  0xc6   :  { %v5404_v1 = vpop.f32.mrf.mxu0  ;;  %v5406_v2 = vpop.f32.mrf.mxu1 }
  0xcd   :  { %v5408_v3 = vpop.f32.mrf.mxu2  ;;  %v5410_v4 = vpop.f32.mrf.mxu3 }
  0xce   :  { %v5412_v5 = vpop.f32.mrf.mxu0  ;;  %v5414_v6 = vpop.f32.mrf.mxu1 }
  0xd5   :  { %v5416_v7 = vpop.f32.mrf.mxu2  ;;  %v5418_v8 = vpop.f32.mrf.mxu3 }
  0xd6   :  { %v405_v9 = vpop.f32.mrf.mxu0  ;;  %v434_v10 = vpop.f32.mrf.mxu1 }
  0xd7   :  { %v406_v24 = vadd.f32 %v405_v9, %v277_v57  ;;  %v435_v31 = vadd.f32 %v434_v10, %v306_v58 }
  0xdd   :  { %v463_v11 = vpop.f32.mrf.mxu2  ;;  %v492_v12 = vpop.f32.mrf.mxu3 }
  0xde   :  { %v408_v13 = vpop.f32.mrf.mxu0  ;;  %v437_v14 = vpop.f32.mrf.mxu1  ;;  %v464_v36 = vadd.f32 %v463_v11, %v335_v59  ;;  %v493_v42 = vadd.f32 %v492_v12, %v364_v60 }
  0xdf   :  { %v409_v54 = vadd.f32 %v408_v13, %v280_v61 }
  0xe5   :  { %v466_v15 = vpop.f32.mrf.mxu2  ;;  %v495_v16 = vpop.f32.mrf.mxu3 }
  0xe6   :  { %v411_v17 = vpop.f32.mrf.mxu0  ;;  %v5420_v18 = vpop.f32.mrf.mxu1  ;;  %v467_v48 = vadd.f32 %v466_v15, %v338_v63  ;;  %v496_v55 = vadd.f32 %v495_v16, %v367_v0  ;;  %v438_v15 = vadd.f32 %v437_v14, %v5402_v62 }
  0xed   :  { %v469_v19 = vpop.f32.mrf.mxu2  ;;  %v5422_v20 = vpop.f32.mrf.mxu3 }
  0xee   :  { %v5424_v21 = vpop.f32.mrf.mxu0  ;;  %v5426_v22 = vpop.f32.mrf.mxu1  ;;  %v470_v9 = vadd.f32 %v469_v19, %v5408_v3  ;;  %v412_v3 = vadd.f32 %v411_v17, %v5404_v1 }
  0xf5   :  { %v5428_v25 = vpop.f32.mrf.mxu2  ;;  %v501_v26 = vpop.f32.mrf.mxu3 }
  0xf6   :  { %v574_v28 = vpop.f32.mrf.mxu0  ;;  %v603_v30 = vpop.f32.mrf.mxu1 }
  0xf7   :  { %v673_v29 = vadd.f32 %v574_v28, %v406_v24  ;;  %v674_v33 = vadd.f32 %v603_v30, %v435_v31  ;;  %v502_v30 = vadd.f32 %v501_v26, %v5418_v8  ;;  %v499_v31 = vadd.f32 %v5422_v20, %v5410_v4 }
  0xf9   :  { %v5433_v32 = vadd.f32 %v5430_v27, %v673_v29  ;;  %v5444_v41 = vadd.f32 %v5435_v34, %v674_v33  ;;  %v473_v33 = vadd.f32 %v5428_v25, %v5416_v7  ;;  %v444_v25 = vadd.f32 %v5426_v22, %v5414_v6 }
  0xfb   :  { %v715_v35 = vmax.f32 %v5433_v32, 0.0  ;;  %v716_v47 = vmax.f32 %v5444_v41, 0.0  ;;  %v1746_v32 = vld [vmem:[#allocation9 + $0xec0] sm:$0xff] }
  0xfd   :  { %v632_v38 = vpop.f32.mrf.mxu2  ;;  %v661_v39 = vpop.f32.mrf.mxu3  ;;  %747 = vrot.lane.b32.xlu2 %v715_v35, %s5205_s0 }
  0xfe   :  { %v675_v40 = vadd.f32 %v632_v38, %v464_v36  ;;  %v676_v44 = vadd.f32 %v661_v39, %v493_v42  ;;  %v577_v49 = vpop.f32.mrf.mxu0  ;;  %v606_v63 = vpop.f32.mrf.mxu1  ;;  %v415_v39 = vadd.f32 %v5424_v21, %v5412_v5  ;;  %v441_v21 = vadd.f32 %v5420_v18, %v5406_v2 }
  0xff   :  { %v677_v57 = vadd.f32 %v577_v49, %v409_v54  ;;  %v678_v19 = vadd.f32 %v606_v63, %v438_v15  ;;  %v1698_v63 = vld [vmem:[#allocation9 + $0xd40] sm:$0xff] }
 0x100   :  { %v5447_v43 = vadd.f32 %v5438_v37, %v675_v40  ;;  %v5457_v52 = vadd.f32 %v694_v45, %v676_v44  ;;  %v1686_v15 = vld [vmem:[#allocation9 + $0xce0] sm:$0xff] }
 0x101   :  { %v5472_v10 = vadd.f32 %v5430_v27, %v677_v57  ;;  %v5492_v62 = vadd.f32 %v5435_v34, %v678_v19  ;;  %v1638_v19 = vld [vmem:[#allocation9 + $0xb60] sm:$0xff] }
 0x102   :  { %v717_v46 = vmax.f32 %v5447_v43, 0.0  ;;  %v718_v60 = vmax.f32 %v5457_v52, 0.0  ;;  %1791 = vmatpush.msrb.mxu1 %v1638_v19  ;;  %v1699_v52 = vld [vmem:[#allocation9 + $0xd48] sm:$0xff] }
 0x103   :  { %v719_v28 = vmax.f32 %v5472_v10, 0.0  ;;  %v720_v40 = vmax.f32 %v5492_v62, 0.0  ;;  %v1671_v62 = vld [vmem:[#allocation9 + $0xc68] sm:$0xff] }
 0x104   :  { %751 = vrot.lane.b32.xlu0 %v717_v46, %s5205_s0 }
 0x105   :  { %v635_v50 = vpop.f32.mrf.mxu2  ;;  %v664_v51 = vpop.f32.mrf.mxu3  ;;  %749 = vrot.lane.b32.xlu2 %v716_v47, %s5205_s0 }
 0x106   :  { %v679_v53 = vadd.f32 %v635_v50, %v467_v48  ;;  %v680_v58 = vadd.f32 %v664_v51, %v496_v55  ;;  %v580_v12 = vpop.f32.mrf.mxu0  ;;  %v609_v1 = vpop.f32.mrf.mxu1 }
 0x107   :  { %v681_v23 = vadd.f32 %v580_v12, %v412_v3  ;;  %v682_v51 = vadd.f32 %v609_v1, %v441_v21  ;;  %v1690_v12 = vld [vmem:[#allocation9 + $0xd00] sm:$0xff] }
 0x108   :  { %v5460_v56 = vadd.f32 %v5438_v37, %v679_v53  ;;  %v5474_v11 = vadd.f32 %v694_v45, %v680_v58  ;;  %v1574_v3 = vld [vmem:[#allocation9 + $0x960] sm:$0xff] }
 0x109   :  { %v5498_v17 = vadd.f32 %v5430_v27, %v681_v23  ;;  %v5545_v2 = vadd.f32 %v5435_v34, %v682_v51  ;;  %1762 = vmatpush.msrb.mxu0 %v1574_v3  ;;  %v1634_v23 = vld [vmem:[#allocation9 + $0xb40] sm:$0xff] }
 0x10a   :  { %v721_v59 = vmax.f32 %v5460_v56, 0.0  ;;  %v722_v24 = vmax.f32 %v5474_v11, 0.0  ;;  %1792 = vmatpush.msrb.mxu1 %v1634_v23  ;;  %v1742_v1 = vld [vmem:[#allocation9 + $0xea0] sm:$0xff]  ;;  %v1687_v11 = vld [vmem:[#allocation9 + $0xce8] sm:$0xff] }
 0x10b   :  { %v723_v48 = vmax.f32 %v5498_v17, 0.0  ;;  %v724_v18 = vmax.f32 %v5545_v2, 0.0  ;;  %v1558_v21 = vld [vmem:[#allocation9 + $0x8e0] sm:$0xff] }
 0x10c   :  { %759 = vrot.lane.b32.xlu1 %v721_v59, %s5205_s0  ;;  %753 = vrot.lane.b32.xlu0 %v718_v60, %s5205_s0  ;;  %v1554_v51 = vld [vmem:[#allocation9 + $0x8c0] sm:$0xff] }
 0x10d   :  { %v638_v61 = vpop.f32.mrf.mxu2  ;;  %v667_v0 = vpop.f32.mrf.mxu3  ;;  %v1658_v3 = vld [vmem:[#allocation9 + $0xc00] sm:$0xff] }
 0x10e   :  { %v683_v13 = vadd.f32 %v638_v61, %v470_v9  ;;  %v583_v36 = vpop.f32.mrf.mxu0  ;;  %v684_v42 = vadd.f32 %v667_v0, %v499_v31  ;;  %v612_v20 = vpop.f32.mrf.mxu1  ;;  %v1694_v61 = vld [vmem:[#allocation9 + $0xd20] sm:$0xff] }
 0x10f   :  { %v685_v50 = vadd.f32 %v583_v36, %v415_v39  ;;  %v686_v53 = vadd.f32 %v612_v20, %v444_v25  ;;  %v1738_v31 = vld [vmem:[#allocation9 + $0xe80] sm:$0xff] }
 0x110   :  { %v5479_v16 = vadd.f32 %v5438_v37, %v683_v13  ;;  %v5520_v4 = vadd.f32 %v694_v45, %v684_v42  ;;  %v1750_v13 = vld [vmem:[#allocation9 + $0xee0] sm:$0xff] }
 0x111   :  { %v5526_v7 = vadd.f32 %v5430_v27, %v685_v50  ;;  %v5548_v6 = vadd.f32 %v5435_v34, %v686_v53  ;;  %v5206_v27 = vmov 0.0   ;;  %1853 = vmatpush.msrb.mxu3 %v1750_v13  ;;  %v1626_v36 = vld [vmem:[#allocation9 + $0xb00] sm:$0xff] }
 0x112   :  { %v725_v29 = vmax.f32 %v5479_v16, 0.0  ;;  %824 = vst [vmem:[#allocation2] sm:$0xff] %v5206_v27  ;;  %v1674_v39 = vld [vmem:[#allocation9 + $0xc80] sm:$0xff] }
 0x113   :  { %v727_v55 = vmax.f32 %v5526_v7, 0.0  ;;  %v728_v22 = vmax.f32 %v5548_v6, 0.0  ;;  %825 = vst [vmem:[#allocation2 + $0x8] sm:$0xff] %v5206_v27  ;;  %1854 = vmatpush.msrb.mxu3 %v1746_v32  ;;  %v1734_v42 = vld [vmem:[#allocation9 + $0xe60] sm:$0xff]  ;;  %v1711_v7 = vld [vmem:[#allocation9 + $0xda8] sm:$0xff] }
 0x114   :  { %761 = vrot.lane.b32.xlu1 %v722_v24, %s5205_s0  ;;  %755 = vrot.lane.b32.xlu0 %v719_v28, %s5205_s0  ;;  %826 = vst [vmem:[#allocation2 + $0x10] sm:$0xff] %v5206_v27  ;;  %v1670_v50 = vld [vmem:[#allocation9 + $0xc60] sm:$0xff] }
 0x115   :  { %767 = vrot.lane.b32.xlu2 %v725_v29, %s5205_s0  ;;  %v670_v14 = vpop.f32.mrf.mxu3  ;;  %v641_v26 = vpop.f32.mrf.mxu2  ;;  %827 = vst.msk [vmem:[#allocation2 + $0x18] sm:$0xff] %vm779_vm1, %v5206_v27  ;;  %1855 = vmatpush.msrb.mxu3 %v1742_v1  ;;  %v1730_v25 = vld [vmem:[#allocation9 + $0xe40] sm:$0xff] }
 0x116   :  { %v688_v8 = vadd.f32 %v670_v14, %v502_v30  ;;  %v687_v44 = vadd.f32 %v641_v26, %v473_v33  ;;  %831 = vst.msk [vmem:[#allocation2 + $0x38] sm:$0xff] %vm779_vm1, %v5206_v27  ;;  %v1682_v30 = vld [vmem:[#allocation9 + $0xcc0] sm:$0xff] }
 0x117   :  { %832 = vst [vmem:[#allocation2 + $0x40] sm:$0xff] %v5206_v27  ;;  %v1566_v14 = vld [vmem:[#allocation9 + $0x920] sm:$0xff]  ;;  %1856 = vmatpush.msrb.mxu3 %v1738_v31 }
 0x118   :  { %v5504_v38 = vadd.f32 %v694_v45, %v688_v8  ;;  %v5523_v5 = vadd.f32 %v5438_v37, %v687_v44  ;;  %v726_v45 = vmax.f32 %v5520_v4, 0.0  ;;  %833 = vst [vmem:[#allocation2 + $0x48] sm:$0xff] %v5206_v27  ;;  %v1702_v37 = vld [vmem:[#allocation9 + $0xd60] sm:$0xff] }
 0x119   :  { %834 = vst [vmem:[#allocation2 + $0x50] sm:$0xff] %v5206_v27  ;;  %1820 = vmatpush.msrb.mxu2 %v1702_v37  ;;  %v1630_v8 = vld [vmem:[#allocation9 + $0xb20] sm:$0xff]  ;;  %1857 = vmatpush.msrb.mxu3 %v1734_v42 }
 0x11a   :  { %v730_v49 = vmax.f32 %v5504_v38, 0.0  ;;  %v729_v54 = vmax.f32 %v5523_v5, 0.0  ;;  %835 = vst.msk [vmem:[#allocation2 + $0x58] sm:$0xff] %vm779_vm1, %v5206_v27  ;;  %v1678_v26 = vld [vmem:[#allocation9 + $0xca0] sm:$0xff]  ;;  %1793 = vmatpush.msrb.mxu1 %v1630_v8  ;;  %v1659_v5 = vld [vmem:[#allocation9 + $0xc08] sm:$0xff] }
 0x11b   :  { %836 = vst [vmem:[#allocation2 + $0x60] sm:$0xff] %v5206_v27  ;;  %1821 = vmatpush.msrb.mxu2 %v1698_v63  ;;  %v1562_v33 = vld [vmem:[#allocation9 + $0x900] sm:$0xff]  ;;  %1858 = vmatpush.msrb.mxu3 %v1730_v25 }
 0x11c   :  { %757 = vrot.lane.b32.xlu1 %v720_v40, %s5205_s0  ;;  %763 = vrot.lane.b32.xlu0 %v723_v48, %s5205_s0  ;;  %837 = vst [vmem:[#allocation2 + $0x68] sm:$0xff] %v5206_v27  ;;  %v1622_v44 = vld [vmem:[#allocation9 + $0xae0] sm:$0xff] }
 0x11d   :  { %777 = vrot.lane.b32.xlu2 %v730_v49, %s5205_s0  ;;  %838 = vst [vmem:[#allocation2 + $0x70] sm:$0xff] %v5206_v27  ;;  %1822 = vmatpush.msrb.mxu2 %v1694_v61  ;;  %v1618_v53 = vld [vmem:[#allocation9 + $0xac0] sm:$0xff] }
 0x11e   :  { %839 = vst.msk [vmem:[#allocation2 + $0x78] sm:$0xff] %vm779_vm1, %v5206_v27  ;;  %1794 = vmatpush.msrb.mxu1 %v1626_v36  ;;  %v1550_v37 = vld [vmem:[#allocation9 + $0x8a0] sm:$0xff] }
 0x11f   :  { %843 = vst.msk [vmem:[#allocation2 + $0x98] sm:$0xff] %vm779_vm1, %v5206_v27  ;;  %1823 = vmatpush.msrb.mxu2 %v1690_v12  ;;  %v1662_v63 = vld [vmem:[#allocation9 + $0xc20] sm:$0xff] }
 0x120   :  { %844 = vst [vmem:[#allocation2 + $0xa0] sm:$0xff] %v5206_v27  ;;  %1795 = vmatpush.msrb.mxu1 %v1622_v44  ;;  %v1722_v61 = vld [vmem:[#allocation9 + $0xe00] sm:$0xff] }
 0x121   :  { %845 = vst [vmem:[#allocation2 + $0xa8] sm:$0xff] %v5206_v27  ;;  %1824 = vmatpush.msrb.mxu2 %v1686_v15  ;;  %v1546_v12 = vld [vmem:[#allocation9 + $0x880] sm:$0xff] }
 0x122   :  { %846 = vst [vmem:[#allocation2 + $0xb0] sm:$0xff] %v5206_v27  ;;  %1796 = vmatpush.msrb.mxu1 %v1618_v53  ;;  %v1610_v13 = vld [vmem:[#allocation9 + $0xa80] sm:$0xff] }
 0x123   :  { %847 = vst.msk [vmem:[#allocation2 + $0xb8] sm:$0xff] %vm779_vm1, %v5206_v27  ;;  %1825 = vmatpush.msrb.mxu2 %v1682_v30  ;;  %v1666_v27 = vld [vmem:[#allocation9 + $0xc40] sm:$0xff] }
 0x124   :  { %775 = vrot.lane.b32.xlu1 %v729_v54, %s5205_s0  ;;  %769 = vrot.lane.b32.xlu0 %v726_v45, %s5205_s0  ;;  %v1606_v23 = vld [vmem:[#allocation9 + $0xa60] sm:$0xff] }
 0x125   :  { %771 = vrot.lane.b32.xlu2 %v727_v55, %s5205_s0  ;;  %1826 = vmatpush.msrb.mxu2 %v1678_v26  ;;  %v1654_v30 = vld [vmem:[#allocation9 + $0xbe0] sm:$0xff] }
 0x126   :  { %v1542_v8 = vld [vmem:[#allocation9 + $0x860] sm:$0xff] }
 0x127   :  { %1827 = vmatpush.msrb.mxu2 %v1674_v39  ;;  %v1538_v26 = vld [vmem:[#allocation9 + $0x840] sm:$0xff] }
 0x128   :  { %v1602_v31 = vld [vmem:[#allocation9 + $0xa40] sm:$0xff] }
 0x129   :  { %1828 = vmatpush.msrb.mxu2 %v1670_v50  ;;  %v1710_v38 = vld [vmem:[#allocation9 + $0xda0] sm:$0xff] }
 0x12a   :  { %v1598_v36 = vld [vmem:[#allocation9 + $0xa20] sm:$0xff] }
 0x12b   :  { %1829 = vmatpush.msrb.mxu2 %v1666_v27  ;;  %v1646_v39 = vld [vmem:[#allocation9 + $0xba0] sm:$0xff] }
 0x12c   :  { %765 = vrot.lane.b32.xlu1 %v724_v18, %s5205_s0  ;;  %773 = vrot.lane.b32.xlu0 %v728_v22, %s5205_s0  ;;  %v1706_v42 = vld [vmem:[#allocation9 + $0xd80] sm:$0xff]  ;;  %s4615_s0 = sshll.u32 %s7754_s15, 4  ;;  %s4616_s0 = int_to_ptr.hbm [resolvable:$true] %s4615_s0 }
 0x12d   :  { %1830 = vmatpush.msrb.mxu2 %v1662_v63  ;;  %v1530_v44 = vld [vmem:[#allocation9 + $0x800] sm:$0xff] }
 0x12e   :  { %v1594_v50 = vld [vmem:[#allocation9 + $0xa00] sm:$0xff] }
 0x12f   :  { %1831 = vmatpush.msrb.mxu2 %v1658_v3  ;;  %v1582_v3 = vld [vmem:[#allocation9 + $0x9a0] sm:$0xff] }
 0x131   :  { %1832 = vmatpush.msrb.mxu2 %v1654_v30  ;;  %v1514_v30 = vld [vmem:[#allocation9 + $0x780] sm:$0xff] }
 0x157   :  { %v748_v34 = vpop.permute.xlu2 %747 }
 0x15f   :  { %v5564_v57 = vpop.permute.xlu2 %749 }
 0x160   :  { %v780_v58 = vsel %vm779_vm1, %v748_v34, %v5564_v57  ;;  %v1726_v34 = vld [vmem:[#allocation9 + $0xe20] sm:$0xff] }
 0x161   :  { %v5570_v9 = vmax.f32 %v715_v35, %v780_v58  ;;  %v1570_v35 = vld [vmem:[#allocation9 + $0x940] sm:$0xff]  ;;  %1859 = vmatpush.msrb.mxu3 %v1726_v34 }
 0x162   :  { %1763 = vmatpush.msrb.mxu0 %v1570_v35  ;;  %v1614_v58 = vld [vmem:[#allocation9 + $0xaa0] sm:$0xff] }
 0x163   :  { %v865_v0 = vrot.slane %v5570_v9, 6  ;;  %1797 = vmatpush.msrb.mxu1 %v1614_v58  ;;  %1860 = vmatpush.msrb.mxu3 %v1722_v61  ;;  %v1718_v35 = vld [vmem:[#allocation9 + $0xde0] sm:$0xff] }
 0x164   :  { %1764 = vmatpush.msrb.mxu0 %v1566_v14  ;;  %v1590_v34 = vld [vmem:[#allocation9 + $0x9e0] sm:$0xff] }
 0x165   :  { %913 = vst [vmem:[#allocation2] sm:$0xfc] %v865_v0  ;;  %1798 = vmatpush.msrb.mxu1 %v1610_v13  ;;  %1861 = vmatpush.msrb.mxu3 %v1718_v35  ;;  %v1526_v58 = vld [vmem:[#allocation9 + $0x7e0] sm:$0xff] }
 0x166   :  { %1765 = vmatpush.msrb.mxu0 %v1562_v33  ;;  %v1522_v13 = vld [vmem:[#allocation9 + $0x7c0] sm:$0xff] }
 0x167   :  { %1799 = vmatpush.msrb.mxu1 %v1606_v23 }
 0x168   :  { %1766 = vmatpush.msrb.mxu0 %v1558_v21 }
 0x169   :  { %1800 = vmatpush.msrb.mxu1 %v1602_v31 }
 0x16a   :  { %1767 = vmatpush.msrb.mxu0 %v1554_v51  ;;  %v1642_v51 = vld [vmem:[#allocation9 + $0xb80] sm:$0xff] }
 0x16b   :  { %1801 = vmatpush.msrb.mxu1 %v1598_v36 }
 0x16c   :  { %1768 = vmatpush.msrb.mxu0 %v1550_v37  ;;  %v1703_v37 = vld [vmem:[#allocation9 + $0xd68] sm:$0xff] }
 0x16d   :  { %1802 = vmatpush.msrb.mxu1 %v1594_v50  ;;  %v1635_v50 = vld [vmem:[#allocation9 + $0xb48] sm:$0xff] }
 0x16e   :  { %1769 = vmatpush.msrb.mxu0 %v1546_v12 }
 0x16f   :  { %v5575_v20 = vpop.permute.xlu2 %767  ;;  %1803 = vmatpush.msrb.mxu1 %v1590_v34  ;;  %v1567_v34 = vld [vmem:[#allocation9 + $0x928] sm:$0xff] }
 0x170   :  { %1770 = vmatpush.msrb.mxu0 %v1542_v8  ;;  %v1578_v8 = vld [vmem:[#allocation9 + $0x980] sm:$0xff] }
 0x172   :  { %1771 = vmatpush.msrb.mxu0 %v1538_v26 }
 0x176   :  { %v752_v15 = vpop.permute.xlu0 %751 }
 0x177   :  { %v781_v19 = vsel %vm779_vm1, %v5564_v57, %v752_v15  ;;  %v5579_v32 = vpop.permute.xlu2 %777  ;;  %v1714_v57 = vld [vmem:[#allocation9 + $0xdc0] sm:$0xff] }
 0x178   :  { %v5583_v1 = vmax.f32 %v716_v47, %v781_v19  ;;  %v5588_v14 = vmax.f32 %v730_v49, %v5579_v32  ;;  %1862 = vmatpush.msrb.mxu3 %v1714_v57  ;;  %v1650_v47 = vld [vmem:[#allocation9 + $0xbc0] sm:$0xff]  ;;  %v1695_v19 = vld [vmem:[#allocation9 + $0xd28] sm:$0xff] }
 0x179   :  { %1833 = vmatpush.msrb.mxu2 %v1650_v47  ;;  %v1534_v49 = vld [vmem:[#allocation9 + $0x820] sm:$0xff]  ;;  %v1691_v57 = vld [vmem:[#allocation9 + $0xd08] sm:$0xff] }
 0x17a   :  { %v866_v33 = vrot.slane %v5583_v1, 6  ;;  %v887_v41 = vrot.slane %v5588_v14, 6  ;;  %1863 = vmatpush.msrb.mxu3 %v1710_v38  ;;  %1772 = vmatpush.msrb.mxu0 %v1534_v49  ;;  %v1751_v47 = vld [vmem:[#allocation9 + $0xee8] sm:$0xff] }
 0x17b   :  { %1834 = vmatpush.msrb.mxu2 %v1646_v39  ;;  %v1575_v38 = vld [vmem:[#allocation9 + $0x968] sm:$0xff] }
 0x17c   :  { %914 = vst [vmem:[#allocation2 + $0x8] sm:$0xfc] %v866_v33  ;;  %1864 = vmatpush.msrb.mxu3 %v1706_v42  ;;  %1773 = vmatpush.msrb.mxu0 %v1530_v44  ;;  %v1639_v49 = vld [vmem:[#allocation9 + $0xb68] sm:$0xff]  ;;  %v5617_v42 = vld [vmem:[#allocation2] sm:$0xf8] }
 0x17d   :  { %938 = vst.msk [vmem:[#allocation2 + $0xb8] sm:$0x3] %vm925_vm2, %v887_v41  ;;  %1835 = vmatpush.msrb.mxu2 %v1642_v51  ;;  %v1747_v39 = vld [vmem:[#allocation9 + $0xec8] sm:$0xff] }
 0x17e   :  { %v5597_v21 = vpop.permute.xlu1 %759  ;;  %v754_v25 = vpop.permute.xlu0 %753  ;;  %1774 = vmatpush.msrb.mxu0 %v1526_v58  ;;  %1969 = vmatpush.msra.mxu3 %v1751_v47  ;;  %v1571_v44 = vld [vmem:[#allocation9 + $0x948] sm:$0xff] }
 0x17f   :  { %v782_v53 = vsel %vm779_vm1, %v752_v15, %v754_v25  ;;  %v811_v27 = vmax.f32 %v718_v60, %v754_v25  ;;  %1936 = vmatpush.msra.mxu2 %v1703_v37  ;;  %v1586_v15 = vld [vmem:[#allocation9 + $0x9c0] sm:$0xff] }
 0x180   :  { %v810_v63 = vmax.f32 %v717_v46, %v782_v53  ;;  %1775 = vmatpush.msrb.mxu0 %v1522_v13  ;;  %1804 = vmatpush.msrb.mxu1 %v1586_v15  ;;  %v1518_v60 = vld [vmem:[#allocation9 + $0x7a0] sm:$0xff]  ;;  %v1683_v53 = vld [vmem:[#allocation9 + $0xcc8] sm:$0xff] }
 0x181   :  { %v868_v61 = vrot.slane %v811_v27, 6  ;;  %1937 = vmatpush.msra.mxu2 %v1699_v52  ;;  %1970 = vmatpush.msra.mxu3 %v1747_v39  ;;  %v1743_v27 = vld [vmem:[#allocation9 + $0xea8] sm:$0xff] }
 0x182   :  { %v867_v12 = vrot.slane %v810_v63, 6  ;;  %1776 = vmatpush.msrb.mxu0 %v1518_v60  ;;  %1805 = vmatpush.msrb.mxu1 %v1582_v3  ;;  %v1631_v63 = vld [vmem:[#allocation9 + $0xb28] sm:$0xff] }
 0x183   :  { %917 = vst.msk [vmem:[#allocation2 + $0x18] sm:$0xfc] %vm916_vm3, %v868_v61  ;;  %1938 = vmatpush.msra.mxu2 %v1695_v19  ;;  %1971 = vmatpush.msra.mxu3 %v1743_v27  ;;  %v1563_v60 = vld [vmem:[#allocation9 + $0x908] sm:$0xff] }
 0x184   :  { %915 = vst [vmem:[#allocation2 + $0x10] sm:$0xfc] %v867_v12  ;;  %1777 = vmatpush.msrb.mxu0 %v1514_v30  ;;  %1806 = vmatpush.msrb.mxu1 %v1578_v8  ;;  %v1627_v3 = vld [vmem:[#allocation9 + $0xb08] sm:$0xff]  ;;  %v1356_v8 = vrot.slane %v5617_v42, 1 }
 0x185   :  { %1939 = vmatpush.msra.mxu2 %v1691_v57  ;;  %v1675_v19 = vld [vmem:[#allocation9 + $0xc88] sm:$0xff] }
 0x186   :  { %v762_v35 = vpop.permute.xlu1 %761  ;;  %v756_v43 = vpop.permute.xlu0 %755  ;;  %1878 = vmatpush.msra.mxu0 %v1575_v38  ;;  %1907 = vmatpush.msra.mxu1 %v1639_v49  ;;  %v1735_v57 = vld [vmem:[#allocation9 + $0xe68] sm:$0xff] }
 0x187   :  { %v785_v46 = vsel %vm779_vm1, %v5597_v21, %v762_v35  ;;  %v815_v23 = vmax.f32 %v722_v24, %v762_v35  ;;  %1940 = vmatpush.msra.mxu2 %v1687_v11  ;;  %v1731_v11 = vld [vmem:[#allocation9 + $0xe48] sm:$0xff] }
 0x188   :  { %v814_v26 = vmax.f32 %v721_v59, %v785_v46  ;;  %1879 = vmatpush.msra.mxu0 %v1571_v44  ;;  %1908 = vmatpush.msra.mxu1 %v1635_v50  ;;  %v1555_v50 = vld [vmem:[#allocation9 + $0x8c8] sm:$0xff] }
 0x189   :  { %v875_v31 = vrot.slane %v815_v23, 6  ;;  %1941 = vmatpush.msra.mxu2 %v1683_v53  ;;  %v1667_v53 = vld [vmem:[#allocation9 + $0xc48] sm:$0xff] }
 0x18a   :  { %v873_v36 = vrot.slane %v814_v26, 6  ;;  %1880 = vmatpush.msra.mxu0 %v1567_v34  ;;  %1909 = vmatpush.msra.mxu1 %v1631_v63  ;;  %v1327_v23 = vld [vmem:[#allocation2 + $0x18] sm:$0xf8]  ;;  %v1559_v26 = vld [vmem:[#allocation9 + $0x8e8] sm:$0xff] }
 0x18b   :  { %v876_v24 = vsel %vm864_vm4, %v868_v61, %v875_v31  ;;  %926 = vst.msk [vmem:[#allocation2 + $0x58] sm:$0x3] %vm925_vm2, %v875_v31  ;;  %v1326_v59 = vld [vmem:[#allocation2 + $0x10] sm:$0xf8]  ;;  %v1362_v38 = vrot.slane %v1327_v23, 1 }
 0x18c   :  { %v5614_v56 = vsel %vm864_vm4, %v867_v12, %v873_v36  ;;  %921 = vst.msk [vmem:[#allocation2 + $0x38] sm:$0xff] %vm779_vm1, %v876_v24  ;;  %v1360_v51 = vrot.slane %v1326_v59, 1  ;;  %v1679_v61 = vld [vmem:[#allocation9 + $0xca8] sm:$0xff]  ;;  %1881 = vmatpush.msra.mxu0 %v1563_v60  ;;  %1910 = vmatpush.msra.mxu1 %v1627_v3  ;;  %v1311_v44 = vld [vmem:[#allocation2 + $0x18] sm:$0xfc] }
 0x18d   :  { %v5620_v25 = vrot.slane %v5614_v56, 1  ;;  %924 = vst [vmem:[#allocation2 + $0x50] sm:$0x3] %v873_v36  ;;  %v1739_v12 = vld [vmem:[#allocation9 + $0xe88] sm:$0xff]  ;;  %1942 = vmatpush.msra.mxu2 %v1679_v61 }
 0x18e   :  { %v758_v37 = vpop.permute.xlu1 %757  ;;  %v5622_v58 = vpop.permute.xlu0 %763  ;;  %v1310_v30 = vld [vmem:[#allocation2 + $0x10] sm:$0xfc]  ;;  %1972 = vmatpush.msra.mxu3 %v1739_v12  ;;  %1882 = vmatpush.msra.mxu0 %v1559_v26 }
 0x18f   :  { %v783_v13 = vsel %vm779_vm1, %v756_v43, %v758_v37  ;;  %v784_v15 = vsel %vm779_vm1, %v758_v37, %v5597_v21  ;;  %v1361_v52 = vsel %vm995_vm5, %v1360_v51, %v5620_v25  ;;  %v5633_v43 = vld [vmem:[#allocation2 + $0x8] sm:$0xf8]  ;;  %1943 = vmatpush.msra.mxu2 %v1675_v19 }
 0x190   :  { %v812_v35 = vmax.f32 %v719_v28, %v783_v13  ;;  %v813_v46 = vmax.f32 %v720_v40, %v784_v15  ;;  %v1414_v21 = vmax.f32 %v1310_v30, %v1361_v52  ;;  %v1623_v31 = vld [vmem:[#allocation9 + $0xae8] sm:$0xff]  ;;  %1973 = vmatpush.msra.mxu3 %v1735_v57  ;;  %v1358_v1 = vrot.slane %v5633_v43, 1  ;;  %1883 = vmatpush.msra.mxu0 %v1555_v50 }
 0x191   :  { %1911 = vmatpush.msra.mxu1 %v1623_v31  ;;  %1944 = vmatpush.msra.mxu2 %v1671_v62  ;;  %v1619_v51 = vld [vmem:[#allocation9 + $0xac8] sm:$0xff] }
 0x192   :  { %v869_v47 = vrot.slane %v812_v35, 6  ;;  %v871_v10 = vrot.slane %v813_v46, 6  ;;  %v1331_v28 = vld [vmem:[#allocation2 + $0x58] sm:$0x7]  ;;  %1974 = vmatpush.msra.mxu3 %v1731_v11  ;;  %v1551_v15 = vld [vmem:[#allocation9 + $0x8a8] sm:$0xff] }
 0x193   :  { %v5636_v40 = vld [vmem:[#allocation2 + $0x38] sm:$0xff]  ;;  %v1370_v49 = vrot.slane %v1331_v28, 1  ;;  %1912 = vmatpush.msra.mxu1 %v1619_v51  ;;  %1945 = vmatpush.msra.mxu2 %v1667_v53  ;;  %v1615_v52 = vld [vmem:[#allocation9 + $0xaa8] sm:$0xff]  ;;  %v1308_v28 = vld [vmem:[#allocation2] sm:$0xfc]  ;;  %v772_v53 = vpop.permute.xlu2 %771 }
 0x194   :  { %v1315_v36 = vld [vmem:[#allocation2 + $0x58] sm:$0x3]  ;;  %v5641_v24 = vsel %vm864_vm4, %v865_v0, %v869_v47  ;;  %v5646_v39 = vsel %vm864_vm4, %v866_v33, %v871_v10  ;;  %922 = vst [vmem:[#allocation2 + $0x40] sm:$0x3] %v869_v47  ;;  %v5649_v59 = vrot.slane %v5636_v40, 1  ;;  %v1467_v0 = vrot.slane %v1414_v21, 2  ;;  %1884 = vmatpush.msra.mxu0 %v1551_v15 }
 0x195   :  { %918 = vst [vmem:[#allocation2 + $0x20] sm:$0xff] %v5641_v24  ;;  %v5652_v9 = vld [vmem:[#allocation2 + $0x50] sm:$0x7]  ;;  %v5654_v27 = vmax.f32 %v1315_v36, %v1370_v49  ;;  %v5666_v13 = vrot.slane %v5641_v24, 1  ;;  %1913 = vmatpush.msra.mxu1 %v1615_v52 }
 0x196   :  { %v1727_v33 = vld [vmem:[#allocation9 + $0xe28] sm:$0xff]  ;;  %919 = vst [vmem:[#allocation2 + $0x28] sm:$0xff] %v5646_v39  ;;  %v5658_v34 = vpop.permute.xlu1 %775  ;;  %v770_v37 = vpop.permute.xlu0 %769  ;;  %v1363_v63 = vsel %vm995_vm5, %v1362_v38, %v5649_v59  ;;  %v1371_v61 = vsel %vm995_vm5, %v5649_v59, %v1370_v49  ;;  %v1368_v12 = vrot.slane %v5652_v9, 1 }
 0x197   :  { %1975 = vmatpush.msra.mxu3 %v1727_v33  ;;  %923 = vst [vmem:[#allocation2 + $0x48] sm:$0x3] %v871_v10  ;;  %v791_v60 = vsel %vm779_vm1, %v5658_v34, %v5579_v32  ;;  %v788_v3 = vsel %vm779_vm1, %v5575_v20, %v770_v37  ;;  %v819_v19 = vmax.f32 %v726_v45, %v770_v37  ;;  %v1663_v46 = vld [vmem:[#allocation9 + $0xc28] sm:$0xff]  ;;  %v5684_v10 = vrot.slane %v5646_v39, 1 }
 0x198   :  { %v1415_v35 = vmax.f32 %v1311_v44, %v1363_v63  ;;  %v1723_v23 = vld [vmem:[#allocation9 + $0xe08] sm:$0xff]  ;;  %v822_v21 = vmax.f32 %v729_v54, %v791_v60  ;;  %v818_v57 = vmax.f32 %v725_v29, %v788_v3  ;;  %v1419_v26 = vmax.f32 %v5636_v40, %v1371_v61  ;;  %1946 = vmatpush.msra.mxu2 %v1663_v46 }
 0x199   :  { %v1547_v30 = vld [vmem:[#allocation9 + $0x888] sm:$0xff]  ;;  %v1369_v32 = vsel %vm995_vm5, %v5620_v25, %v1368_v12  ;;  %v880_v47 = vrot.slane %v819_v19, 6  ;;  %v1357_v62 = vsel %vm995_vm5, %v1356_v8, %v5666_v13  ;;  %1976 = vmatpush.msra.mxu3 %v1723_v23  ;;  %v1479_v14 = vrot.slane %v5654_v27, 2 }
 0x19a   :  { %v1611_v31 = vld [vmem:[#allocation9 + $0xa88] sm:$0xff]  ;;  %v1470_v4 = vrot.slane %v1415_v35, 2  ;;  %v1418_v45 = vmax.f32 %v5614_v56, %v1369_v32  ;;  %v885_v54 = vrot.slane %v822_v21, 6  ;;  %v879_v16 = vrot.slane %v818_v57, 6  ;;  %1885 = vmatpush.msra.mxu0 %v1547_v30  ;;  %1947 = vmatpush.msra.mxu2 %v1659_v5 }
 0x19b   :  { %v5686_v29 = vrot.slane %v1419_v26, 2  ;;  %930 = vst.msk [vmem:[#allocation2 + $0x78] sm:$0xfc] %vm916_vm3, %v880_v47  ;;  %v5695_v49 = vld [vmem:[#allocation2 + $0x40] sm:$0x7]  ;;  %v1412_v36 = vmax.f32 %v1308_v28, %v1357_v62  ;;  %1914 = vmatpush.msra.mxu1 %v1611_v31  ;;  %v1719_v11 = vld [vmem:[#allocation9 + $0xde8] sm:$0xff]  ;;  %v888_v42 = vsel %vm864_vm4, %v880_v47, %v887_v41 }
 0x19c   :  { %v5693_v38 = vrot.slane %v1418_v45, 2  ;;  %937 = vst [vmem:[#allocation2 + $0xb0] sm:$0x3] %v885_v54  ;;  %v5698_v44 = vsel %vm864_vm4, %v879_v16, %v885_v54  ;;  %v1364_v50 = vrot.slane %v5695_v49, 1  ;;  %v1314_v51 = vld [vmem:[#allocation2 + $0x50] sm:$0x3]  ;;  %1977 = vmatpush.msra.mxu3 %v1719_v11 }
 0x19d   :  { %v5705_v8 = vsel %vm1460_vm6, %v1470_v4, %v5686_v29  ;;  %929 = vst [vmem:[#allocation2 + $0x70] sm:$0xfc] %v879_v16  ;;  %v5715_v41 = vmax.f32 %v1314_v51, %v1368_v12  ;;  %v1543_v33 = vld [vmem:[#allocation9 + $0x868] sm:$0xff]  ;;  %v1461_v15 = vrot.slane %v1412_v36, 2  ;;  %v5752_v26 = vld [vmem:[#allocation2 + $0xb8] sm:$0x7] }
 0x19e   :  { %4677 = vmatmul.msk.f32.vlgmr.msrb.gmra.mxu3 %vm779_vm1, %v5705_v8  ;;  %v5712_v9 = vsel %vm1460_vm6, %v1467_v0, %v5693_v38  ;;  %933 = vst [vmem:[#allocation2 + $0x90] sm:$0xff] %v5698_v44  ;;  %v766_v37 = vpop.permute.xlu1 %765  ;;  %v774_v63 = vpop.permute.xlu0 %773  ;;  %v1365_v61 = vsel %vm995_vm5, %v5666_v13, %v1364_v50  ;;  %v5721_v52 = vld [vmem:[#allocation2 + $0x48] sm:$0x7]  ;;  %v1359_v0 = vsel %vm995_vm5, %v1358_v1, %v5684_v10  ;;  %v1607_v27 = vld [vmem:[#allocation9 + $0xa68] sm:$0xff]  ;;  %v1312_v32 = vld [vmem:[#allocation2 + $0x40] sm:$0x3] }
 0x19f   :  { %1836 = vmatmul.f32.vlgmr.msrb.gmra.mxu2 %v5712_v9  ;;  %v1655_v12 = vld [vmem:[#allocation9 + $0xbe8] sm:$0xff]  ;;  %934 = vst.msk [vmem:[#allocation2 + $0x98] sm:$0xff] %vm779_vm1, %v888_v42  ;;  %v786_v60 = vsel %vm779_vm1, %v5622_v58, %v766_v37  ;;  %v787_v3 = vsel %vm779_vm1, %v766_v37, %v5575_v20  ;;  %v789_v19 = vsel %vm779_vm1, %v772_v53, %v774_v63  ;;  %v1366_v17 = vrot.slane %v5721_v52, 1  ;;  %v1313_v62 = vld [vmem:[#allocation2 + $0x48] sm:$0x3] }
 0x1a0   :  { %v790_v35 = vsel %vm779_vm1, %v774_v63, %v5658_v34  ;;  %v1715_v46 = vld [vmem:[#allocation9 + $0xdc8] sm:$0xff]  ;;  %v816_v1 = vmax.f32 %v723_v48, %v786_v60  ;;  %v817_v23 = vmax.f32 %v724_v18, %v787_v3  ;;  %v5741_v30 = vmax.f32 %v727_v55, %v789_v19  ;;  %1886 = vmatpush.msra.mxu0 %v1543_v33 }
 0x1a1   :  { %v1539_v43 = vld [vmem:[#allocation9 + $0x848] sm:$0xff]  ;;  %v5745_v20 = vmax.f32 %v728_v22, %v790_v35  ;;  %v1416_v57 = vmax.f32 %v5641_v24, %v1365_v61  ;;  %v1477_v2 = vrot.slane %v5715_v41, 2  ;;  %1915 = vmatpush.msra.mxu1 %v1607_v27  ;;  %1948 = vmatpush.msra.mxu2 %v1655_v12  ;;  %v5756_v24 = vsel %vm1460_vm6, %v5686_v29, %v1479_v14 }
 0x1a2   :  { %v1309_v58 = vld [vmem:[#allocation2 + $0x8] sm:$0xfc]  ;;  %v877_v55 = vrot.slane %v816_v1, 6  ;;  %v878_v18 = vrot.slane %v817_v23, 6  ;;  %v881_v6 = vrot.slane %v5741_v30, 6  ;;  %1978 = vmatpush.msra.mxu3 %v1715_v46  ;;  %1887 = vmatpush.msra.mxu0 %v1539_v43  ;;  %v1367_v47 = vsel %vm995_vm5, %v5684_v10, %v1366_v17 }
 0x1a3   :  { %v1603_v21 = vld [vmem:[#allocation9 + $0xa48] sm:$0xff]  ;;  %v1413_v48 = vmax.f32 %v1309_v58, %v1359_v0  ;;  %v883_v22 = vrot.slane %v5745_v20, 6  ;;  %v5758_v31 = vrot.slane %v1416_v57, 2  ;;  %v1335_v4 = vld [vmem:[#allocation2 + $0x78] sm:$0xf8]  ;;  %v5762_v45 = vmax.f32 %v1312_v32, %v1364_v50 }
 0x1a4   :  { %v1651_v34 = vld [vmem:[#allocation9 + $0xbc8] sm:$0xff]  ;;  %1916 = vmatpush.msra.mxu1 %v1603_v21  ;;  %927 = vst [vmem:[#allocation2 + $0x60] sm:$0xfc] %v877_v55  ;;  %v5767_v16 = vsel %vm864_vm4, %v877_v55, %v881_v6  ;;  %v1417_v28 = vmax.f32 %v5646_v39, %v1367_v47  ;;  %v5774_v49 = vrot.slane %v5698_v44, 1  ;;  %1979 = vmatpush.msra.mxu3 %v1711_v7  ;;  %v1378_v50 = vrot.slane %v1335_v4, 1  ;;  %v1704_v20 = vld [vmem:[#allocation9 + $0xd70] sm:$0xff] }
 0x1a5   :  { %v5764_v5 = vld [vmem:[#allocation2 + $0xb0] sm:$0x7]  ;;  %1949 = vmatpush.msra.mxu2 %v1651_v34  ;;  %v5770_v29 = vsel %vm864_vm4, %v878_v18, %v883_v22  ;;  %928 = vst [vmem:[#allocation2 + $0x68] sm:$0xfc] %v878_v18  ;;  %v5780_v11 = vsel %vm1460_vm6, %v1461_v15, %v5758_v31  ;;  %v5784_v42 = vsel %vm1460_vm6, %v5693_v38, %v1477_v2  ;;  %v1334_v39 = vld [vmem:[#allocation2 + $0x70] sm:$0xf8] }
 0x1a6   :  { %v1535_v54 = vld [vmem:[#allocation9 + $0x828] sm:$0xff]  ;;  %4678 = vmatmul.msk.f32.gmra.mxu3 %vm779_vm1, %v5756_v24  ;;  %v1384_v51 = vrot.slane %v5764_v5, 1  ;;  %931 = vst [vmem:[#allocation2 + $0x80] sm:$0xff] %v5767_v16  ;;  %1778 = vmatmul.f32.vlgmr.msrb.gmra.mxu0 %v5780_v11  ;;  %v1464_v53 = vrot.slane %v1413_v48, 2  ;;  %v5789_v14 = vrot.slane %v1417_v28, 2  ;;  %v954_v41 = vld [vmem:[#allocation2 + $0x98] sm:$0xff]  ;;  %v5796_v61 = vmax.f32 %v1313_v62, %v1366_v17 }
 0x1a7   :  { %v1599_v36 = vld [vmem:[#allocation9 + $0xa28] sm:$0xff]  ;;  %1839 = vmatmul.f32.gmra.mxu2 %v5784_v42  ;;  %v1376_v33 = vrot.slane %v1334_v39, 1  ;;  %932 = vst [vmem:[#allocation2 + $0x88] sm:$0xff] %v5770_v29  ;;  %v5793_v38 = vrot.slane %v954_v41, 1  ;;  %v1386_v63 = vrot.slane %v5752_v26, 1  ;;  %1888 = vmatpush.msra.mxu0 %v1535_v54  ;;  %v1473_v23 = vrot.slane %v5762_v45, 2 }
 0x1a8   :  { %v1647_v37 = vld [vmem:[#allocation9 + $0xba8] sm:$0xff]  ;;  %v1385_v15 = vsel %vm995_vm5, %v5774_v49, %v1384_v51  ;;  %1917 = vmatpush.msra.mxu1 %v1599_v36  ;;  %935 = vst [vmem:[#allocation2 + $0xa0] sm:$0x3] %v881_v6  ;;  %v5804_v12 = vsel %vm1460_vm6, %v1464_v53, %v5789_v14  ;;  %v1319_v60 = vld [vmem:[#allocation2 + $0x78] sm:$0xfc]  ;;  %v1475_v2 = vrot.slane %v5796_v61, 2 }
 0x1a9   :  { %v1707_v52 = vld [vmem:[#allocation9 + $0xd88] sm:$0xff]  ;;  %v1377_v3 = vsel %vm995_vm5, %v1376_v33, %v5774_v49  ;;  %v1430_v19 = vmax.f32 %v5698_v44, %v1385_v15  ;;  %936 = vst [vmem:[#allocation2 + $0xa8] sm:$0x3] %v883_v22  ;;  %1807 = vmatmul.f32.vlgmr.msrb.gmra.mxu1 %v5804_v12  ;;  %v1379_v43 = vsel %vm995_vm5, %v1378_v50, %v5793_v38  ;;  %v1752_v17 = vld [vmem:[#allocation9 + $0xef0] sm:$0xff]  ;;  %v5821_v7 = vrot.slane %v5767_v16, 1 }
 0x1aa   :  { %v1531_v0 = vld [vmem:[#allocation9 + $0x808] sm:$0xff]  ;;  %v1387_v1 = vsel %vm995_vm5, %v5793_v38, %v1386_v63  ;;  %1950 = vmatpush.msra.mxu2 %v1647_v37  ;;  %v1427_v58 = vmax.f32 %v1319_v60, %v1379_v43  ;;  %1980 = vmatpush.msra.mxu3 %v1707_v52  ;;  %v962_v48 = vld [vmem:[#allocation2 + $0x58] sm:$0x1]  ;;  %v5827_v4 = vsel %vm1460_vm6, %v5758_v31, %v1473_v23  ;;  %v5846_v15 = vrot.slane %v5770_v29, 1 }
 0x1ab   :  { %v1595_v27 = vld [vmem:[#allocation9 + $0xa08] sm:$0xff]  ;;  %v1431_v44 = vmax.f32 %v954_v41, %v1387_v1  ;;  %v5817_v34 = vrot.slane %v1430_v19, 2  ;;  %1889 = vmatpush.msra.mxu0 %v1531_v0  ;;  %v1332_v55 = vld [vmem:[#allocation2 + $0x60] sm:$0xf8]  ;;  %v1014_v62 = vrot.slane %v962_v48, 1  ;;  %v1700_v33 = vld [vmem:[#allocation9 + $0xd50] sm:$0xff]  ;;  %v5852_v5 = vsel %vm1460_vm6, %v5789_v14, %v1475_v2 }
 0x1ac   :  { %v1643_v35 = vld [vmem:[#allocation9 + $0xb88] sm:$0xff]  ;;  %1918 = vmatpush.msra.mxu1 %v1595_v27  ;;  %v1490_v18 = vrot.slane %v1427_v58, 2  ;;  %v1372_v32 = vrot.slane %v1332_v55, 1  ;;  %2085 = vmatpush.msrb.mxu3 %v1752_v17  ;;  %v1323_v39 = vld [vmem:[#allocation2 + $0xb8] sm:$0x3] }
 0x1ad   :  { %v1527_v46 = vld [vmem:[#allocation9 + $0x7e8] sm:$0xff]  ;;  %1951 = vmatpush.msra.mxu2 %v1643_v35  ;;  %v5823_v6 = vrot.slane %v1431_v44, 2  ;;  %v1316_v53 = vld [vmem:[#allocation2 + $0x60] sm:$0xfc]  ;;  %v1015_v60 = vsel %vm995_vm5, %v5649_v59, %v1014_v62  ;;  %v1696_v35 = vld [vmem:[#allocation9 + $0xd30] sm:$0xff] }
 0x1ae   :  { %v1318_v30 = vld [vmem:[#allocation2 + $0x70] sm:$0xfc]  ;;  %1890 = vmatpush.msra.mxu0 %v1527_v46  ;;  %v1333_v45 = vld [vmem:[#allocation2 + $0x68] sm:$0xf8]  ;;  %v1322_v54 = vld [vmem:[#allocation2 + $0xb0] sm:$0x3]  ;;  %v1373_v31 = vsel %vm995_vm5, %v1372_v32, %v5821_v7  ;;  %v5857_v43 = vmax.f32 %v5636_v40, %v1015_v60 }
 0x1af   :  { %v1426_v21 = vmax.f32 %v1318_v30, %v1377_v3  ;;  %v1591_v57 = vld [vmem:[#allocation9 + $0x9e8] sm:$0xff]  ;;  %2052 = vmatpush.msrb.mxu2 %v1704_v20  ;;  %v5831_v36 = vsel %vm1460_vm6, %v1490_v18, %v5823_v6  ;;  %1781 = vmatmul.f32.gmra.mxu0 %v5827_v4  ;;  %v1434_v41 = vmax.f32 %v1322_v54, %v1384_v51  ;;  %v1336_v37 = vld [vmem:[#allocation2 + $0xa0] sm:$0x7]  ;;  %v1374_v52 = vrot.slane %v1333_v45, 1  ;;  %v1748_v46 = vld [vmem:[#allocation9 + $0xed0] sm:$0xff] }
 0x1b0   :  { %v1523_v47 = vld [vmem:[#allocation9 + $0x7c8] sm:$0xff]  ;;  %1919 = vmatpush.msra.mxu1 %v1591_v57  ;;  %4679 = vmatmul.msk.f32.gmra.mxu3 %vm779_vm1, %v5831_v36  ;;  %v1424_v61 = vmax.f32 %v1316_v53, %v1373_v31  ;;  %v1435_v51 = vmax.f32 %v1323_v39, %v1386_v63  ;;  %v1380_v3 = vrot.slane %v1336_v37, 1  ;;  %v1337_v19 = vld [vmem:[#allocation2 + $0xa8] sm:$0x7]  ;;  %v1692_v44 = vld [vmem:[#allocation9 + $0xd10] sm:$0xff] }
 0x1b1   :  { %v1487_v22 = vrot.slane %v1426_v21, 2  ;;  %v1587_v28 = vld [vmem:[#allocation9 + $0x9c8] sm:$0xff]  ;;  %1891 = vmatpush.msra.mxu0 %v1523_v47  ;;  %1810 = vmatmul.f32.gmra.mxu1 %v5852_v5  ;;  %v1375_v23 = vsel %vm995_vm5, %v1374_v52, %v5846_v15  ;;  %v1382_v14 = vrot.slane %v1337_v19, 1  ;;  %v1497_v58 = vrot.slane %v1434_v41, 2  ;;  %v1576_v21 = vld [vmem:[#allocation9 + $0x970] sm:$0xff] }
 0x1b2   :  { %v1519_v0 = vld [vmem:[#allocation9 + $0x7a8] sm:$0xff]  ;;  %1920 = vmatpush.msra.mxu1 %v1587_v28  ;;  %2053 = vmatpush.msrb.mxu2 %v1700_v33  ;;  %v1381_v63 = vsel %vm995_vm5, %v5821_v7, %v1380_v3  ;;  %v1481_v17 = vrot.slane %v1424_v61, 2  ;;  %v1640_v2 = vld [vmem:[#allocation9 + $0xb70] sm:$0xff]  ;;  %v1499_v18 = vrot.slane %v1435_v51, 2  ;;  %v1320_v62 = vld [vmem:[#allocation2 + $0xa0] sm:$0x3] }
 0x1b3   :  { %v5836_v50 = vsel %vm1460_vm6, %v1487_v22, %v5817_v34  ;;  %v1583_v27 = vld [vmem:[#allocation9 + $0x9a8] sm:$0xff]  ;;  %1892 = vmatpush.msra.mxu0 %v1519_v0  ;;  %v1428_v57 = vmax.f32 %v5767_v16, %v1381_v63  ;;  %v1383_v48 = vsel %vm995_vm5, %v5846_v15, %v1382_v14  ;;  %2086 = vmatpush.msrb.mxu3 %v1748_v46  ;;  %v1744_v55 = vld [vmem:[#allocation9 + $0xeb0] sm:$0xff] }
 0x1b4   :  { %1842 = vmatmul.f32.gmra.mxu2 %v5836_v50  ;;  %v1317_v1 = vld [vmem:[#allocation2 + $0x68] sm:$0xfc]  ;;  %1921 = vmatpush.msra.mxu1 %v1583_v27  ;;  %v1429_v22 = vmax.f32 %v5770_v29, %v1383_v48  ;;  %v1688_v45 = vld [vmem:[#allocation9 + $0xcf0] sm:$0xff]  ;;  %v5870_v16 = vsel %vm1460_vm6, %v5823_v6, %v1499_v18  ;;  %v5874_v28 = vsel %vm1460_vm6, %v5817_v34, %v1497_v58  ;;  %v1321_v6 = vld [vmem:[#allocation2 + $0xa8] sm:$0x3] }
 0x1b5   :  { %v1515_v30 = vld [vmem:[#allocation9 + $0x788] sm:$0xff]  ;;  %v1425_v20 = vmax.f32 %v1317_v1, %v1375_v23  ;;  %2054 = vmatpush.msrb.mxu2 %v1696_v35  ;;  %v1482_v47 = vrot.slane %v1428_v57, 2  ;;  %v1572_v39 = vld [vmem:[#allocation9 + $0x950] sm:$0xff]  ;;  %2087 = vmatpush.msrb.mxu3 %v1744_v55  ;;  %v1432_v53 = vmax.f32 %v1320_v62, %v1380_v3  ;;  %v1433_v33 = vmax.f32 %v1321_v6, %v1382_v14 }
 0x1b6   :  { %v1579_v26 = vld [vmem:[#allocation9 + $0x988] sm:$0xff]  ;;  %1893 = vmatpush.msra.mxu0 %v1515_v30  ;;  %v1485_v54 = vrot.slane %v1429_v22, 2  ;;  %v1636_v31 = vld [vmem:[#allocation9 + $0xb50] sm:$0xff] }
 0x1b7   :  { %v1484_v32 = vrot.slane %v1425_v20, 2  ;;  %1922 = vmatpush.msra.mxu1 %v1579_v26  ;;  %2055 = vmatpush.msrb.mxu2 %v1692_v44  ;;  %v5879_v29 = vsel %vm1460_vm6, %v1481_v17, %v1482_v47  ;;  %v1684_v41 = vld [vmem:[#allocation9 + $0xcd0] sm:$0xff]  ;;  %v961_v52 = vld [vmem:[#allocation2 + $0x50] sm:$0x1]  ;;  %v1493_v19 = vrot.slane %v1432_v53, 2  ;;  %v1495_v23 = vrot.slane %v1433_v33, 2 }
 0x1b8   :  { %1994 = vmatpush.msrb.mxu0 %v1576_v21  ;;  %4680 = vmatmul.msk.f32.gmra.mxu3 %vm779_vm1, %v5870_v16  ;;  %v1568_v37 = vld [vmem:[#allocation9 + $0x930] sm:$0xff]  ;;  %v1012_v60 = vrot.slane %v961_v52, 1 }
 0x1b9   :  { %2023 = vmatpush.msrb.mxu1 %v1640_v2  ;;  %1784 = vmatmul.f32.gmra.mxu0 %v5879_v29  ;;  %v5884_v34 = vsel %vm1460_vm6, %v1484_v32, %v1485_v54  ;;  %v1740_v61 = vld [vmem:[#allocation9 + $0xe90] sm:$0xff]  ;;  %v5895_v63 = vsel %vm1460_vm6, %v1482_v47, %v1493_v19  ;;  %v5900_v44 = vsel %vm1460_vm6, %v1485_v54, %v1495_v23  ;;  %v2721_v54 = vld [vmem:[#allocation2 + $0x18] sm:$0xe0] }
 0x1ba   :  { %2056 = vmatpush.msrb.mxu2 %v1688_v45  ;;  %1813 = vmatmul.f32.gmra.mxu1 %v5884_v34  ;;  %v1632_v0 = vld [vmem:[#allocation9 + $0xb30] sm:$0xff]  ;;  %v1013_v1 = vsel %vm995_vm5, %v5620_v25, %v1012_v60  ;;  %v2756_v6 = vrot.slane %v2721_v54, 1 }
 0x1bb   :  { %1995 = vmatpush.msrb.mxu0 %v1572_v39  ;;  %v1680_v27 = vld [vmem:[#allocation9 + $0xcb0] sm:$0xff]  ;;  %2024 = vmatpush.msrb.mxu1 %v1636_v31  ;;  %v5890_v14 = vmax.f32 %v5614_v56, %v1013_v1 }
 0x1bc   :  { %1845 = vmatmul.f32.gmra.mxu2 %v5874_v28  ;;  %v1564_v51 = vld [vmem:[#allocation9 + $0x910] sm:$0xff]  ;;  %2088 = vmatpush.msrb.mxu3 %v1740_v61 }
 0x1bd   :  { %2057 = vmatpush.msrb.mxu2 %v1684_v41  ;;  %v1736_v3 = vld [vmem:[#allocation9 + $0xe70] sm:$0xff]  ;;  %1996 = vmatpush.msrb.mxu0 %v1568_v37  ;;  %v5910_v37 = vld [vmem:[#allocation2 + $0x50] sm:$0x1f] }
 0x1be   :  { %v1628_v35 = vld [vmem:[#allocation9 + $0xb10] sm:$0xff]  ;;  %2025 = vmatpush.msrb.mxu1 %v1632_v0  ;;  %2089 = vmatpush.msrb.mxu3 %v1736_v3 }
 0x1bf   :  { %v1676_v46 = vld [vmem:[#allocation9 + $0xc90] sm:$0xff]  ;;  %2058 = vmatpush.msrb.mxu2 %v1680_v27  ;;  %1997 = vmatpush.msrb.mxu0 %v1564_v51  ;;  %v2757_v27 = vsel %vm995_vm5, %v2756_v6, %v5649_v59 }
 0x1c0   :  { %v1624_v30 = vld [vmem:[#allocation9 + $0xaf0] sm:$0xff]  ;;  %2026 = vmatpush.msrb.mxu1 %v1628_v35  ;;  %4681 = vmatmul.msk.f32.vlgmr.msra.gmra.mxu3 %vm779_vm1, %v5705_v8 }
 0x1c1   :  { %2059 = vmatpush.msrb.mxu2 %v1676_v46  ;;  %v1560_v26 = vld [vmem:[#allocation9 + $0x8f0] sm:$0xff]  ;;  %1787 = vmatmul.f32.gmra.mxu0 %v5895_v63  ;;  %v7755_v46 = vrot.slane %v5910_v37, 1 }
 0x1c2   :  { %v1672_v20 = vld [vmem:[#allocation9 + $0xc70] sm:$0xff]  ;;  %2027 = vmatpush.msrb.mxu1 %v1624_v30  ;;  %1998 = vmatpush.msrb.mxu0 %v1560_v26 }
 0x1c3   :  { %v1732_v58 = vld [vmem:[#allocation9 + $0xe50] sm:$0xff]  ;;  %1816 = vmatmul.f32.gmra.mxu1 %v5900_v44  ;;  %2060 = vmatpush.msrb.mxu2 %v1672_v20 }
 0x1c4   :  { %1952 = vmatmul.f32.vlgmr.msra.gmra.mxu2 %v5712_v9  ;;  %v1556_v21 = vld [vmem:[#allocation9 + $0x8d0] sm:$0xff]  ;;  %2090 = vmatpush.msrb.mxu3 %v1732_v58 }
 0x1c5   :  { %v1620_v57 = vld [vmem:[#allocation9 + $0xad0] sm:$0xff]  ;;  %1999 = vmatpush.msrb.mxu0 %v1556_v21  ;;  %v2763_v21 = vsel %vm995_vm5, %v5620_v25, %v7755_v46 }
 0x1c6   :  { %v1668_v17 = vld [vmem:[#allocation9 + $0xc50] sm:$0xff]  ;;  %2028 = vmatpush.msrb.mxu1 %v1620_v57 }
 0x1c7   :  { %v1728_v48 = vld [vmem:[#allocation9 + $0xe30] sm:$0xff]  ;;  %2061 = vmatpush.msrb.mxu2 %v1668_v17 }
 0x1c8   :  { %v1552_v2 = vld [vmem:[#allocation9 + $0x8b0] sm:$0xff]  ;;  %2091 = vmatpush.msrb.mxu3 %v1728_v48 }
 0x1c9   :  { %v1616_v55 = vld [vmem:[#allocation9 + $0xab0] sm:$0xff]  ;;  %2000 = vmatpush.msrb.mxu0 %v1552_v2  ;;  %4682 = vmatmul.msk.f32.gmra.mxu3 %vm779_vm1, %v5756_v24 }
 0x1ca   :  { %v1664_v18 = vld [vmem:[#allocation9 + $0xc30] sm:$0xff]  ;;  %2029 = vmatpush.msrb.mxu1 %v1616_v55  ;;  %1894 = vmatmul.f32.vlgmr.msra.gmra.mxu0 %v5780_v11 }
 0x1cb   :  { %v1724_v22 = vld [vmem:[#allocation9 + $0xe10] sm:$0xff]  ;;  %2062 = vmatpush.msrb.mxu2 %v1664_v18  ;;  %1923 = vmatmul.f32.vlgmr.msra.gmra.mxu1 %v5804_v12 }
 0x1cc   :  { %v1612_v32 = vld [vmem:[#allocation9 + $0xa90] sm:$0xff]  ;;  %2092 = vmatpush.msrb.mxu3 %v1724_v22  ;;  %1955 = vmatmul.f32.gmra.mxu2 %v5784_v42 }
 0x1cd   :  { %v1548_v47 = vld [vmem:[#allocation9 + $0x890] sm:$0xff]  ;;  %2030 = vmatpush.msrb.mxu1 %v1612_v32 }
 0x1ce   :  { %v1660_v45 = vld [vmem:[#allocation9 + $0xc10] sm:$0xff]  ;;  %2001 = vmatpush.msrb.mxu0 %v1548_v47 }
 0x1cf   :  { %v1720_v62 = vld [vmem:[#allocation9 + $0xdf0] sm:$0xff]  ;;  %2063 = vmatpush.msrb.mxu2 %v1660_v45 }
 0x1d0   :  { %v1544_v39 = vld [vmem:[#allocation9 + $0x870] sm:$0xff]  ;;  %2093 = vmatpush.msrb.mxu3 %v1720_v62  ;;  %v1753_v62 = vld [vmem:[#allocation9 + $0xef8] sm:$0xff] }
 0x1d1   :  { %v5906_v53 = vld [vmem:[#allocation2 + $0x58] sm:$0x1f]  ;;  %v2720_v33 = vld [vmem:[#allocation2 + $0x10] sm:$0xe0]  ;;  %2002 = vmatpush.msrb.mxu0 %v1544_v39  ;;  %4683 = vmatmul.msk.f32.gmra.mxu3 %vm779_vm1, %v5831_v36 }
 0x1d2   :  { %v1608_v31 = vld [vmem:[#allocation9 + $0xa70] sm:$0xff]  ;;  %v7756_v41 = vrot.slane %v5906_v53, 1  ;;  %v2754_v60 = vrot.slane %v2720_v33, 1  ;;  %1897 = vmatmul.f32.gmra.mxu0 %v5827_v4  ;;  %v1705_v33 = vld [vmem:[#allocation9 + $0xd78] sm:$0xff] }
 0x1d3   :  { %v1656_v61 = vld [vmem:[#allocation9 + $0xbf0] sm:$0xff]  ;;  %2031 = vmatpush.msrb.mxu1 %v1608_v31 }
 0x1d4   :  { %v1716_v52 = vld [vmem:[#allocation9 + $0xdd0] sm:$0xff]  ;;  %v2765_v19 = vsel %vm995_vm5, %v5649_v59, %v7756_v41  ;;  %v2755_v20 = vsel %vm995_vm5, %v2754_v60, %v5620_v25  ;;  %2064 = vmatpush.msrb.mxu2 %v1656_v61  ;;  %1926 = vmatmul.f32.gmra.mxu1 %v5852_v5  ;;  %v1749_v61 = vld [vmem:[#allocation9 + $0xed8] sm:$0xff] }
 0x1d5   :  { %v2705_v0 = vld [vmem:[#allocation2 + $0x18] sm:$0xf0]  ;;  %v2813_v30 = vmax.f32 %v5636_v40, %v2765_v19  ;;  %v2704_v26 = vld [vmem:[#allocation2 + $0x10] sm:$0xf0]  ;;  %2094 = vmatpush.msrb.mxu3 %v1716_v52  ;;  %v2812_v40 = vmax.f32 %v5614_v56, %v2763_v21  ;;  %1958 = vmatmul.f32.gmra.mxu2 %v5836_v50 }
 0x1d6   :  { %v1540_v51 = vld [vmem:[#allocation9 + $0x850] sm:$0xff]  ;;  %v2809_v35 = vmax.f32 %v2705_v0, %v2757_v27  ;;  %v2808_v57 = vmax.f32 %v2704_v26, %v2755_v20  ;;  %v1701_v27 = vld [vmem:[#allocation9 + $0xd58] sm:$0xff] }
 0x1d7   :  { %v1604_v3 = vld [vmem:[#allocation9 + $0xa50] sm:$0xff]  ;;  %2003 = vmatpush.msrb.mxu0 %v1540_v51  ;;  %v5927_v48 = vrot.slane %v2813_v30, 4  ;;  %v5937_v47 = vrot.slane %v2812_v40, 4  ;;  %v1697_v19 = vld [vmem:[#allocation9 + $0xd38] sm:$0xff] }
 0x1d8   :  { %v1652_v1 = vld [vmem:[#allocation9 + $0xbd0] sm:$0xff]  ;;  %v2864_v58 = vrot.slane %v2809_v35, 4  ;;  %2032 = vmatpush.msrb.mxu1 %v1604_v3  ;;  %v2861_v32 = vrot.slane %v2808_v57, 4  ;;  %v1745_v3 = vld [vmem:[#allocation9 + $0xeb8] sm:$0xff] }
 0x1d9   :  { %v1712_v23 = vld [vmem:[#allocation9 + $0xdb0] sm:$0xff]  ;;  %2065 = vmatpush.msrb.mxu2 %v1652_v1  ;;  %4684 = vmatmul.msk.f32.gmra.mxu3 %vm779_vm1, %v5870_v16  ;;  %v1693_v30 = vld [vmem:[#allocation9 + $0xd18] sm:$0xff] }
 0x1da   :  { %v1600_v17 = vld [vmem:[#allocation9 + $0xa30] sm:$0xff]  ;;  %2095 = vmatpush.msrb.mxu3 %v1712_v23  ;;  %v5935_v22 = vsel %vm2854_vm7, %v2864_v58, %v5927_v48  ;;  %v5943_v39 = vsel %vm2854_vm7, %v2861_v32, %v5937_v47  ;;  %1900 = vmatmul.f32.gmra.mxu0 %v5879_v29  ;;  %v1641_v23 = vld [vmem:[#allocation9 + $0xb78] sm:$0xff] }
 0x1db   :  { %v1536_v2 = vld [vmem:[#allocation9 + $0x830] sm:$0xff]  ;;  %2033 = vmatpush.msrb.mxu1 %v1600_v17  ;;  %v1577_v26 = vld [vmem:[#allocation9 + $0x978] sm:$0xff] }
 0x1dc   :  { %v1648_v55 = vld [vmem:[#allocation9 + $0xbb0] sm:$0xff]  ;;  %2004 = vmatpush.msrb.mxu0 %v1536_v2  ;;  %1929 = vmatmul.f32.gmra.mxu1 %v5884_v34  ;;  %v1689_v20 = vld [vmem:[#allocation9 + $0xcf8] sm:$0xff] }
 0x1dd   :  { %v1708_v18 = vld [vmem:[#allocation9 + $0xd90] sm:$0xff]  ;;  %2066 = vmatpush.msrb.mxu2 %v1648_v55  ;;  %v1573_v58 = vld [vmem:[#allocation9 + $0x958] sm:$0xff] }
 0x1de   :  { %v1532_v56 = vld [vmem:[#allocation9 + $0x810] sm:$0xff]  ;;  %2096 = vmatpush.msrb.mxu3 %v1708_v18  ;;  %1961 = vmatmul.f32.gmra.mxu2 %v5874_v28  ;;  %v1637_v21 = vld [vmem:[#allocation9 + $0xb58] sm:$0xff] }
 0x1df   :  { %v1596_v45 = vld [vmem:[#allocation9 + $0xa10] sm:$0xff]  ;;  %2005 = vmatpush.msrb.mxu0 %v1532_v56  ;;  %v1685_v57 = vld [vmem:[#allocation9 + $0xcd8] sm:$0xff] }
 0x1e0   :  { %v1644_v54 = vld [vmem:[#allocation9 + $0xb90] sm:$0xff]  ;;  %2034 = vmatpush.msrb.mxu1 %v1596_v45  ;;  %2201 = vmatpush.msra.mxu3 %v1753_v62  ;;  %v1569_v17 = vld [vmem:[#allocation9 + $0x938] sm:$0xff] }
 0x1e1   :  { %v1528_v6 = vld [vmem:[#allocation9 + $0x7f0] sm:$0xff]  ;;  %2067 = vmatpush.msrb.mxu2 %v1644_v54  ;;  %4685 = vmatmul.msk.f32.vlgmr.msrb.gmra.mxu3 %vm779_vm1, %v5705_v8  ;;  %v1741_v40 = vld [vmem:[#allocation9 + $0xe98] sm:$0xff] }
 0x1e2   :  { %v1592_v31 = vld [vmem:[#allocation9 + $0x9f0] sm:$0xff]  ;;  %2006 = vmatpush.msrb.mxu0 %v1528_v6  ;;  %2202 = vmatpush.msra.mxu3 %v1749_v61  ;;  %v1633_v2 = vld [vmem:[#allocation9 + $0xb38] sm:$0xff] }
 0x1e3   :  { %2035 = vmatpush.msrb.mxu1 %v1592_v31  ;;  %v1588_v52 = vld [vmem:[#allocation9 + $0x9d0] sm:$0xff]  ;;  %2168 = vmatpush.msra.mxu2 %v1705_v33  ;;  %v1681_v55 = vld [vmem:[#allocation9 + $0xcb8] sm:$0xff] }
 0x1e4   :  { %v1524_v0 = vld [vmem:[#allocation9 + $0x7d0] sm:$0xff]  ;;  %2203 = vmatpush.msra.mxu3 %v1745_v3  ;;  %1903 = vmatmul.f32.gmra.mxu0 %v5895_v63  ;;  %v1565_v18 = vld [vmem:[#allocation9 + $0x918] sm:$0xff] }
 0x1e5   :  { %v1584_v60 = vld [vmem:[#allocation9 + $0x9b0] sm:$0xff]  ;;  %2036 = vmatpush.msrb.mxu1 %v1588_v52  ;;  %2007 = vmatpush.msrb.mxu0 %v1524_v0  ;;  %v1737_v32 = vld [vmem:[#allocation9 + $0xe78] sm:$0xff] }
 0x1e6   :  { %v1520_v51 = vld [vmem:[#allocation9 + $0x7b0] sm:$0xff]  ;;  %2169 = vmatpush.msra.mxu2 %v1701_v27  ;;  %1932 = vmatmul.f32.gmra.mxu1 %v5900_v44  ;;  %v1629_v56 = vld [vmem:[#allocation9 + $0xb18] sm:$0xff] }
 0x1e7   :  { %v1580_v35 = vld [vmem:[#allocation9 + $0x990] sm:$0xff]  ;;  %2037 = vmatpush.msrb.mxu1 %v1584_v60  ;;  %2008 = vmatpush.msrb.mxu0 %v1520_v51  ;;  %v1677_v45 = vld [vmem:[#allocation9 + $0xc98] sm:$0xff] }
 0x1e8   :  { %v1516_v1 = vld [vmem:[#allocation9 + $0x790] sm:$0xff]  ;;  %2170 = vmatpush.msra.mxu2 %v1697_v19  ;;  %2204 = vmatpush.msra.mxu3 %v1741_v40  ;;  %v1625_v54 = vld [vmem:[#allocation9 + $0xaf8] sm:$0xff] }
 0x1e9   :  { %2038 = vmatpush.msrb.mxu1 %v1580_v35  ;;  %2009 = vmatpush.msrb.mxu0 %v1516_v1  ;;  %v1561_v62 = vld [vmem:[#allocation9 + $0x8f8] sm:$0xff]  ;;  %v1246_v41 = vld [vmem:[#allocation9 + $0x590] sm:$0xff] }
 0x1ea   :  { %2171 = vmatpush.msra.mxu2 %v1693_v30  ;;  %2205 = vmatpush.msra.mxu3 %v1737_v32  ;;  %v1673_v6 = vld [vmem:[#allocation9 + $0xc78] sm:$0xff] }
 0x1eb   :  { %2139 = vmatpush.msra.mxu1 %v1641_v23  ;;  %2110 = vmatpush.msra.mxu0 %v1577_v26  ;;  %v1733_v31 = vld [vmem:[#allocation9 + $0xe58] sm:$0xff] }
 0x1ec   :  { %2068 = vmatmul.f32.vlgmr.msrb.gmra.mxu2 %v5712_v9  ;;  %4686 = vmatmul.msk.f32.gmra.mxu3 %vm779_vm1, %v5756_v24  ;;  %v1557_v33 = vld [vmem:[#allocation9 + $0x8d8] sm:$0xff] }
 0x1ed   :  { %2172 = vmatpush.msra.mxu2 %v1689_v20  ;;  %2111 = vmatpush.msra.mxu0 %v1573_v58  ;;  %v1621_v61 = vld [vmem:[#allocation9 + $0xad8] sm:$0xff] }
 0x1ee   :  { %2140 = vmatpush.msra.mxu1 %v1637_v21  ;;  %2010 = vmatmul.f32.vlgmr.msrb.gmra.mxu0 %v5780_v11  ;;  %v1669_v52 = vld [vmem:[#allocation9 + $0xc58] sm:$0xff] }
 0x1ef   :  { %2173 = vmatpush.msra.mxu2 %v1685_v57  ;;  %2112 = vmatpush.msra.mxu0 %v1569_v17  ;;  %v1729_v0 = vld [vmem:[#allocation9 + $0xe38] sm:$0xff] }
 0x1f0   :  { %2141 = vmatpush.msra.mxu1 %v1633_v2  ;;  %2206 = vmatpush.msra.mxu3 %v1733_v31  ;;  %v1553_v27 = vld [vmem:[#allocation9 + $0x8b8] sm:$0xff] }
 0x1f1   :  { %2174 = vmatpush.msra.mxu2 %v1681_v55  ;;  %2113 = vmatpush.msra.mxu0 %v1565_v18  ;;  %v1617_v60 = vld [vmem:[#allocation9 + $0xab8] sm:$0xff] }
 0x1f2   :  { %2142 = vmatpush.msra.mxu1 %v1629_v56  ;;  %v1665_v51 = vld [vmem:[#allocation9 + $0xc38] sm:$0xff]  ;;  %2207 = vmatpush.msra.mxu3 %v1729_v0 }
 0x1f3   :  { %2175 = vmatpush.msra.mxu2 %v1677_v45  ;;  %2039 = vmatmul.f32.vlgmr.msrb.gmra.mxu1 %v5804_v12  ;;  %v1725_v3 = vld [vmem:[#allocation9 + $0xe18] sm:$0xff] }
 0x1f4   :  { %2071 = vmatmul.f32.gmra.mxu2 %v5784_v42  ;;  %2143 = vmatpush.msra.mxu1 %v1625_v54  ;;  %v1613_v19 = vld [vmem:[#allocation9 + $0xa98] sm:$0xff] }
 0x1f5   :  { %2114 = vmatpush.msra.mxu0 %v1561_v62  ;;  %2176 = vmatpush.msra.mxu2 %v1673_v6  ;;  %v1549_v35 = vld [vmem:[#allocation9 + $0x898] sm:$0xff]  ;;  %v1304_v62 = vld [vmem:[#allocation9 + $0x760] sm:$0xff] }
 0x1f6   :  { %2144 = vmatpush.msra.mxu1 %v1621_v61  ;;  %2208 = vmatpush.msra.mxu3 %v1725_v3  ;;  %v1661_v1 = vld [vmem:[#allocation9 + $0xc18] sm:$0xff]  ;;  %v1300_v61 = vld [vmem:[#allocation9 + $0x740] sm:$0xff] }
 0x1f7   :  { %2115 = vmatpush.msra.mxu0 %v1557_v33  ;;  %2177 = vmatpush.msra.mxu2 %v1669_v52  ;;  %v1721_v23 = vld [vmem:[#allocation9 + $0xdf8] sm:$0xff]  ;;  %v1256_v33 = vld [vmem:[#allocation9 + $0x5e0] sm:$0xff] }
 0x1f8   :  { %2145 = vmatpush.msra.mxu1 %v1617_v60  ;;  %4687 = vmatmul.msk.f32.gmra.mxu3 %vm779_vm1, %v5831_v36  ;;  %v1545_v30 = vld [vmem:[#allocation9 + $0x878] sm:$0xff]  ;;  %v1296_v3 = vld [vmem:[#allocation9 + $0x720] sm:$0xff] }
 0x1f9   :  { %2116 = vmatpush.msra.mxu0 %v1553_v27  ;;  %2178 = vmatpush.msra.mxu2 %v1665_v51  ;;  %v1609_v26 = vld [vmem:[#allocation9 + $0xa78] sm:$0xff]  ;;  %v1252_v27 = vld [vmem:[#allocation9 + $0x5c0] sm:$0xff] }
 0x1fa   :  { %2013 = vmatmul.f32.gmra.mxu0 %v5827_v4  ;;  %2146 = vmatpush.msra.mxu1 %v1613_v19  ;;  %v1657_v20 = vld [vmem:[#allocation9 + $0xbf8] sm:$0xff]  ;;  %v1248_v19 = vld [vmem:[#allocation9 + $0x5a0] sm:$0xff] }
 0x1fb   :  { %2042 = vmatmul.f32.gmra.mxu1 %v5852_v5  ;;  %2117 = vmatpush.msra.mxu0 %v1549_v35  ;;  %v1717_v58 = vld [vmem:[#allocation9 + $0xdd8] sm:$0xff] }
 0x1fc   :  { %2074 = vmatmul.f32.gmra.mxu2 %v5836_v50  ;;  %2209 = vmatpush.msra.mxu3 %v1721_v23  ;;  %v1541_v21 = vld [vmem:[#allocation9 + $0x858] sm:$0xff]  ;;  %v1192_v23 = vld [vmem:[#allocation9 + $0x3e0] sm:$0xff] }
 0x1fd   :  { %2179 = vmatpush.msra.mxu2 %v1661_v1  ;;  %v1605_v57 = vld [vmem:[#allocation9 + $0xa58] sm:$0xff]  ;;  %2118 = vmatpush.msra.mxu0 %v1545_v30  ;;  %v1128_v30 = vld [vmem:[#allocation9 + $0x1e0] sm:$0xff] }
 0x1fe   :  { %2147 = vmatpush.msra.mxu1 %v1609_v26  ;;  %v1653_v17 = vld [vmem:[#allocation9 + $0xbd8] sm:$0xff]  ;;  %2210 = vmatpush.msra.mxu3 %v1717_v58  ;;  %v1124_v26 = vld [vmem:[#allocation9 + $0x1c0] sm:$0xff] }
 0x1ff   :  { %v1713_v40 = vld [vmem:[#allocation9 + $0xdb8] sm:$0xff]  ;;  %2180 = vmatpush.msra.mxu2 %v1657_v20  ;;  %2119 = vmatpush.msra.mxu0 %v1541_v21  ;;  %v1188_v20 = vld [vmem:[#allocation9 + $0x3c0] sm:$0xff] }
 0x200   :  { %2148 = vmatpush.msra.mxu1 %v1605_v57  ;;  %v1601_v2 = vld [vmem:[#allocation9 + $0xa38] sm:$0xff]  ;;  %2211 = vmatpush.msra.mxu3 %v1713_v40  ;;  %v1236_v58 = vld [vmem:[#allocation9 + $0x540] sm:$0xff] }
 0x201   :  { %2181 = vmatpush.msra.mxu2 %v1653_v17  ;;  %v1537_v55 = vld [vmem:[#allocation9 + $0x838] sm:$0xff]  ;;  %4688 = vmatmul.msk.f32.gmra.mxu3 %vm779_vm1, %v5870_v16  ;;  %v1120_v21 = vld [vmem:[#allocation9 + $0x1a0] sm:$0xff] }
 0x202   :  { %v1649_v18 = vld [vmem:[#allocation9 + $0xbb8] sm:$0xff]  ;;  %2016 = vmatmul.f32.gmra.mxu0 %v5879_v29  ;;  %2149 = vmatpush.msra.mxu1 %v1601_v2  ;;  %v1292_v57 = vld [vmem:[#allocation9 + $0x700] sm:$0xff] }
 0x203   :  { %v1709_v32 = vld [vmem:[#allocation9 + $0xd98] sm:$0xff]  ;;  %2045 = vmatmul.f32.gmra.mxu1 %v5884_v34  ;;  %2120 = vmatpush.msra.mxu0 %v1537_v55  ;;  %v1184_v17 = vld [vmem:[#allocation9 + $0x3a0] sm:$0xff] }
 0x204   :  { %2077 = vmatmul.f32.gmra.mxu2 %v5874_v28  ;;  %v1533_v56 = vld [vmem:[#allocation9 + $0x818] sm:$0xff]  ;;  %2212 = vmatpush.msra.mxu3 %v1709_v32  ;;  %v1232_v40 = vld [vmem:[#allocation9 + $0x520] sm:$0xff] }
 0x205   :  { %v1597_v45 = vld [vmem:[#allocation9 + $0xa18] sm:$0xff]  ;;  %2182 = vmatpush.msra.mxu2 %v1649_v18  ;;  %2121 = vmatpush.msra.mxu0 %v1533_v56  ;;  %v1116_v2 = vld [vmem:[#allocation9 + $0x180] sm:$0xff] }
 0x206   :  { %v1645_v54 = vld [vmem:[#allocation9 + $0xb98] sm:$0xff]  ;;  %2150 = vmatpush.msra.mxu1 %v1597_v45  ;;  %2329 = vmatpush.msrb.mxu3 %v1304_v62  ;;  %v1288_v55 = vld [vmem:[#allocation9 + $0x6e0] sm:$0xff] }
 0x207   :  { %v1529_v6 = vld [vmem:[#allocation9 + $0x7f8] sm:$0xff]  ;;  %2183 = vmatpush.msra.mxu2 %v1645_v54  ;;  %v1112_v18 = vld [vmem:[#allocation9 + $0x160] sm:$0xff] }
 0x208   :  { %v1593_v31 = vld [vmem:[#allocation9 + $0x9f8] sm:$0xff]  ;;  %2122 = vmatpush.msra.mxu0 %v1529_v6  ;;  %2330 = vmatpush.msrb.mxu3 %v1300_v61  ;;  %v1284_v32 = vld [vmem:[#allocation9 + $0x6c0] sm:$0xff] }
 0x209   :  { %2151 = vmatpush.msra.mxu1 %v1593_v31  ;;  %v1589_v52 = vld [vmem:[#allocation9 + $0x9d8] sm:$0xff]  ;;  %2296 = vmatpush.msrb.mxu2 %v1256_v33  ;;  %v1108_v56 = vld [vmem:[#allocation9 + $0x140] sm:$0xff] }
 0x20a   :  { %v1525_v0 = vld [vmem:[#allocation9 + $0x7d8] sm:$0xff]  ;;  %4689 = vmatmul.msk.f32.vlgmr.msra.gmra.mxu3 %vm779_vm1, %v5705_v8  ;;  %2019 = vmatmul.f32.gmra.mxu0 %v5895_v63  ;;  %v1244_v8 = vld [vmem:[#allocation9 + $0x580] sm:$0xff] }
 0x20b   :  { %v1585_v60 = vld [vmem:[#allocation9 + $0x9b8] sm:$0xff]  ;;  %2152 = vmatpush.msra.mxu1 %v1589_v52  ;;  %2123 = vmatpush.msra.mxu0 %v1525_v0  ;;  %v1172_v45 = vld [vmem:[#allocation9 + $0x340] sm:$0xff] }
 0x20c   :  { %2184 = vmatmul.f32.vlgmr.msra.gmra.mxu2 %v5712_v9  ;;  %v1521_v51 = vld [vmem:[#allocation9 + $0x7b8] sm:$0xff]  ;;  %2048 = vmatmul.f32.gmra.mxu1 %v5900_v44  ;;  %v1240_v9 = vld [vmem:[#allocation9 + $0x560] sm:$0xff] }
 0x20d   :  { %v1581_v35 = vld [vmem:[#allocation9 + $0x998] sm:$0xff]  ;;  %2297 = vmatpush.msrb.mxu2 %v1252_v27  ;;  %2153 = vmatpush.msra.mxu1 %v1585_v60  ;;  %v1220_v54 = vld [vmem:[#allocation9 + $0x4c0] sm:$0xff]  ;;  %v957_v60 = vld [vmem:[#allocation2 + $0x10] sm:$0xfe] }
 0x20e   :  { %v1517_v1 = vld [vmem:[#allocation9 + $0x798] sm:$0xff]  ;;  %2124 = vmatpush.msra.mxu0 %v1521_v51  ;;  %2331 = vmatpush.msrb.mxu3 %v1296_v3  ;;  %v1280_v62 = vld [vmem:[#allocation9 + $0x6a0] sm:$0xff] }
 0x20f   :  { %2298 = vmatpush.msrb.mxu2 %v1248_v19  ;;  %2154 = vmatpush.msra.mxu1 %v1581_v35  ;;  %v1104_v6 = vld [vmem:[#allocation9 + $0x120] sm:$0xff]  ;;  %v958_v52 = vld [vmem:[#allocation2 + $0x18] sm:$0xfe] }
 0x210   :  { %2125 = vmatpush.msra.mxu0 %v1517_v1  ;;  %2332 = vmatpush.msrb.mxu3 %v1292_v57  ;;  %v1168_v31 = vld [vmem:[#allocation9 + $0x320] sm:$0xff] }
 0x211   :  { %2267 = vmatpush.msrb.mxu1 %v1192_v23  ;;  %2299 = vmatpush.msrb.mxu2 %v1244_v8  ;;  %v1100_v33 = vld [vmem:[#allocation9 + $0x100] sm:$0xff]  ;;  %v1005_v23 = vrot.slane %v958_v52, 1  ;;  %v1002_v8 = vrot.slane %v957_v60, 1 }
 0x212   :  { %2238 = vmatpush.msrb.mxu0 %v1128_v30  ;;  %4690 = vmatmul.msk.f32.gmra.mxu3 %vm779_vm1, %v5756_v24  ;;  %v1180_v24 = vld [vmem:[#allocation9 + $0x380] sm:$0xff] }
 0x213   :  { %2126 = vmatmul.f32.vlgmr.msra.gmra.mxu0 %v5780_v11  ;;  %2300 = vmatpush.msrb.mxu2 %v1240_v9  ;;  %v1176_v11 = vld [vmem:[#allocation9 + $0x360] sm:$0xff]  ;;  %v1004_v57 = vsel %vm995_vm5, %v1002_v8, %v5620_v25 }
 0x214   :  { %2187 = vmatmul.f32.gmra.mxu2 %v5784_v42  ;;  %2155 = vmatmul.f32.vlgmr.msra.gmra.mxu1 %v5804_v12  ;;  %v1228_v42 = vld [vmem:[#allocation9 + $0x500] sm:$0xff] }
 0x215   :  { %2239 = vmatpush.msrb.mxu0 %v1124_v26  ;;  %2268 = vmatpush.msrb.mxu1 %v1188_v20  ;;  %v1224_v12 = vld [vmem:[#allocation9 + $0x4e0] sm:$0xff] }
 0x216   :  { %2301 = vmatpush.msrb.mxu2 %v1236_v58  ;;  %2333 = vmatpush.msrb.mxu3 %v1288_v55  ;;  %v1212_v61 = vld [vmem:[#allocation9 + $0x480] sm:$0xff] }
 0x217   :  { %2240 = vmatpush.msrb.mxu0 %v1120_v21  ;;  %2269 = vmatpush.msrb.mxu1 %v1184_v17  ;;  %v1096_v0 = vld [vmem:[#allocation9 + $0xe0] sm:$0xff]  ;;  %v942_v21 = vld [vmem:[#allocation2 + $0x18] sm:$0xff] }
 0x218   :  { %2302 = vmatpush.msrb.mxu2 %v1232_v40  ;;  %2334 = vmatpush.msrb.mxu3 %v1284_v32  ;;  %v1160_v27 = vld [vmem:[#allocation9 + $0x2e0] sm:$0xff] }
 0x219   :  { %2241 = vmatpush.msrb.mxu0 %v1116_v2  ;;  %2270 = vmatpush.msrb.mxu1 %v1180_v24  ;;  %v1208_v51 = vld [vmem:[#allocation9 + $0x460] sm:$0xff] }
 0x21a   :  { %2303 = vmatpush.msrb.mxu2 %v1228_v42  ;;  %4691 = vmatmul.msk.f32.gmra.mxu3 %vm779_vm1, %v5831_v36  ;;  %v1216_v36 = vld [vmem:[#allocation9 + $0x4a0] sm:$0xff] }
 0x21b   :  { %2129 = vmatmul.f32.gmra.mxu0 %v5827_v4  ;;  %2271 = vmatpush.msrb.mxu1 %v1176_v11  ;;  %v1164_v4 = vld [vmem:[#allocation9 + $0x300] sm:$0xff]  ;;  %v1257_v11 = vld [vmem:[#allocation9 + $0x5e8] sm:$0xff] }
 0x21c   :  { %2190 = vmatmul.f32.gmra.mxu2 %v5836_v50  ;;  %2158 = vmatmul.f32.gmra.mxu1 %v5852_v5  ;;  %v1276_v50 = vld [vmem:[#allocation9 + $0x680] sm:$0xff] }
 0x21d   :  { %2242 = vmatpush.msrb.mxu0 %v1112_v18  ;;  %2304 = vmatpush.msrb.mxu2 %v1224_v12  ;;  %v1272_v5 = vld [vmem:[#allocation9 + $0x660] sm:$0xff] }
 0x21e   :  { %2272 = vmatpush.msrb.mxu1 %v1172_v45  ;;  %2335 = vmatpush.msrb.mxu3 %v1280_v62  ;;  %v1268_v3 = vld [vmem:[#allocation9 + $0x640] sm:$0xff] }
 0x21f   :  { %2243 = vmatpush.msrb.mxu0 %v1108_v56  ;;  %2305 = vmatpush.msrb.mxu2 %v1220_v54  ;;  %v1092_v19 = vld [vmem:[#allocation9 + $0xc0] sm:$0xff]  ;;  %v1305_v56 = vld [vmem:[#allocation9 + $0x768] sm:$0xff] }
 0x220   :  { %2273 = vmatpush.msrb.mxu1 %v1168_v31  ;;  %2336 = vmatpush.msrb.mxu3 %v1276_v50  ;;  %v1156_v35 = vld [vmem:[#allocation9 + $0x2c0] sm:$0xff]  ;;  %v1253_v54 = vld [vmem:[#allocation9 + $0x5c8] sm:$0xff] }
 0x221   :  { %2244 = vmatpush.msrb.mxu0 %v1104_v6  ;;  %2306 = vmatpush.msrb.mxu2 %v1216_v36  ;;  %v1264_v1 = vld [vmem:[#allocation9 + $0x620] sm:$0xff]  ;;  %v5996_v40 = vpop.f32.mrf.mxu3  ;;  %v1301_v36 = vld [vmem:[#allocation9 + $0x748] sm:$0xff] }
 0x222   :  { %4692 = vmatmul.msk.f32.gmra.mxu3 %vm779_vm1, %v5870_v16  ;;  %2274 = vmatpush.msrb.mxu1 %v1164_v4  ;;  %v1204_v16 = vld [vmem:[#allocation9 + $0x440] sm:$0xff]  ;;  %7761 = vst [vmem:[#allocation25_spill] sm:$0xff] %v5996_v40  ;;  %v5998_v55 = vpop.f32.mrf.mxu2 }
 0x223   :  { %2245 = vmatpush.msrb.mxu0 %v1100_v33  ;;  %2307 = vmatpush.msrb.mxu2 %v1212_v61  ;;  %v1088_v30 = vld [vmem:[#allocation9 + $0xa0] sm:$0xff]  ;;  %7762 = vst [vmem:[#allocation26_spill] sm:$0xff] %v5998_v55  ;;  %v6006_v32 = vpop.f32.mrf.mxu0  ;;  %v3093_v55 = vld [vmem:[#allocation9 + $0x14c8] sm:$0xff] }
 0x224   :  { %2132 = vmatmul.f32.gmra.mxu0 %v5879_v29  ;;  %2161 = vmatmul.f32.gmra.mxu1 %v5884_v34  ;;  %v1152_v9 = vld [vmem:[#allocation9 + $0x2a0] sm:$0xff] }
 0x225   :  { %2193 = vmatmul.f32.gmra.mxu2 %v5874_v28  ;;  %2337 = vmatpush.msrb.mxu3 %v1272_v5  ;;  %v1200_v29 = vld [vmem:[#allocation9 + $0x420] sm:$0xff]  ;;  %v1007_v28 = vsel %vm995_vm5, %v1005_v23, %v5649_v59  ;;  %v941_v59 = vld [vmem:[#allocation2 + $0x10] sm:$0xff]  ;;  %v966_v5 = vld [vmem:[#allocation2 + $0x78] sm:$0xfe] }
 0x226   :  { %2246 = vmatpush.msrb.mxu0 %v1096_v0  ;;  %2275 = vmatpush.msrb.mxu1 %v1160_v27  ;;  %v1260_v34 = vld [vmem:[#allocation9 + $0x600] sm:$0xff]  ;;  %v5994_v17 = vmax.f32 %v942_v21, %v1007_v28  ;;  %v6002_v42 = vmax.f32 %v941_v59, %v1004_v57  ;;  %v6009_v50 = vpop.f32.mrf.mxu1  ;;  %v1245_v0 = vld [vmem:[#allocation9 + $0x588] sm:$0xff]  ;;  %v1025_v8 = vrot.slane %v966_v5, 1 }
 0x227   :  { %2308 = vmatpush.msrb.mxu2 %v1208_v51  ;;  %2338 = vmatpush.msrb.mxu3 %v1268_v3  ;;  %v1084_v26 = vld [vmem:[#allocation9 + $0x80] sm:$0xff]  ;;  %v1129_v23 = vld [vmem:[#allocation9 + $0x1e8] sm:$0xff] }
 0x228   :  { %2247 = vmatpush.msrb.mxu0 %v1092_v19  ;;  %2276 = vmatpush.msrb.mxu1 %v1156_v35  ;;  %v1148_v20 = vld [vmem:[#allocation9 + $0x280] sm:$0xff]  ;;  %v959_v19 = vld [vmem:[#allocation2 + $0x40] sm:$0x1]  ;;  %v1125_v28 = vld [vmem:[#allocation9 + $0x1c8] sm:$0xff] }
 0x229   :  { %2309 = vmatpush.msrb.mxu2 %v1204_v16  ;;  %2339 = vmatpush.msrb.mxu3 %v1264_v1  ;;  %v1196_v58 = vld [vmem:[#allocation9 + $0x400] sm:$0xff]  ;;  %v6015_v60 = vpop.f32.mrf.mxu3  ;;  %v1189_v21 = vld [vmem:[#allocation9 + $0x3c8] sm:$0xff] }
 0x22a   :  { %2248 = vmatpush.msrb.mxu0 %v1088_v30  ;;  %2277 = vmatpush.msrb.mxu1 %v1152_v9  ;;  %v1080_v2 = vld [vmem:[#allocation9 + $0x60] sm:$0xff]  ;;  %7763 = vst [vmem:[#allocation27_spill] sm:$0xff] %v6015_v60  ;;  %v6017_v3 = vpop.f32.mrf.mxu2  ;;  %v965_v30 = vld [vmem:[#allocation2 + $0x70] sm:$0xfe] }
 0x22b   :  { %2310 = vmatpush.msrb.mxu2 %v1200_v29  ;;  %2340 = vmatpush.msrb.mxu3 %v1260_v34  ;;  %v955_v24 = vld [vmem:[#allocation2] sm:$0xfe]  ;;  %v956_v18 = vld [vmem:[#allocation2 + $0x8] sm:$0xfe]  ;;  %7764 = vst [vmem:[#allocation28_spill] sm:$0xff] %v6017_v3  ;;  %v1022_v59 = vrot.slane %v965_v30, 1 }
 0x22c   :  { %2249 = vmatpush.msrb.mxu0 %v1084_v26  ;;  %2278 = vmatpush.msrb.mxu1 %v1148_v20  ;;  %v1144_v25 = vld [vmem:[#allocation9 + $0x260] sm:$0xff]  ;;  %v996_v6 = vrot.slane %v955_v24, 1  ;;  %v999_v31 = vrot.slane %v956_v18, 1  ;;  %v1193_v9 = vld [vmem:[#allocation9 + $0x3e8] sm:$0xff]  ;;  %v6025_v34 = vpop.f32.mrf.mxu0  ;;  %v1008_v20 = vrot.slane %v959_v19, 1  ;;  %v1118_v60 = vld [vmem:[#allocation9 + $0x190] sm:$0xff] }
 0x22d   :  { %2311 = vmatpush.msrb.mxu2 %v1196_v58  ;;  %4693 = vmatmul.msk.f32.vlgmr.msrb.gmra.mxu3 %vm779_vm1, %v5994_v17  ;;  %v1076_v12 = vld [vmem:[#allocation9 + $0x40] sm:$0xff]  ;;  %v1241_v29 = vld [vmem:[#allocation9 + $0x568] sm:$0xff]  ;;  %7765 = vst [vmem:[#allocation29_spill] sm:$0xff] %v6025_v34  ;;  %v1278_v3 = vld [vmem:[#allocation9 + $0x690] sm:$0xff] }
 0x22e   :  { %2135 = vmatmul.f32.gmra.mxu0 %v5895_v63  ;;  %2164 = vmatmul.f32.gmra.mxu1 %v5900_v44  ;;  %v1140_v45 = vld [vmem:[#allocation9 + $0x240] sm:$0xff]  ;;  %v1249_v44 = vld [vmem:[#allocation9 + $0x5a8] sm:$0xff]  ;;  %v998_v4 = vsel %vm995_vm5, %v996_v6, %v5666_v13  ;;  %v1001_v61 = vsel %vm995_vm5, %v999_v31, %v5684_v10 }
 0x22f   :  { %2312 = vmatmul.f32.vlgmr.msrb.gmra.mxu2 %v6002_v42  ;;  %2250 = vmatpush.msrb.mxu0 %v1080_v2  ;;  %v1072_v62 = vld [vmem:[#allocation9 + $0x20] sm:$0xff]  ;;  %v1297_v26 = vld [vmem:[#allocation9 + $0x728] sm:$0xff]  ;;  %v6030_v2 = vpop.f32.mrf.mxu1 }
 0x230   :  { %2279 = vmatpush.msrb.mxu1 %v1144_v25  ;;  %2412 = vmatpush.msra.mxu2 %v1257_v11  ;;  %v1136_v63 = vld [vmem:[#allocation9 + $0x220] sm:$0xff]  ;;  %v1237_v57 = vld [vmem:[#allocation9 + $0x548] sm:$0xff]  ;;  %7766 = vst [vmem:[#allocation30_spill] sm:$0xff] %v6030_v2  ;;  %v1027_v11 = vsel %vm995_vm5, %v1025_v8, %v5793_v38 }
 0x231   :  { %2251 = vmatpush.msrb.mxu0 %v1076_v12  ;;  %2445 = vmatpush.msra.mxu3 %v1305_v56  ;;  %v1068_v33 = vld [vmem:[#allocation9] sm:$0xff]  ;;  %v1121_v24 = vld [vmem:[#allocation9 + $0x1a8] sm:$0xff]  ;;  %v950_v56 = vld [vmem:[#allocation2 + $0x78] sm:$0xff] }
 0x232   :  { %2280 = vmatpush.msrb.mxu1 %v1140_v45  ;;  %2413 = vmatpush.msra.mxu2 %v1253_v54  ;;  %v1132_v52 = vld [vmem:[#allocation9 + $0x200] sm:$0xff]  ;;  %v1293_v25 = vld [vmem:[#allocation9 + $0x708] sm:$0xff]  ;;  %v1009_v54 = vsel %vm995_vm5, %v5666_v13, %v1008_v20  ;;  %v6038_v6 = vmax.f32 %v950_v56, %v1027_v11 }
 0x233   :  { %2252 = vmatpush.msrb.mxu0 %v1072_v62  ;;  %v939_v27 = vld [vmem:[#allocation2] sm:$0xff]  ;;  %2446 = vmatpush.msra.mxu3 %v1301_v36  ;;  %v940_v51 = vld [vmem:[#allocation2 + $0x8] sm:$0xff] }
 0x234   :  { %2281 = vmatpush.msrb.mxu1 %v1136_v63  ;;  %2414 = vmatpush.msra.mxu2 %v1249_v44  ;;  %v960_v35 = vld [vmem:[#allocation2 + $0x48] sm:$0x1]  ;;  %v6021_v16 = vmax.f32 %v939_v27, %v998_v4  ;;  %v6023_v1 = vmax.f32 %v940_v51, %v1001_v61  ;;  %v1185_v18 = vld [vmem:[#allocation9 + $0x3a8] sm:$0xff]  ;;  %v1024_v63 = vsel %vm995_vm5, %v1022_v59, %v5774_v49  ;;  %v970_v61 = vld [vmem:[#allocation2 + $0xb8] sm:$0x1] }
 0x235   :  { %2253 = vmatpush.msrb.mxu0 %v1068_v33  ;;  %4694 = vmatmul.msk.f32.gmra.mxu3 %vm779_vm1, %v5857_v43  ;;  %v1010_v58 = vrot.slane %v960_v35, 1  ;;  %v1233_v12 = vld [vmem:[#allocation9 + $0x528] sm:$0xff]  ;;  %v6042_v33 = vpop.f32.mrf.mxu3  ;;  %v4955_v5 = vld [vmem:[#allocation2 + $0x20] sm:$0xff] }
 0x236   :  { %2282 = vmatpush.msrb.mxu1 %v1132_v52  ;;  %2415 = vmatpush.msra.mxu2 %v1245_v0  ;;  %v1117_v45 = vld [vmem:[#allocation9 + $0x188] sm:$0xff]  ;;  %7767 = vst [vmem:[#allocation31_spill] sm:$0xff] %v6042_v33  ;;  %v6048_v52 = vmax.f32 %v4955_v5, %v1009_v54  ;;  %v963_v19 = vld [vmem:[#allocation2 + $0x60] sm:$0xfe]  ;;  %v4957_v5 = vld [vmem:[#allocation2 + $0x98] sm:$0xff] }
 0x237   :  { %2254 = vmatmul.f32.vlgmr.msrb.gmra.mxu0 %v6021_v16  ;;  %2283 = vmatmul.f32.vlgmr.msrb.gmra.mxu1 %v6023_v1  ;;  %v1011_v62 = vsel %vm995_vm5, %v5684_v10, %v1010_v58  ;;  %v1181_v31 = vld [vmem:[#allocation9 + $0x388] sm:$0xff]  ;;  %v6044_v4 = vpop.f32.mrf.mxu2  ;;  %v1016_v59 = vrot.slane %v963_v19, 1  ;;  %v1262_v33 = vld [vmem:[#allocation9 + $0x610] sm:$0xff] }
 0x238   :  { %2315 = vmatmul.f32.gmra.mxu2 %v5890_v14  ;;  %2354 = vmatpush.msra.mxu0 %v1129_v23  ;;  %v1229_v36 = vld [vmem:[#allocation9 + $0x508] sm:$0xff]  ;;  %7768 = vst [vmem:[#allocation32_spill] sm:$0xff] %v6044_v4  ;;  %v1231_v4 = vld [vmem:[#allocation9 + $0x518] sm:$0xff] }
 0x239   :  { %2383 = vmatpush.msra.mxu1 %v1193_v9  ;;  %2416 = vmatpush.msra.mxu2 %v1241_v29  ;;  %v949_v44 = vld [vmem:[#allocation2 + $0x70] sm:$0xff]  ;;  %v4956_v0 = vld [vmem:[#allocation2 + $0x28] sm:$0xff] }
 0x23a   :  { %2355 = vmatpush.msra.mxu0 %v1125_v28  ;;  %2447 = vmatpush.msra.mxu3 %v1297_v26  ;;  %v6050_v27 = vmax.f32 %v4956_v0, %v1011_v62  ;;  %v1289_v51 = vld [vmem:[#allocation9 + $0x6e8] sm:$0xff]  ;;  %v6052_v23 = vmax.f32 %v949_v44, %v1024_v63  ;;  %v6056_v26 = vpop.f32.mrf.mxu0 }
 0x23b   :  { %2384 = vmatpush.msra.mxu1 %v1189_v21  ;;  %2417 = vmatpush.msra.mxu2 %v1237_v57  ;;  %v964_v35 = vld [vmem:[#allocation2 + $0x68] sm:$0xfe]  ;;  %v969_v9 = vld [vmem:[#allocation2 + $0xb0] sm:$0x1]  ;;  %7769 = vst [vmem:[#allocation33_spill] sm:$0xff] %v6056_v26  ;;  %v6059_v21 = vpop.f32.mrf.mxu1  ;;  %v1034_v57 = vrot.slane %v970_v61, 1 }
 0x23c   :  { %2356 = vmatpush.msra.mxu0 %v1121_v24  ;;  %2448 = vmatpush.msra.mxu3 %v1293_v25  ;;  %v1113_v8 = vld [vmem:[#allocation9 + $0x168] sm:$0xff]  ;;  %7770 = vst [vmem:[#allocation34_spill] sm:$0xff] %v6059_v21  ;;  %v1019_v24 = vrot.slane %v964_v35, 1  ;;  %v1203_v26 = vld [vmem:[#allocation9 + $0x438] sm:$0xff] }
 0x23d   :  { %2385 = vmatpush.msra.mxu1 %v1185_v18  ;;  %2418 = vmatpush.msra.mxu2 %v1233_v12  ;;  %v1177_v30 = vld [vmem:[#allocation9 + $0x368] sm:$0xff]  ;;  %v1032_v18 = vrot.slane %v969_v9, 1  ;;  %v6067_v44 = vpop.f32.mrf.mxu3 }
 0x23e   :  { %4695 = vmatmul.msk.f32.gmra.mxu3 %vm779_vm1, %v6038_v6  ;;  %2357 = vmatpush.msra.mxu0 %v1117_v45  ;;  %v1225_v29 = vld [vmem:[#allocation9 + $0x4e8] sm:$0xff]  ;;  %v1035_v45 = vsel %vm995_vm5, %v5793_v38, %v1034_v57  ;;  %v1021_v63 = vsel %vm995_vm5, %v1019_v24, %v5846_v15  ;;  %7771 = vst [vmem:[#allocation35_spill] sm:$0xff] %v6067_v44  ;;  %v968_v57 = vld [vmem:[#allocation2 + $0xa8] sm:$0x1] }
 0x23f   :  { %2386 = vmatpush.msra.mxu1 %v1181_v31  ;;  %2419 = vmatpush.msra.mxu2 %v1229_v36  ;;  %v1285_v28 = vld [vmem:[#allocation9 + $0x6c8] sm:$0xff]  ;;  %v1018_v36 = vsel %vm995_vm5, %v1016_v59, %v5821_v7  ;;  %v6069_v61 = vpop.f32.mrf.mxu2  ;;  %v6071_v0 = vmax.f32 %v4957_v5, %v1035_v45  ;;  %v1033_v35 = vsel %vm995_vm5, %v5774_v49, %v1032_v18 }
 0x240   :  { %2257 = vmatmul.f32.gmra.mxu0 %v6048_v52  ;;  %2286 = vmatmul.f32.gmra.mxu1 %v6050_v27  ;;  %v1109_v20 = vld [vmem:[#allocation9 + $0x148] sm:$0xff]  ;;  %7772 = vst [vmem:[#allocation36_spill] sm:$0xff] %v6069_v61 }
 0x241   :  { %2318 = vmatmul.f32.gmra.mxu2 %v6052_v23  ;;  %2449 = vmatpush.msra.mxu3 %v1289_v51  ;;  %v1173_v58 = vld [vmem:[#allocation9 + $0x348] sm:$0xff] }
 0x242   :  { %2358 = vmatpush.msra.mxu0 %v1113_v8  ;;  %2387 = vmatpush.msra.mxu1 %v1177_v30  ;;  %v1221_v25 = vld [vmem:[#allocation9 + $0x4c8] sm:$0xff]  ;;  %v947_v8 = vld [vmem:[#allocation2 + $0x60] sm:$0xff] }
 0x243   :  { %v1281_v11 = vld [vmem:[#allocation9 + $0x6a8] sm:$0xff]  ;;  %2420 = vmatpush.msra.mxu2 %v1225_v29  ;;  %2450 = vmatpush.msra.mxu3 %v1285_v28  ;;  %v6077_v9 = vmax.f32 %v947_v8, %v1018_v36  ;;  %v6085_v18 = vpop.f32.mrf.mxu1 }
 0x244   :  { %v1105_v12 = vld [vmem:[#allocation9 + $0x128] sm:$0xff]  ;;  %2359 = vmatpush.msra.mxu0 %v1109_v20  ;;  %2388 = vmatpush.msra.mxu1 %v1173_v58  ;;  %v6081_v20 = vpop.f32.mrf.mxu0  ;;  %v967_v58 = vld [vmem:[#allocation2 + $0xa0] sm:$0x1]  ;;  %7774 = vst [vmem:[#allocation38_spill] sm:$0xff] %v6085_v18 }
 0x245   :  { %v1169_v56 = vld [vmem:[#allocation9 + $0x328] sm:$0xff]  ;;  %2421 = vmatpush.msra.mxu2 %v1221_v25  ;;  %2451 = vmatpush.msra.mxu3 %v1281_v11  ;;  %7773 = vst [vmem:[#allocation37_spill] sm:$0xff] %v6081_v20  ;;  %v1230_v20 = vld [vmem:[#allocation9 + $0x510] sm:$0xff] }
 0x246   :  { %v1217_v54 = vld [vmem:[#allocation9 + $0x4a8] sm:$0xff]  ;;  %2360 = vmatpush.msra.mxu0 %v1105_v12  ;;  %2389 = vmatpush.msra.mxu1 %v1169_v56 }
 0x247   :  { %v1277_v62 = vld [vmem:[#allocation9 + $0x688] sm:$0xff]  ;;  %2422 = vmatpush.msra.mxu2 %v1217_v54  ;;  %4696 = vmatmul.msk.f32.gmra.mxu3 %vm779_vm1, %v6071_v0 }
 0x248   :  { %v1101_v31 = vld [vmem:[#allocation9 + $0x108] sm:$0xff]  ;;  %2452 = vmatpush.msra.mxu3 %v1277_v62  ;;  %2260 = vmatmul.f32.gmra.mxu0 %v6077_v9  ;;  %v1028_v62 = vrot.slane %v967_v58, 1 }
 0x249   :  { %v1165_v51 = vld [vmem:[#allocation9 + $0x308] sm:$0xff]  ;;  %2361 = vmatpush.msra.mxu0 %v1101_v31  ;;  %v1030_v31 = vrot.slane %v968_v57, 1 }
 0x24a   :  { %v1213_v19 = vld [vmem:[#allocation9 + $0x488] sm:$0xff]  ;;  %2390 = vmatpush.msra.mxu1 %v1165_v51  ;;  %v1029_v57 = vsel %vm995_vm5, %v5821_v7, %v1028_v62 }
 0x24b   :  { %v948_v30 = vld [vmem:[#allocation2 + $0x68] sm:$0xff]  ;;  %2423 = vmatpush.msra.mxu2 %v1213_v19  ;;  %v4958_v59 = vld [vmem:[#allocation2 + $0x90] sm:$0xff]  ;;  %v6090_v19 = vpop.f32.mrf.mxu3 }
 0x24c   :  { %v6079_v29 = vmax.f32 %v948_v30, %v1021_v63  ;;  %v1273_v28 = vld [vmem:[#allocation9 + $0x668] sm:$0xff]  ;;  %v6083_v24 = vmax.f32 %v4958_v59, %v1033_v35  ;;  %7775 = vst [vmem:[#allocation39_spill] sm:$0xff] %v6090_v19  ;;  %v6092_v35 = vpop.f32.mrf.mxu2  ;;  %v1031_v59 = vsel %vm995_vm5, %v5846_v15, %v1030_v31 }
 0x24d   :  { %v1097_v25 = vld [vmem:[#allocation9 + $0xe8] sm:$0xff]  ;;  %2453 = vmatpush.msra.mxu3 %v1273_v28  ;;  %7776 = vst [vmem:[#allocation40_spill] sm:$0xff] %v6092_v35 }
 0x24e   :  { %v1161_v11 = vld [vmem:[#allocation9 + $0x2e8] sm:$0xff]  ;;  %2289 = vmatmul.f32.gmra.mxu1 %v6079_v29  ;;  %2321 = vmatmul.f32.gmra.mxu2 %v6083_v24 }
 0x24f   :  { %v1209_v12 = vld [vmem:[#allocation9 + $0x468] sm:$0xff]  ;;  %2362 = vmatpush.msra.mxu0 %v1097_v25  ;;  %2391 = vmatpush.msra.mxu1 %v1161_v11  ;;  %v6098_v11 = vpop.f32.mrf.mxu0 }
 0x250   :  { %v1269_v56 = vld [vmem:[#allocation9 + $0x648] sm:$0xff]  ;;  %2424 = vmatpush.msra.mxu2 %v1209_v12  ;;  %v6100_v12 = vpop.f32.mrf.mxu1 }
 0x251   :  { %v1093_v45 = vld [vmem:[#allocation9 + $0xc8] sm:$0xff]  ;;  %2454 = vmatpush.msra.mxu3 %v1269_v56  ;;  %v4959_v56 = vld [vmem:[#allocation2 + $0x80] sm:$0xff] }
 0x252   :  { %v1157_v54 = vld [vmem:[#allocation9 + $0x2c8] sm:$0xff]  ;;  %2363 = vmatpush.msra.mxu0 %v1093_v45  ;;  %v6102_v45 = vmax.f32 %v4959_v56, %v1029_v57  ;;  %v1250_v56 = vld [vmem:[#allocation9 + $0x5b0] sm:$0xff] }
 0x253   :  { %v1205_v36 = vld [vmem:[#allocation9 + $0x448] sm:$0xff]  ;;  %2392 = vmatpush.msra.mxu1 %v1157_v54 }
 0x254   :  { %v1265_v63 = vld [vmem:[#allocation9 + $0x628] sm:$0xff]  ;;  %2425 = vmatpush.msra.mxu2 %v1205_v36  ;;  %2263 = vmatmul.f32.gmra.mxu0 %v6102_v45 }
 0x255   :  { %v1089_v5 = vld [vmem:[#allocation9 + $0xa8] sm:$0xff]  ;;  %2455 = vmatpush.msra.mxu3 %v1265_v63  ;;  %v1258_v63 = vld [vmem:[#allocation9 + $0x5f0] sm:$0xff] }
 0x256   :  { %v1153_v51 = vld [vmem:[#allocation9 + $0x2a8] sm:$0xff]  ;;  %2364 = vmatpush.msra.mxu0 %v1089_v5 }
 0x257   :  { %v1201_v8 = vld [vmem:[#allocation9 + $0x428] sm:$0xff]  ;;  %2393 = vmatpush.msra.mxu1 %v1153_v51  ;;  %v1306_v51 = vld [vmem:[#allocation9 + $0x770] sm:$0xff]  ;;  %v6115_v46 = vpop.f32.mrf.mxu0 }
 0x258   :  { %v1261_v30 = vld [vmem:[#allocation9 + $0x608] sm:$0xff]  ;;  %2426 = vmatpush.msra.mxu2 %v1201_v8  ;;  %7779 = vst [vmem:[#allocation43_spill] sm:$0xff] %v6115_v46  ;;  %v6117_v44 = vpop.f32.mrf.mxu1  ;;  %v1119_v46 = vld [vmem:[#allocation9 + $0x198] sm:$0xff] }
 0x259   :  { %v1085_v28 = vld [vmem:[#allocation9 + $0x88] sm:$0xff]  ;;  %2456 = vmatpush.msra.mxu3 %v1261_v30  ;;  %v1254_v30 = vld [vmem:[#allocation9 + $0x5d0] sm:$0xff]  ;;  %7780 = vst [vmem:[#allocation44_spill] sm:$0xff] %v6117_v44  ;;  %v1235_v44 = vld [vmem:[#allocation9 + $0x538] sm:$0xff] }
 0x25a   :  { %v1149_v58 = vld [vmem:[#allocation9 + $0x288] sm:$0xff]  ;;  %2365 = vmatpush.msra.mxu0 %v1085_v28  ;;  %4697 = vmatmul.msk.f32.vlgmr.msra.gmra.mxu3 %vm779_vm1, %v5994_v17  ;;  %v6111_v28 = vpop.f32.mrf.mxu3 }
 0x25b   :  { %v1197_v25 = vld [vmem:[#allocation9 + $0x408] sm:$0xff]  ;;  %2394 = vmatpush.msra.mxu1 %v1149_v58  ;;  %7777 = vst [vmem:[#allocation41_spill] sm:$0xff] %v6111_v28  ;;  %v6113_v58 = vpop.f32.mrf.mxu2  ;;  %2561 = vmatpush.msrb.mxu3 %v1306_v51  ;;  %v1126_v51 = vld [vmem:[#allocation9 + $0x1d0] sm:$0xff] }
 0x25c   :  { %v4960_v54 = vld [vmem:[#allocation2 + $0x88] sm:$0xff]  ;;  %2427 = vmatpush.msra.mxu2 %v1197_v25  ;;  %7778 = vst [vmem:[#allocation42_spill] sm:$0xff] %v6113_v58  ;;  %v1218_v28 = vld [vmem:[#allocation9 + $0x4b0] sm:$0xff]  ;;  %v6302_v19 = vld [vmem:[#allocation2 + $0xb0] sm:$0x1f] }
 0x25d   :  { %v6104_v36 = vmax.f32 %v4960_v54, %v1031_v59  ;;  %v1081_v62 = vld [vmem:[#allocation9 + $0x68] sm:$0xff]  ;;  %2428 = vmatmul.f32.vlgmr.msra.gmra.mxu2 %v6002_v42  ;;  %v1302_v59 = vld [vmem:[#allocation9 + $0x750] sm:$0xff] }
 0x25e   :  { %v1145_v31 = vld [vmem:[#allocation9 + $0x268] sm:$0xff]  ;;  %2366 = vmatpush.msra.mxu0 %v1081_v62  ;;  %2528 = vmatpush.msrb.mxu2 %v1258_v63  ;;  %v1194_v63 = vld [vmem:[#allocation9 + $0x3f0] sm:$0xff] }
 0x25f   :  { %2292 = vmatmul.f32.gmra.mxu1 %v6104_v36  ;;  %v1077_v5 = vld [vmem:[#allocation9 + $0x48] sm:$0xff]  ;;  %2562 = vmatpush.msrb.mxu3 %v1302_v59  ;;  %v1190_v59 = vld [vmem:[#allocation9 + $0x3d0] sm:$0xff]  ;;  %v6128_v61 = vpop.f32.mrf.mxu0 }
 0x260   :  { %v1141_v8 = vld [vmem:[#allocation9 + $0x248] sm:$0xff]  ;;  %2395 = vmatpush.msra.mxu1 %v1145_v31  ;;  %2367 = vmatpush.msra.mxu0 %v1077_v5  ;;  %v1130_v31 = vld [vmem:[#allocation9 + $0x1f0] sm:$0xff]  ;;  %7783 = vst [vmem:[#allocation47_spill] sm:$0xff] %v6128_v61  ;;  %v6130_v18 = vpop.f32.mrf.mxu1 }
 0x261   :  { %v1073_v57 = vld [vmem:[#allocation9 + $0x28] sm:$0xff]  ;;  %2529 = vmatpush.msrb.mxu2 %v1254_v30  ;;  %v1242_v5 = vld [vmem:[#allocation9 + $0x570] sm:$0xff]  ;;  %7784 = vst [vmem:[#allocation48_spill] sm:$0xff] %v6130_v18  ;;  %v1071_v18 = vld [vmem:[#allocation9 + $0x18] sm:$0xff] }
 0x262   :  { %v1137_v25 = vld [vmem:[#allocation9 + $0x228] sm:$0xff]  ;;  %2396 = vmatpush.msra.mxu1 %v1141_v8  ;;  %2368 = vmatpush.msra.mxu0 %v1073_v57  ;;  %v1298_v8 = vld [vmem:[#allocation9 + $0x730] sm:$0xff]  ;;  %v6123_v30 = vpop.f32.mrf.mxu3 }
 0x263   :  { %v1069_v54 = vld [vmem:[#allocation9 + $0x8] sm:$0xff]  ;;  %2530 = vmatpush.msrb.mxu2 %v1250_v56  ;;  %4698 = vmatmul.msk.f32.gmra.mxu3 %vm779_vm1, %v5857_v43  ;;  %7781 = vst [vmem:[#allocation45_spill] sm:$0xff] %v6123_v30  ;;  %v6125_v57 = vpop.f32.mrf.mxu2  ;;  %v1294_v56 = vld [vmem:[#allocation9 + $0x710] sm:$0xff] }
 0x264   :  { %v1133_v62 = vld [vmem:[#allocation9 + $0x208] sm:$0xff]  ;;  %2397 = vmatpush.msra.mxu1 %v1137_v25  ;;  %2369 = vmatpush.msra.mxu0 %v1069_v54  ;;  %7782 = vst [vmem:[#allocation46_spill] sm:$0xff] %v6125_v57  ;;  %v1238_v25 = vld [vmem:[#allocation9 + $0x550] sm:$0xff] }
 0x265   :  { %2531 = vmatpush.msrb.mxu2 %v1246_v41  ;;  %2370 = vmatmul.f32.vlgmr.msra.gmra.mxu0 %v6021_v16  ;;  %v1122_v41 = vld [vmem:[#allocation9 + $0x1b0] sm:$0xff] }
 0x266   :  { %2398 = vmatpush.msra.mxu1 %v1133_v62  ;;  %2431 = vmatmul.f32.gmra.mxu2 %v5890_v14  ;;  %v1186_v54 = vld [vmem:[#allocation9 + $0x3b0] sm:$0xff] }
 0x267   :  { %2399 = vmatmul.f32.vlgmr.msra.gmra.mxu1 %v6023_v1  ;;  %2470 = vmatpush.msrb.mxu0 %v1130_v31  ;;  %v1234_v62 = vld [vmem:[#allocation9 + $0x530] sm:$0xff] }
 0x268   :  { %2499 = vmatpush.msrb.mxu1 %v1194_v63  ;;  %2532 = vmatpush.msrb.mxu2 %v1242_v5  ;;  %v1182_v31 = vld [vmem:[#allocation9 + $0x390] sm:$0xff] }
 0x269   :  { %2471 = vmatpush.msrb.mxu0 %v1126_v51  ;;  %2563 = vmatpush.msrb.mxu3 %v1298_v8  ;;  %v1290_v63 = vld [vmem:[#allocation9 + $0x6f0] sm:$0xff] }
 0x26a   :  { %2500 = vmatpush.msrb.mxu1 %v1190_v59  ;;  %2533 = vmatpush.msrb.mxu2 %v1238_v25  ;;  %v1114_v5 = vld [vmem:[#allocation9 + $0x170] sm:$0xff]  ;;  %v6134_v8 = vpop.f32.mrf.mxu3 }
 0x26b   :  { %2472 = vmatpush.msrb.mxu0 %v1122_v41  ;;  %2564 = vmatpush.msrb.mxu3 %v1294_v56  ;;  %v1178_v51 = vld [vmem:[#allocation9 + $0x370] sm:$0xff]  ;;  %7785 = vst [vmem:[#allocation49_spill] sm:$0xff] %v6134_v8  ;;  %v6136_v59 = vpop.f32.mrf.mxu2 }
 0x26c   :  { %2501 = vmatpush.msrb.mxu1 %v1186_v54  ;;  %2534 = vmatpush.msrb.mxu2 %v1234_v62  ;;  %7786 = vst [vmem:[#allocation50_spill] sm:$0xff] %v6136_v59  ;;  %v1226_v25 = vld [vmem:[#allocation9 + $0x4f0] sm:$0xff]  ;;  %v6141_v62 = vpop.f32.mrf.mxu0  ;;  %v6143_v59 = vpop.f32.mrf.mxu1 }
 0x26d   :  { %4699 = vmatmul.msk.f32.gmra.mxu3 %vm779_vm1, %v6038_v6  ;;  %2473 = vmatpush.msrb.mxu0 %v1118_v60  ;;  %v1286_v41 = vld [vmem:[#allocation9 + $0x6d0] sm:$0xff]  ;;  %7787 = vst [vmem:[#allocation51_spill] sm:$0xff] %v6141_v62 }
 0x26e   :  { %2502 = vmatpush.msrb.mxu1 %v1182_v31  ;;  %2535 = vmatpush.msrb.mxu2 %v1230_v20  ;;  %v1110_v56 = vld [vmem:[#allocation9 + $0x150] sm:$0xff]  ;;  %7788 = vst [vmem:[#allocation52_spill] sm:$0xff] %v6143_v59 }
 0x26f   :  { %2373 = vmatmul.f32.gmra.mxu0 %v6048_v52  ;;  %2402 = vmatmul.f32.gmra.mxu1 %v6050_v27  ;;  %v1174_v60 = vld [vmem:[#allocation9 + $0x350] sm:$0xff] }
 0x270   :  { %2434 = vmatmul.f32.gmra.mxu2 %v6052_v23  ;;  %2565 = vmatpush.msrb.mxu3 %v1290_v63  ;;  %v1222_v20 = vld [vmem:[#allocation9 + $0x4d0] sm:$0xff] }
 0x271   :  { %2474 = vmatpush.msrb.mxu0 %v1114_v5  ;;  %2503 = vmatpush.msrb.mxu1 %v1178_v51  ;;  %v1282_v54 = vld [vmem:[#allocation9 + $0x6b0] sm:$0xff] }
 0x272   :  { %2536 = vmatpush.msrb.mxu2 %v1226_v25  ;;  %2566 = vmatpush.msrb.mxu3 %v1286_v41  ;;  %v1106_v31 = vld [vmem:[#allocation9 + $0x130] sm:$0xff]  ;;  %v6145_v62 = vpop.f32.mrf.mxu3 }
 0x273   :  { %v1170_v8 = vld [vmem:[#allocation9 + $0x330] sm:$0xff]  ;;  %2475 = vmatpush.msrb.mxu0 %v1110_v56  ;;  %2504 = vmatpush.msrb.mxu1 %v1174_v60  ;;  %7789 = vst [vmem:[#allocation53_spill] sm:$0xff] %v6145_v62  ;;  %v6147_v25 = vpop.f32.mrf.mxu2 }
 0x274   :  { %2537 = vmatpush.msrb.mxu2 %v1222_v20  ;;  %2567 = vmatpush.msrb.mxu3 %v1282_v54  ;;  %v1102_v63 = vld [vmem:[#allocation9 + $0x110] sm:$0xff] }
 0x275   :  { %2476 = vmatpush.msrb.mxu0 %v1106_v31  ;;  %2505 = vmatpush.msrb.mxu1 %v1170_v8  ;;  %v1166_v5 = vld [vmem:[#allocation9 + $0x310] sm:$0xff]  ;;  %v6156_v31 = vpop.f32.mrf.mxu1 }
 0x276   :  { %v1214_v51 = vld [vmem:[#allocation9 + $0x490] sm:$0xff]  ;;  %2538 = vmatpush.msrb.mxu2 %v1218_v28  ;;  %2568 = vmatpush.msrb.mxu3 %v1278_v3  ;;  %v6153_v3 = vpop.f32.mrf.mxu0 }
 0x277   :  { %4700 = vmatmul.msk.f32.gmra.mxu3 %vm779_vm1, %v6071_v0  ;;  %2477 = vmatpush.msrb.mxu0 %v1102_v63  ;;  %v1274_v41 = vld [vmem:[#allocation9 + $0x670] sm:$0xff] }
 0x278   :  { %2506 = vmatpush.msrb.mxu1 %v1166_v5  ;;  %2539 = vmatpush.msrb.mxu2 %v1214_v51  ;;  %v1098_v56 = vld [vmem:[#allocation9 + $0xf0] sm:$0xff] }
 0x279   :  { %v1162_v60 = vld [vmem:[#allocation9 + $0x2f0] sm:$0xff]  ;;  %2376 = vmatmul.f32.gmra.mxu0 %v6077_v9  ;;  %2405 = vmatmul.f32.gmra.mxu1 %v6079_v29 }
 0x27a   :  { %v1210_v8 = vld [vmem:[#allocation9 + $0x470] sm:$0xff]  ;;  %2437 = vmatmul.f32.gmra.mxu2 %v6083_v24  ;;  %2569 = vmatpush.msrb.mxu3 %v1274_v41  ;;  %v6158_v2 = vpop.f32.mrf.mxu3 }
 0x27b   :  { %v1270_v28 = vld [vmem:[#allocation9 + $0x650] sm:$0xff]  ;;  %2478 = vmatpush.msrb.mxu0 %v1098_v56  ;;  %2507 = vmatpush.msrb.mxu1 %v1162_v60  ;;  %7790 = vst [vmem:[#allocation54_spill] sm:$0xff] %v6158_v2  ;;  %v6160_v34 = vpop.f32.mrf.mxu2 }
 0x27c   :  { %v1094_v20 = vld [vmem:[#allocation9 + $0xd0] sm:$0xff]  ;;  %2540 = vmatpush.msrb.mxu2 %v1210_v8  ;;  %2570 = vmatpush.msrb.mxu3 %v1270_v28  ;;  %7791 = vst [vmem:[#allocation55_spill] sm:$0xff] %v6160_v34 }
 0x27d   :  { %v1158_v54 = vld [vmem:[#allocation9 + $0x2d0] sm:$0xff]  ;;  %2479 = vmatpush.msrb.mxu0 %v1094_v20  ;;  %v1259_v20 = vld [vmem:[#allocation9 + $0x5f8] sm:$0xff] }
 0x27e   :  { %v1206_v63 = vld [vmem:[#allocation9 + $0x450] sm:$0xff]  ;;  %2508 = vmatpush.msrb.mxu1 %v1158_v54  ;;  %v6162_v8 = vpop.f32.mrf.mxu0  ;;  %v6166_v54 = vpop.f32.mrf.mxu1 }
 0x27f   :  { %v1266_v5 = vld [vmem:[#allocation9 + $0x630] sm:$0xff]  ;;  %2541 = vmatpush.msrb.mxu2 %v1206_v63  ;;  %7792 = vst [vmem:[#allocation56_spill] sm:$0xff] %v6162_v8 }
 0x280   :  { %v1090_v51 = vld [vmem:[#allocation9 + $0xb0] sm:$0xff]  ;;  %2571 = vmatpush.msrb.mxu3 %v1266_v5  ;;  %7793 = vst [vmem:[#allocation57_spill] sm:$0xff] %v6166_v54  ;;  %v1303_v5 = vld [vmem:[#allocation9 + $0x758] sm:$0xff] }
 0x281   :  { %v1154_v59 = vld [vmem:[#allocation9 + $0x2b0] sm:$0xff]  ;;  %2480 = vmatpush.msrb.mxu0 %v1090_v51  ;;  %2408 = vmatmul.f32.gmra.mxu1 %v6104_v36 }
 0x282   :  { %v1202_v58 = vld [vmem:[#allocation9 + $0x430] sm:$0xff]  ;;  %2509 = vmatpush.msrb.mxu1 %v1154_v59  ;;  %2572 = vmatpush.msrb.mxu3 %v1262_v33 }
 0x283   :  { %v1086_v30 = vld [vmem:[#allocation9 + $0x90] sm:$0xff]  ;;  %2542 = vmatpush.msrb.mxu2 %v1202_v58  ;;  %4701 = vmatmul.msk.f32.vlgmr.msrb.gmra.mxu3 %vm779_vm1, %v5994_v17  ;;  %v1307_v58 = vld [vmem:[#allocation9 + $0x778] sm:$0xff]  ;;  %v6173_v2 = vpop.f32.mrf.mxu2 }
 0x284   :  { %v1150_v41 = vld [vmem:[#allocation9 + $0x290] sm:$0xff]  ;;  %2481 = vmatpush.msrb.mxu0 %v1086_v30  ;;  %v1255_v30 = vld [vmem:[#allocation9 + $0x5d8] sm:$0xff]  ;;  %2677 = vmatpush.msra.mxu3 %v1307_v58 }
 0x285   :  { %v1198_v56 = vld [vmem:[#allocation9 + $0x410] sm:$0xff]  ;;  %2510 = vmatpush.msrb.mxu1 %v1150_v41  ;;  %2379 = vmatmul.f32.gmra.mxu0 %v6102_v45  ;;  %v1251_v41 = vld [vmem:[#allocation9 + $0x5b8] sm:$0xff] }
 0x286   :  { %v1082_v60 = vld [vmem:[#allocation9 + $0x70] sm:$0xff]  ;;  %2543 = vmatpush.msrb.mxu2 %v1198_v56  ;;  %v6171_v56 = vpop.f32.mrf.mxu3  ;;  %2678 = vmatpush.msra.mxu3 %v1303_v5  ;;  %v1195_v58 = vld [vmem:[#allocation9 + $0x3f8] sm:$0xff] }
 0x287   :  { %v1146_v28 = vld [vmem:[#allocation9 + $0x270] sm:$0xff]  ;;  %2544 = vmatmul.f32.vlgmr.msrb.gmra.mxu2 %v6002_v42  ;;  %2482 = vmatpush.msrb.mxu0 %v1082_v60  ;;  %7794 = vst [vmem:[#allocation58_spill] sm:$0xff] %v6171_v56  ;;  %v1247_v60 = vld [vmem:[#allocation9 + $0x598] sm:$0xff]  ;;  %v2980_v56 = vld [vmem:[#allocation9 + $0x1140] sm:$0xff] }
 0x288   :  { %v1078_v59 = vld [vmem:[#allocation9 + $0x50] sm:$0xff]  ;;  %2511 = vmatpush.msrb.mxu1 %v1146_v28  ;;  %2644 = vmatpush.msra.mxu2 %v1259_v20  ;;  %v6175_v28 = vpop.f32.mrf.mxu0  ;;  %v1131_v20 = vld [vmem:[#allocation9 + $0x1f8] sm:$0xff] }
 0x289   :  { %v1142_v33 = vld [vmem:[#allocation9 + $0x250] sm:$0xff]  ;;  %2483 = vmatpush.msrb.mxu0 %v1078_v59  ;;  %v6179_v59 = vpop.f32.mrf.mxu1  ;;  %v1239_v5 = vld [vmem:[#allocation9 + $0x558] sm:$0xff] }
 0x28a   :  { %v1074_v63 = vld [vmem:[#allocation9 + $0x30] sm:$0xff]  ;;  %2512 = vmatpush.msrb.mxu1 %v1142_v33  ;;  %2645 = vmatpush.msra.mxu2 %v1255_v30  ;;  %v1243_v33 = vld [vmem:[#allocation9 + $0x578] sm:$0xff] }
 0x28b   :  { %v1138_v51 = vld [vmem:[#allocation9 + $0x230] sm:$0xff]  ;;  %2484 = vmatpush.msrb.mxu0 %v1074_v63  ;;  %4702 = vmatmul.msk.f32.gmra.mxu3 %vm779_vm1, %v5857_v43  ;;  %v1127_v30 = vld [vmem:[#allocation9 + $0x1d8] sm:$0xff] }
 0x28c   :  { %v1070_v34 = vld [vmem:[#allocation9 + $0x10] sm:$0xff]  ;;  %2513 = vmatpush.msrb.mxu1 %v1138_v51  ;;  %2646 = vmatpush.msra.mxu2 %v1251_v41  ;;  %v1299_v63 = vld [vmem:[#allocation9 + $0x738] sm:$0xff] }
 0x28d   :  { %v1134_v54 = vld [vmem:[#allocation9 + $0x210] sm:$0xff]  ;;  %2485 = vmatpush.msrb.mxu0 %v1070_v34  ;;  %v1191_v34 = vld [vmem:[#allocation9 + $0x3d8] sm:$0xff]  ;;  %2679 = vmatpush.msra.mxu3 %v1299_v63 }
 0x28e   :  { %2514 = vmatpush.msrb.mxu1 %v1134_v54  ;;  %2647 = vmatpush.msra.mxu2 %v1247_v60  ;;  %v1123_v51 = vld [vmem:[#allocation9 + $0x1b8] sm:$0xff]  ;;  %v6184_v8 = vpop.f32.mrf.mxu3  ;;  %v6186_v54 = vpop.f32.mrf.mxu2 }
 0x28f   :  { %2486 = vmatmul.f32.vlgmr.msrb.gmra.mxu0 %v6021_v16  ;;  %2515 = vmatmul.f32.vlgmr.msrb.gmra.mxu1 %v6023_v1  ;;  %v1295_v41 = vld [vmem:[#allocation9 + $0x718] sm:$0xff]  ;;  %7795 = vst [vmem:[#allocation59_spill] sm:$0xff] %v6184_v8 }
 0x290   :  { %2547 = vmatmul.f32.gmra.mxu2 %v5890_v14  ;;  %2586 = vmatpush.msra.mxu0 %v1131_v20  ;;  %7796 = vst [vmem:[#allocation60_spill] sm:$0xff] %v6186_v54  ;;  %v1187_v60 = vld [vmem:[#allocation9 + $0x3b8] sm:$0xff]  ;;  %v6188_v57 = vpop.f32.mrf.mxu0 }
 0x291   :  { %2615 = vmatpush.msra.mxu1 %v1195_v58  ;;  %2648 = vmatpush.msra.mxu2 %v1243_v33  ;;  %v1183_v20 = vld [vmem:[#allocation9 + $0x398] sm:$0xff]  ;;  %7797 = vst [vmem:[#allocation61_spill] sm:$0xff] %v6188_v57  ;;  %v6190_v58 = vpop.f32.mrf.mxu1 }
 0x292   :  { %2587 = vmatpush.msra.mxu0 %v1127_v30  ;;  %2680 = vmatpush.msra.mxu3 %v1295_v41  ;;  %7798 = vst [vmem:[#allocation62_spill] sm:$0xff] %v6190_v58  ;;  %v1291_v33 = vld [vmem:[#allocation9 + $0x6f8] sm:$0xff] }
 0x293   :  { %2616 = vmatpush.msra.mxu1 %v1191_v34  ;;  %2649 = vmatpush.msra.mxu2 %v1239_v5  ;;  %v1115_v30 = vld [vmem:[#allocation9 + $0x178] sm:$0xff] }
 0x294   :  { %2588 = vmatpush.msra.mxu0 %v1123_v51  ;;  %4703 = vmatmul.msk.f32.gmra.mxu3 %vm779_vm1, %v6038_v6  ;;  %v1179_v63 = vld [vmem:[#allocation9 + $0x378] sm:$0xff] }
 0x295   :  { %2617 = vmatpush.msra.mxu1 %v1187_v60  ;;  %2650 = vmatpush.msra.mxu2 %v1235_v44  ;;  %v1227_v34 = vld [vmem:[#allocation9 + $0x4f8] sm:$0xff] }
 0x296   :  { %2589 = vmatpush.msra.mxu0 %v1119_v46  ;;  %v1287_v5 = vld [vmem:[#allocation9 + $0x6d8] sm:$0xff]  ;;  %2681 = vmatpush.msra.mxu3 %v1291_v33  ;;  %v6197_v41 = vpop.f32.mrf.mxu3  ;;  %v6199_v60 = vpop.f32.mrf.mxu2 }
 0x297   :  { %2618 = vmatpush.msra.mxu1 %v1183_v20  ;;  %2651 = vmatpush.msra.mxu2 %v1231_v4  ;;  %v1111_v44 = vld [vmem:[#allocation9 + $0x158] sm:$0xff]  ;;  %7799 = vst [vmem:[#allocation63_spill] sm:$0xff] %v6197_v41 }
 0x298   :  { %2489 = vmatmul.f32.gmra.mxu0 %v6048_v52  ;;  %2518 = vmatmul.f32.gmra.mxu1 %v6050_v27  ;;  %v1175_v51 = vld [vmem:[#allocation9 + $0x358] sm:$0xff]  ;;  %7800 = vst [vmem:[#allocation64_spill] sm:$0xff] %v6199_v60  ;;  %v6201_v57 = vpop.f32.mrf.mxu0 }
 0x299   :  { %2550 = vmatmul.f32.gmra.mxu2 %v6052_v23  ;;  %2590 = vmatpush.msra.mxu0 %v1115_v30  ;;  %v1223_v46 = vld [vmem:[#allocation9 + $0x4d8] sm:$0xff]  ;;  %7801 = vst [vmem:[#allocation65_spill] sm:$0xff] %v6201_v57  ;;  %v6203_v41 = vpop.f32.mrf.mxu1 }
 0x29a   :  { %2619 = vmatpush.msra.mxu1 %v1179_v63  ;;  %v1283_v4 = vld [vmem:[#allocation9 + $0x6b8] sm:$0xff]  ;;  %2652 = vmatpush.msra.mxu2 %v1227_v34  ;;  %7802 = vst [vmem:[#allocation66_spill] sm:$0xff] %v6203_v41 }
 0x29b   :  { %2682 = vmatpush.msra.mxu3 %v1287_v5  ;;  %v1107_v20 = vld [vmem:[#allocation9 + $0x138] sm:$0xff]  ;;  %2591 = vmatpush.msra.mxu0 %v1111_v44 }
 0x29c   :  { %v1171_v8 = vld [vmem:[#allocation9 + $0x338] sm:$0xff]  ;;  %2620 = vmatpush.msra.mxu1 %v1175_v51  ;;  %2653 = vmatpush.msra.mxu2 %v1223_v46 }
 0x29d   :  { %v1219_v54 = vld [vmem:[#allocation9 + $0x4b8] sm:$0xff]  ;;  %2683 = vmatpush.msra.mxu3 %v1283_v4  ;;  %2592 = vmatpush.msra.mxu0 %v1107_v20 }
 0x29e   :  { %v1279_v58 = vld [vmem:[#allocation9 + $0x698] sm:$0xff]  ;;  %2621 = vmatpush.msra.mxu1 %v1171_v8  ;;  %2654 = vmatpush.msra.mxu2 %v1219_v54  ;;  %v6207_v51 = vpop.f32.mrf.mxu3  ;;  %v6209_v46 = vpop.f32.mrf.mxu2 }
 0x29f   :  { %v1103_v33 = vld [vmem:[#allocation9 + $0x118] sm:$0xff]  ;;  %2684 = vmatpush.msra.mxu3 %v1279_v58 }
 0x2a0   :  { %v1167_v30 = vld [vmem:[#allocation9 + $0x318] sm:$0xff]  ;;  %4704 = vmatmul.msk.f32.gmra.mxu3 %vm779_vm1, %v6071_v0  ;;  %2593 = vmatpush.msra.mxu0 %v1103_v33 }
 0x2a1   :  { %v1215_v63 = vld [vmem:[#allocation9 + $0x498] sm:$0xff]  ;;  %2622 = vmatpush.msra.mxu1 %v1167_v30  ;;  %2492 = vmatmul.f32.gmra.mxu0 %v6077_v9  ;;  %v6214_v30 = vpop.f32.mrf.mxu0  ;;  %v6216_v21 = vpop.f32.mrf.mxu1 }
 0x2a2   :  { %v1275_v34 = vld [vmem:[#allocation9 + $0x678] sm:$0xff]  ;;  %2655 = vmatpush.msra.mxu2 %v1215_v63  ;;  %2521 = vmatmul.f32.gmra.mxu1 %v6079_v29 }
 0x2a3   :  { %v1099_v5 = vld [vmem:[#allocation9 + $0xf8] sm:$0xff]  ;;  %2553 = vmatmul.f32.gmra.mxu2 %v6083_v24  ;;  %2685 = vmatpush.msra.mxu3 %v1275_v34 }
 0x2a4   :  { %v1163_v44 = vld [vmem:[#allocation9 + $0x2f8] sm:$0xff]  ;;  %2594 = vmatpush.msra.mxu0 %v1099_v5 }
 0x2a5   :  { %v1211_v8 = vld [vmem:[#allocation9 + $0x478] sm:$0xff]  ;;  %2623 = vmatpush.msra.mxu1 %v1163_v44 }
 0x2a6   :  { %v1271_v54 = vld [vmem:[#allocation9 + $0x658] sm:$0xff]  ;;  %2656 = vmatpush.msra.mxu2 %v1211_v8  ;;  %v6218_v44 = vpop.f32.mrf.mxu3 }
 0x2a7   :  { %v1095_v58 = vld [vmem:[#allocation9 + $0xd8] sm:$0xff]  ;;  %2686 = vmatpush.msra.mxu3 %v1271_v54  ;;  %v6220_v54 = vpop.f32.mrf.mxu2 }
 0x2a8   :  { %v1159_v4 = vld [vmem:[#allocation9 + $0x2d8] sm:$0xff]  ;;  %2595 = vmatpush.msra.mxu0 %v1095_v58 }
 0x2a9   :  { %v1207_v20 = vld [vmem:[#allocation9 + $0x458] sm:$0xff]  ;;  %2624 = vmatpush.msra.mxu1 %v1159_v4  ;;  %v3096_v4 = vld [vmem:[#allocation9 + $0x14e0] sm:$0xff]  ;;  %2495 = vmatmul.f32.gmra.mxu0 %v6102_v45 }
 0x2aa   :  { %v1267_v33 = vld [vmem:[#allocation9 + $0x638] sm:$0xff]  ;;  %2657 = vmatpush.msra.mxu2 %v1207_v20  ;;  %2524 = vmatmul.f32.gmra.mxu1 %v6104_v36  ;;  %v6227_v20 = vpop.f32.mrf.mxu0 }
 0x2ab   :  { %v1091_v63 = vld [vmem:[#allocation9 + $0xb8] sm:$0xff]  ;;  %2687 = vmatpush.msra.mxu3 %v1267_v33  ;;  %v6229_v33 = vpop.f32.mrf.mxu1 }
 0x2ac   :  { %v1155_v60 = vld [vmem:[#allocation9 + $0x2b8] sm:$0xff]  ;;  %2596 = vmatpush.msra.mxu0 %v1091_v63  ;;  %2658 = vmatpush.msra.mxu2 %v1203_v26  ;;  %v3144_v26 = vld [vmem:[#allocation9 + $0x1660] sm:$0xff] }
 0x2ad   :  { %v1263_v41 = vld [vmem:[#allocation9 + $0x618] sm:$0xff]  ;;  %2625 = vmatpush.msra.mxu1 %v1155_v60  ;;  %v3140_v63 = vld [vmem:[#allocation9 + $0x1640] sm:$0xff] }
 0x2ae   :  { %v1087_v34 = vld [vmem:[#allocation9 + $0x98] sm:$0xff]  ;;  %2688 = vmatpush.msra.mxu3 %v1263_v41  ;;  %v6231_v61 = vpop.f32.mrf.mxu3 }
 0x2af   :  { %v1151_v57 = vld [vmem:[#allocation9 + $0x298] sm:$0xff]  ;;  %2597 = vmatpush.msra.mxu0 %v1087_v34  ;;  %4705 = vmatmul.msk.f32.vlgmr.msra.gmra.mxu3 %vm779_vm1, %v5994_v17 }
 0x2b0   :  { %v1199_v5 = vld [vmem:[#allocation9 + $0x418] sm:$0xff]  ;;  %2626 = vmatpush.msra.mxu1 %v1151_v57  ;;  %v3092_v57 = vld [vmem:[#allocation9 + $0x14c0] sm:$0xff]  ;;  %3247 = vmatpush.msrb.mxu3 %v3144_v26  ;;  %v6235_v26 = vpop.f32.mrf.mxu2 }
 0x2b1   :  { %v1083_v8 = vld [vmem:[#allocation9 + $0x78] sm:$0xff]  ;;  %2659 = vmatpush.msra.mxu2 %v1199_v5  ;;  %v3088_v5 = vld [vmem:[#allocation9 + $0x14a0] sm:$0xff] }
 0x2b2   :  { %v1147_v58 = vld [vmem:[#allocation9 + $0x278] sm:$0xff]  ;;  %2660 = vmatmul.f32.vlgmr.msra.gmra.mxu2 %v6002_v42  ;;  %2598 = vmatpush.msra.mxu0 %v1083_v8  ;;  %v3084_v8 = vld [vmem:[#allocation9 + $0x1480] sm:$0xff] }
 0x2b3   :  { %v1079_v60 = vld [vmem:[#allocation9 + $0x58] sm:$0xff]  ;;  %2627 = vmatpush.msra.mxu1 %v1147_v58  ;;  %3214 = vmatpush.msrb.mxu2 %v3096_v4  ;;  %v2968_v58 = vld [vmem:[#allocation9 + $0x10e0] sm:$0xff] }
 0x2b4   :  { %v1143_v41 = vld [vmem:[#allocation9 + $0x258] sm:$0xff]  ;;  %2599 = vmatpush.msra.mxu0 %v1079_v60  ;;  %3248 = vmatpush.msrb.mxu3 %v3140_v63  ;;  %v3032_v4 = vld [vmem:[#allocation9 + $0x12e0] sm:$0xff] }
 0x2b5   :  { %v1075_v17 = vld [vmem:[#allocation9 + $0x38] sm:$0xff]  ;;  %2628 = vmatpush.msra.mxu1 %v1143_v41  ;;  %3215 = vmatpush.msrb.mxu2 %v3092_v57  ;;  %v3080_v60 = vld [vmem:[#allocation9 + $0x1460] sm:$0xff] }
 0x2b6   :  { %v1139_v34 = vld [vmem:[#allocation9 + $0x238] sm:$0xff]  ;;  %2600 = vmatpush.msra.mxu0 %v1075_v17  ;;  %v2964_v41 = vld [vmem:[#allocation9 + $0x10c0] sm:$0xff] }
 0x2b7   :  { %v1135_v42 = vld [vmem:[#allocation9 + $0x218] sm:$0xff]  ;;  %2629 = vmatpush.msra.mxu1 %v1139_v34  ;;  %3216 = vmatpush.msrb.mxu2 %v3088_v5  ;;  %v3136_v57 = vld [vmem:[#allocation9 + $0x1620] sm:$0xff]  ;;  %v6240_v34 = vpop.f32.mrf.mxu0  ;;  %v6242_v5 = vpop.f32.mrf.mxu1 }
 0x2b8   :  { %2601 = vmatpush.msra.mxu0 %v1071_v18  ;;  %4706 = vmatmul.msk.f32.gmra.mxu3 %vm779_vm1, %v5857_v43  ;;  %v3028_v18 = vld [vmem:[#allocation9 + $0x12c0] sm:$0xff] }
 0x2b9   :  { %2630 = vmatpush.msra.mxu1 %v1135_v42  ;;  %3217 = vmatpush.msrb.mxu2 %v3084_v8  ;;  %v3076_v17 = vld [vmem:[#allocation9 + $0x1440] sm:$0xff] }
 0x2ba   :  { %2602 = vmatmul.f32.vlgmr.msra.gmra.mxu0 %v6021_v16  ;;  %2631 = vmatmul.f32.vlgmr.msra.gmra.mxu1 %v6023_v1  ;;  %v2960_v43 = vld [vmem:[#allocation9 + $0x10a0] sm:$0xff] }
 0x2bb   :  { %2663 = vmatmul.f32.gmra.mxu2 %v5890_v14  ;;  %3156 = vmatpush.msrb.mxu0 %v2968_v58  ;;  %v3132_v63 = vld [vmem:[#allocation9 + $0x1600] sm:$0xff] }
 0x2bc   :  { %3185 = vmatpush.msrb.mxu1 %v3032_v4  ;;  %3218 = vmatpush.msrb.mxu2 %v3080_v60  ;;  %v3024_v16 = vld [vmem:[#allocation9 + $0x12a0] sm:$0xff]  ;;  %v6246_v4 = vpop.f32.mrf.mxu3 }
 0x2bd   :  { %3157 = vmatpush.msrb.mxu0 %v2964_v41  ;;  %3249 = vmatpush.msrb.mxu3 %v3136_v57  ;;  %v3072_v42 = vld [vmem:[#allocation9 + $0x1420] sm:$0xff]  ;;  %7803 = vst [vmem:[#allocation67_spill] sm:$0xff] %v6246_v4  ;;  %v2719_v4 = vld [vmem:[#allocation2 + $0x8] sm:$0xe0] }
 0x2be   :  { %3186 = vmatpush.msrb.mxu1 %v3028_v18  ;;  %3219 = vmatpush.msrb.mxu2 %v3076_v17  ;;  %v2956_v1 = vld [vmem:[#allocation9 + $0x1080] sm:$0xff]  ;;  %v6250_v17 = vpop.f32.mrf.mxu2 }
 0x2bf   :  { %3158 = vmatpush.msrb.mxu0 %v2960_v43  ;;  %3250 = vmatpush.msrb.mxu3 %v3132_v63  ;;  %v3020_v14 = vld [vmem:[#allocation9 + $0x1280] sm:$0xff]  ;;  %7804 = vst [vmem:[#allocation68_spill] sm:$0xff] %v6250_v17 }
 0x2c0   :  { %v3068_v8 = vld [vmem:[#allocation9 + $0x1400] sm:$0xff]  ;;  %3187 = vmatpush.msrb.mxu1 %v3024_v16  ;;  %3220 = vmatpush.msrb.mxu2 %v3072_v42  ;;  %v6253_v42 = vpop.f32.mrf.mxu0 }
 0x2c1   :  { %4707 = vmatmul.msk.f32.gmra.mxu3 %vm779_vm1, %v6038_v6  ;;  %3159 = vmatpush.msrb.mxu0 %v2956_v1  ;;  %v3128_v58 = vld [vmem:[#allocation9 + $0x15e0] sm:$0xff]  ;;  %7805 = vst [vmem:[#allocation69_spill] sm:$0xff] %v6253_v42  ;;  %v6255_v1 = vpop.f32.mrf.mxu1 }
 0x2c2   :  { %3188 = vmatpush.msrb.mxu1 %v3020_v14  ;;  %3221 = vmatpush.msrb.mxu2 %v3068_v8  ;;  %v2952_v60 = vld [vmem:[#allocation9 + $0x1060] sm:$0xff]  ;;  %7806 = vst [vmem:[#allocation70_spill] sm:$0xff] %v6255_v1 }
 0x2c3   :  { %v3016_v41 = vld [vmem:[#allocation9 + $0x1260] sm:$0xff]  ;;  %2605 = vmatmul.f32.gmra.mxu0 %v6048_v52  ;;  %2634 = vmatmul.f32.gmra.mxu1 %v6050_v27 }
 0x2c4   :  { %v3064_v57 = vld [vmem:[#allocation9 + $0x13e0] sm:$0xff]  ;;  %2666 = vmatmul.f32.gmra.mxu2 %v6052_v23  ;;  %3251 = vmatpush.msrb.mxu3 %v3128_v58 }
 0x2c5   :  { %v3124_v18 = vld [vmem:[#allocation9 + $0x15c0] sm:$0xff]  ;;  %3160 = vmatpush.msrb.mxu0 %v2952_v60  ;;  %3189 = vmatpush.msrb.mxu1 %v3016_v41  ;;  %v6257_v41 = vpop.f32.mrf.mxu3 }
 0x2c6   :  { %v2948_v6 = vld [vmem:[#allocation9 + $0x1040] sm:$0xff]  ;;  %3222 = vmatpush.msrb.mxu2 %v3064_v57  ;;  %3252 = vmatpush.msrb.mxu3 %v3124_v18  ;;  %7807 = vst [vmem:[#allocation71_spill] sm:$0xff] %v6257_v41 }
 0x2c7   :  { %v3012_v43 = vld [vmem:[#allocation9 + $0x1240] sm:$0xff]  ;;  %3161 = vmatpush.msrb.mxu0 %v2948_v6 }
 0x2c8   :  { %v3060_v63 = vld [vmem:[#allocation9 + $0x13c0] sm:$0xff]  ;;  %3190 = vmatpush.msrb.mxu1 %v3012_v43  ;;  %v6261_v43 = vld [vmem:[#allocation2 + $0x40] sm:$0x1f] }
 0x2c9   :  { %v3120_v16 = vld [vmem:[#allocation9 + $0x15a0] sm:$0xff]  ;;  %3223 = vmatpush.msrb.mxu2 %v3060_v63  ;;  %4708 = vmatmul.msk.f32.gmra.mxu3 %vm779_vm1, %v6071_v0  ;;  %v6263_v63 = vpop.f32.mrf.mxu2 }
 0x2ca   :  { %v2944_v52 = vld [vmem:[#allocation9 + $0x1020] sm:$0xff]  ;;  %3253 = vmatpush.msrb.mxu3 %v3120_v16  ;;  %7808 = vst [vmem:[#allocation72_spill] sm:$0xff] %v6263_v63  ;;  %v2709_v63 = vld [vmem:[#allocation2 + $0x58] sm:$0xf] }
 0x2cb   :  { %v3008_v27 = vld [vmem:[#allocation9 + $0x1220] sm:$0xff]  ;;  %3162 = vmatpush.msrb.mxu0 %v2944_v52  ;;  %2637 = vmatmul.f32.gmra.mxu1 %v6079_v29 }
 0x2cc   :  { %v3056_v14 = vld [vmem:[#allocation9 + $0x13a0] sm:$0xff]  ;;  %3191 = vmatpush.msrb.mxu1 %v3008_v27  ;;  %2608 = vmatmul.f32.gmra.mxu0 %v6077_v9 }
 0x2cd   :  { %v3116_v8 = vld [vmem:[#allocation9 + $0x1580] sm:$0xff]  ;;  %3224 = vmatpush.msrb.mxu2 %v3056_v14  ;;  %v6276_v17 = vpop.f32.mrf.mxu3 }
 0x2ce   :  { %v2940_v23 = vld [vmem:[#allocation9 + $0x1000] sm:$0xff]  ;;  %3254 = vmatpush.msrb.mxu3 %v3116_v8  ;;  %2669 = vmatmul.f32.gmra.mxu2 %v6083_v24  ;;  %v6270_v8 = vpop.f32.mrf.mxu0  ;;  %7811 = vst [vmem:[#allocation75_spill] sm:$0xff] %v6276_v17  ;;  %v7812_v24 = vrot.slane %v6261_v43, 1  ;;  %v6290_v17 = vld [vmem:[#allocation2 + $0xb8] sm:$0x1f] }
 0x2cf   :  { %v3004_v58 = vld [vmem:[#allocation9 + $0x1200] sm:$0xff]  ;;  %3163 = vmatpush.msrb.mxu0 %v2940_v23  ;;  %7809 = vst [vmem:[#allocation73_spill] sm:$0xff] %v6270_v8  ;;  %v6272_v23 = vpop.f32.mrf.mxu1 }
 0x2d0   :  { %v3052_v60 = vld [vmem:[#allocation9 + $0x1380] sm:$0xff]  ;;  %3192 = vmatpush.msrb.mxu1 %v3004_v58  ;;  %7810 = vst [vmem:[#allocation74_spill] sm:$0xff] %v6272_v23 }
 0x2d1   :  { %v3112_v57 = vld [vmem:[#allocation9 + $0x1560] sm:$0xff]  ;;  %3225 = vmatpush.msrb.mxu2 %v3052_v60 }
 0x2d2   :  { %v2936_v18 = vld [vmem:[#allocation9 + $0xfe0] sm:$0xff]  ;;  %3255 = vmatpush.msrb.mxu3 %v3112_v57 }
 0x2d3   :  { %v3000_v6 = vld [vmem:[#allocation9 + $0x11e0] sm:$0xff]  ;;  %3164 = vmatpush.msrb.mxu0 %v2936_v18  ;;  %2640 = vmatmul.f32.gmra.mxu1 %v6104_v36  ;;  %v7816_v36 = vrot.slane %v5910_v37, 1 }
 0x2d4   :  { %v3048_v16 = vld [vmem:[#allocation9 + $0x1360] sm:$0xff]  ;;  %3193 = vmatpush.msrb.mxu1 %v3000_v6  ;;  %2611 = vmatmul.f32.gmra.mxu0 %v6102_v45 }
 0x2d5   :  { %v3108_v52 = vld [vmem:[#allocation9 + $0x1540] sm:$0xff]  ;;  %3226 = vmatpush.msrb.mxu2 %v3048_v16 }
 0x2d6   :  { %v6267_v27 = vld [vmem:[#allocation2 + $0x48] sm:$0x1f]  ;;  %v2718_v9 = vld [vmem:[#allocation2] sm:$0xe0]  ;;  %3256 = vmatpush.msrb.mxu3 %v3108_v52  ;;  %v2752_v52 = vrot.slane %v2719_v4, 1 }
 0x2d7   :  { %v2932_v0 = vld [vmem:[#allocation9 + $0xfc0] sm:$0xff]  ;;  %v2750_v16 = vrot.slane %v2718_v9, 1 }
 0x2d8   :  { %v2996_v14 = vld [vmem:[#allocation9 + $0x11c0] sm:$0xff]  ;;  %3165 = vmatpush.msrb.mxu0 %v2932_v0  ;;  %v2759_v0 = vsel %vm995_vm5, %v5666_v13, %v7812_v24  ;;  %v6292_v24 = vpop.f32.mrf.mxu2 }
 0x2d9   :  { %v3044_v58 = vld [vmem:[#allocation9 + $0x1340] sm:$0xff]  ;;  %3194 = vmatpush.msrb.mxu1 %v2996_v14  ;;  %v7813_v14 = vrot.slane %v6267_v27, 1  ;;  %v2751_v9 = vsel %vm995_vm5, %v2750_v16, %v5666_v13  ;;  %7814 = vst [vmem:[#allocation76_spill] sm:$0xff] %v6292_v24 }
 0x2da   :  { %v3104_v60 = vld [vmem:[#allocation9 + $0x1520] sm:$0xff]  ;;  %3227 = vmatpush.msrb.mxu2 %v3044_v58 }
 0x2db   :  { %v2928_v29 = vld [vmem:[#allocation9 + $0xfa0] sm:$0xff]  ;;  %3257 = vmatpush.msrb.mxu3 %v3104_v60  ;;  %v2761_v58 = vsel %vm995_vm5, %v5684_v10, %v7813_v14  ;;  %v2729_v60 = vld [vmem:[#allocation2 + $0x78] sm:$0xe0]  ;;  %v6296_v14 = vld [vmem:[#allocation2 + $0x70] sm:$0xe0] }
 0x2dc   :  { %v2992_v41 = vld [vmem:[#allocation9 + $0x11a0] sm:$0xff]  ;;  %3166 = vmatpush.msrb.mxu0 %v2928_v29  ;;  %v2753_v29 = vsel %vm995_vm5, %v2752_v52, %v5684_v10  ;;  %v7815_v10 = vrot.slane %v5906_v53, 1  ;;  %v2772_v40 = vrot.slane %v2729_v60, 1  ;;  %v7758_v53 = vrot.slane %v6290_v17, 1 }
 0x2dd   :  { %v3040_v57 = vld [vmem:[#allocation9 + $0x1320] sm:$0xff]  ;;  %3195 = vmatpush.msrb.mxu1 %v2992_v41 }
 0x2de   :  { %v3100_v8 = vld [vmem:[#allocation9 + $0x1500] sm:$0xff]  ;;  %3228 = vmatpush.msrb.mxu2 %v3040_v57  ;;  %v2708_v57 = vld [vmem:[#allocation2 + $0x50] sm:$0xf]  ;;  %v2817_v16 = vmax.f32 %v2709_v63, %v7815_v10  ;;  %v6308_v63 = vpop.f32.mrf.mxu0  ;;  %v6316_v37 = vsel %vm995_vm5, %v5793_v38, %v7758_v53 }
 0x2df   :  { %v2924_v18 = vld [vmem:[#allocation9 + $0xf80] sm:$0xff]  ;;  %3258 = vmatpush.msrb.mxu3 %v3100_v8  ;;  %v2816_v62 = vmax.f32 %v2708_v57, %v7816_v36  ;;  %7817 = vst [vmem:[#allocation77_spill] sm:$0xff] %v6308_v63  ;;  %v3085_v10 = vld [vmem:[#allocation9 + $0x1488] sm:$0xff] }
 0x2e0   :  { %v2988_v6 = vld [vmem:[#allocation9 + $0x1180] sm:$0xff]  ;;  %3167 = vmatpush.msrb.mxu0 %v2924_v18  ;;  %4709 = vmatmul.msk.f32.vlgmr.msrb.gmra.mxu3 %vm779_vm1, %v5935_v22  ;;  %v3077_v53 = vld [vmem:[#allocation9 + $0x1448] sm:$0xff] }
 0x2e1   :  { %v3036_v23 = vld [vmem:[#allocation9 + $0x1300] sm:$0xff]  ;;  %3196 = vmatpush.msrb.mxu1 %v2988_v6  ;;  %v3097_v6 = vld [vmem:[#allocation9 + $0x14e8] sm:$0xff]  ;;  %v2871_v36 = vrot.slane %v2816_v62, 4 }
 0x2e2   :  { %v2920_v41 = vld [vmem:[#allocation9 + $0xf60] sm:$0xff]  ;;  %3229 = vmatpush.msrb.mxu2 %v3036_v23  ;;  %v3145_v23 = vld [vmem:[#allocation9 + $0x1668] sm:$0xff] }
 0x2e3   :  { %v2702_v4 = vld [vmem:[#allocation2] sm:$0xf0]  ;;  %v2703_v8 = vld [vmem:[#allocation2 + $0x8] sm:$0xf0]  ;;  %3230 = vmatmul.f32.vlgmr.msrb.gmra.mxu2 %v5943_v39  ;;  %3168 = vmatpush.msrb.mxu0 %v2920_v41  ;;  %v2712_v62 = vld [vmem:[#allocation2 + $0x70] sm:$0xf0] }
 0x2e4   :  { %v2984_v18 = vld [vmem:[#allocation9 + $0x1160] sm:$0xff]  ;;  %v2806_v45 = vmax.f32 %v2702_v4, %v2751_v9  ;;  %v2807_v35 = vmax.f32 %v2703_v8, %v2753_v29  ;;  %3330 = vmatpush.msra.mxu2 %v3097_v6  ;;  %v3089_v41 = vld [vmem:[#allocation9 + $0x14a8] sm:$0xff]  ;;  %3363 = vmatpush.msra.mxu3 %v3145_v23  ;;  %v2770_v4 = vrot.slane %v6296_v14, 1  ;;  %v7757_v9 = vrot.slane %v6302_v19, 1  ;;  %v2706_v14 = vld [vmem:[#allocation2 + $0x40] sm:$0xf] }
 0x2e5   :  { %v2916_v13 = vld [vmem:[#allocation9 + $0xf40] sm:$0xff]  ;;  %3197 = vmatpush.msrb.mxu1 %v2984_v18  ;;  %v2873_v29 = vrot.slane %v2817_v16, 4  ;;  %v2773_v6 = vsel %vm995_vm5, %v2772_v40, %v5793_v38  ;;  %v6331_v38 = vpop.f32.mrf.mxu3  ;;  %v2969_v40 = vld [vmem:[#allocation9 + $0x10e8] sm:$0xff] }
 0x2e6   :  { %v4961_v52 = vld [vmem:[#allocation2 + $0x20] sm:$0xff]  ;;  %v4962_v42 = vld [vmem:[#allocation2 + $0x28] sm:$0xff]  ;;  %3169 = vmatpush.msrb.mxu0 %v2916_v13  ;;  %3331 = vmatpush.msra.mxu2 %v3093_v55  ;;  %v2858_v23 = vrot.slane %v2807_v35, 4  ;;  %7819 = vst [vmem:[#allocation79_spill] sm:$0xff] %v6331_v38 }
 0x2e7   :  { %v2810_v1 = vmax.f32 %v4961_v52, %v2759_v0  ;;  %v2811_v24 = vmax.f32 %v4962_v42, %v2761_v58  ;;  %v6310_v0 = vpop.f32.mrf.mxu1  ;;  %v2912_v42 = vld [vmem:[#allocation9 + $0xf20] sm:$0xff]  ;;  %v3141_v58 = vld [vmem:[#allocation9 + $0x1648] sm:$0xff]  ;;  %3198 = vmatpush.msrb.mxu1 %v2980_v56  ;;  %v2855_v52 = vrot.slane %v2806_v45, 4  ;;  %v6328_v55 = vsel %vm2854_vm7, %v5927_v48, %v2873_v29  ;;  %v2713_v56 = vld [vmem:[#allocation2 + $0x78] sm:$0xf0]  ;;  %v6351_v29 = vpop.f32.mrf.mxu2 }
 0x2e8   :  { %7818 = vst [vmem:[#allocation78_spill] sm:$0xff] %v6310_v0  ;;  %v2976_v60 = vld [vmem:[#allocation9 + $0x1120] sm:$0xff]  ;;  %3170 = vmatpush.msrb.mxu0 %v2912_v42  ;;  %3364 = vmatpush.msra.mxu3 %v3141_v58  ;;  %v2821_v35 = vmax.f32 %v2713_v56, %v2773_v6  ;;  %v2771_v45 = vsel %vm995_vm5, %v2770_v4, %v5774_v49  ;;  %v6341_v58 = vld [vmem:[#allocation2 + $0xa0] sm:$0x1f]  ;;  %v3081_v4 = vld [vmem:[#allocation9 + $0x1468] sm:$0xff] }
 0x2e9   :  { %v2908_v8 = vld [vmem:[#allocation9 + $0xf00] sm:$0xff]  ;;  %v6320_v57 = vrot.slane %v2810_v1, 4  ;;  %v6322_v18 = vrot.slane %v2811_v24, 4  ;;  %3199 = vmatpush.msrb.mxu1 %v2976_v60  ;;  %3332 = vmatpush.msra.mxu2 %v3089_v41  ;;  %v4963_v1 = vld [vmem:[#allocation2 + $0x98] sm:$0xff]  ;;  %v2779_v48 = vsel %vm995_vm5, %v5774_v49, %v7757_v9  ;;  %7820 = vst [vmem:[#allocation80_spill] sm:$0xff] %v6351_v29  ;;  %v6357_v49 = vsel %vm2854_vm7, %v5937_v47, %v2871_v36  ;;  %v2965_v6 = vld [vmem:[#allocation9 + $0x10c8] sm:$0xff] }
 0x2ea   :  { %v2972_v13 = vld [vmem:[#allocation9 + $0x1100] sm:$0xff]  ;;  %v2825_v24 = vmax.f32 %v4963_v1, %v6316_v37  ;;  %3171 = vmatpush.msrb.mxu0 %v2908_v8  ;;  %4710 = vmatmul.msk.f32.gmra.mxu3 %vm779_vm1, %v6328_v55  ;;  %v3033_v37 = vld [vmem:[#allocation9 + $0x12e8] sm:$0xff]  ;;  %v2820_v38 = vmax.f32 %v2712_v62, %v2771_v45  ;;  %v2884_v63 = vrot.slane %v2821_v35, 4  ;;  %v7760_v62 = vrot.slane %v6341_v58, 1 }
 0x2eb   :  { %v2707_v16 = vld [vmem:[#allocation2 + $0x48] sm:$0xf]  ;;  %v2726_v42 = vld [vmem:[#allocation2 + $0x60] sm:$0xe0]  ;;  %3200 = vmatpush.msrb.mxu1 %v2972_v13  ;;  %3333 = vmatpush.msra.mxu2 %v3085_v10  ;;  %v6345_v60 = vsel %vm2854_vm7, %v2855_v52, %v6320_v57  ;;  %v6349_v41 = vsel %vm2854_vm7, %v2858_v23, %v6322_v18  ;;  %v2727_v8 = vld [vmem:[#allocation2 + $0x68] sm:$0xe0] }
 0x2ec   :  { %3172 = vmatmul.f32.vlgmr.msrb.gmra.mxu0 %v6345_v60  ;;  %3201 = vmatmul.f32.vlgmr.msrb.gmra.mxu1 %v6349_v41  ;;  %v3137_v13 = vld [vmem:[#allocation9 + $0x1628] sm:$0xff]  ;;  %v7821_v10 = vrot.slane %v6261_v43, 1  ;;  %v7822_v23 = vrot.slane %v6267_v27, 1  ;;  %v6363_v1 = vld [vmem:[#allocation2 + $0xa8] sm:$0x1f]  ;;  %v6366_v43 = vrot.slane %v2825_v24, 4  ;;  %v6368_v27 = vpop.f32.mrf.mxu0 }
 0x2ed   :  { %3233 = vmatmul.f32.gmra.mxu2 %v6357_v49  ;;  %3272 = vmatpush.msra.mxu0 %v2969_v40  ;;  %v3029_v9 = vld [vmem:[#allocation9 + $0x12c8] sm:$0xff]  ;;  %7823 = vst [vmem:[#allocation81_spill] sm:$0xff] %v6368_v27  ;;  %v2768_v45 = vrot.slane %v2727_v8, 1  ;;  %v2717_v8 = vld [vmem:[#allocation2 + $0xb8] sm:$0xf] }
 0x2ee   :  { %v2814_v52 = vmax.f32 %v2706_v14, %v7821_v10  ;;  %v2815_v56 = vmax.f32 %v2707_v16, %v7822_v23  ;;  %v4964_v29 = vld [vmem:[#allocation2 + $0x90] sm:$0xff]  ;;  %3301 = vmatpush.msra.mxu1 %v3033_v37  ;;  %3334 = vmatpush.msra.mxu2 %v3081_v4  ;;  %v2766_v14 = vrot.slane %v2726_v42, 1 }
 0x2ef   :  { %v2824_v0 = vmax.f32 %v4964_v29, %v2779_v48  ;;  %v2961_v47 = vld [vmem:[#allocation9 + $0x10a8] sm:$0xff]  ;;  %v6370_v16 = vpop.f32.mrf.mxu1  ;;  %3273 = vmatpush.msra.mxu0 %v2965_v6  ;;  %3365 = vmatpush.msra.mxu3 %v3137_v13  ;;  %v7759_v48 = vrot.slane %v6363_v1, 1  ;;  %v2881_v29 = vrot.slane %v2820_v38, 4  ;;  %v6378_v6 = vsel %vm2854_vm7, %v2884_v63, %v6366_v43  ;;  %v6394_v13 = vpop.f32.mrf.mxu3 }
 0x2f0   :  { %v3133_v36 = vld [vmem:[#allocation9 + $0x1608] sm:$0xff]  ;;  %7824 = vst [vmem:[#allocation82_spill] sm:$0xff] %v6370_v16  ;;  %3302 = vmatpush.msra.mxu1 %v3029_v9  ;;  %3335 = vmatpush.msra.mxu2 %v3077_v53  ;;  %v2867_v35 = vrot.slane %v2814_v52, 4  ;;  %v2869_v24 = vrot.slane %v2815_v56, 4  ;;  %v2767_v9 = vsel %vm995_vm5, %v2766_v14, %v5821_v7  ;;  %v2769_v38 = vsel %vm995_vm5, %v2768_v45, %v5846_v15 }
 0x2f1   :  { %v3025_v40 = vld [vmem:[#allocation9 + $0x12a8] sm:$0xff]  ;;  %3274 = vmatpush.msra.mxu0 %v2961_v47  ;;  %3366 = vmatpush.msra.mxu3 %v3133_v36  ;;  %v6374_v23 = vrot.slane %v2824_v0, 4  ;;  %v2775_v0 = vsel %vm995_vm5, %v5821_v7, %v7760_v62  ;;  %v2777_v63 = vsel %vm995_vm5, %v5846_v15, %v7759_v48  ;;  %7825 = vst [vmem:[#allocation83_spill] sm:$0xff] %v6394_v13  ;;  %v2710_v36 = vld [vmem:[#allocation2 + $0x60] sm:$0xf0] }
 0x2f2   :  { %v3073_v10 = vld [vmem:[#allocation9 + $0x1428] sm:$0xff]  ;;  %3303 = vmatpush.msra.mxu1 %v3025_v40  ;;  %4711 = vmatmul.msk.f32.gmra.mxu3 %vm779_vm1, %v6378_v6  ;;  %v6398_v52 = vsel %vm2854_vm7, %v6320_v57, %v2867_v35  ;;  %v6402_v56 = vsel %vm2854_vm7, %v6322_v18, %v2869_v24  ;;  %v7826_v57 = vrot.slane %v6290_v17, 1  ;;  %v2818_v45 = vmax.f32 %v2710_v36, %v2767_v9  ;;  %v6412_v18 = vpop.f32.mrf.mxu2 }
 0x2f3   :  { %v2957_v37 = vld [vmem:[#allocation9 + $0x1088] sm:$0xff]  ;;  %3336 = vmatpush.msra.mxu2 %v3073_v10  ;;  %v6408_v15 = vsel %vm2854_vm7, %v2881_v29, %v6374_v23  ;;  %7827 = vst [vmem:[#allocation84_spill] sm:$0xff] %v6412_v18  ;;  %v7828_v9 = vrot.slane %v6302_v19, 1  ;;  %v2927_v18 = vld [vmem:[#allocation9 + $0xf98] sm:$0xff] }
 0x2f4   :  { %v3021_v42 = vld [vmem:[#allocation9 + $0x1288] sm:$0xff]  ;;  %3275 = vmatpush.msra.mxu0 %v2957_v37  ;;  %3204 = vmatmul.f32.gmra.mxu1 %v6402_v56  ;;  %v2829_v10 = vmax.f32 %v2717_v8, %v7826_v57  ;;  %v6417_v36 = vpop.f32.mrf.mxu0 }
 0x2f5   :  { %v3069_v4 = vld [vmem:[#allocation9 + $0x1408] sm:$0xff]  ;;  %3304 = vmatpush.msra.mxu1 %v3021_v42  ;;  %3175 = vmatmul.f32.gmra.mxu0 %v6398_v52  ;;  %v4965_v42 = vld [vmem:[#allocation2 + $0x80] sm:$0xff] }
 0x2f6   :  { %v3129_v53 = vld [vmem:[#allocation9 + $0x15e8] sm:$0xff]  ;;  %3337 = vmatpush.msra.mxu2 %v3069_v4  ;;  %v2822_v4 = vmax.f32 %v4965_v42, %v2775_v0 }
 0x2f7   :  { %v2953_v7 = vld [vmem:[#allocation9 + $0x1068] sm:$0xff]  ;;  %3236 = vmatmul.f32.gmra.mxu2 %v6408_v15  ;;  %3367 = vmatpush.msra.mxu3 %v3129_v53  ;;  %v6419_v57 = vpop.f32.mrf.mxu1  ;;  %v6425_v42 = vpop.f32.mrf.mxu3 }
 0x2f8   :  { %v3017_v47 = vld [vmem:[#allocation9 + $0x1268] sm:$0xff]  ;;  %3276 = vmatpush.msra.mxu0 %v2953_v7  ;;  %v2875_v7 = vrot.slane %v2818_v45, 4  ;;  %7829 = vst [vmem:[#allocation85_spill] sm:$0xff] %v6425_v42  ;;  %v3010_v42 = vld [vmem:[#allocation9 + $0x1230] sm:$0xff] }
 0x2f9   :  { %v3065_v14 = vld [vmem:[#allocation9 + $0x13e8] sm:$0xff]  ;;  %3305 = vmatpush.msra.mxu1 %v3017_v47  ;;  %v6421_v47 = vrot.slane %v2822_v4, 4 }
 0x2fa   :  { %v3125_v40 = vld [vmem:[#allocation9 + $0x15c8] sm:$0xff]  ;;  %3338 = vmatpush.msra.mxu2 %v3065_v14 }
 0x2fb   :  { %v2711_v37 = vld [vmem:[#allocation2 + $0x68] sm:$0xf0]  ;;  %v2716_v16 = vld [vmem:[#allocation2 + $0xb0] sm:$0xf]  ;;  %3368 = vmatpush.msra.mxu3 %v3125_v40 }
 0x2fc   :  { %v2949_v35 = vld [vmem:[#allocation9 + $0x1048] sm:$0xff]  ;;  %v2819_v48 = vmax.f32 %v2711_v37, %v2769_v38  ;;  %v2828_v8 = vmax.f32 %v2716_v16, %v7828_v9  ;;  %v2893_v38 = vrot.slane %v2829_v10, 4  ;;  %v2715_v9 = vld [vmem:[#allocation2 + $0xa8] sm:$0xf] }
 0x2fd   :  { %v3013_v24 = vld [vmem:[#allocation9 + $0x1248] sm:$0xff]  ;;  %3277 = vmatpush.msra.mxu0 %v2949_v35 }
 0x2fe   :  { %v4966_v62 = vld [vmem:[#allocation2 + $0x88] sm:$0xff]  ;;  %3306 = vmatpush.msra.mxu1 %v3013_v24  ;;  %v2878_v19 = vrot.slane %v2819_v48, 4  ;;  %v2891_v37 = vrot.slane %v2828_v8, 4  ;;  %v2714_v24 = vld [vmem:[#allocation2 + $0xa0] sm:$0xf] }
 0x2ff   :  { %v2823_v29 = vmax.f32 %v4966_v62, %v2777_v63  ;;  %v3061_v27 = vld [vmem:[#allocation9 + $0x13c8] sm:$0xff] }
 0x300   :  { %v3121_v17 = vld [vmem:[#allocation9 + $0x15a8] sm:$0xff]  ;;  %3339 = vmatpush.msra.mxu2 %v3061_v27  ;;  %v6429_v27 = vsel %vm2854_vm7, %v6366_v43, %v2893_v38  ;;  %v6441_v43 = vpop.f32.mrf.mxu2  ;;  %v6447_v4 = vsel %vm2854_vm7, %v6374_v23, %v2891_v37  ;;  %v7832_v38 = vrot.slane %v6363_v1, 1 }
 0x301   :  { %v2945_v53 = vld [vmem:[#allocation9 + $0x1028] sm:$0xff]  ;;  %3369 = vmatpush.msra.mxu3 %v3121_v17  ;;  %v6423_v16 = vrot.slane %v2823_v29, 4  ;;  %7830 = vst [vmem:[#allocation86_spill] sm:$0xff] %v6441_v43  ;;  %3239 = vmatmul.f32.gmra.mxu2 %v6447_v4  ;;  %v3118_v43 = vld [vmem:[#allocation9 + $0x1590] sm:$0xff] }
 0x302   :  { %v3009_v13 = vld [vmem:[#allocation9 + $0x1228] sm:$0xff]  ;;  %3278 = vmatpush.msra.mxu0 %v2945_v53  ;;  %4712 = vmatmul.msk.f32.gmra.mxu3 %vm779_vm1, %v6429_v27 }
 0x303   :  { %v3057_v0 = vld [vmem:[#allocation9 + $0x13a8] sm:$0xff]  ;;  %3307 = vmatpush.msra.mxu1 %v3009_v13  ;;  %v6435_v13 = vsel %vm2854_vm7, %v2875_v7, %v6421_v47  ;;  %v6439_v10 = vsel %vm2854_vm7, %v2878_v19, %v6423_v16  ;;  %v6454_v7 = vpop.f32.mrf.mxu0  ;;  %v6456_v19 = vpop.f32.mrf.mxu1 }
 0x304   :  { %v3117_v62 = vld [vmem:[#allocation9 + $0x1588] sm:$0xff]  ;;  %3340 = vmatpush.msra.mxu2 %v3057_v0  ;;  %3178 = vmatmul.f32.gmra.mxu0 %v6435_v13  ;;  %v7831_v0 = vrot.slane %v6341_v58, 1  ;;  %7833 = vst [vmem:[#allocation87_spill] sm:$0xff] %v6454_v7  ;;  %v2974_v7 = vld [vmem:[#allocation9 + $0x1110] sm:$0xff] }
 0x305   :  { %v2941_v63 = vld [vmem:[#allocation9 + $0x1008] sm:$0xff]  ;;  %3370 = vmatpush.msra.mxu3 %v3117_v62  ;;  %3207 = vmatmul.f32.gmra.mxu1 %v6439_v10  ;;  %7834 = vst [vmem:[#allocation88_spill] sm:$0xff] %v6456_v19  ;;  %v3102_v19 = vld [vmem:[#allocation9 + $0x1510] sm:$0xff] }
 0x306   :  { %v3005_v14 = vld [vmem:[#allocation9 + $0x1208] sm:$0xff]  ;;  %3279 = vmatpush.msra.mxu0 %v2941_v63  ;;  %v2826_v62 = vmax.f32 %v2714_v24, %v7831_v0  ;;  %v2827_v63 = vmax.f32 %v2715_v9, %v7832_v38  ;;  %v3098_v38 = vld [vmem:[#allocation9 + $0x14f0] sm:$0xff] }
 0x307   :  { %v3053_v40 = vld [vmem:[#allocation9 + $0x1388] sm:$0xff]  ;;  %3308 = vmatpush.msra.mxu1 %v3005_v14 }
 0x308   :  { %v3113_v48 = vld [vmem:[#allocation9 + $0x1568] sm:$0xff]  ;;  %3341 = vmatpush.msra.mxu2 %v3053_v40  ;;  %v2887_v9 = vrot.slane %v2826_v62, 4  ;;  %v2889_v0 = vrot.slane %v2827_v63, 4 }
 0x309   :  { %v2937_v45 = vld [vmem:[#allocation9 + $0xfe8] sm:$0xff]  ;;  %3371 = vmatpush.msra.mxu3 %v3113_v48 }
 0x30a   :  { %v3001_v35 = vld [vmem:[#allocation9 + $0x11e8] sm:$0xff]  ;;  %3280 = vmatpush.msra.mxu0 %v2937_v45 }
 0x30b   :  { %v3049_v29 = vld [vmem:[#allocation9 + $0x1368] sm:$0xff]  ;;  %3309 = vmatpush.msra.mxu1 %v3001_v35  ;;  %v6458_v35 = vpop.f32.mrf.mxu3 }
 0x30c   :  { %v3109_v17 = vld [vmem:[#allocation9 + $0x1548] sm:$0xff]  ;;  %3342 = vmatpush.msra.mxu2 %v3049_v29  ;;  %7835 = vst [vmem:[#allocation89_spill] sm:$0xff] %v6458_v35 }
 0x30d   :  { %v2933_v8 = vld [vmem:[#allocation9 + $0xfc8] sm:$0xff]  ;;  %3372 = vmatpush.msra.mxu3 %v3109_v17  ;;  %v6460_v17 = vpop.f32.mrf.mxu2 }
 0x30e   :  { %v2997_v53 = vld [vmem:[#allocation9 + $0x11c8] sm:$0xff]  ;;  %3281 = vmatpush.msra.mxu0 %v2933_v8  ;;  %7836 = vst [vmem:[#allocation90_spill] sm:$0xff] %v6460_v17  ;;  %v6466_v8 = vsel %vm2854_vm7, %v6421_v47, %v2887_v9  ;;  %v6477_v47 = vpop.f32.mrf.mxu1  ;;  %v2990_v17 = vld [vmem:[#allocation9 + $0x1190] sm:$0xff] }
 0x30f   :  { %v3045_v23 = vld [vmem:[#allocation9 + $0x1348] sm:$0xff]  ;;  %3310 = vmatpush.msra.mxu1 %v2997_v53  ;;  %v6470_v53 = vsel %vm2854_vm7, %v6423_v16, %v2889_v0  ;;  %3181 = vmatmul.f32.gmra.mxu0 %v6466_v8  ;;  %7838 = vst [vmem:[#allocation92_spill] sm:$0xff] %v6477_v47  ;;  %v3086_v0 = vld [vmem:[#allocation9 + $0x1490] sm:$0xff] }
 0x310   :  { %v3105_v14 = vld [vmem:[#allocation9 + $0x1528] sm:$0xff]  ;;  %3343 = vmatpush.msra.mxu2 %v3045_v23  ;;  %3210 = vmatmul.f32.gmra.mxu1 %v6470_v53  ;;  %v3146_v23 = vld [vmem:[#allocation9 + $0x1670] sm:$0xff] }
 0x311   :  { %v2929_v40 = vld [vmem:[#allocation9 + $0xfa8] sm:$0xff]  ;;  %3373 = vmatpush.msra.mxu3 %v3105_v14 }
 0x312   :  { %v2993_v37 = vld [vmem:[#allocation9 + $0x11a8] sm:$0xff]  ;;  %3282 = vmatpush.msra.mxu0 %v2929_v40  ;;  %v3094_v40 = vld [vmem:[#allocation9 + $0x14d0] sm:$0xff] }
 0x313   :  { %v3041_v48 = vld [vmem:[#allocation9 + $0x1328] sm:$0xff]  ;;  %3311 = vmatpush.msra.mxu1 %v2993_v37  ;;  %v6475_v37 = vpop.f32.mrf.mxu0 }
 0x314   :  { %v3101_v58 = vld [vmem:[#allocation9 + $0x1508] sm:$0xff]  ;;  %3344 = vmatpush.msra.mxu2 %v3041_v48  ;;  %7837 = vst [vmem:[#allocation91_spill] sm:$0xff] %v6475_v37  ;;  %v3142_v48 = vld [vmem:[#allocation9 + $0x1650] sm:$0xff]  ;;  %v3071_v37 = vld [vmem:[#allocation9 + $0x1418] sm:$0xff] }
 0x315   :  { %v2925_v1 = vld [vmem:[#allocation9 + $0xf88] sm:$0xff]  ;;  %3374 = vmatpush.msra.mxu3 %v3101_v58 }
 0x316   :  { %v2989_v24 = vld [vmem:[#allocation9 + $0x1188] sm:$0xff]  ;;  %3283 = vmatpush.msra.mxu0 %v2925_v1  ;;  %4713 = vmatmul.msk.f32.vlgmr.msra.gmra.mxu3 %vm779_vm1, %v5935_v22  ;;  %v3090_v1 = vld [vmem:[#allocation9 + $0x14b0] sm:$0xff] }
 0x317   :  { %v3037_v45 = vld [vmem:[#allocation9 + $0x1308] sm:$0xff]  ;;  %3312 = vmatpush.msra.mxu1 %v2989_v24  ;;  %3479 = vmatpush.msrb.mxu3 %v3146_v23  ;;  %v2966_v23 = vld [vmem:[#allocation9 + $0x10d0] sm:$0xff] }
 0x318   :  { %v2921_v29 = vld [vmem:[#allocation9 + $0xf68] sm:$0xff]  ;;  %3345 = vmatpush.msra.mxu2 %v3037_v45  ;;  %v6479_v45 = vpop.f32.mrf.mxu3 }
 0x319   :  { %v2985_v62 = vld [vmem:[#allocation9 + $0x1168] sm:$0xff]  ;;  %3346 = vmatmul.f32.vlgmr.msra.gmra.mxu2 %v5943_v39  ;;  %3284 = vmatpush.msra.mxu0 %v2921_v29  ;;  %7839 = vst [vmem:[#allocation93_spill] sm:$0xff] %v6479_v45  ;;  %v2970_v29 = vld [vmem:[#allocation9 + $0x10f0] sm:$0xff] }
 0x31a   :  { %v2917_v63 = vld [vmem:[#allocation9 + $0xf48] sm:$0xff]  ;;  %3313 = vmatpush.msra.mxu1 %v2985_v62  ;;  %3446 = vmatpush.msrb.mxu2 %v3098_v38  ;;  %v3034_v62 = vld [vmem:[#allocation9 + $0x12f0] sm:$0xff] }
 0x31b   :  { %v2981_v14 = vld [vmem:[#allocation9 + $0x1148] sm:$0xff]  ;;  %3285 = vmatpush.msra.mxu0 %v2917_v63  ;;  %3480 = vmatpush.msrb.mxu3 %v3142_v48  ;;  %v3082_v38 = vld [vmem:[#allocation9 + $0x1470] sm:$0xff]  ;;  %v6483_v63 = vpop.f32.mrf.mxu2 }
 0x31c   :  { %v2913_v16 = vld [vmem:[#allocation9 + $0xf28] sm:$0xff]  ;;  %3314 = vmatpush.msra.mxu1 %v2981_v14  ;;  %3447 = vmatpush.msrb.mxu2 %v3094_v40  ;;  %7840 = vst [vmem:[#allocation94_spill] sm:$0xff] %v6483_v63  ;;  %v3138_v14 = vld [vmem:[#allocation9 + $0x1630] sm:$0xff] }
 0x31d   :  { %v2977_v58 = vld [vmem:[#allocation9 + $0x1128] sm:$0xff]  ;;  %3286 = vmatpush.msra.mxu0 %v2913_v16  ;;  %v3030_v40 = vld [vmem:[#allocation9 + $0x12d0] sm:$0xff]  ;;  %3481 = vmatpush.msrb.mxu3 %v3138_v14 }
 0x31e   :  { %v2909_v24 = vld [vmem:[#allocation9 + $0xf08] sm:$0xff]  ;;  %3315 = vmatpush.msra.mxu1 %v2977_v58  ;;  %3448 = vmatpush.msrb.mxu2 %v3090_v1  ;;  %v3078_v16 = vld [vmem:[#allocation9 + $0x1450] sm:$0xff]  ;;  %v6488_v1 = vpop.f32.mrf.mxu0 }
 0x31f   :  { %v2973_v9 = vld [vmem:[#allocation9 + $0x1108] sm:$0xff]  ;;  %3287 = vmatpush.msra.mxu0 %v2909_v24  ;;  %4714 = vmatmul.msk.f32.gmra.mxu3 %vm779_vm1, %v6328_v55  ;;  %v2962_v48 = vld [vmem:[#allocation9 + $0x10b0] sm:$0xff]  ;;  %7841 = vst [vmem:[#allocation95_spill] sm:$0xff] %v6488_v1  ;;  %v6490_v24 = vpop.f32.mrf.mxu1 }
 0x320   :  { %3316 = vmatpush.msra.mxu1 %v2973_v9  ;;  %3449 = vmatpush.msrb.mxu2 %v3086_v0  ;;  %v3134_v58 = vld [vmem:[#allocation9 + $0x1610] sm:$0xff]  ;;  %7842 = vst [vmem:[#allocation96_spill] sm:$0xff] %v6490_v24 }
 0x321   :  { %3288 = vmatmul.f32.vlgmr.msra.gmra.mxu0 %v6345_v60  ;;  %3317 = vmatmul.f32.vlgmr.msra.gmra.mxu1 %v6349_v41  ;;  %v3026_v9 = vld [vmem:[#allocation9 + $0x12b0] sm:$0xff] }
 0x322   :  { %3349 = vmatmul.f32.gmra.mxu2 %v6357_v49  ;;  %3388 = vmatpush.msrb.mxu0 %v2970_v29  ;;  %v3074_v0 = vld [vmem:[#allocation9 + $0x1430] sm:$0xff] }
 0x323   :  { %3417 = vmatpush.msrb.mxu1 %v3034_v62  ;;  %3450 = vmatpush.msrb.mxu2 %v3082_v38  ;;  %v2958_v45 = vld [vmem:[#allocation9 + $0x1090] sm:$0xff]  ;;  %v6494_v38 = vpop.f32.mrf.mxu3 }
 0x324   :  { %3389 = vmatpush.msrb.mxu0 %v2966_v23  ;;  %3482 = vmatpush.msrb.mxu3 %v3134_v58  ;;  %v3022_v29 = vld [vmem:[#allocation9 + $0x1290] sm:$0xff] }
 0x325   :  { %3418 = vmatpush.msrb.mxu1 %v3030_v40  ;;  %3451 = vmatpush.msrb.mxu2 %v3078_v16  ;;  %v3070_v63 = vld [vmem:[#allocation9 + $0x1410] sm:$0xff] }
 0x326   :  { %3390 = vmatpush.msrb.mxu0 %v2962_v48  ;;  %v3130_v62 = vld [vmem:[#allocation9 + $0x15f0] sm:$0xff]  ;;  %v6498_v48 = vpop.f32.mrf.mxu2 }
 0x327   :  { %3419 = vmatpush.msrb.mxu1 %v3026_v9  ;;  %3452 = vmatpush.msrb.mxu2 %v3074_v0  ;;  %v2954_v23 = vld [vmem:[#allocation9 + $0x1070] sm:$0xff] }
 0x328   :  { %4715 = vmatmul.msk.f32.gmra.mxu3 %vm779_vm1, %v6378_v6  ;;  %3391 = vmatpush.msrb.mxu0 %v2958_v45  ;;  %v3018_v14 = vld [vmem:[#allocation9 + $0x1270] sm:$0xff] }
 0x329   :  { %3420 = vmatpush.msrb.mxu1 %v3022_v29  ;;  %3453 = vmatpush.msrb.mxu2 %v3070_v63  ;;  %v3066_v40 = vld [vmem:[#allocation9 + $0x13f0] sm:$0xff]  ;;  %v6501_v63 = vpop.f32.mrf.mxu0  ;;  %v6503_v29 = vpop.f32.mrf.mxu1 }
 0x32a   :  { %3291 = vmatmul.f32.gmra.mxu0 %v6398_v52  ;;  %3320 = vmatmul.f32.gmra.mxu1 %v6402_v56  ;;  %v3126_v16 = vld [vmem:[#allocation9 + $0x15d0] sm:$0xff] }
 0x32b   :  { %3352 = vmatmul.f32.gmra.mxu2 %v6408_v15  ;;  %3483 = vmatpush.msrb.mxu3 %v3130_v62  ;;  %v2950_v58 = vld [vmem:[#allocation9 + $0x1050] sm:$0xff]  ;;  %v6505_v35 = vpop.f32.mrf.mxu3 }
 0x32c   :  { %v3014_v45 = vld [vmem:[#allocation9 + $0x1250] sm:$0xff]  ;;  %3392 = vmatpush.msrb.mxu0 %v2954_v23  ;;  %3421 = vmatpush.msrb.mxu1 %v3018_v14  ;;  %7843 = vst [vmem:[#allocation97_spill] sm:$0xff] %v6505_v35 }
 0x32d   :  { %v3062_v9 = vld [vmem:[#allocation9 + $0x13d0] sm:$0xff]  ;;  %3454 = vmatpush.msrb.mxu2 %v3066_v40  ;;  %3484 = vmatpush.msrb.mxu3 %v3126_v16 }
 0x32e   :  { %v3122_v0 = vld [vmem:[#allocation9 + $0x15b0] sm:$0xff]  ;;  %3393 = vmatpush.msrb.mxu0 %v2950_v58  ;;  %3422 = vmatpush.msrb.mxu1 %v3014_v45  ;;  %v6509_v45 = vpop.f32.mrf.mxu2 }
 0x32f   :  { %v2946_v24 = vld [vmem:[#allocation9 + $0x1030] sm:$0xff]  ;;  %3455 = vmatpush.msrb.mxu2 %v3062_v9  ;;  %3485 = vmatpush.msrb.mxu3 %v3122_v0  ;;  %7844 = vst [vmem:[#allocation98_spill] sm:$0xff] %v6509_v45 }
 0x330   :  { %v3058_v1 = vld [vmem:[#allocation9 + $0x13b0] sm:$0xff]  ;;  %3394 = vmatpush.msrb.mxu0 %v2946_v24  ;;  %3423 = vmatpush.msrb.mxu1 %v3010_v42 }
 0x331   :  { %v2942_v62 = vld [vmem:[#allocation9 + $0x1010] sm:$0xff]  ;;  %3456 = vmatpush.msrb.mxu2 %v3058_v1  ;;  %3486 = vmatpush.msrb.mxu3 %v3118_v43  ;;  %v6514_v9 = vpop.f32.mrf.mxu0  ;;  %v6516_v0 = vpop.f32.mrf.mxu1 }
 0x332   :  { %v3006_v23 = vld [vmem:[#allocation9 + $0x1210] sm:$0xff]  ;;  %4716 = vmatmul.msk.f32.gmra.mxu3 %vm779_vm1, %v6429_v27  ;;  %3395 = vmatpush.msrb.mxu0 %v2942_v62  ;;  %7845 = vst [vmem:[#allocation99_spill] sm:$0xff] %v6514_v9 }
 0x333   :  { %v3054_v14 = vld [vmem:[#allocation9 + $0x1390] sm:$0xff]  ;;  %3424 = vmatpush.msrb.mxu1 %v3006_v23  ;;  %3294 = vmatmul.f32.gmra.mxu0 %v6435_v13  ;;  %7846 = vst [vmem:[#allocation100_spill] sm:$0xff] %v6516_v0  ;;  %v6518_v0 = vpop.f32.mrf.mxu3 }
 0x334   :  { %v3114_v40 = vld [vmem:[#allocation9 + $0x1570] sm:$0xff]  ;;  %3457 = vmatpush.msrb.mxu2 %v3054_v14  ;;  %3323 = vmatmul.f32.gmra.mxu1 %v6439_v10  ;;  %7847 = vst [vmem:[#allocation101_spill] sm:$0xff] %v6518_v0  ;;  %v2943_v0 = vld [vmem:[#allocation9 + $0x1018] sm:$0xff] }
 0x335   :  { %v2938_v16 = vld [vmem:[#allocation9 + $0xff0] sm:$0xff]  ;;  %3355 = vmatmul.f32.gmra.mxu2 %v6447_v4  ;;  %3487 = vmatpush.msrb.mxu3 %v3114_v40 }
 0x336   :  { %v3002_v58 = vld [vmem:[#allocation9 + $0x11f0] sm:$0xff]  ;;  %3396 = vmatpush.msrb.mxu0 %v2938_v16 }
 0x337   :  { %v3050_v42 = vld [vmem:[#allocation9 + $0x1370] sm:$0xff]  ;;  %3425 = vmatpush.msrb.mxu1 %v3002_v58  ;;  %v6520_v58 = vpop.f32.mrf.mxu2 }
 0x338   :  { %v3110_v24 = vld [vmem:[#allocation9 + $0x1550] sm:$0xff]  ;;  %3458 = vmatpush.msrb.mxu2 %v3050_v42  ;;  %7848 = vst [vmem:[#allocation102_spill] sm:$0xff] %v6520_v58  ;;  %v2991_v58 = vld [vmem:[#allocation9 + $0x1198] sm:$0xff] }
 0x339   :  { %v2934_v43 = vld [vmem:[#allocation9 + $0xfd0] sm:$0xff]  ;;  %3488 = vmatpush.msrb.mxu3 %v3110_v24  ;;  %v3099_v24 = vld [vmem:[#allocation9 + $0x14f8] sm:$0xff] }
 0x33a   :  { %v2998_v1 = vld [vmem:[#allocation9 + $0x11d0] sm:$0xff]  ;;  %3397 = vmatpush.msrb.mxu0 %v2934_v43  ;;  %v3147_v43 = vld [vmem:[#allocation9 + $0x1678] sm:$0xff] }
 0x33b   :  { %v3046_v62 = vld [vmem:[#allocation9 + $0x1350] sm:$0xff]  ;;  %3426 = vmatpush.msrb.mxu1 %v2998_v1  ;;  %3297 = vmatmul.f32.gmra.mxu0 %v6466_v8  ;;  %v6529_v1 = vpop.f32.mrf.mxu1  ;;  %v6531_v47 = vpop.f32.mrf.mxu3 }
 0x33c   :  { %v3106_v23 = vld [vmem:[#allocation9 + $0x1530] sm:$0xff]  ;;  %3459 = vmatpush.msrb.mxu2 %v3046_v62  ;;  %3326 = vmatmul.f32.gmra.mxu1 %v6470_v53  ;;  %v3143_v62 = vld [vmem:[#allocation9 + $0x1658] sm:$0xff]  ;;  %7849 = vst [vmem:[#allocation103_spill] sm:$0xff] %v6531_v47 }
 0x33d   :  { %v2930_v14 = vld [vmem:[#allocation9 + $0xfb0] sm:$0xff]  ;;  %3489 = vmatpush.msrb.mxu3 %v3106_v23  ;;  %v3075_v47 = vld [vmem:[#allocation9 + $0x1438] sm:$0xff] }
 0x33e   :  { %v2994_v35 = vld [vmem:[#allocation9 + $0x11b0] sm:$0xff]  ;;  %3398 = vmatpush.msrb.mxu0 %v2930_v14  ;;  %v3091_v14 = vld [vmem:[#allocation9 + $0x14b8] sm:$0xff] }
 0x33f   :  { %v3042_v45 = vld [vmem:[#allocation9 + $0x1330] sm:$0xff]  ;;  %3427 = vmatpush.msrb.mxu1 %v2994_v35  ;;  %3490 = vmatpush.msrb.mxu3 %v3102_v19 }
 0x340   :  { %v2926_v40 = vld [vmem:[#allocation9 + $0xf90] sm:$0xff]  ;;  %3460 = vmatpush.msrb.mxu2 %v3042_v45  ;;  %4717 = vmatmul.msk.f32.vlgmr.msrb.gmra.mxu3 %vm779_vm1, %v5935_v22  ;;  %v6527_v45 = vpop.f32.mrf.mxu0 }
 0x341   :  { %v3038_v9 = vld [vmem:[#allocation9 + $0x1310] sm:$0xff]  ;;  %3399 = vmatpush.msrb.mxu0 %v2926_v40  ;;  %3428 = vmatpush.msrb.mxu1 %v2990_v17  ;;  %v3095_v17 = vld [vmem:[#allocation9 + $0x14d8] sm:$0xff] }
 0x342   :  { %v2922_v16 = vld [vmem:[#allocation9 + $0xf70] sm:$0xff]  ;;  %3461 = vmatpush.msrb.mxu2 %v3038_v9  ;;  %3595 = vmatpush.msra.mxu3 %v3147_v43  ;;  %v6535_v43 = vpop.f32.mrf.mxu2 }
 0x343   :  { %v2986_v42 = vld [vmem:[#allocation9 + $0x1170] sm:$0xff]  ;;  %3462 = vmatmul.f32.vlgmr.msrb.gmra.mxu2 %v5943_v39  ;;  %3400 = vmatpush.msrb.mxu0 %v2922_v16  ;;  %v3087_v16 = vld [vmem:[#allocation9 + $0x1498] sm:$0xff]  ;;  %7850 = vst [vmem:[#allocation104_spill] sm:$0xff] %v6535_v43 }
 0x344   :  { %v2918_v35 = vld [vmem:[#allocation9 + $0xf50] sm:$0xff]  ;;  %3429 = vmatpush.msrb.mxu1 %v2986_v42  ;;  %3562 = vmatpush.msra.mxu2 %v3099_v24  ;;  %v2971_v42 = vld [vmem:[#allocation9 + $0x10f8] sm:$0xff] }
 0x345   :  { %v2982_v19 = vld [vmem:[#allocation9 + $0x1150] sm:$0xff]  ;;  %3401 = vmatpush.msrb.mxu0 %v2918_v35  ;;  %3596 = vmatpush.msra.mxu3 %v3143_v62  ;;  %v3035_v24 = vld [vmem:[#allocation9 + $0x12f8] sm:$0xff] }
 0x346   :  { %v2914_v9 = vld [vmem:[#allocation9 + $0xf30] sm:$0xff]  ;;  %3430 = vmatpush.msrb.mxu1 %v2982_v19  ;;  %3563 = vmatpush.msra.mxu2 %v3095_v17  ;;  %v3083_v35 = vld [vmem:[#allocation9 + $0x1478] sm:$0xff] }
 0x347   :  { %v2978_v23 = vld [vmem:[#allocation9 + $0x1130] sm:$0xff]  ;;  %3402 = vmatpush.msrb.mxu0 %v2914_v9  ;;  %v2967_v19 = vld [vmem:[#allocation9 + $0x10d8] sm:$0xff] }
 0x348   :  { %v2910_v40 = vld [vmem:[#allocation9 + $0xf10] sm:$0xff]  ;;  %3431 = vmatpush.msrb.mxu1 %v2978_v23  ;;  %3564 = vmatpush.msra.mxu2 %v3091_v14  ;;  %v3139_v17 = vld [vmem:[#allocation9 + $0x1638] sm:$0xff]  ;;  %v6540_v14 = vpop.f32.mrf.mxu0 }
 0x349   :  { %3403 = vmatpush.msrb.mxu0 %v2910_v40  ;;  %4718 = vmatmul.msk.f32.gmra.mxu3 %vm779_vm1, %v6328_v55  ;;  %v3031_v9 = vld [vmem:[#allocation9 + $0x12d8] sm:$0xff]  ;;  %7851 = vst [vmem:[#allocation105_spill] sm:$0xff] %v6540_v14  ;;  %v6542_v40 = vpop.f32.mrf.mxu1 }
 0x34a   :  { %3432 = vmatpush.msrb.mxu1 %v2974_v7  ;;  %3565 = vmatpush.msra.mxu2 %v3087_v16  ;;  %v3079_v62 = vld [vmem:[#allocation9 + $0x1458] sm:$0xff]  ;;  %7852 = vst [vmem:[#allocation106_spill] sm:$0xff] %v6542_v40 }
 0x34b   :  { %3404 = vmatmul.f32.vlgmr.msrb.gmra.mxu0 %v6345_v60  ;;  %3433 = vmatmul.f32.vlgmr.msrb.gmra.mxu1 %v6349_v41  ;;  %v2963_v23 = vld [vmem:[#allocation9 + $0x10b8] sm:$0xff] }
 0x34c   :  { %3465 = vmatmul.f32.gmra.mxu2 %v6357_v49  ;;  %3504 = vmatpush.msra.mxu0 %v2971_v42  ;;  %v3135_v7 = vld [vmem:[#allocation9 + $0x1618] sm:$0xff] }
 0x34d   :  { %3533 = vmatpush.msra.mxu1 %v3035_v24  ;;  %3566 = vmatpush.msra.mxu2 %v3083_v35  ;;  %v3027_v16 = vld [vmem:[#allocation9 + $0x12b8] sm:$0xff]  ;;  %v6546_v35 = vpop.f32.mrf.mxu3 }
 0x34e   :  { %3505 = vmatpush.msra.mxu0 %v2967_v19  ;;  %3597 = vmatpush.msra.mxu3 %v3139_v17  ;;  %v2959_v43 = vld [vmem:[#allocation9 + $0x1098] sm:$0xff]  ;;  %7853 = vst [vmem:[#allocation107_spill] sm:$0xff] %v6546_v35 }
 0x34f   :  { %3534 = vmatpush.msra.mxu1 %v3031_v9  ;;  %3567 = vmatpush.msra.mxu2 %v3079_v62  ;;  %v3023_v42 = vld [vmem:[#allocation9 + $0x1298] sm:$0xff] }
 0x350   :  { %3506 = vmatpush.msra.mxu0 %v2963_v23  ;;  %3598 = vmatpush.msra.mxu3 %v3135_v7  ;;  %v3131_v24 = vld [vmem:[#allocation9 + $0x15f8] sm:$0xff]  ;;  %v6550_v23 = vpop.f32.mrf.mxu2  ;;  %v2160_v7 = vadd.f32 %v6216_v21, %v6214_v30 }
 0x351   :  { %3535 = vmatpush.msra.mxu1 %v3027_v16  ;;  %3568 = vmatpush.msra.mxu2 %v3075_v47  ;;  %v2955_v19 = vld [vmem:[#allocation9 + $0x1078] sm:$0xff]  ;;  %7854 = vst [vmem:[#allocation108_spill] sm:$0xff] %v6550_v23  ;;  %v6557_v40 = vpop.f32.mrf.mxu1 }
 0x352   :  { %4719 = vmatmul.msk.f32.gmra.mxu3 %vm779_vm1, %v6378_v6  ;;  %3507 = vmatpush.msra.mxu0 %v2959_v43  ;;  %v3019_v17 = vld [vmem:[#allocation9 + $0x1278] sm:$0xff]  ;;  %7856 = vst [vmem:[#allocation110_spill] sm:$0xff] %v6557_v40  ;;  %v2189_v21 = vadd.f32 %v6209_v46, %v2160_v7 }
 0x353   :  { %3536 = vmatpush.msra.mxu1 %v3023_v42  ;;  %3569 = vmatpush.msra.mxu2 %v3071_v37  ;;  %v3067_v9 = vld [vmem:[#allocation9 + $0x13f8] sm:$0xff]  ;;  %v6555_v42 = vpop.f32.mrf.mxu0 }
 0x354   :  { %3407 = vmatmul.f32.gmra.mxu0 %v6398_v52  ;;  %3436 = vmatmul.f32.gmra.mxu1 %v6402_v56  ;;  %v3127_v62 = vld [vmem:[#allocation9 + $0x15d8] sm:$0xff]  ;;  %7855 = vst [vmem:[#allocation109_spill] sm:$0xff] %v6555_v42 }
 0x355   :  { %3468 = vmatmul.f32.gmra.mxu2 %v6408_v15  ;;  %3599 = vmatpush.msra.mxu3 %v3131_v24  ;;  %v2951_v47 = vld [vmem:[#allocation9 + $0x1058] sm:$0xff] }
 0x356   :  { %v3015_v43 = vld [vmem:[#allocation9 + $0x1258] sm:$0xff]  ;;  %3508 = vmatpush.msra.mxu0 %v2955_v19  ;;  %3537 = vmatpush.msra.mxu1 %v3019_v17  ;;  %v2693_v17 = vpop.f32.mrf.mxu3 }
 0x357   :  { %v3063_v37 = vld [vmem:[#allocation9 + $0x13d8] sm:$0xff]  ;;  %3570 = vmatpush.msra.mxu2 %v3067_v9  ;;  %3600 = vmatpush.msra.mxu3 %v3127_v62 }
 0x358   :  { %v3123_v16 = vld [vmem:[#allocation9 + $0x15b8] sm:$0xff]  ;;  %3509 = vmatpush.msra.mxu0 %v2951_v47  ;;  %3538 = vmatpush.msra.mxu1 %v3015_v43  ;;  %v2664_v43 = vpop.f32.mrf.mxu2 }
 0x359   :  { %v2947_v14 = vld [vmem:[#allocation9 + $0x1038] sm:$0xff]  ;;  %3571 = vmatpush.msra.mxu2 %v3063_v37  ;;  %3601 = vmatpush.msra.mxu3 %v3123_v16  ;;  %v2635_v37 = vpop.f32.mrf.mxu1  ;;  %v2163_v16 = vadd.f32 %v6229_v33, %v6227_v20 }
 0x35a   :  { %v3011_v35 = vld [vmem:[#allocation9 + $0x1238] sm:$0xff]  ;;  %3510 = vmatpush.msra.mxu0 %v2947_v14  ;;  %4720 = vmatmul.msk.f32.gmra.mxu3 %vm779_vm1, %v6429_v27 }
 0x35b   :  { %v3059_v24 = vld [vmem:[#allocation9 + $0x13b8] sm:$0xff]  ;;  %3539 = vmatpush.msra.mxu1 %v3011_v35  ;;  %v2218_v35 = vadd.f32 %v6207_v51, %v2189_v21  ;;  %v2192_v20 = vadd.f32 %v6220_v54, %v2163_v16 }
 0x35c   :  { %v3119_v23 = vld [vmem:[#allocation9 + $0x1598] sm:$0xff]  ;;  %3572 = vmatpush.msra.mxu2 %v3059_v24  ;;  %3511 = vmatpush.msra.mxu0 %v2943_v0  ;;  %v2606_v0 = vpop.f32.mrf.mxu0 }
 0x35d   :  { %v3007_v30 = vld [vmem:[#allocation9 + $0x1218] sm:$0xff]  ;;  %3602 = vmatpush.msra.mxu3 %v3119_v23  ;;  %3410 = vmatmul.f32.gmra.mxu0 %v6435_v13 }
 0x35e   :  { %v3055_v19 = vld [vmem:[#allocation9 + $0x1398] sm:$0xff]  ;;  %3540 = vmatpush.msra.mxu1 %v3007_v30  ;;  %3471 = vmatmul.f32.gmra.mxu2 %v6447_v4 }
 0x35f   :  { %v3115_v9 = vld [vmem:[#allocation9 + $0x1578] sm:$0xff]  ;;  %3573 = vmatpush.msra.mxu2 %v3055_v19  ;;  %3439 = vmatmul.f32.gmra.mxu1 %v6439_v10  ;;  %v2607_v19 = vadd.f32 %v2606_v0, %v2218_v35 }
 0x360   :  { %v2939_v62 = vld [vmem:[#allocation9 + $0xff8] sm:$0xff]  ;;  %3603 = vmatpush.msra.mxu3 %v3115_v9  ;;  %v2667_v35 = vpop.f32.mrf.mxu2 }
 0x361   :  { %v3003_v47 = vld [vmem:[#allocation9 + $0x11f8] sm:$0xff]  ;;  %3512 = vmatpush.msra.mxu0 %v2939_v62  ;;  %v2636_v9 = vadd.f32 %v2635_v37, %v2607_v19 }
 0x362   :  { %v3051_v46 = vld [vmem:[#allocation9 + $0x1378] sm:$0xff]  ;;  %3541 = vmatpush.msra.mxu1 %v3003_v47  ;;  %v2696_v47 = vpop.f32.mrf.mxu3 }
 0x363   :  { %v3111_v14 = vld [vmem:[#allocation9 + $0x1558] sm:$0xff]  ;;  %3574 = vmatpush.msra.mxu2 %v3051_v46  ;;  %v2665_v62 = vadd.f32 %v2664_v43, %v2636_v9 }
 0x364   :  { %v2935_v23 = vld [vmem:[#allocation9 + $0xfd8] sm:$0xff]  ;;  %3604 = vmatpush.msra.mxu3 %v3111_v14 }
 0x365   :  { %v2999_v7 = vld [vmem:[#allocation9 + $0x11d8] sm:$0xff]  ;;  %3513 = vmatpush.msra.mxu0 %v2935_v23  ;;  %v6569_v14 = vadd.f32 %v2693_v17, %v2665_v62  ;;  %v2166_v17 = vadd.f32 %v6242_v5, %v6240_v34 }
 0x366   :  { %v3047_v24 = vld [vmem:[#allocation9 + $0x1358] sm:$0xff]  ;;  %3542 = vmatpush.msra.mxu1 %v2999_v7  ;;  %3413 = vmatmul.f32.gmra.mxu0 %v6466_v8 }
 0x367   :  { %v3107_v30 = vld [vmem:[#allocation9 + $0x1538] sm:$0xff]  ;;  %3575 = vmatpush.msra.mxu2 %v3047_v24  ;;  %3442 = vmatmul.f32.gmra.mxu1 %v6470_v53 }
 0x368   :  { %v2931_v40 = vld [vmem:[#allocation9 + $0xfb8] sm:$0xff]  ;;  %3605 = vmatpush.msra.mxu3 %v3107_v30  ;;  %v2670_v5 = vpop.f32.mrf.mxu2 }
 0x369   :  { %v2995_v42 = vld [vmem:[#allocation9 + $0x11b8] sm:$0xff]  ;;  %3514 = vmatpush.msra.mxu0 %v2931_v40  ;;  %v2221_v40 = vadd.f32 %v6218_v44, %v2192_v20  ;;  %v2195_v44 = vadd.f32 %v6235_v26, %v2166_v17 }
 0x36a   :  { %v3043_v51 = vld [vmem:[#allocation9 + $0x1338] sm:$0xff]  ;;  %3543 = vmatpush.msra.mxu1 %v2995_v42  ;;  %v2638_v42 = vpop.f32.mrf.mxu1  ;;  %v2699_v24 = vpop.f32.mrf.mxu3 }
 0x36b   :  { %v3103_v21 = vld [vmem:[#allocation9 + $0x1518] sm:$0xff]  ;;  %3576 = vmatpush.msra.mxu2 %v3043_v51  ;;  %3515 = vmatpush.msra.mxu0 %v2927_v18  ;;  %v2224_v30 = vadd.f32 %v6231_v61, %v2195_v44 }
 0x36c   :  { %v3039_v33 = vld [vmem:[#allocation9 + $0x1318] sm:$0xff]  ;;  %3606 = vmatpush.msra.mxu3 %v3103_v21  ;;  %3544 = vmatpush.msra.mxu1 %v2991_v58  ;;  %v2609_v58 = vpop.f32.mrf.mxu0 }
 0x36d   :  { %v2923_v46 = vld [vmem:[#allocation9 + $0xf78] sm:$0xff]  ;;  %3577 = vmatpush.msra.mxu2 %v3039_v33  ;;  %4721 = vmatmul.msk.f32.vlgmr.msra.gmra.mxu3 %vm779_vm1, %v5935_v22  ;;  %v2610_v22 = vadd.f32 %v2609_v58, %v2221_v40 }
 0x36e   :  { %v2987_v23 = vld [vmem:[#allocation9 + $0x1178] sm:$0xff]  ;;  %3578 = vmatmul.f32.vlgmr.msra.gmra.mxu2 %v5943_v39  ;;  %3516 = vmatpush.msra.mxu0 %v2923_v46 }
 0x36f   :  { %v2919_v54 = vld [vmem:[#allocation9 + $0xf58] sm:$0xff]  ;;  %3545 = vmatpush.msra.mxu1 %v2987_v23  ;;  %v2639_v37 = vadd.f32 %v2638_v42, %v2610_v22 }
 0x370   :  { %v2983_v18 = vld [vmem:[#allocation9 + $0x1158] sm:$0xff]  ;;  %3517 = vmatpush.msra.mxu0 %v2919_v54 }
 0x371   :  { %v2915_v43 = vld [vmem:[#allocation9 + $0xf38] sm:$0xff]  ;;  %3546 = vmatpush.msra.mxu1 %v2983_v18  ;;  %v2668_v39 = vadd.f32 %v2667_v35, %v2639_v37 }
 0x372   :  { %v2979_v7 = vld [vmem:[#allocation9 + $0x1138] sm:$0xff]  ;;  %3518 = vmatpush.msra.mxu0 %v2915_v43  ;;  %v2641_v19 = vpop.f32.mrf.mxu1 }
 0x373   :  { %v2911_v0 = vld [vmem:[#allocation9 + $0xf18] sm:$0xff]  ;;  %3547 = vmatpush.msra.mxu1 %v2979_v7  ;;  %v6583_v34 = vadd.f32 %v2696_v47, %v2668_v39 }
 0x374   :  { %v2975_v16 = vld [vmem:[#allocation9 + $0x1118] sm:$0xff]  ;;  %3519 = vmatpush.msra.mxu0 %v2911_v0  ;;  %v2612_v26 = vpop.f32.mrf.mxu0 }
 0x375   :  { %4722 = vmatmul.msk.f32.gmra.mxu3 %vm779_vm1, %v6328_v55  ;;  %3548 = vmatpush.msra.mxu1 %v2975_v16  ;;  %v2613_v51 = vadd.f32 %v2612_v26, %v2224_v30 }
 0x376   :  { %3520 = vmatmul.f32.vlgmr.msra.gmra.mxu0 %v6345_v60  ;;  %3549 = vmatmul.f32.vlgmr.msra.gmra.mxu1 %v6349_v41  ;;  %v3260_v60 = vpop.f32.mrf.mxu3 }
 0x377   :  { %3581 = vmatmul.f32.gmra.mxu2 %v6357_v49  ;;  %v2642_v21 = vadd.f32 %v2641_v19, %v2613_v51  ;;  %v3231_v49 = vpop.f32.mrf.mxu2 }
 0x379   :  { %v2671_v55 = vadd.f32 %v2670_v5, %v2642_v21 }
 0x37a   :  { %v3202_v61 = vpop.f32.mrf.mxu1 }
 0x37b   :  { %v6593_v41 = vadd.f32 %v2699_v24, %v2671_v55 }
 0x37c   :  { %v3173_v9 = vpop.f32.mrf.mxu0 }
 0x37d   :  { %4723 = vmatmul.msk.f32.gmra.mxu3 %vm779_vm1, %v6378_v6  ;;  %v3203_v20 = vadd.f32 %v3202_v61, %v3173_v9 }
 0x37e   :  { %3523 = vmatmul.f32.gmra.mxu0 %v6398_v52  ;;  %3552 = vmatmul.f32.gmra.mxu1 %v6402_v56  ;;  %v3263_v6 = vpop.f32.mrf.mxu3 }
 0x37f   :  { %3584 = vmatmul.f32.gmra.mxu2 %v6408_v15  ;;  %v3232_v33 = vadd.f32 %v3231_v49, %v3203_v20  ;;  %v3234_v56 = vpop.f32.mrf.mxu2 }
 0x381   :  { %v6600_v52 = vadd.f32 %v3260_v60, %v3232_v33 }
 0x382   :  { %v3205_v62 = vpop.f32.mrf.mxu1 }
 0x384   :  { %v3176_v15 = vpop.f32.mrf.mxu0 }
 0x385   :  { %4724 = vmatmul.msk.f32.gmra.mxu3 %vm779_vm1, %v6429_v27  ;;  %v3206_v47 = vadd.f32 %v3205_v62, %v3176_v15  ;;  %v2041_v15 = vadd.f32 %v6156_v31, %v6153_v3  ;;  %v7858_v31 = vld [vmem:[#allocation40_spill] sm:$0xff] }
 0x386   :  { %3526 = vmatmul.f32.gmra.mxu0 %v6435_v13  ;;  %3555 = vmatmul.f32.gmra.mxu1 %v6439_v10  ;;  %v3266_v35 = vpop.f32.mrf.mxu3 }
 0x387   :  { %3587 = vmatmul.f32.gmra.mxu2 %v6447_v4  ;;  %v3235_v46 = vadd.f32 %v3234_v56, %v3206_v47  ;;  %v3237_v13 = vpop.f32.mrf.mxu2 }
 0x389   :  { %v6604_v27 = vadd.f32 %v3263_v6, %v3235_v46 }
 0x38a   :  { %v3208_v54 = vpop.f32.mrf.mxu1 }
 0x38c   :  { %v3179_v23 = vpop.f32.mrf.mxu0 }
 0x38d   :  { %v3209_v10 = vadd.f32 %v3208_v54, %v3179_v23  ;;  %v1925_v23 = vadd.f32 %v6100_v12, %v6098_v11  ;;  %v1809_v54 = vadd.f32 %v6009_v50, %v6006_v32  ;;  %v7860_v12 = vld [vmem:[#allocation58_spill] sm:$0xff] }
 0x38e   :  { %3529 = vmatmul.f32.gmra.mxu0 %v6466_v8  ;;  %3558 = vmatmul.f32.gmra.mxu1 %v6470_v53  ;;  %v3269_v18 = vpop.f32.mrf.mxu3 }
 0x38f   :  { %v3238_v40 = vadd.f32 %v3237_v13, %v3209_v10  ;;  %v3240_v58 = vpop.f32.mrf.mxu2  ;;  %v2047_v13 = vadd.f32 %v6179_v59, %v6175_v28 }
 0x391   :  { %v6606_v4 = vadd.f32 %v3266_v35, %v3238_v40  ;;  %v2070_v35 = vadd.f32 %v6147_v25, %v2041_v15  ;;  %v2076_v10 = vadd.f32 %v6173_v2, %v2047_v13  ;;  %v7857_v40 = vld [vmem:[#allocation53_spill] sm:$0xff]  ;;  %v7861_v2 = vld [vmem:[#allocation39_spill] sm:$0xff] }
 0x392   :  { %v3211_v17 = vpop.f32.mrf.mxu1 }
 0x393   :  { %v2105_v32 = vadd.f32 %v7860_v12, %v2076_v10  ;;  %v7874_v12 = vld [vmem:[#allocation101_spill] sm:$0xff] }
 0x394   :  { %v3182_v42 = vpop.f32.mrf.mxu0 }
 0x395   :  { %v3212_v43 = vadd.f32 %v3211_v17, %v3182_v42  ;;  %v1954_v42 = vadd.f32 %v7858_v31, %v1925_v23  ;;  %v7859_v17 = vld [vmem:[#allocation26_spill] sm:$0xff] }
 0x396   :  { %v1838_v28 = vadd.f32 %v7859_v17, %v1809_v54  ;;  %v7866_v54 = vld [vmem:[#allocation47_spill] sm:$0xff] }
 0x397   :  { %v3241_v22 = vadd.f32 %v3240_v58, %v3212_v43  ;;  %v1983_v43 = vadd.f32 %v7861_v2, %v1954_v42 }
 0x399   :  { %v6608_v8 = vadd.f32 %v3269_v18, %v3241_v22  ;;  %v6610_v7 = vpop.f32.mrf.mxu3  ;;  %v2099_v18 = vadd.f32 %v7857_v40, %v2070_v35  ;;  %v6663_v40 = vld [vmem:[#allocation10] sm:$0xf] }
 0x39a   :  { %v6667_v42 = vperm.slane %v6663_v40, 2 }
 0x39b   :  { %v2488_v25 = vadd.f32 %v6501_v63, %v2099_v18 }
 0x39c   :  { %v3347_v53 = vpop.f32.mrf.mxu2 }
 0x39d   :  { %v2517_v22 = vadd.f32 %v6503_v29, %v2488_v25  ;;  %v7864_v29 = vld [vmem:[#allocation70_spill] sm:$0xff] }
 0x39e   :  { %v3289_v0 = vpop.f32.mrf.mxu0  ;;  %v3318_v37 = vpop.f32.mrf.mxu1  ;;  %v7872_v25 = vld [vmem:[#allocation34_spill] sm:$0xff] }
 0x3a2   :  { %v3379_v16 = vpop.f32.mrf.mxu3 }
 0x3a5   :  { %v3350_v44 = vpop.f32.mrf.mxu2 }
 0x3a7   :  { %v3292_v39 = vpop.f32.mrf.mxu0  ;;  %v3321_v24 = vpop.f32.mrf.mxu1 }
 0x3a8   :  { %v3322_v5 = vadd.f32 %v3321_v24, %v3292_v39  ;;  %v2372_v24 = vadd.f32 %v6417_v36, %v1983_v43  ;;  %v7865_v36 = vld [vmem:[#allocation102_spill] sm:$0xff] }
 0x3a9   :  { %v7875_v43 = vld [vmem:[#allocation46_spill] sm:$0xff] }
 0x3aa   :  { %v3351_v30 = vadd.f32 %v3350_v44, %v3322_v5  ;;  %v7862_v44 = vld [vmem:[#allocation25_spill] sm:$0xff] }
 0x3ab   :  { %v6614_v19 = vpop.f32.mrf.mxu3  ;;  %v1867_v39 = vadd.f32 %v7862_v44, %v1838_v28  ;;  %v7863_v5 = vld [vmem:[#allocation69_spill] sm:$0xff] }
 0x3ac   :  { %v6612_v26 = vadd.f32 %v3379_v16, %v3351_v30  ;;  %v2494_v16 = vadd.f32 %v6527_v45, %v2105_v32 }
 0x3ad   :  { %v2256_v30 = vadd.f32 %v7863_v5, %v1867_v39  ;;  %v7877_v39 = vld [vmem:[#allocation83_spill] sm:$0xff] }
 0x3ae   :  { %v6616_v51 = vpop.f32.mrf.mxu2 }
 0x3b0   :  { %v6618_v21 = vpop.f32.mrf.mxu0 }
 0x3b1   :  { %v6620_v55 = vpop.f32.mrf.mxu1 }
 0x3b5   :  { %v3385_v60 = vpop.f32.mrf.mxu3 }
 0x3b8   :  { %v3356_v49 = vpop.f32.mrf.mxu2  ;;  %v3298_v9 = vpop.f32.mrf.mxu0 }
 0x3b9   :  { %v3327_v61 = vpop.f32.mrf.mxu1 }
 0x3ba   :  { %v3328_v20 = vadd.f32 %v3327_v61, %v3298_v9  ;;  %v3319_v9 = vadd.f32 %v3318_v37, %v3289_v0  ;;  %v7869_v0 = vld [vmem:[#allocation66_spill] sm:$0xff] }
 0x3bc   :  { %v3357_v33 = vadd.f32 %v3356_v49, %v3328_v20  ;;  %v2523_v49 = vadd.f32 %v6529_v1, %v2494_v16  ;;  %v3348_v13 = vadd.f32 %v3347_v53, %v3319_v9  ;;  %v7868_v1 = vld [vmem:[#allocation65_spill] sm:$0xff]  ;;  %v7873_v53 = vld [vmem:[#allocation68_spill] sm:$0xff] }
 0x3bd   :  { %v2157_v37 = vadd.f32 %v7869_v0, %v7868_v1  ;;  %v7876_v16 = vld [vmem:[#allocation64_spill] sm:$0xff] }
 0x3be   :  { %v6622_v6 = vadd.f32 %v3385_v60, %v3357_v33  ;;  %v2546_v60 = vadd.f32 %v6498_v48, %v2517_v22  ;;  %v2401_v33 = vadd.f32 %v6419_v57, %v2372_v24  ;;  %v7867_v48 = vld [vmem:[#allocation48_spill] sm:$0xff] }
 0x3bf   :  { %v1931_v10 = vadd.f32 %v7867_v48, %v7866_v54  ;;  %v7870_v57 = vld [vmem:[#allocation84_spill] sm:$0xff]  ;;  %v2186_v44 = vadd.f32 %v7876_v16, %v2157_v37 }
 0x3c0   :  { %v2575_v35 = vadd.f32 %v6494_v38, %v2546_v60  ;;  %v7871_v38 = vld [vmem:[#allocation33_spill] sm:$0xff] }
 0x3c1   :  { %v1815_v17 = vadd.f32 %v7872_v25, %v7871_v38  ;;  %v1960_v22 = vadd.f32 %v7875_v43, %v1931_v10  ;;  %v7888_v25 = vld [vmem:[#allocation109_spill] sm:$0xff]  ;;  %v7891_v43 = vld [vmem:[#allocation28_spill] sm:$0xff] }
 0x3c3   :  { %v3492_v56 = vpop.f32.mrf.mxu3 }
 0x3c6   :  { %v3463_v62 = vpop.f32.mrf.mxu2 }
 0x3c8   :  { %v3405_v47 = vpop.f32.mrf.mxu0  ;;  %v3434_v46 = vpop.f32.mrf.mxu1 }
 0x3c9   :  { %v3435_v50 = vadd.f32 %v3434_v46, %v3405_v47  ;;  %v2285_v47 = vadd.f32 %v7864_v29, %v2256_v30 }
 0x3cb   :  { %v3464_v63 = vadd.f32 %v3463_v62, %v3435_v50  ;;  %v2552_v62 = vadd.f32 %v7865_v36, %v2523_v49  ;;  %v2314_v28 = vadd.f32 %v7873_v53, %v2285_v47  ;;  %v3377_v50 = vadd.f32 %v6610_v7, %v3348_v13  ;;  %v7878_v49 = vld [vmem:[#allocation32_spill] sm:$0xff]  ;;  %v7889_v53 = vld [vmem:[#allocation42_spill] sm:$0xff] }
 0x3cc   :  { %v6635_v58 = vpop.f32.mrf.mxu3  ;;  %v1844_v9 = vadd.f32 %v7878_v49, %v1815_v17  ;;  %v7894_v49 = vld [vmem:[#allocation51_spill] sm:$0xff] }
 0x3cd   :  { %v3493_v15 = vadd.f32 %v3492_v56, %v3464_v63  ;;  %v2430_v56 = vadd.f32 %v7870_v57, %v2401_v33  ;;  %v2581_v32 = vadd.f32 %v7874_v12, %v2552_v62  ;;  %v7880_v33 = vld [vmem:[#allocation44_spill] sm:$0xff]  ;;  %v7884_v62 = vld [vmem:[#allocation45_spill] sm:$0xff]  ;;  %v6706_v57 = vperm.slane %v6663_v40, 0 }
 0x3ce   :  { %v1989_v13 = vadd.f32 %v7884_v62, %v1960_v22  ;;  %v7899_v62 = vld [vmem:[#allocation38_spill] sm:$0xff] }
 0x3cf   :  { %v6637_v3 = vpop.f32.mrf.mxu2  ;;  %v3622_v18 = vadd.f32 %v3493_v15, %v2575_v35  ;;  %v2459_v24 = vadd.f32 %v7877_v39, %v2430_v56  ;;  %v7883_v35 = vld [vmem:[#allocation30_spill] sm:$0xff]  ;;  %v7886_v56 = vld [vmem:[#allocation31_spill] sm:$0xff] }
 0x3d1   :  { %v6642_v59 = vpop.f32.mrf.mxu0  ;;  %v6644_v11 = vpop.f32.mrf.mxu1  ;;  %v6682_v60 = vadd.f32 %v6667_v42, %v3622_v18  ;;  %v3621_v29 = vadd.f32 %v3377_v50, %v2459_v24  ;;  %v1873_v18 = vadd.f32 %v7886_v56, %v1844_v9  ;;  %v7893_v24 = vld [vmem:[#allocation110_spill] sm:$0xff]  ;;  %v7895_v9 = vld [vmem:[#allocation52_spill] sm:$0xff] }
 0x3d3   :  { %v3664_v0 = vmax.f32 %v6682_v60, 0.0  ;;  %v4824_v60 = vld [vmem:[%s7744_s5 + $0x4c8] sm:$0xff] }
 0x3d5   :  { %v3498_v61 = vpop.f32.mrf.mxu3 }
 0x3d8   :  { %v3469_v20 = vpop.f32.mrf.mxu2 }
 0x3da   :  { %v3411_v45 = vpop.f32.mrf.mxu0 }
 0x3dc   :  { %v3440_v46 = vpop.f32.mrf.mxu1 }
 0x3dd   :  { %v3441_v23 = vadd.f32 %v3440_v46, %v3411_v45  ;;  %v6677_v5 = vpop.f32.mrf.mxu3  ;;  %v6692_v45 = vperm.slane %v6663_v40, 1  ;;  %v7882_v46 = vld [vmem:[#allocation29_spill] sm:$0xff] }
 0x3de   :  { %v1812_v36 = vadd.f32 %v7883_v35, %v7882_v46 }
 0x3df   :  { %v3470_v31 = vadd.f32 %v3469_v20, %v3441_v23  ;;  %v7879_v20 = vld [vmem:[#allocation43_spill] sm:$0xff]  ;;  %v6717_v12 = vadd.f32 %v6692_v45, %v3621_v29 }
 0x3e0   :  { %v1928_v7 = vadd.f32 %v7880_v33, %v7879_v20  ;;  %v7885_v23 = vld [vmem:[#allocation63_spill] sm:$0xff]  ;;  %v1841_v22 = vadd.f32 %v7891_v43, %v1812_v36  ;;  %v1934_v20 = vadd.f32 %v7895_v9, %v7894_v49  ;;  %v7896_v33 = vld [vmem:[#allocation41_spill] sm:$0xff]  ;;  %v7906_v43 = vld [vmem:[#allocation76_spill] sm:$0xff] }
 0x3e1   :  { %v3499_v2 = vadd.f32 %v3498_v61, %v3470_v31  ;;  %v6679_v30 = vpop.f32.mrf.mxu2  ;;  %v7881_v61 = vld [vmem:[#allocation67_spill] sm:$0xff]  ;;  %v2215_v54 = vadd.f32 %v7885_v23, %v2186_v44  ;;  %v7892_v44 = vld [vmem:[#allocation92_spill] sm:$0xff]  ;;  %v7898_v36 = vld [vmem:[#allocation37_spill] sm:$0xff] }
 0x3e2   :  { %v2343_v15 = vadd.f32 %v7881_v61, %v2314_v28  ;;  %v7887_v31 = vld [vmem:[#allocation91_spill] sm:$0xff]  ;;  %v1957_v28 = vadd.f32 %v7889_v53, %v1928_v7  ;;  %v7907_v49 = vld [vmem:[#allocation36_spill] sm:$0xff] }
 0x3e3   :  { %v3630_v63 = vadd.f32 %v3499_v2, %v2581_v32  ;;  %v6698_v48 = vpop.f32.mrf.mxu0  ;;  %v2378_v38 = vadd.f32 %v7887_v31, %v1989_v13  ;;  %v2604_v17 = vadd.f32 %v7888_v25, %v2215_v54  ;;  %v7890_v32 = vld [vmem:[#allocation77_spill] sm:$0xff]  ;;  %v3325_v2 = vadd.f32 %v6620_v55, %v6618_v21  ;;  %v7897_v55 = vld [vmem:[#allocation78_spill] sm:$0xff]  ;;  %v7900_v23 = vld [vmem:[#allocation27_spill] sm:$0xff] }
 0x3e4   :  { %v6700_v10 = vpop.f32.mrf.mxu1  ;;  %v3620_v1 = vadd.f32 %v6600_v52, %v2343_v15  ;;  %v2262_v50 = vadd.f32 %v7890_v32, %v1873_v18  ;;  %v1986_v7 = vadd.f32 %v7896_v33, %v1957_v28  ;;  %v3663_v21 = vmax.f32 %v6717_v12, 0.0  ;;  %v3836_v12 = vld [vmem:[%s7744_s5 + $0x108] sm:$0xff] }
 0x3e5   :  { %v6689_v47 = vadd.f32 %v6667_v42, %v3630_v63  ;;  %v2407_v39 = vadd.f32 %v7892_v44, %v2378_v38  ;;  %v2633_v63 = vadd.f32 %v7893_v24, %v2604_v17  ;;  %v3354_v46 = vadd.f32 %v6616_v51, %v3325_v2  ;;  %v7902_v38 = vld [vmem:[#allocation90_spill] sm:$0xff]  ;;  %v7903_v17 = vld [vmem:[#allocation108_spill] sm:$0xff] }
 0x3e6   :  { %v6725_v16 = vadd.f32 %v6706_v57, %v3620_v1  ;;  %v2291_v29 = vadd.f32 %v7897_v55, %v2262_v50  ;;  %v1818_v13 = vadd.f32 %v7899_v62, %v7898_v36  ;;  %v1870_v54 = vadd.f32 %v7900_v23, %v1841_v22  ;;  %v7901_v1 = vld [vmem:[#allocation87_spill] sm:$0xff]  ;;  %v7905_v50 = vld [vmem:[#allocation73_spill] sm:$0xff]  ;;  %v7912_v23 = vld [vmem:[#allocation62_spill] sm:$0xff] }
 0x3e7   :  { %v3672_v37 = vmax.f32 %v6689_v47, 0.0  ;;  %v2375_v56 = vadd.f32 %v7901_v1, %v1986_v7  ;;  %v2436_v25 = vadd.f32 %v7902_v38, %v2407_v39  ;;  %v2662_v53 = vadd.f32 %v7903_v17, %v2633_v63  ;;  %v7908_v39 = vld [vmem:[#allocation88_spill] sm:$0xff]  ;;  %v7909_v63 = vld [vmem:[#allocation89_spill] sm:$0xff]  ;;  %v7910_v7 = vld [vmem:[#allocation107_spill] sm:$0xff] }
 0x3e8   :  { %v3662_v31 = vmax.f32 %v6725_v16, 0.0  ;;  %v2259_v51 = vadd.f32 %v7905_v50, %v1870_v54  ;;  %v2320_v22 = vadd.f32 %v7906_v43, %v2291_v29  ;;  %v3383_v44 = vadd.f32 %v6614_v19, %v3354_v46  ;;  %v7911_v62 = vld [vmem:[#allocation61_spill] sm:$0xff]  ;;  %v7913_v54 = vld [vmem:[#allocation74_spill] sm:$0xff]  ;;  %v7915_v1 = vld [vmem:[#allocation56_spill] sm:$0xff] }
 0x3e9   :  { %v4917_v52 = vpack.i.bf16 %v3672_v37, %v3664_v0  ;;  %v1847_v9 = vadd.f32 %v7907_v49, %v1818_v13  ;;  %v2404_v33 = vadd.f32 %v7908_v39, %v2375_v56  ;;  %v2691_v55 = vadd.f32 %v7910_v7, %v2662_v53  ;;  %v7916_v56 = vld [vmem:[#allocation57_spill] sm:$0xff]  ;;  %v7917_v38 = vld [vmem:[#allocation75_spill] sm:$0xff]  ;;  %v7922_v39 = vld [vmem:[#allocation72_spill] sm:$0xff] }
 0x3ea   :  { %v4922_v2 = vpack.i.bf16 %v3663_v21, %v3662_v31  ;;  %v6756_v36 = vperm.slane %v6663_v40, 3  ;;  %v2050_v29 = vadd.f32 %v7912_v23, %v7911_v62  ;;  %v2288_v19 = vadd.f32 %v7913_v54, %v2259_v51  ;;  %v7918_v40 = vld [vmem:[#allocation86_spill] sm:$0xff]  ;;  %v7925_v23 = vld [vmem:[#allocation85_spill] sm:$0xff]  ;;  %v7926_v54 = vld [vmem:[#allocation96_spill] sm:$0xff] }
 0x3eb   :  { %4918 = vrot.lane.b32.xlu1 %v4917_v52, %s5207_s12  ;;  %v7904_v52 = vld [vmem:[#allocation50_spill] sm:$0xff]  ;;  %v4805_v47 = vld [vmem:[%s7744_s5 + $0x430] sm:$0xff] }
 0x3ec   :  { %v1963_v32 = vadd.f32 %v7904_v52, %v1934_v20  ;;  %v2465_v20 = vadd.f32 %v7909_v63, %v2436_v25  ;;  %v2349_v25 = vadd.f32 %v7917_v38, %v2320_v22  ;;  %v7919_v52 = vld [vmem:[#allocation95_spill] sm:$0xff]  ;;  %v7921_v22 = vld [vmem:[#allocation60_spill] sm:$0xff]  ;;  %v2317_v63 = vadd.f32 %v7922_v39, %v2288_v19  ;;  %v4740_v19 = vld [vmem:[%s7744_s5 + $0x238] sm:$0xff] }
 0x3ed   :  { %3942 = vmatpush.msrb.mxu0 %v4740_v19 }
 0x3ee   :  { %v3629_v17 = vadd.f32 %v3383_v44, %v2465_v20  ;;  %v2079_v44 = vadd.f32 %v7921_v22, %v2050_v29  ;;  %v7923_v20 = vld [vmem:[#allocation55_spill] sm:$0xff] }
 0x3f0   :  { %v3608_v61 = vpop.f32.mrf.mxu3  ;;  %v6786_v62 = vadd.f32 %v6692_v45, %v3629_v17  ;;  %v4755_v17 = vld [vmem:[%s7744_s5 + $0x2b0] sm:$0xff] }
 0x3f1   :  { %v3579_v15 = vpop.f32.mrf.mxu2 }
 0x3f3   :  { %v3521_v35 = vpop.f32.mrf.mxu0  ;;  %v3550_v18 = vpop.f32.mrf.mxu1  ;;  %4923 = vrot.lane.b32.xlu1 %v4922_v2, %s5207_s12 }
 0x3f4   :  { %v3551_v28 = vadd.f32 %v3550_v18, %v3521_v35  ;;  %v2044_v18 = vadd.f32 %v7916_v56, %v7915_v1  ;;  %v7927_v1 = vld [vmem:[#allocation71_spill] sm:$0xff] }
 0x3f5   :  { %v2346_v56 = vadd.f32 %v7927_v1, %v2317_v63  ;;  %v3444_v1 = vadd.f32 %v6700_v10, %v6698_v48  ;;  %v4772_v10 = vld [vmem:[%s7744_s5 + $0x338] sm:$0xff] }
 0x3f6   :  { %v3580_v24 = vadd.f32 %v3579_v15, %v3551_v28  ;;  %v7914_v15 = vld [vmem:[#allocation49_spill] sm:$0xff]  ;;  %v2433_v28 = vadd.f32 %v7918_v40, %v2404_v33  ;;  %v2073_v7 = vadd.f32 %v7923_v20, %v2044_v18  ;;  %v7928_v18 = vld [vmem:[#allocation59_spill] sm:$0xff]  ;;  %3982 = vmatpush.msrb.mxu2 %v4772_v10 }
 0x3f7   :  { %v1992_v46 = vadd.f32 %v7914_v15, %v1963_v32  ;;  %v7920_v32 = vld [vmem:[#allocation35_spill] sm:$0xff]  ;;  %v7924_v33 = vld [vmem:[#allocation81_spill] sm:$0xff]  ;;  %v2108_v38 = vadd.f32 %v7928_v18, %v2079_v44  ;;  %v3624_v63 = vadd.f32 %v6604_v27, %v2346_v56 }
 0x3f8   :  { %v3609_v35 = vadd.f32 %v3608_v61, %v3580_v24  ;;  %v6771_v2 = vpop.f32.mrf.mxu3  ;;  %v1876_v43 = vadd.f32 %v7920_v32, %v1847_v9  ;;  %v3628_v24 = vadd.f32 %v6606_v4, %v2349_v25  ;;  %v2462_v9 = vadd.f32 %v7925_v23, %v2433_v28  ;;  %v4756_v15 = vld [vmem:[%s7744_s5 + $0x2b8] sm:$0xff]  ;;  %v4737_v23 = vld [vmem:[%s7744_s5 + $0x220] sm:$0xff] }
 0x3f9   :  { %v2381_v50 = vadd.f32 %v7919_v52, %v1992_v46  ;;  %v4739_v46 = vld [vmem:[%s7744_s5 + $0x230] sm:$0xff]  ;;  %3962 = vmatpush.msrb.mxu1 %v4756_v15  ;;  %v7930_v28 = vld [vmem:[#allocation54_spill] sm:$0xff]  ;;  %v3671_v32 = vmax.f32 %v6786_v62, 0.0  ;;  %v6850_v48 = vadd.f32 %v6706_v57, %v3624_v63  ;;  %v7938_v63 = vld [vmem:[#allocation79_spill] sm:$0xff] }
 0x3fa   :  { %v6762_v13 = vpop.f32.mrf.mxu2  ;;  %v3623_v61 = vadd.f32 %v3609_v35, %v2691_v55  ;;  %v2265_v55 = vadd.f32 %v7924_v33, %v1876_v43  ;;  %v6794_v29 = vadd.f32 %v6706_v57, %v3628_v24  ;;  %v3625_v25 = vadd.f32 %v6612_v26, %v2462_v9  ;;  %v4738_v43 = vld [vmem:[%s7744_s5 + $0x228] sm:$0xff]  ;;  %v7931_v24 = vld [vmem:[#allocation94_spill] sm:$0xff]  ;;  %v7932_v44 = vld [vmem:[#allocation105_spill] sm:$0xff]  ;;  %3943 = vmatpush.msrb.mxu0 %v4739_v46 }
 0x3fb   :  { %v6767_v53 = vpop.f32.mrf.mxu0  ;;  %v6773_v51 = vpop.f32.mrf.mxu1  ;;  %v2410_v4 = vadd.f32 %v7926_v54, %v2381_v50  ;;  %v2102_v52 = vadd.f32 %v7930_v28, %v2073_v7  ;;  %v4754_v26 = vld [vmem:[%s7744_s5 + $0x2a8] sm:$0xff]  ;;  %v2497_v39 = vadd.f32 %v7932_v44, %v2108_v38  ;;  %3963 = vmatpush.msrb.mxu1 %v4755_v17  ;;  %v4753_v9 = vld [vmem:[%s7744_s5 + $0x2a0] sm:$0xff]  ;;  %v4736_v38 = vld [vmem:[%s7744_s5 + $0x218] sm:$0xff] }
 0x3fc   :  { %v6778_v49 = vadd.f32 %v6756_v36, %v3623_v61  ;;  %v7929_v61 = vld [vmem:[#allocation82_spill] sm:$0xff]  ;;  %v7933_v54 = vld [vmem:[#allocation99_spill] sm:$0xff]  ;;  %v6832_v27 = vadd.f32 %v6692_v45, %v3625_v25  ;;  %3944 = vmatpush.msrb.mxu0 %v4738_v43  ;;  %v7934_v15 = vld [vmem:[#allocation80_spill] sm:$0xff] }
 0x3fd   :  { %v2294_v40 = vadd.f32 %v7929_v61, %v2265_v55  ;;  %v2439_v22 = vadd.f32 %v7931_v24, %v2410_v4  ;;  %v3670_v55 = vmax.f32 %v6794_v29, 0.0  ;;  %v2491_v4 = vadd.f32 %v7933_v54, %v2102_v52  ;;  %3964 = vmatpush.msrb.mxu1 %v4754_v26  ;;  %v4752_v25 = vld [vmem:[%s7744_s5 + $0x298] sm:$0xff]  ;;  %v4735_v43 = vld [vmem:[%s7744_s5 + $0x210] sm:$0xff]  ;;  %v4750_v54 = vld [vmem:[%s7744_s5 + $0x288] sm:$0xff] }
 0x3fe   :  { %v3665_v35 = vmax.f32 %v6778_v49, 0.0  ;;  %v7935_v17 = vld [vmem:[#allocation93_spill] sm:$0xff]  ;;  %3945 = vmatpush.msrb.mxu0 %v4737_v23  ;;  %v3438_v52 = vadd.f32 %v6644_v11, %v6642_v59  ;;  %v3667_v11 = vmax.f32 %v6832_v27, 0.0  ;;  %v3855_v29 = vld [vmem:[%s7744_s5 + $0x1a0] sm:$0xff] }
 0x3ff   :  { %v2323_v46 = vadd.f32 %v7934_v15, %v2294_v40  ;;  %v4927_v18 = vpack.i.bf16 %v3671_v32, %v3670_v55  ;;  %v2468_v61 = vadd.f32 %v7935_v17, %v2439_v22  ;;  %v7936_v40 = vld [vmem:[#allocation106_spill] sm:$0xff]  ;;  %3965 = vmatpush.msrb.mxu1 %v4753_v9  ;;  %v4751_v26 = vld [vmem:[%s7744_s5 + $0x290] sm:$0xff] }
 0x400   :  { %3700 = vrot.lane.b32.xlu2 %v3665_v35, %s5207_s12  ;;  %v3614_v19 = vpop.f32.mrf.mxu3  ;;  %v2526_v28 = vadd.f32 %v7936_v40, %v2497_v39  ;;  %v4771_v24 = vld [vmem:[%s7744_s5 + $0x330] sm:$0xff]  ;;  %3946 = vmatpush.msrb.mxu0 %v4736_v38  ;;  %v4770_v39 = vld [vmem:[%s7744_s5 + $0x328] sm:$0xff]  ;;  %v7940_v38 = vld [vmem:[#allocation98_spill] sm:$0xff] }
 0x401   :  { %v7937_v22 = vld [vmem:[#allocation100_spill] sm:$0xff]  ;;  %v3633_v59 = vadd.f32 %v6622_v6, %v2468_v61  ;;  %3966 = vmatpush.msrb.mxu1 %v4752_v25  ;;  %3983 = vmatpush.msrb.mxu2 %v4771_v24  ;;  %v3839_v62 = vld [vmem:[%s7744_s5 + $0x120] sm:$0xff] }
 0x402   :  { %v3585_v20 = vpop.f32.mrf.mxu2  ;;  %v2520_v44 = vadd.f32 %v7937_v22, %v2491_v4  ;;  %v4734_v6 = vld [vmem:[%s7744_s5 + $0x208] sm:$0xff]  ;;  %3947 = vmatpush.msrb.mxu0 %v4735_v43  ;;  %v4825_v49 = vld [vmem:[%s7744_s5 + $0x4d0] sm:$0xff] }
 0x403   :  { %v3527_v50 = vpop.f32.mrf.mxu0  ;;  %v3556_v33 = vpop.f32.mrf.mxu1  ;;  %v7939_v4 = vld [vmem:[#allocation104_spill] sm:$0xff]  ;;  %3967 = vmatpush.msrb.mxu1 %v4751_v26  ;;  %3984 = vmatpush.msrb.mxu2 %v4770_v39  ;;  %v7942_v39 = vld [vmem:[#allocation97_spill] sm:$0xff] }
 0x404   :  { %v3557_v7 = vadd.f32 %v3556_v33, %v3527_v50  ;;  %v3473_v33 = vadd.f32 %v6679_v30, %v3444_v1  ;;  %v3666_v30 = vmax.f32 %v6850_v48, 0.0  ;;  %v2549_v25 = vadd.f32 %v7940_v38, %v2520_v44  ;;  %3948 = vmatpush.msrb.mxu0 %v4734_v6  ;;  %v4731_v44 = vld [vmem:[%s7744_s5 + $0x1f0] sm:$0xff]  ;;  %v4786_v48 = vld [vmem:[%s7744_s5 + $0x398] sm:$0xff] }
 0x405   :  { %3968 = vmatpush.msrb.mxu1 %v4750_v54  ;;  %v4833_v27 = vld [vmem:[%s7744_s5 + $0x510] sm:$0xff] }
 0x406   :  { %v3586_v56 = vadd.f32 %v3585_v20, %v3557_v7  ;;  %v2352_v20 = vadd.f32 %v7938_v63, %v2323_v46  ;;  %v3554_v7 = vadd.f32 %v6773_v51, %v6767_v53  ;;  %v3467_v51 = vadd.f32 %v6637_v3, %v3438_v52  ;;  %v4732_v52 = vld [vmem:[%s7744_s5 + $0x1f8] sm:$0xff]  ;;  %v4767_v63 = vld [vmem:[%s7744_s5 + $0x310] sm:$0xff] }
 0x407   :  { %v6906_v3 = vadd.f32 %v6692_v45, %v3633_v59  ;;  %v3502_v61 = vadd.f32 %v6677_v5, %v3473_v33  ;;  %v7941_v45 = vld [vmem:[#allocation103_spill] sm:$0xff]  ;;  %v4768_v5 = vld [vmem:[%s7744_s5 + $0x318] sm:$0xff]  ;;  %v4747_v59 = vld [vmem:[%s7744_s5 + $0x270] sm:$0xff] }
 0x408   :  { %v3615_v50 = vadd.f32 %v3614_v19, %v3586_v56  ;;  %4928 = vrot.lane.b32.xlu2 %v4927_v18, %s5207_s12  ;;  %v2555_v19 = vadd.f32 %v7939_v4, %v2526_v28  ;;  %v3632_v53 = vadd.f32 %v6608_v8, %v2352_v20  ;;  %v4733_v56 = vld [vmem:[%s7744_s5 + $0x200] sm:$0xff]  ;;  %v4937_v8 = vpack.i.bf16 %v3667_v11, %v3666_v30  ;;  %v3617_v26 = vpop.f32.mrf.mxu3 }
 0x409   :  { %v4749_v18 = vld [vmem:[%s7744_s5 + $0x280] sm:$0xff]  ;;  %v3583_v40 = vadd.f32 %v6762_v13, %v3554_v7  ;;  %3949 = vmatpush.msrb.mxu0 %v4733_v56  ;;  %v3496_v13 = vadd.f32 %v6635_v58, %v3467_v51  ;;  %v2578_v58 = vadd.f32 %v7942_v39, %v2549_v25  ;;  %v3675_v7 = vmax.f32 %v6906_v3, 0.0  ;;  %v4728_v51 = vld [vmem:[%s7744_s5 + $0x1d8] sm:$0xff] }
 0x40a   :  { %v3631_v9 = vadd.f32 %v3615_v50, %v6583_v34  ;;  %v4769_v34 = vld [vmem:[%s7744_s5 + $0x320] sm:$0xff]  ;;  %v3588_v17 = vpop.f32.mrf.mxu2  ;;  %v4748_v50 = vld [vmem:[%s7744_s5 + $0x278] sm:$0xff]  ;;  %v2584_v43 = vadd.f32 %v7941_v45, %v2555_v19  ;;  %3969 = vmatpush.msrb.mxu1 %v4749_v18  ;;  %v6927_v22 = vadd.f32 %v6706_v57, %v3632_v53  ;;  %v4743_v18 = vld [vmem:[%s7744_s5 + $0x250] sm:$0xff] }
 0x40b   :  { %v3530_v23 = vpop.f32.mrf.mxu0  ;;  %v3559_v15 = vpop.f32.mrf.mxu1  ;;  %3985 = vmatpush.msrb.mxu2 %v4769_v34  ;;  %3950 = vmatpush.msrb.mxu0 %v4732_v52  ;;  %v3612_v57 = vadd.f32 %v6771_v2, %v3583_v40  ;;  %v3626_v6 = vadd.f32 %v3496_v13, %v2578_v58  ;;  %v4745_v4 = vld [vmem:[%s7744_s5 + $0x260] sm:$0xff]  ;;  %v3818_v52 = vld [vmem:[%s7744_s5 + $0x78] sm:$0xff]  ;;  %v4766_v45 = vld [vmem:[%s7744_s5 + $0x308] sm:$0xff] }
 0x40c   :  { %v3560_v46 = vadd.f32 %v3559_v15, %v3530_v23  ;;  %v6892_v1 = vadd.f32 %v6756_v36, %v3631_v9  ;;  %3970 = vmatpush.msrb.mxu1 %v4748_v50  ;;  %v3634_v20 = vadd.f32 %v3502_v61, %v2584_v43  ;;  %v4730_v23 = vld [vmem:[%s7744_s5 + $0x1e8] sm:$0xff]  ;;  %v3674_v2 = vmax.f32 %v6927_v22, 0.0  ;;  %v4725_v61 = vld [vmem:[%s7744_s5 + $0x1c0] sm:$0xff]  ;;  %v3834_v50 = vld [vmem:[%s7744_s5 + $0xf8] sm:$0xff] }
 0x40d   :  { %v4746_v9 = vld [vmem:[%s7744_s5 + $0x268] sm:$0xff]  ;;  %3986 = vmatpush.msrb.mxu2 %v4768_v5  ;;  %3951 = vmatpush.msrb.mxu0 %v4731_v44  ;;  %v3627_v53 = vadd.f32 %v3612_v57, %v6569_v14  ;;  %v6978_v56 = vadd.f32 %v6667_v42, %v3626_v6  ;;  %v4727_v14 = vld [vmem:[%s7744_s5 + $0x1d0] sm:$0xff]  ;;  %v4765_v5 = vld [vmem:[%s7744_s5 + $0x300] sm:$0xff] }
 0x40e   :  { %v3589_v28 = vadd.f32 %v3588_v17, %v3560_v46  ;;  %v3673_v10 = vmax.f32 %v6892_v1, 0.0  ;;  %3971 = vmatpush.msrb.mxu1 %v4747_v59  ;;  %v4932_v15 = vpack.i.bf16 %v3675_v7, %v3674_v2  ;;  %v6964_v34 = vadd.f32 %v6667_v42, %v3634_v20  ;;  %v4744_v46 = vld [vmem:[%s7744_s5 + $0x258] sm:$0xff]  ;;  %v4726_v42 = vld [vmem:[%s7744_s5 + $0x1c8] sm:$0xff]  ;;  %v3817_v43 = vld [vmem:[%s7744_s5 + $0x70] sm:$0xff] }
 0x40f   :  { %3987 = vmatpush.msrb.mxu2 %v4767_v63  ;;  %3952 = vmatpush.msrb.mxu0 %v4730_v23  ;;  %v6988_v25 = vadd.f32 %v6756_v36, %v3627_v53  ;;  %v4742_v17 = vld [vmem:[%s7744_s5 + $0x248] sm:$0xff]  ;;  %v4764_v44 = vld [vmem:[%s7744_s5 + $0x2f8] sm:$0xff]  ;;  %v3815_v59 = vld [vmem:[%s7744_s5 + $0x60] sm:$0xff] }
 0x410   :  { %v3618_v24 = vadd.f32 %v3617_v26, %v3589_v28  ;;  %3716 = vrot.lane.b32.xlu0 %v3673_v10, %s5207_s12  ;;  %4938 = vrot.lane.b32.xlu2 %v4937_v8, %s5207_s12  ;;  %v3676_v38 = vmax.f32 %v6964_v34, 0.0  ;;  %v3668_v8 = vmax.f32 %v6978_v56, 0.0  ;;  %v3833_v26 = vld [vmem:[%s7744_s5 + $0xf0] sm:$0xff]  ;;  %v3816_v13 = vld [vmem:[%s7744_s5 + $0x68] sm:$0xff] }
 0x411   :  { %3972 = vmatpush.msrb.mxu1 %v4746_v9  ;;  %v3669_v28 = vmax.f32 %v6988_v25, 0.0  ;;  %3988 = vmatpush.msrb.mxu2 %v4766_v45  ;;  %v3831_v39 = vld [vmem:[%s7744_s5 + $0xe0] sm:$0xff]  ;;  %v4763_v58 = vld [vmem:[%s7744_s5 + $0x2f0] sm:$0xff]  ;;  %v3814_v63 = vld [vmem:[%s7744_s5 + $0x58] sm:$0xff] }
 0x412   :  { %v3635_v33 = vadd.f32 %v3618_v24, %v6593_v41  ;;  %v4729_v41 = vld [vmem:[%s7744_s5 + $0x1e0] sm:$0xff]  ;;  %v4942_v40 = vpack.i.bf16 %v3676_v38, %v3668_v8  ;;  %v3832_v24 = vld [vmem:[%s7744_s5 + $0xe8] sm:$0xff]  ;;  %v3830_v20 = vld [vmem:[%s7744_s5 + $0xd8] sm:$0xff] }
 0x413   :  { %3953 = vmatpush.msrb.mxu0 %v4729_v41  ;;  %3973 = vmatpush.msrb.mxu1 %v4745_v4  ;;  %v4762_v57 = vld [vmem:[%s7744_s5 + $0x2e8] sm:$0xff]  ;;  %v3829_v23 = vld [vmem:[%s7744_s5 + $0xd0] sm:$0xff]  ;;  %v4761_v9 = vld [vmem:[%s7744_s5 + $0x2e0] sm:$0xff] }
 0x414   :  { %v6949_v54 = vadd.f32 %v6756_v36, %v3635_v33  ;;  %v4741_v36 = vld [vmem:[%s7744_s5 + $0x240] sm:$0xff]  ;;  %3989 = vmatpush.msrb.mxu2 %v4765_v5  ;;  %v3813_v33 = vld [vmem:[%s7744_s5 + $0x50] sm:$0xff]  ;;  %v3812_v6 = vld [vmem:[%s7744_s5 + $0x48] sm:$0xff] }
 0x415   :  { %3954 = vmatpush.msrb.mxu0 %v4728_v51  ;;  %3974 = vmatpush.msrb.mxu1 %v4744_v46  ;;  %v3828_v41 = vld [vmem:[%s7744_s5 + $0xc8] sm:$0xff]  ;;  %v4760_v4 = vld [vmem:[%s7744_s5 + $0x2d8] sm:$0xff]  ;;  %v3827_v53 = vld [vmem:[%s7744_s5 + $0xc0] sm:$0xff] }
 0x416   :  { %v3677_v19 = vmax.f32 %v6949_v54, 0.0  ;;  %3990 = vmatpush.msrb.mxu2 %v4764_v44  ;;  %v4759_v51 = vld [vmem:[%s7744_s5 + $0x2d0] sm:$0xff]  ;;  %v3810_v46 = vld [vmem:[%s7744_s5 + $0x38] sm:$0xff]  ;;  %v4884_v22 = vld [vmem:[%s7744_s5 + $0x6a0] sm:$0xff] }
 0x417   :  { %3955 = vmatpush.msrb.mxu0 %v4727_v14  ;;  %3975 = vmatpush.msrb.mxu1 %v4743_v18  ;;  %v3826_v14 = vld [vmem:[%s7744_s5 + $0xb8] sm:$0xff]  ;;  %v4758_v18 = vld [vmem:[%s7744_s5 + $0x2c8] sm:$0xff]  ;;  %v4779_v45 = vld [vmem:[%s7744_s5 + $0x370] sm:$0xff] }
 0x418   :  { %3724 = vrot.lane.b32.xlu1 %v3677_v19, %s5207_s12  ;;  %4933 = vrot.lane.b32.xlu0 %v4932_v15, %s5207_s12  ;;  %v3811_v15 = vld [vmem:[%s7744_s5 + $0x40] sm:$0xff]  ;;  %v3849_v5 = vld [vmem:[%s7744_s5 + $0x170] sm:$0xff] }
 0x419   :  { %3956 = vmatpush.msrb.mxu0 %v4726_v42  ;;  %3976 = vmatpush.msrb.mxu1 %v4742_v17  ;;  %v3809_v42 = vld [vmem:[%s7744_s5 + $0x30] sm:$0xff]  ;;  %v3822_v44 = vld [vmem:[%s7744_s5 + $0x98] sm:$0xff] }
 0x41a   :  { %3991 = vmatpush.msrb.mxu2 %v4763_v58  ;;  %v3825_v17 = vld [vmem:[%s7744_s5 + $0xb0] sm:$0xff]  ;;  %v4887_v56 = vld [vmem:[%s7744_s5 + $0x6b8] sm:$0xff] }
 0x41b   :  { %3957 = vmatpush.msrb.mxu0 %v4725_v61  ;;  %3977 = vmatpush.msrb.mxu1 %v4741_v36  ;;  %v4757_v61 = vld [vmem:[%s7744_s5 + $0x2c0] sm:$0xff]  ;;  %v4780_v36 = vld [vmem:[%s7744_s5 + $0x378] sm:$0xff]  ;;  %v3805_v58 = vld [vmem:[%s7744_s5 + $0x10] sm:$0xff] }
 0x41c   :  { %3992 = vmatpush.msrb.mxu2 %v4762_v57  ;;  %4010 = vmatpush.msrb.mxu3 %v4780_v36 }
 0x41d   :  { %4035 = vmatpush.msra.mxu0 %v3818_v52  ;;  %4055 = vmatpush.msra.mxu1 %v3834_v50  ;;  %v3824_v52 = vld [vmem:[%s7744_s5 + $0xa8] sm:$0xff]  ;;  %v3850_v50 = vld [vmem:[%s7744_s5 + $0x178] sm:$0xff] }
 0x41e   :  { %3993 = vmatpush.msrb.mxu2 %v4761_v9  ;;  %4011 = vmatpush.msrb.mxu3 %v4779_v45  ;;  %v3820_v9 = vld [vmem:[%s7744_s5 + $0x88] sm:$0xff]  ;;  %v3857_v45 = vld [vmem:[%s7744_s5 + $0x1b0] sm:$0xff] }
 0x41f   :  { %4036 = vmatpush.msra.mxu0 %v3817_v43  ;;  %4056 = vmatpush.msra.mxu1 %v3833_v26  ;;  %v3807_v43 = vld [vmem:[%s7744_s5 + $0x20] sm:$0xff] }
 0x420   :  { %4943 = vrot.lane.b32.xlu1 %v4942_v40, %s5207_s12  ;;  %3708 = vrot.lane.b32.xlu0 %v3669_v28, %s5207_s12  ;;  %v3808_v40 = vld [vmem:[%s7744_s5 + $0x28] sm:$0xff]  ;;  %v3823_v26 = vld [vmem:[%s7744_s5 + $0xa0] sm:$0xff] }
 0x421   :  { %4037 = vmatpush.msra.mxu0 %v3816_v13  ;;  %4057 = vmatpush.msra.mxu1 %v3832_v24  ;;  %v4778_v13 = vld [vmem:[%s7744_s5 + $0x368] sm:$0xff]  ;;  %v3806_v24 = vld [vmem:[%s7744_s5 + $0x18] sm:$0xff] }
 0x422   :  { %3994 = vmatpush.msrb.mxu2 %v4760_v4  ;;  %4012 = vmatpush.msrb.mxu3 %v4778_v13  ;;  %v3803_v4 = vld [vmem:[%s7744_s5] sm:$0xff]  ;;  %v3856_v13 = vld [vmem:[%s7744_s5 + $0x1a8] sm:$0xff] }
 0x423   :  { %4038 = vmatpush.msra.mxu0 %v3815_v59  ;;  %4058 = vmatpush.msra.mxu1 %v3831_v39  ;;  %v3848_v59 = vld [vmem:[%s7744_s5 + $0x168] sm:$0xff]  ;;  %v4777_v39 = vld [vmem:[%s7744_s5 + $0x360] sm:$0xff] }
 0x424   :  { %3995 = vmatpush.msrb.mxu2 %v4759_v51  ;;  %4013 = vmatpush.msrb.mxu3 %v4777_v39  ;;  %v4774_v51 = vld [vmem:[%s7744_s5 + $0x348] sm:$0xff] }
 0x425   :  { %4039 = vmatpush.msra.mxu0 %v3814_v63  ;;  %4059 = vmatpush.msra.mxu1 %v3830_v20  ;;  %v3821_v63 = vld [vmem:[%s7744_s5 + $0x90] sm:$0xff]  ;;  %v3847_v20 = vld [vmem:[%s7744_s5 + $0x160] sm:$0xff] }
 0x426   :  { %3996 = vmatpush.msrb.mxu2 %v4758_v18 }
 0x427   :  { %4040 = vmatpush.msra.mxu0 %v3813_v33  ;;  %4060 = vmatpush.msra.mxu1 %v3829_v23  ;;  %v4776_v33 = vld [vmem:[%s7744_s5 + $0x358] sm:$0xff]  ;;  %v3804_v23 = vld [vmem:[%s7744_s5 + $0x8] sm:$0xff] }
 0x428   :  { %3997 = vmatpush.msrb.mxu2 %v4757_v61  ;;  %4014 = vmatpush.msrb.mxu3 %v4776_v33 }
 0x429   :  { %4041 = vmatpush.msra.mxu0 %v3812_v6  ;;  %4061 = vmatpush.msra.mxu1 %v3828_v41  ;;  %v3846_v6 = vld [vmem:[%s7744_s5 + $0x158] sm:$0xff]  ;;  %v4775_v41 = vld [vmem:[%s7744_s5 + $0x350] sm:$0xff] }
 0x42a   :  { %4075 = vmatpush.msra.mxu2 %v3850_v50  ;;  %4015 = vmatpush.msrb.mxu3 %v4775_v41  ;;  %v3842_v50 = vld [vmem:[%s7744_s5 + $0x138] sm:$0xff]  ;;  %v3853_v41 = vld [vmem:[%s7744_s5 + $0x190] sm:$0xff] }
 0x42b   :  { %4042 = vmatpush.msra.mxu0 %v3811_v15  ;;  %4062 = vmatpush.msra.mxu1 %v3827_v53  ;;  %v3819_v15 = vld [vmem:[%s7744_s5 + $0x80] sm:$0xff]  ;;  %v3845_v53 = vld [vmem:[%s7744_s5 + $0x150] sm:$0xff] }
 0x42c   :  { %4076 = vmatpush.msra.mxu2 %v3849_v5  ;;  %4016 = vmatpush.msrb.mxu3 %v4774_v51  ;;  %v3841_v5 = vld [vmem:[%s7744_s5 + $0x130] sm:$0xff]  ;;  %v3852_v51 = vld [vmem:[%s7744_s5 + $0x188] sm:$0xff] }
 0x42d   :  { %4043 = vmatpush.msra.mxu0 %v3810_v46  ;;  %4063 = vmatpush.msra.mxu1 %v3826_v14  ;;  %v3844_v46 = vld [vmem:[%s7744_s5 + $0x148] sm:$0xff]  ;;  %v4773_v14 = vld [vmem:[%s7744_s5 + $0x340] sm:$0xff] }
 0x42e   :  { %4077 = vmatpush.msra.mxu2 %v3848_v59  ;;  %4017 = vmatpush.msrb.mxu3 %v4773_v14  ;;  %v3840_v59 = vld [vmem:[%s7744_s5 + $0x128] sm:$0xff] }
 0x42f   :  { %4044 = vmatpush.msra.mxu0 %v3809_v42  ;;  %4064 = vmatpush.msra.mxu1 %v3825_v17  ;;  %v3843_v42 = vld [vmem:[%s7744_s5 + $0x140] sm:$0xff]  ;;  %v3858_v17 = vld [vmem:[%s7744_s5 + $0x1b8] sm:$0xff] }
 0x430   :  { %4078 = vmatpush.msra.mxu2 %v3847_v20  ;;  %4103 = vmatpush.msra.mxu3 %v3858_v17 }
 0x431   :  { %4045 = vmatpush.msra.mxu0 %v3808_v40  ;;  %4065 = vmatpush.msra.mxu1 %v3824_v52 }
 0x432   :  { %4079 = vmatpush.msra.mxu2 %v3846_v6  ;;  %4104 = vmatpush.msra.mxu3 %v3857_v45  ;;  %v3838_v6 = vld [vmem:[%s7744_s5 + $0x118] sm:$0xff]  ;;  %v3835_v45 = vld [vmem:[%s7744_s5 + $0x100] sm:$0xff] }
 0x433   :  { %4046 = vmatpush.msra.mxu0 %v3807_v43  ;;  %4066 = vmatpush.msra.mxu1 %v3823_v26 }
 0x434   :  { %4080 = vmatpush.msra.mxu2 %v3845_v53  ;;  %4105 = vmatpush.msra.mxu3 %v3856_v13  ;;  %v3837_v53 = vld [vmem:[%s7744_s5 + $0x110] sm:$0xff] }
 0x435   :  { %4047 = vmatpush.msra.mxu0 %v3806_v24  ;;  %4067 = vmatpush.msra.mxu1 %v3822_v44 }
 0x436   :  { %4081 = vmatpush.msra.mxu2 %v3844_v46  ;;  %4106 = vmatpush.msra.mxu3 %v3855_v29 }
 0x437   :  { %4048 = vmatpush.msra.mxu0 %v3805_v58  ;;  %4068 = vmatpush.msra.mxu1 %v3821_v63 }
 0x438   :  { %4082 = vmatpush.msra.mxu2 %v3843_v42 }
 0x439   :  { %4049 = vmatpush.msra.mxu0 %v3804_v23  ;;  %4069 = vmatpush.msra.mxu1 %v3820_v9 }
 0x43a   :  { %4083 = vmatpush.msra.mxu2 %v3842_v50 }
 0x43b   :  { %4050 = vmatpush.msra.mxu0 %v3803_v4  ;;  %4070 = vmatpush.msra.mxu1 %v3819_v15 }
 0x43c   :  { %4084 = vmatpush.msra.mxu2 %v3841_v5 }
 0x43e   :  { %4085 = vmatpush.msra.mxu2 %v3840_v59  ;;  %v4812_v59 = vld [vmem:[%s7744_s5 + $0x468] sm:$0xff] }
 0x440   :  { %4086 = vmatpush.msra.mxu2 %v3839_v62  ;;  %v4810_v62 = vld [vmem:[%s7744_s5 + $0x458] sm:$0xff] }
 0x442   :  { %4087 = vmatpush.msra.mxu2 %v3838_v6 }
 0x444   :  { %4088 = vmatpush.msra.mxu2 %v3837_v53  ;;  %v4823_v53 = vld [vmem:[%s7744_s5 + $0x4c0] sm:$0xff] }
 0x446   :  { %4089 = vmatpush.msra.mxu2 %v3836_v12 }
 0x448   :  { %4090 = vmatpush.msra.mxu2 %v3835_v45 }
 0x45a   :  { %v7150_v57 = vpop.permute.xlu2 %3700 }
 0x45d   :  { %v7185_v18 = vpop.permute.xlu1 %4918 }
 0x45e   :  { %v4921_v36 = vunpack.i.h.bf16 %v7185_v18  ;;  %v4920_v58 = vunpack.i.l.bf16 %v7185_v18 }
 0x460   :  { %v3729_v29 = vsel %vm3726_vm8, %v4920_v58, %v7150_v57 }
 0x461   :  { %v3757_v6 = vmax.f32 %v3664_v0, %v3729_v29  ;;  %v4796_v29 = vld [vmem:[%s7744_s5 + $0x3e8] sm:$0xff] }
 0x462   :  { %v4929_v61 = vpop.permute.xlu2 %4928 }
 0x463   :  { %v4931_v40 = vunpack.i.h.bf16 %v4929_v61  ;;  %v4930_v52 = vunpack.i.l.bf16 %v4929_v61 }
 0x465   :  { %v3733_v43 = vsel %vm3726_vm8, %v4930_v52, %v4931_v40  ;;  %v3734_v26 = vsel %vm3726_vm8, %v4931_v40, %v4921_v36  ;;  %v4924_v39 = vpop.permute.xlu1 %4923 }
 0x466   :  { %v3763_v24 = vmax.f32 %v3670_v55, %v3733_v43  ;;  %v3764_v44 = vmax.f32 %v3671_v32, %v3734_v26  ;;  %v4926_v63 = vunpack.i.h.bf16 %v4924_v39  ;;  %v4925_v20 = vunpack.i.l.bf16 %v4924_v39  ;;  %v3854_v32 = vld [vmem:[%s7744_s5 + $0x198] sm:$0xff]  ;;  %v4828_v39 = vld [vmem:[%s7744_s5 + $0x4e8] sm:$0xff] }
 0x467   :  { %4107 = vmatpush.msra.mxu3 %v3854_v32  ;;  %v4814_v43 = vld [vmem:[%s7744_s5 + $0x478] sm:$0xff] }
 0x468   :  { %v3783_v55 = vrot.slane %v3763_v24, 2  ;;  %v3784_v33 = vrot.slane %v3764_v44, 2  ;;  %v3728_v23 = vsel %vm3726_vm8, %v4926_v63, %v4920_v58  ;;  %v3727_v9 = vsel %vm3726_vm8, %v4925_v20, %v4926_v63  ;;  %v4830_v26 = vld [vmem:[%s7744_s5 + $0x4f8] sm:$0xff]  ;;  %v4811_v63 = vld [vmem:[%s7744_s5 + $0x460] sm:$0xff] }
 0x469   :  { %v3756_v4 = vmax.f32 %v3663_v21, %v3728_v23  ;;  %v3755_v15 = vmax.f32 %v3662_v31, %v3727_v9  ;;  %4108 = vmatpush.msra.mxu3 %v3853_v41  ;;  %v3851_v31 = vld [vmem:[%s7744_s5 + $0x180] sm:$0xff]  ;;  %v4826_v32 = vld [vmem:[%s7744_s5 + $0x4d8] sm:$0xff]  ;;  %v3758_v23 = vmax.f32 %v3665_v35, %v7150_v57  ;;  %v4809_v41 = vld [vmem:[%s7744_s5 + $0x450] sm:$0xff]  ;;  %v3781_v57 = vrot.slane %v3757_v6, 2 }
 0x46a   :  { %v3799_v46 = vmax.f32 %v3763_v24, %v3783_v55  ;;  %v3800_v14 = vmax.f32 %v3764_v44, %v3784_v33  ;;  %v4813_v24 = vld [vmem:[%s7744_s5 + $0x470] sm:$0xff]  ;;  %v4827_v20 = vld [vmem:[%s7744_s5 + $0x4e0] sm:$0xff]  ;;  %v4808_v35 = vld [vmem:[%s7744_s5 + $0x448] sm:$0xff] }
 0x46b   :  { %v3780_v42 = vrot.slane %v3756_v4, 2  ;;  %v3779_v17 = vrot.slane %v3755_v15, 2  ;;  %4109 = vmatpush.msra.mxu3 %v3852_v51  ;;  %v4829_v44 = vld [vmem:[%s7744_s5 + $0x4f0] sm:$0xff]  ;;  %v3782_v0 = vrot.slane %v3758_v23, 2  ;;  %v7328_v1 = vmax.f32 %v3757_v6, %v3781_v57  ;;  %v4794_v57 = vld [vmem:[%s7744_s5 + $0x3d8] sm:$0xff] }
 0x46c   :  { %v3925_v40 = vrot.slane %v3799_v46, 3  ;;  %v3929_v50 = vrot.slane %v3800_v14, 3  ;;  %v4022_v55 = vrot.slane %v3799_v46, 7  ;;  %v4024_v33 = vrot.slane %v3800_v14, 7  ;;  %v4817_v6 = vld [vmem:[%s7744_s5 + $0x490] sm:$0xff] }
 0x46d   :  { %v3796_v16 = vmax.f32 %v3756_v4, %v3780_v42  ;;  %v3795_v21 = vmax.f32 %v3755_v15, %v3779_v17  ;;  %4110 = vmatpush.msra.mxu3 %v3851_v31  ;;  %v4807_v15 = vld [vmem:[%s7744_s5 + $0x440] sm:$0xff]  ;;  %v4806_v42 = vld [vmem:[%s7744_s5 + $0x438] sm:$0xff]  ;;  %v7326_v12 = vmax.f32 %v3758_v23, %v3782_v0  ;;  %v4820_v31 = vld [vmem:[%s7744_s5 + $0x4a8] sm:$0xff] }
 0x46e   :  { %v4822_v17 = vld [vmem:[%s7744_s5 + $0x4b8] sm:$0xff]  ;;  %v4801_v23 = vld [vmem:[%s7744_s5 + $0x410] sm:$0xff] }
 0x46f   :  { %v3924_v61 = vrot.slane %v3795_v21, 4  ;;  %v3928_v52 = vrot.slane %v3796_v16, 4  ;;  %v4023_v58 = vsel %vm3926_vm9, %v4022_v55, %v3795_v21  ;;  %v4025_v9 = vsel %vm3926_vm9, %v4024_v33, %v3796_v16  ;;  %v4804_v21 = vld [vmem:[%s7744_s5 + $0x428] sm:$0xff]  ;;  %v4818_v55 = vld [vmem:[%s7744_s5 + $0x498] sm:$0xff]  ;;  %v7376_v33 = vpop.permute.xlu2 %4938 }
 0x471   :  { %v3927_v5 = vsel %vm3926_vm9, %v3925_v40, %v3924_v61  ;;  %v3930_v13 = vsel %vm3926_vm9, %v3929_v50, %v3928_v52  ;;  %v3934_v61 = vrot.slane %v7326_v12, 4 }
 0x472   :  { %3958 = vmatmul.f32.vlgmr.msrb.gmra.mxu0 %v3927_v5  ;;  %3978 = vmatmul.f32.vlgmr.msrb.gmra.mxu1 %v3930_v13  ;;  %v4838_v13 = vld [vmem:[%s7744_s5 + $0x538] sm:$0xff] }
 0x473   :  { %4245 = vmatpush.msrb.mxu0 %v4814_v43  ;;  %4265 = vmatpush.msrb.mxu1 %v4830_v26  ;;  %v4798_v43 = vld [vmem:[%s7744_s5 + $0x3f8] sm:$0xff]  ;;  %v3931_v26 = vrot.slane %v7328_v1, 4 }
 0x475   :  { %4246 = vmatpush.msrb.mxu0 %v4813_v24  ;;  %4266 = vmatpush.msrb.mxu1 %v4829_v44  ;;  %v4803_v24 = vld [vmem:[%s7744_s5 + $0x420] sm:$0xff] }
 0x477   :  { %4247 = vmatpush.msrb.mxu0 %v4812_v59  ;;  %4267 = vmatpush.msrb.mxu1 %v4828_v39  ;;  %v4797_v59 = vld [vmem:[%s7744_s5 + $0x3f0] sm:$0xff]  ;;  %v4819_v39 = vld [vmem:[%s7744_s5 + $0x4a0] sm:$0xff] }
 0x479   :  { %4248 = vmatpush.msrb.mxu0 %v4811_v63  ;;  %4268 = vmatpush.msrb.mxu1 %v4827_v20  ;;  %v4837_v63 = vld [vmem:[%s7744_s5 + $0x530] sm:$0xff]  ;;  %v4802_v20 = vld [vmem:[%s7744_s5 + $0x418] sm:$0xff] }
 0x47a   :  { %4051 = vmatmul.f32.vlgmr.msra.gmra.mxu0 %v4023_v58  ;;  %4071 = vmatmul.f32.vlgmr.msra.gmra.mxu1 %v4025_v9  ;;  %v4795_v9 = vld [vmem:[%s7744_s5 + $0x3e0] sm:$0xff] }
 0x47b   :  { %4249 = vmatpush.msrb.mxu0 %v4810_v62  ;;  %4269 = vmatpush.msrb.mxu1 %v4826_v32  ;;  %v4836_v32 = vld [vmem:[%s7744_s5 + $0x528] sm:$0xff] }
 0x47d   :  { %4250 = vmatpush.msrb.mxu0 %v4809_v41  ;;  %4270 = vmatpush.msrb.mxu1 %v4825_v49  ;;  %v4835_v41 = vld [vmem:[%s7744_s5 + $0x520] sm:$0xff]  ;;  %v4941_v49 = vunpack.i.h.bf16 %v7376_v33 }
 0x47f   :  { %4251 = vmatpush.msrb.mxu0 %v4808_v35  ;;  %4271 = vmatpush.msrb.mxu1 %v4824_v60 }
 0x481   :  { %4252 = vmatpush.msrb.mxu0 %v4807_v15  ;;  %4272 = vmatpush.msrb.mxu1 %v4823_v53 }
 0x482   :  { %v3717_v4 = vpop.permute.xlu0 %3716 }
 0x483   :  { %v3735_v51 = vsel %vm3726_vm8, %v4921_v36, %v3717_v4  ;;  %v3766_v46 = vmax.f32 %v3673_v10, %v3717_v4  ;;  %4253 = vmatpush.msrb.mxu0 %v4806_v42  ;;  %4273 = vmatpush.msrb.mxu1 %v4822_v17 }
 0x484   :  { %v3765_v14 = vmax.f32 %v3672_v37, %v3735_v51  ;;  %v4821_v37 = vld [vmem:[%s7744_s5 + $0x4b0] sm:$0xff] }
 0x485   :  { %v3786_v18 = vrot.slane %v3766_v46, 2  ;;  %4254 = vmatpush.msrb.mxu0 %v4805_v47  ;;  %4274 = vmatpush.msrb.mxu1 %v4821_v37 }
 0x486   :  { %v3785_v10 = vrot.slane %v3765_v14, 2 }
 0x487   :  { %v3802_v36 = vmax.f32 %v3766_v46, %v3786_v18  ;;  %4255 = vmatpush.msrb.mxu0 %v4804_v21  ;;  %4275 = vmatpush.msrb.mxu1 %v4820_v31  ;;  %v4800_v46 = vld [vmem:[%s7744_s5 + $0x408] sm:$0xff]  ;;  %v4793_v18 = vld [vmem:[%s7744_s5 + $0x3d0] sm:$0xff] }
 0x488   :  { %v3801_v16 = vmax.f32 %v3765_v14, %v3785_v10  ;;  %v4816_v14 = vld [vmem:[%s7744_s5 + $0x488] sm:$0xff] }
 0x489   :  { %v3935_v40 = vrot.slane %v3802_v36, 3  ;;  %4256 = vmatpush.msrb.mxu0 %v4803_v24  ;;  %v4028_v62 = vrot.slane %v3802_v36, 7  ;;  %4276 = vmatpush.msrb.mxu1 %v4819_v39  ;;  %v4799_v36 = vld [vmem:[%s7744_s5 + $0x400] sm:$0xff]  ;;  %v4832_v31 = vld [vmem:[%s7744_s5 + $0x508] sm:$0xff]  ;;  %v4790_v39 = vld [vmem:[%s7744_s5 + $0x3b8] sm:$0xff] }
 0x48a   :  { %v3932_v52 = vrot.slane %v3801_v16, 3  ;;  %v3725_v50 = vpop.permute.xlu1 %3724  ;;  %v7343_v45 = vpop.permute.xlu0 %4933  ;;  %v4026_v58 = vrot.slane %v3801_v16, 7  ;;  %v4815_v16 = vld [vmem:[%s7744_s5 + $0x480] sm:$0xff] }
 0x48b   :  { %v3936_v5 = vsel %vm3926_vm9, %v3935_v40, %v3934_v61  ;;  %4257 = vmatpush.msrb.mxu0 %v4802_v20  ;;  %4277 = vmatpush.msrb.mxu1 %v4818_v55  ;;  %v3770_v35 = vmax.f32 %v3677_v19, %v3725_v50  ;;  %v4936_v4 = vunpack.i.h.bf16 %v7343_v45  ;;  %v4029_v51 = vsel %vm3926_vm9, %v4028_v62, %v7326_v12  ;;  %v4834_v12 = vld [vmem:[%s7744_s5 + $0x518] sm:$0xff]  ;;  %v4831_v24 = vld [vmem:[%s7744_s5 + $0x500] sm:$0xff]  ;;  %v4885_v55 = vld [vmem:[%s7744_s5 + $0x6a8] sm:$0xff] }
 0x48c   :  { %4781 = vmatmul.msk.f32.vlgmr.msrb.gmra.mxu3 %vm3726_vm8, %v3936_v5  ;;  %v3933_v44 = vsel %vm3926_vm9, %v3932_v52, %v3931_v26  ;;  %v4027_v19 = vsel %vm3926_vm9, %v4026_v58, %v7328_v1  ;;  %v4935_v21 = vunpack.i.l.bf16 %v7343_v45  ;;  %v4791_v45 = vld [vmem:[%s7744_s5 + $0x3c0] sm:$0xff]  ;;  %v4940_v20 = vunpack.i.l.bf16 %v7376_v33  ;;  %v4893_v62 = vld [vmem:[%s7744_s5 + $0x6e8] sm:$0xff]  ;;  %v4883_v33 = vld [vmem:[%s7744_s5 + $0x698] sm:$0xff] }
 0x48d   :  { %4225 = vmatpush.msrb.mxu3 %v4798_v43  ;;  %3998 = vmatmul.f32.vlgmr.msrb.gmra.mxu2 %v3933_v44  ;;  %v4130_v1 = vrot.slane %v3770_v35, 2  ;;  %v4886_v43 = vld [vmem:[%s7744_s5 + $0x6b0] sm:$0xff] }
 0x48e   :  { %4293 = vmatpush.msrb.mxu2 %v4838_v13  ;;  %4258 = vmatpush.msrb.mxu0 %v4801_v23  ;;  %v3736_v26 = vsel %vm3726_vm8, %v4935_v21, %v4936_v4  ;;  %v4894_v13 = vld [vmem:[%s7744_s5 + $0x6f0] sm:$0xff] }
 0x48f   :  { %4226 = vmatpush.msrb.mxu3 %v4797_v59  ;;  %4278 = vmatpush.msrb.mxu1 %v4817_v6  ;;  %v7455_v61 = vmax.f32 %v3770_v35, %v4130_v1  ;;  %v3767_v23 = vmax.f32 %v3674_v2, %v3736_v26  ;;  %v4892_v35 = vld [vmem:[%s7744_s5 + $0x6e0] sm:$0xff]  ;;  %v4850_v1 = vld [vmem:[%s7744_s5 + $0x590] sm:$0xff]  ;;  %v4869_v26 = vld [vmem:[%s7744_s5 + $0x628] sm:$0xff] }
 0x490   :  { %4294 = vmatpush.msrb.mxu2 %v4837_v63  ;;  %4259 = vmatpush.msrb.mxu0 %v4800_v46  ;;  %v4855_v63 = vld [vmem:[%s7744_s5 + $0x5b8] sm:$0xff]  ;;  %v4882_v46 = vld [vmem:[%s7744_s5 + $0x690] sm:$0xff] }
 0x491   :  { %4227 = vmatpush.msrb.mxu3 %v4796_v29  ;;  %4279 = vmatpush.msrb.mxu1 %v4816_v14  ;;  %v4890_v14 = vld [vmem:[%s7744_s5 + $0x6d0] sm:$0xff] }
 0x492   :  { %4295 = vmatpush.msrb.mxu2 %v4836_v32  ;;  %v4944_v60 = vpop.permute.xlu1 %4943  ;;  %v3709_v0 = vpop.permute.xlu0 %3708  ;;  %4260 = vmatpush.msrb.mxu0 %v4799_v36  ;;  %v4218_v32 = vrot.slane %v7455_v61, 7  ;;  %v4373_v36 = vrot.slane %v7455_v61, 3  ;;  %v4877_v61 = vld [vmem:[%s7744_s5 + $0x668] sm:$0xff] }
 0x493   :  { %4228 = vmatpush.msrb.mxu3 %v4795_v9  ;;  %v4946_v15 = vunpack.i.h.bf16 %v4944_v60  ;;  %v4945_v53 = vunpack.i.l.bf16 %v4944_v60  ;;  %v3762_v54 = vmax.f32 %v3669_v28, %v3709_v0  ;;  %4280 = vmatpush.msrb.mxu1 %v4815_v16  ;;  %v4789_v9 = vld [vmem:[%s7744_s5 + $0x3b0] sm:$0xff]  ;;  %v4849_v16 = vld [vmem:[%s7744_s5 + $0x588] sm:$0xff] }
 0x494   :  { %4296 = vmatpush.msrb.mxu2 %v4835_v41  ;;  %4782 = vmatmul.msk.f32.vlgmr.msra.gmra.mxu3 %vm3726_vm8, %v4029_v51  ;;  %v4854_v41 = vld [vmem:[%s7744_s5 + $0x5b0] sm:$0xff]  ;;  %v4787_v51 = vld [vmem:[%s7744_s5 + $0x3a0] sm:$0xff] }
 0x495   :  { %v3738_v42 = vsel %vm3726_vm8, %v4946_v15, %v3725_v50  ;;  %v3731_v25 = vsel %vm3726_vm8, %v4941_v49, %v4945_v53  ;;  %v3737_v28 = vsel %vm3726_vm8, %v4936_v4, %v4946_v15  ;;  %v3732_v17 = vsel %vm3726_vm8, %v4945_v53, %v3709_v0  ;;  %4229 = vmatpush.msrb.mxu3 %v4794_v57  ;;  %v4788_v4 = vld [vmem:[%s7744_s5 + $0x3a8] sm:$0xff] }
 0x496   :  { %v3769_v10 = vmax.f32 %v3676_v38, %v3738_v42  ;;  %v3760_v47 = vmax.f32 %v3667_v11, %v3731_v25  ;;  %v3768_v37 = vmax.f32 %v3675_v7, %v3737_v28  ;;  %4091 = vmatmul.f32.vlgmr.msra.gmra.mxu2 %v4027_v19  ;;  %v3761_v34 = vmax.f32 %v3668_v8, %v3732_v17  ;;  %v4792_v38 = vld [vmem:[%s7744_s5 + $0x3c8] sm:$0xff]  ;;  %v4895_v8 = vld [vmem:[%s7744_s5 + $0x6f8] sm:$0xff]  ;;  %v4852_v19 = vld [vmem:[%s7744_s5 + $0x5a0] sm:$0xff] }
 0x497   :  { %v4126_v7 = vrot.slane %v3762_v54, 2  ;;  %4297 = vmatpush.msrb.mxu2 %v4834_v12  ;;  %4230 = vmatpush.msrb.mxu3 %v4793_v18  ;;  %v3730_v0 = vsel %vm3726_vm8, %v4940_v20, %v4941_v49  ;;  %v4127_v15 = vrot.slane %v3767_v23, 2  ;;  %v4853_v53 = vld [vmem:[%s7744_s5 + $0x5a8] sm:$0xff]  ;;  %v4891_v49 = vld [vmem:[%s7744_s5 + $0x6d8] sm:$0xff]  ;;  %v4785_v17 = vld [vmem:[%s7744_s5 + $0x390] sm:$0xff] }
 0x498   :  { %v4129_v11 = vrot.slane %v3769_v10, 2  ;;  %v4128_v3 = vrot.slane %v3768_v37, 2  ;;  %v4124_v52 = vrot.slane %v3760_v47, 2  ;;  %v4125_v5 = vrot.slane %v3761_v34, 2  ;;  %4420 = vmatpush.msra.mxu0 %v4887_v56  ;;  %4448 = vmatpush.msra.mxu1 %v4895_v8  ;;  %v4851_v42 = vld [vmem:[%s7744_s5 + $0x598] sm:$0xff]  ;;  %v4881_v25 = vld [vmem:[%s7744_s5 + $0x688] sm:$0xff] }
 0x499   :  { %4298 = vmatpush.msrb.mxu2 %v4833_v27  ;;  %4231 = vmatpush.msrb.mxu3 %v4792_v38  ;;  %v7475_v59 = vmax.f32 %v3762_v54, %v4126_v7  ;;  %v3759_v54 = vmax.f32 %v3666_v30, %v3730_v0  ;;  %v7549_v30 = vmax.f32 %v3767_v23, %v4127_v15  ;;  %v4889_v28 = vld [vmem:[%s7744_s5 + $0x6c8] sm:$0xff]  ;;  %v4783_v27 = vld [vmem:[%s7744_s5 + $0x380] sm:$0xff]  ;;  %v4878_v38 = vld [vmem:[%s7744_s5 + $0x670] sm:$0xff] }
 0x49a   :  { %v7457_v40 = vmax.f32 %v3769_v10, %v4129_v11  ;;  %v7459_v50 = vmax.f32 %v3768_v37, %v4128_v3  ;;  %4421 = vmatpush.msra.mxu0 %v4886_v43  ;;  %v7494_v58 = vmax.f32 %v3760_v47, %v4124_v52  ;;  %4449 = vmatpush.msra.mxu1 %v4894_v13  ;;  %v4880_v10 = vld [vmem:[%s7744_s5 + $0x680] sm:$0xff]  ;;  %v4784_v37 = vld [vmem:[%s7744_s5 + $0x388] sm:$0xff]  ;;  %v4871_v56 = vld [vmem:[%s7744_s5 + $0x638] sm:$0xff] }
 0x49b   :  { %4299 = vmatpush.msrb.mxu2 %v4832_v31  ;;  %4232 = vmatpush.msrb.mxu3 %v4791_v45  ;;  %v7499_v6 = vmax.f32 %v3761_v34, %v4125_v5  ;;  %v4219_v2 = vsel %vm3926_vm9, %v4218_v32, %v7475_v59  ;;  %v4123_v12 = vrot.slane %v3759_v54, 2  ;;  %v4372_v18 = vrot.slane %v7475_v59, 4  ;;  %v4888_v47 = vld [vmem:[%s7744_s5 + $0x6c0] sm:$0xff]  ;;  %v4879_v34 = vld [vmem:[%s7744_s5 + $0x678] sm:$0xff]  ;;  %v4870_v52 = vld [vmem:[%s7744_s5 + $0x630] sm:$0xff] }
 0x49c   :  { %v4214_v44 = vrot.slane %v7459_v50, 7  ;;  %v4216_v29 = vrot.slane %v7457_v40, 7  ;;  %4422 = vmatpush.msra.mxu0 %v4885_v55  ;;  %4450 = vmatpush.msra.mxu1 %v4893_v62  ;;  %v4212_v21 = vrot.slane %v7549_v30, 7  ;;  %v4848_v7 = vld [vmem:[%s7744_s5 + $0x580] sm:$0xff]  ;;  %v4847_v31 = vld [vmem:[%s7744_s5 + $0x578] sm:$0xff]  ;;  %v4846_v45 = vld [vmem:[%s7744_s5 + $0x570] sm:$0xff] }
 0x49d   :  { %4300 = vmatpush.msrb.mxu2 %v4831_v24  ;;  %4233 = vmatpush.msrb.mxu3 %v4790_v39  ;;  %v7587_v11 = vmax.f32 %v3759_v54, %v4123_v12  ;;  %v4374_v3 = vsel %vm3926_vm9, %v4373_v36, %v4372_v18  ;;  %v4876_v43 = vld [vmem:[%s7744_s5 + $0x660] sm:$0xff]  ;;  %v4845_v5 = vld [vmem:[%s7744_s5 + $0x568] sm:$0xff]  ;;  %v4875_v13 = vld [vmem:[%s7744_s5 + $0x658] sm:$0xff]  ;;  %v4370_v55 = vrot.slane %v7457_v40, 3  ;;  %v4369_v62 = vrot.slane %v7499_v6, 4 }
 0x49e   :  { %v4215_v60 = vsel %vm3926_vm9, %v4214_v44, %v7494_v58  ;;  %4839 = vmatmul.msk.f32.vlgmr.msrb.gmra.mxu2 %vm3726_vm8, %v4219_v2  ;;  %v4217_v57 = vsel %vm3926_vm9, %v4216_v29, %v7499_v6  ;;  %4423 = vmatpush.msra.mxu0 %v4884_v22  ;;  %v4868_v24 = vld [vmem:[%s7744_s5 + $0x620] sm:$0xff]  ;;  %v4874_v59 = vld [vmem:[%s7744_s5 + $0x650] sm:$0xff]  ;;  %v4867_v39 = vld [vmem:[%s7744_s5 + $0x618] sm:$0xff]  ;;  %v4367_v54 = vrot.slane %v7459_v50, 3 }
 0x49f   :  { %4380 = vmatpush.msra.mxu2 %v4855_v63  ;;  %4234 = vmatpush.msrb.mxu3 %v4789_v9  ;;  %v4213_v8 = vsel %vm3926_vm9, %v4212_v21, %v7587_v11  ;;  %v4844_v44 = vld [vmem:[%s7744_s5 + $0x560] sm:$0xff]  ;;  %v4843_v63 = vld [vmem:[%s7744_s5 + $0x558] sm:$0xff]  ;;  %v4873_v20 = vld [vmem:[%s7744_s5 + $0x648] sm:$0xff]  ;;  %v4371_v22 = vsel %vm3926_vm9, %v4370_v55, %v4369_v62 }
 0x4a0   :  { %4451 = vmatpush.msra.mxu1 %v4892_v35  ;;  %4261 = vmatmul.f32.vlgmr.msrb.gmra.mxu0 %v4215_v60  ;;  %v4866_v29 = vld [vmem:[%s7744_s5 + $0x610] sm:$0xff]  ;;  %v4872_v23 = vld [vmem:[%s7744_s5 + $0x640] sm:$0xff]  ;;  %v4865_v9 = vld [vmem:[%s7744_s5 + $0x608] sm:$0xff]  ;;  %v4363_v35 = vrot.slane %v7587_v11, 4 }
 0x4a1   :  { %4381 = vmatpush.msra.mxu2 %v4854_v41  ;;  %4281 = vmatmul.f32.vlgmr.msrb.gmra.mxu1 %v4217_v57  ;;  %v4842_v32 = vld [vmem:[%s7744_s5 + $0x550] sm:$0xff]  ;;  %v4841_v40 = vld [vmem:[%s7744_s5 + $0x548] sm:$0xff]  ;;  %v4864_v6 = vld [vmem:[%s7744_s5 + $0x600] sm:$0xff]  ;;  %v4364_v41 = vrot.slane %v7549_v30, 3 }
 0x4a2   :  { %4235 = vmatpush.msrb.mxu3 %v4788_v4  ;;  %4424 = vmatpush.msra.mxu0 %v4883_v33  ;;  %v4840_v2 = vld [vmem:[%s7744_s5 + $0x540] sm:$0xff]  ;;  %v4863_v60 = vld [vmem:[%s7744_s5 + $0x5f8] sm:$0xff]  ;;  %v4862_v57 = vld [vmem:[%s7744_s5 + $0x5f0] sm:$0xff] }
 0x4a3   :  { %4382 = vmatpush.msra.mxu2 %v4853_v53  ;;  %4452 = vmatpush.msra.mxu1 %v4891_v49  ;;  %v4365_v0 = vsel %vm3926_vm9, %v4364_v41, %v4363_v35  ;;  %v4861_v4 = vld [vmem:[%s7744_s5 + $0x5e8] sm:$0xff]  ;;  %v4860_v15 = vld [vmem:[%s7744_s5 + $0x5e0] sm:$0xff]  ;;  %v4859_v53 = vld [vmem:[%s7744_s5 + $0x5d8] sm:$0xff] }
 0x4a4   :  { %4236 = vmatpush.msrb.mxu3 %v4787_v51  ;;  %4425 = vmatpush.msra.mxu0 %v4882_v46  ;;  %v4858_v33 = vld [vmem:[%s7744_s5 + $0x5d0] sm:$0xff]  ;;  %v4857_v49 = vld [vmem:[%s7744_s5 + $0x5c8] sm:$0xff]  ;;  %v4366_v51 = vrot.slane %v7494_v58, 4  ;;  %v4533_v58 = vld [vmem:[%s7750_s11 + $0x18] sm:$0xff] }
 0x4a5   :  { %4383 = vmatpush.msra.mxu2 %v4852_v19  ;;  %4453 = vmatpush.msra.mxu1 %v4890_v14  ;;  %v4856_v19 = vld [vmem:[%s7744_s5 + $0x5c0] sm:$0xff]  ;;  %v4470_v50 = vld [vmem:[%s7746_s7 + $0x18] sm:$0xff]  ;;  %v4531_v12 = vld [vmem:[%s7750_s11 + $0x8] sm:$0xff] }
 0x4a6   :  { %4237 = vmatpush.msrb.mxu3 %v4786_v48  ;;  %4426 = vmatpush.msra.mxu0 %v4881_v25  ;;  %v4368_v46 = vsel %vm3926_vm9, %v4367_v54, %v4366_v51  ;;  %v4532_v25 = vld [vmem:[%s7750_s11 + $0x10] sm:$0xff]  ;;  %v4468_v18 = vld [vmem:[%s7746_s7 + $0x8] sm:$0xff]  ;;  %v4467_v36 = vld [vmem:[%s7746_s7] sm:$0xff] }
 0x4a7   :  { %4384 = vmatpush.msra.mxu2 %v4851_v42  ;;  %4454 = vmatpush.msra.mxu1 %v4889_v28  ;;  %v4469_v28 = vld [vmem:[%s7746_s7 + $0x10] sm:$0xff]  ;;  %v4501_v62 = vld [vmem:[%s7748_s9 + $0x8] sm:$0xff] }
 0x4a8   :  { %4238 = vmatpush.msrb.mxu3 %v4785_v17  ;;  %4427 = vmatpush.msra.mxu0 %v4880_v10 }
 0x4a9   :  { %4385 = vmatpush.msra.mxu2 %v4850_v1  ;;  %4455 = vmatpush.msra.mxu1 %v4888_v47 }
 0x4aa   :  { %4239 = vmatpush.msrb.mxu3 %v4784_v37  ;;  %4896 = vmatmul.msk.f32.vlgmr.msra.gmra.mxu1 %vm3726_vm8, %v4374_v3  ;;  %v4530_v37 = vld [vmem:[%s7750_s11] sm:$0xff] }
 0x4ab   :  { %4386 = vmatpush.msra.mxu2 %v4849_v16  ;;  %4428 = vmatpush.msra.mxu0 %v4879_v34 }
 0x4ac   :  { %4240 = vmatpush.msrb.mxu3 %v4783_v27  ;;  %4491 = vmatpush.msrb.mxu1 %v4470_v50 }
 0x4ad   :  { %4387 = vmatpush.msra.mxu2 %v4848_v7  ;;  %4241 = vmatmul.f32.vlgmr.msrb.gmra.mxu3 %v4213_v8 }
 0x4ae   :  { %4429 = vmatpush.msra.mxu0 %v4878_v38  ;;  %4400 = vmatpush.msra.mxu3 %v4871_v56 }
 0x4af   :  { %4388 = vmatpush.msra.mxu2 %v4847_v31  ;;  %4492 = vmatpush.msrb.mxu1 %v4469_v28 }
 0x4b0   :  { %4430 = vmatpush.msra.mxu0 %v4877_v61  ;;  %4401 = vmatpush.msra.mxu3 %v4870_v52 }
 0x4b1   :  { %4389 = vmatpush.msra.mxu2 %v4846_v45  ;;  %4493 = vmatpush.msrb.mxu1 %v4468_v18 }
 0x4b2   :  { %4431 = vmatpush.msra.mxu0 %v4876_v43  ;;  %4402 = vmatpush.msra.mxu3 %v4869_v26 }
 0x4b3   :  { %4390 = vmatpush.msra.mxu2 %v4845_v5  ;;  %4494 = vmatpush.msrb.mxu1 %v4467_v36 }
 0x4b4   :  { %4432 = vmatpush.msra.mxu0 %v4875_v13  ;;  %4403 = vmatpush.msra.mxu3 %v4868_v24 }
 0x4b5   :  { %4391 = vmatpush.msra.mxu2 %v4844_v44 }
 0x4b6   :  { %4433 = vmatpush.msra.mxu0 %v4874_v59  ;;  %4404 = vmatpush.msra.mxu3 %v4867_v39 }
 0x4b7   :  { %4392 = vmatpush.msra.mxu2 %v4843_v63  ;;  %v4948_v63 = vld [vmem:[#allocation12] ss:$0 sm:$0xff] }
 0x4b8   :  { %4434 = vmatpush.msra.mxu0 %v4873_v20  ;;  %4405 = vmatpush.msra.mxu3 %v4866_v29 }
 0x4b9   :  { %4393 = vmatpush.msra.mxu2 %v4842_v32  ;;  %v4560_v32 = vld [vmem:[%s7752_s13 + $0x8] sm:$0xff] }
 0x4ba   :  { %4435 = vmatpush.msra.mxu0 %v4872_v23  ;;  %4406 = vmatpush.msra.mxu3 %v4865_v9  ;;  %v4500_v23 = vld [vmem:[%s7748_s9] sm:$0xff]  ;;  %s5210_s9 = smov [#allocation18]  }
 0x4bb   :  { %4436 = vmatmul.f32.vlgmr.msra.gmra.mxu0 %v4371_v22  ;;  %4394 = vmatpush.msra.mxu2 %v4841_v40  ;;  %v4559_v9 = vld [vmem:[%s7752_s13] sm:$0xff]  ;;  %v4949_v40 = vld [vmem:[#allocation13] ss:$0 sm:$0xff]  ;;  %s4613_s13 = sshll.u32 %s5210_s9, 4  ;;  %s4614_s13 = int_to_ptr.vmem [resolvable:$true] %s4613_s13 }
 0x4bc   :  { %4407 = vmatpush.msra.mxu3 %v4864_v6  ;;  %4582 = vmatpush.msra.mxu1 %v4560_v32 }
 0x4bd   :  { %4395 = vmatpush.msra.mxu2 %v4840_v2  ;;  %v4950_v2 = vld [vmem:[#allocation15] ss:$0 sm:$0xff] }
 0x4be   :  { %4396 = vmatmul.f32.vlgmr.msra.gmra.mxu2 %v4365_v0  ;;  %4408 = vmatpush.msra.mxu3 %v4863_v60 }
 0x4bf   :  { %4524 = vmatpush.msrb.mxu2 %v4501_v62  ;;  %4583 = vmatpush.msra.mxu1 %v4559_v9 }
 0x4c0   :  { %4409 = vmatpush.msra.mxu3 %v4862_v57  ;;  %v5208_v57 = vmov 0  }
 0x4c1   :  { %4525 = vmatpush.msrb.mxu2 %v4500_v23  ;;  %4947 = vset.pattern.permute.xlu0 %v5208_v57 }
 0x4c2   :  { %4410 = vmatpush.msra.mxu3 %v4861_v4  ;;  %v4951_v4 = vld [vmem:[#allocation3] ss:$0 sm:$0xff] }
 0x4c4   :  { %4411 = vmatpush.msra.mxu3 %v4860_v15  ;;  %v4952_v15 = vld [vmem:[#allocation16] ss:$0 sm:$0xff] }
 0x4c6   :  { %4412 = vmatpush.msra.mxu3 %v4859_v53 }
 0x4c8   :  { %4413 = vmatpush.msra.mxu3 %v4858_v33 }
 0x4ca   :  { %4414 = vmatpush.msra.mxu3 %v4857_v49 }
 0x4cc   :  { %4415 = vmatpush.msra.mxu3 %v4856_v19  ;;  %v5209_v19 = vmov 6.0  }
 0x4cd   :  { %4416 = vmatmul.f32.vlgmr.msra.gmra.mxu3 %v4368_v46  ;;  %4953 = vrcp.f32 %v5209_v19 }
 0x4ce   :  { %4550 = vmatpush.msrb.mxu3 %v4533_v58 }
 0x4d0   :  { %4551 = vmatpush.msrb.mxu3 %v4532_v25 }
 0x4d2   :  { %4552 = vmatpush.msrb.mxu3 %v4531_v12 }
 0x4d3   :  { %v4954_v46 = vpop.eup %4953 }
 0x4d4   :  { %4553 = vmatpush.msrb.mxu3 %v4530_v37  ;;  %vm4597_vm13 = vweird.f32 %v4954_v46 }
 0x4ef   :  { %v3959_v30 = vpop.f32.mrf.mxu0  ;;  %v3979_v42 = vpop.f32.mrf.mxu1 }
 0x4f0   :  { %v3980_v17 = vadd.f32 %v3979_v42, %v3959_v30 }
 0x4f7   :  { %v4052_v16 = vpop.f32.mrf.mxu0  ;;  %v4072_v21 = vpop.f32.mrf.mxu1 }
 0x50f   :  { %v4019_v14 = vpop.f32.mrf.mxu3 }
 0x510   :  { %v3999_v48 = vpop.f32.mrf.mxu2 }
 0x511   :  { %v4000_v47 = vadd.f32 %v3999_v48, %v3980_v17 }
 0x513   :  { %v4020_v34 = vadd.f32 %v4019_v14, %v4000_v47  ;;  %v4593_v14 = vmul.f32 6.0, %v4954_v46 }
 0x515   :  { %v4053_v11 = vadd.f32 %v4052_v16, %v4020_v34  ;;  %v4594_v48 = vsub.f32 1.0, %v4593_v14 }
 0x517   :  { %v4112_v1 = vpop.f32.mrf.mxu3  ;;  %v4073_v8 = vadd.f32 %v4072_v21, %v4053_v11  ;;  %v4595_v30 = vmul.f32 %v4954_v46, %v4594_v48 }
 0x519   :  { %v4092_v10 = vpop.f32.mrf.mxu2  ;;  %v4596_v42 = vadd.f32 %v4954_v46, %v4595_v30 }
 0x51a   :  { %v4093_v61 = vadd.f32 %v4092_v10, %v4073_v8 }
 0x51b   :  { %v4598_v58 = vsel %vm4597_vm13, %v4954_v46, %v4596_v42 }
 0x51c   :  { %v4113_v13 = vadd.f32 %v4112_v1, %v4093_v61 }
 0x51d   :  { %v4262_v3 = vpop.f32.mrf.mxu0 }
 0x51e   :  { %v4282_v56 = vpop.f32.mrf.mxu1 }
 0x521   :  { %v4302_v7 = vpop.f32.mrf.mxu2 }
 0x527   :  { %v4457_v44 = vpop.f32.mrf.mxu1 }
 0x530   :  { %v4242_v27 = vpop.f32.mrf.mxu3 }
 0x531   :  { %v4263_v38 = vadd.f32 %v4262_v3, %v4242_v27 }
 0x533   :  { %v4283_v31 = vadd.f32 %v4282_v56, %v4263_v38 }
 0x535   :  { %v4303_v43 = vadd.f32 %v4302_v7, %v4283_v31 }
 0x537   :  { %v4305_v59 = vadd.f32 %v4303_v43, %v4113_v13 }
 0x538   :  { %v4437_v5 = vpop.f32.mrf.mxu0 }
 0x541   :  { %v4397_v52 = vpop.f32.mrf.mxu2 }
 0x550   :  { %v4417_v45 = vpop.f32.mrf.mxu3 }
 0x551   :  { %v4418_v26 = vadd.f32 %v4417_v45, %v4397_v52 }
 0x553   :  { %v4438_v24 = vadd.f32 %v4437_v5, %v4418_v26 }
 0x555   :  { %v4458_v39 = vadd.f32 %v4457_v44, %v4438_v24 }
 0x557   :  { %v4460_v20 = vadd.f32 %v4458_v39, %v4305_v59 }
 0x559   :  { %v4465_v29 = vadd.f32 %v4948_v63, %v4460_v20 }
 0x55b   :  { %v4466_v55 = vmax.f32 %v4465_v29, 0.0 }
 0x55d   :  { %4897 = vmatmul.msk.f32.vlgmr.msrb.gmra.mxu1 %vm4475_vm10, %v4466_v55  ;;  %4899 = vmatmul.msk.f32.vlgmr.msrb.gmra.mxu3 %vm4475_vm10, %v4466_v55 }
 0x5da   :  { %v4496_v6 = vpop.f32.mrf.mxu1 }
 0x5db   :  { %v4497_v41 = vadd.f32 %v4949_v40, %v4496_v6 }
 0x5dd   :  { %v4499_v22 = vmax.f32 %v4497_v41, 0.0 }
 0x5df   :  { %4898 = vmatmul.msk.f32.vlgmr.msrb.gmra.mxu2 %vm4506_vm11, %v4499_v22 }
 0x5e0   :  { %v4555_v35 = vpop.f32.mrf.mxu3 }
 0x5e1   :  { %v4556_v60 = vadd.f32 %v4950_v2, %v4555_v35 }
 0x5e3   :  { %v4558_v0 = vmax.f32 %v4556_v60, 0.0 }
 0x5e5   :  { %4900 = vmatmul.msk.f32.vlgmr.msra.gmra.mxu1 %vm4506_vm11, %v4558_v0 }
 0x662   :  { %v4527_v53 = vpop.f32.mrf.mxu2  ;;  %v4585_v33 = vpop.f32.mrf.mxu1 }
 0x663   :  { %v4528_v49 = vadd.f32 %v4951_v4, %v4527_v53  ;;  %v4586_v51 = vadd.f32 %v4952_v15, %v4585_v33 }
 0x665   :  { %4603 = vperm.xlu0 %4947, %v4528_v49   ;;  %v4589_v54 = vsel %vm4588_vm12, %v4586_v51, 0.0 }
 0x666   :  { %4590 = vadd.xlane.f32.xlu2 %v4589_v54 }
 0x6d7   :  { %v4604_v17 = vpop.permute.xlu0 %4603 }
 0x6d9   :  { %v4591_v50 = vpop.xlane.xlu2 %4590 }
 0x6da   :  { %v4599_v25 = vmul.f32 %v4598_v58, %v4591_v50 }
 0x6dc   :  { %v4600_v28 = vsub.f32 %v4586_v51, %v4599_v25 }
 0x6de   :  { %v4606_v12 = vadd.f32 %v4604_v17, %v4600_v28 }
 0x6e0   :  { %4607 = vst.msk [vmem:[#allocation18] sm:$0x3] %vm4588_vm12, %v4606_v12 }
 0x6e1   :  { %4618 = dma.vmem_to_hbm [thread:$0]  %s4614_s13, 32, %s4616_s0, [#allocation6]  }
 0x6e2   :  { %5193 = dma.done.wait [#allocation6], 32  }
 0x6e3   :  { %5194 = vsyncadd [#allocation6], 4294967264 }
 0x6e4   :  { %4623 = vsyncpa [#allocation5], 1 }
 0x6e5   :  { %4624 = vsyncpa [#allocation8], 1 }
 0x6e6   :  { %4625 = vsyncpa [#allocation11], 1 }
 0x6e7   :  { %4626 = vsyncpa [#allocation14], 1 }
 0x6e8   :  { %4627 = vsyncpa [#allocation17], 1 }
 0x6e9   :  { %4628 = vsyncpa [#allocation6], 1 }

</bundles_post_ra>
